<compile_context>
chip_gen: v5e
topology: v5e:2x2
jax: 0.10.0
libtpu: 0.0.40
codegen_flags: <defaults>
</compile_context>

<pallas_src>
import functools

import jax
import jax.numpy as jnp
from jax.experimental import pallas as pl
from jax.experimental.pallas import tpu as pltpu

EPS = 1e-5                       # PyTorch BatchNorm2d default
_LANE = 128
_SUBLANE = 8
_VMEM_LIMIT = 32 * 1024 * 1024   # comfortable headroom on v7x (64 MiB physical VMEM)


def _round_up(x, m):
    return ((x + m - 1) // m) * m


# ---------------- in-kernel conv helper (fused im2col) ----------------

def _conv_block(x_ref, w_ref, *, kh, kw, stride, Ho, Wo):
    """Bias-free conv of one padded NHWC image block via kh*kw shifted MXU matmuls.

    x_ref: (1, Hp, Wp, Cin_p) bf16;  w_ref: (kh*kw, Cin_p, Cp) bf16.  Returns (Ho*Wo, Cp) f32.
    """
    x = x_ref[0]                                     # (Hp, Wp, Cin_p)
    cin = x.shape[-1]
    cp = w_ref.shape[-1]
    acc = jnp.zeros((Ho * Wo, cp), jnp.float32)
    for ih in range(kh):                             # static unroll, kh*kw is small
        for iw in range(kw):
            slab = x[ih:ih + (Ho - 1) * stride + 1:stride,
                     iw:iw + (Wo - 1) * stride + 1:stride, :]   # (Ho, Wo, Cin_p), static slice
            acc = acc + jnp.dot(slab.reshape(Ho * Wo, cin),
                                w_ref[ih * kw + iw],
                                preferred_element_type=jnp.float32)
    return acc


# ---------------- Pallas kernels ----------------

def _conv_stats_kernel(x_ref, w_ref, psum_ref, psq_ref, *, kh, kw, stride, Ho, Wo):
    """Pass 1 (stats only): per-grid-step partial channel sums / sums-of-squares of the
    bias-free conv output.  Per-step partial outputs keep the grid axis 'parallel'."""
    cout = psum_ref.shape[-1]
    z = _conv_block(x_ref, w_ref, kh=kh, kw=kw, stride=stride, Ho=Ho, Wo=Wo)[:, :cout]
    colsum = jnp.sum(z, axis=0, keepdims=True)                 # (1, Cout)
    colsq = jnp.sum(z * z, axis=0, keepdims=True)              # (1, Cout)
    psum_ref[...] = jnp.broadcast_to(colsum, psum_ref.shape)   # replicated across 8 sublanes
    psq_ref[...] = jnp.broadcast_to(colsq, psq_ref.shape)


def _conv_bn_relu_kernel(x_ref, w_ref, scale_ref, shift_ref, out_ref, *, kh, kw, stride, Ho, Wo):
    """Pass 2: recompute the conv and stream y = max(z*scale + shift, 0) to NHWC output."""
    cout = out_ref.shape[-1]
    z = _conv_block(x_ref, w_ref, kh=kh, kw=kw, stride=stride, Ho=Ho, Wo=Wo)[:, :cout]
    y = jnp.maximum(z * scale_ref[...] + shift_ref[...], 0.0)
    out_ref[0] = y.reshape(Ho, Wo, cout).astype(out_ref.dtype)


# ---------------- per-layer wrapper (NHWC in, NHWC out) ----------------

def conv_bn_relu_pallas(x, w, b, gamma, beta, *, stride, padding):
    """x: (N, H, W, Cin) NHWC -> (N, Ho, Wo, Cout) f32 NHWC.  Conv2d + BatchNorm2d(train) + ReLU."""
    del b  # a conv bias preceding a train-mode BatchNorm cancels exactly (the mean absorbs it)
    N, H, W, Cin = x.shape
    Cout, Cin_w, kh, kw = w.shape
    assert Cin_w == Cin
    s, p = stride, padding
    Ho = (H + 2 * p - kh) // s + 1
    Wo = (W + 2 * p - kw) // s + 1
    Hp, Wp = H + 2 * p, W + 2 * p
    Cin_p = _round_up(Cin, _SUBLANE)   # sublane-aligned contraction dim (zero channels are inert)
    Cp = _round_up(Cout, _LANE)        # lane-dense MXU output width (weights only; HBM stays Cout)
    M = N * Ho * Wo

    # glue: spatial zero-pad + Cin pad + bf16 cast -> one small fused XLA op on the raw input
    xp = jnp.pad(x.astype(jnp.bfloat16), ((0, 0), (p, p), (p, p), (0, Cin_p - Cin)))

    # tap matrices: t = ih*kw + iw -> w[:, :, ih, iw].T, zero-padded to (Cin_p, Cp), bf16
    wt = jnp.transpose(w.astype(jnp.float32), (2, 3, 1, 0)).reshape(kh * kw, Cin, Cout)
    wt = jnp.pad(wt, ((0, 0), (0, Cin_p - Cin), (0, Cp - Cout))).astype(jnp.bfloat16)

    grid = (N,)     # one padded image per step; >= 2 steps -> both v7x TensorCores get work
    cparams = pltpu.CompilerParams(
        dimension_semantics=("parallel",),
        vmem_limit_bytes=_VMEM_LIMIT)

    x_spec = pl.BlockSpec((1, Hp, Wp, Cin_p), lambda n: (n, 0, 0, 0))
    w_spec = pl.BlockSpec((kh * kw, Cin_p, Cp), lambda n: (0, 0, 0))
    stat_spec = pl.BlockSpec((1, _SUBLANE, Cout), lambda n: (n, 0, 0))

    # ---- pass 1: statistics only (no conv output written to HBM) ----
    psum, psq = pl.pallas_call(
        functools.partial(_conv_stats_kernel, kh=kh, kw=kw, stride=s, Ho=Ho, Wo=Wo),
        grid=grid,
        in_specs=[x_spec, w_spec],
        out_specs=[stat_spec, stat_spec],
        out_shape=[jax.ShapeDtypeStruct((N, _SUBLANE, Cout), jnp.float32),
                   jax.ShapeDtypeStruct((N, _SUBLANE, Cout), jnp.float32)],
        compiler_params=cparams,
    )(xp, wt)

    # ---- finalize BN statistics once (tiny): biased batch variance, train-mode BatchNorm ----
    zsum = jnp.sum(psum[:, 0, :], axis=0)                      # (Cout,)
    zsq = jnp.sum(psq[:, 0, :], axis=0)
    mean = zsum / M
    var = jnp.maximum(zsq / M - mean * mean, 0.0)              # bias-free z => well-conditioned
    inv = jax.lax.rsqrt(var + EPS)
    scale_v = gamma.astype(jnp.float32) * inv
    shift_v = beta.astype(jnp.float32) - mean * scale_v        # conv bias already folded away
    scale_row = scale_v.reshape(1, Cout)
    shift_row = shift_v.reshape(1, Cout)

    # ---- pass 2: conv (recomputed) + scale/shift + ReLU, streamed to NHWC output ----
    y = pl.pallas_call(
        functools.partial(_conv_bn_relu_kernel, kh=kh, kw=kw, stride=s, Ho=Ho, Wo=Wo),
        grid=grid,
        in_specs=[x_spec, w_spec,
                  pl.BlockSpec((1, Cout), lambda n: (0, 0)),
                  pl.BlockSpec((1, Cout), lambda n: (0, 0))],
        out_specs=pl.BlockSpec((1, Ho, Wo, Cout), lambda n: (n, 0, 0, 0)),
        out_shape=jax.ShapeDtypeStruct((N, Ho, Wo, Cout), jnp.float32),
        compiler_params=cparams,
    )(xp, wt, scale_row, shift_row)

    return y            # stays NHWC for the next layer


# ---------------- ConvLayer module ----------------

def init_conv_layer_params(key, in_channels, out_channels, kernel_sizes):
    assert len(in_channels) == len(out_channels) == len(kernel_sizes)
    params = []
    for ic, oc, k in zip(in_channels, out_channels, kernel_sizes):
        key, kw_, kb_ = jax.random.split(key, 3)
        fan_in = ic * k * k
        w = jax.random.normal(kw_, (oc, ic, k, k), jnp.float32) / jnp.sqrt(fan_in)
        b = 0.1 * jax.random.normal(kb_, (oc,), jnp.float32)
        gamma = jnp.ones((oc,), jnp.float32)    # PyTorch BatchNorm2d default
        beta = jnp.zeros((oc,), jnp.float32)    # PyTorch BatchNorm2d default
        params.append((w, b, gamma, beta))
    return params


def conv_layer_forward(x, params, *, stride, padding):
    """External interface is NCHW (like PyTorch); NHWC is kept between layers internally."""
    x = jnp.transpose(x, (0, 2, 3, 1))                   # NCHW -> NHWC, once at the boundary
    for (w, b, g, bt) in params:
        x = conv_bn_relu_pallas(x, w, b, g, bt, stride=stride, padding=padding)
    return jnp.transpose(x, (0, 3, 1, 2))                # NHWC -> NCHW, once at the boundary


# ---------------- plain-JAX reference (for sanity check) ----------------

def reference_forward(x, params, *, stride, padding):
    for (w, b, g, bt) in params:
        y = jax.lax.conv_general_dilated(
            x, w, window_strides=(stride, stride),
            padding=[(padding, padding), (padding, padding)],
            dimension_numbers=("NCHW", "OIHW", "NCHW"))
        y = y + b[None, :, None, None]
        mean = jnp.mean(y, axis=(0, 2, 3), keepdims=True)
        var = jnp.mean((y - mean) ** 2, axis=(0, 2, 3), keepdims=True)   # biased (train mode)
        y = (y - mean) * jax.lax.rsqrt(var + EPS)
        y = y * g[None, :, None, None] + bt[None, :, None, None]
        x = jnp.maximum(y, 0.0)
    return x


if __name__ == "__main__":
    key = jax.random.PRNGKey(0)
    kx, kp = jax.random.split(key)

    # ConvLayer(in_channels=[4, 8], out_channels=[8, 16], kernel_sizes=[3, 3], padding=1, stride=1)
    in_channels = [4, 8]
    out_channels = [8, 16]
    kernel_sizes = [3, 3]
    padding = 1
    stride = 1

    x = jax.random.normal(kx, (2, 4, 16, 16), jnp.float32)   # NCHW, like PyTorch
    params = init_conv_layer_params(kp, in_channels, out_channels, kernel_sizes)

    fwd = jax.jit(functools.partial(conv_layer_forward, stride=stride, padding=padding))
    out = jax.block_until_ready(fwd(x, params))

    ref = jax.block_until_ready(reference_forward(x, params, stride=stride, padding=padding))
    assert out.shape == ref.shape == (2, 16, 16, 16)
    err = float(jnp.max(jnp.abs(out - ref)))
    # bf16 MXU inputs vs. a pure-f32 reference -> relaxed tolerance (per review).
    assert jnp.allclose(out, ref, atol=5e-2, rtol=5e-2), err
    print("KERNEL_OK")
</pallas_src>

<mosaic_0001>
module attributes {stable_mosaic.version = 11 : i64} {
  func.func @_conv_stats_kernel(%arg0: i32, %arg1: memref<1x18x18x8xbf16, #tpu.memory_space<vmem>>, %arg2: memref<9x8x128xbf16, #tpu.memory_space<vmem>>, %arg3: memref<1x8x8xf32, #tpu.memory_space<vmem>>, %arg4: memref<1x8x8xf32, #tpu.memory_space<vmem>>) attributes {dimension_semantics = [#tpu.dimension_semantics<parallel>], iteration_bounds = array<i64: 2>, scalar_prefetch = 0 : i64, scratch_operands = 0 : i64, tpu.core_type = #tpu.core_type<tc>, window_params = [{transform_indices = @transform_0, window_bounds = array<i64: 1, 18, 18, 8>}, {pipeline_mode = #tpu.pipeline_mode<synchronous>, transform_indices = @transform_1, window_bounds = array<i64: 9, 8, 128>}, {transform_indices = @transform_2, window_bounds = array<i64: 1, 8, 8>}, {transform_indices = @transform_3, window_bounds = array<i64: 1, 8, 8>}]} {
    %c0 = arith.constant 0 : index
    %c0_0 = arith.constant 0 : index
    %c0_1 = arith.constant 0 : index
    %c0_2 = arith.constant 0 : index
    %0 = vector.load %arg1[%c0, %c0_0, %c0_1, %c0_2] : memref<1x18x18x8xbf16, #tpu.memory_space<vmem>>, vector<1x18x18x8xbf16>
    %1 = vector.shape_cast %0 : vector<1x18x18x8xbf16> to vector<18x18x8xbf16>
    %cst = arith.constant 0.000000e+00 : f32
    %2 = vector.broadcast %cst : f32 to vector<256x128xf32>
    %3 = vector.extract_strided_slice %1 {offsets = [0, 0, 0], sizes = [16, 16, 8], strides = [1, 1, 1]} : vector<18x18x8xbf16> to vector<16x16x8xbf16>
    %4 = vector.shape_cast %3 : vector<16x16x8xbf16> to vector<256x8xbf16>
    %c0_3 = arith.constant 0 : index
    %c0_4 = arith.constant 0 : index
    %c0_5 = arith.constant 0 : index
    %5 = vector.load %arg2[%c0_3, %c0_4, %c0_5] : memref<9x8x128xbf16, #tpu.memory_space<vmem>>, vector<1x8x128xbf16>
    %6 = vector.shape_cast %5 : vector<1x8x128xbf16> to vector<8x128xbf16>
    %cst_6 = arith.constant dense<0.000000e+00> : vector<256x128xf32>
    %7 = tpu.matmul %4, %6, %cst_6 {dimension_numbers = #tpu.dot_dimension_numbers<[1], [0], [0], [1], [0, 0, 1, 1], [], []>} : vector<256x8xbf16>, vector<8x128xbf16>, vector<256x128xf32> -> vector<256x128xf32>
    %8 = arith.addf %2, %7 : vector<256x128xf32>
    %9 = vector.extract_strided_slice %1 {offsets = [0, 1, 0], sizes = [16, 16, 8], strides = [1, 1, 1]} : vector<18x18x8xbf16> to vector<16x16x8xbf16>
    %10 = vector.shape_cast %9 : vector<16x16x8xbf16> to vector<256x8xbf16>
    %c1 = arith.constant 1 : index
    %c0_7 = arith.constant 0 : index
    %c0_8 = arith.constant 0 : index
    %11 = vector.load %arg2[%c1, %c0_7, %c0_8] : memref<9x8x128xbf16, #tpu.memory_space<vmem>>, vector<1x8x128xbf16>
    %12 = vector.shape_cast %11 : vector<1x8x128xbf16> to vector<8x128xbf16>
    %cst_9 = arith.constant dense<0.000000e+00> : vector<256x128xf32>
    %13 = tpu.matmul %10, %12, %cst_9 {dimension_numbers = #tpu.dot_dimension_numbers<[1], [0], [0], [1], [0, 0, 1, 1], [], []>} : vector<256x8xbf16>, vector<8x128xbf16>, vector<256x128xf32> -> vector<256x128xf32>
    %14 = arith.addf %8, %13 : vector<256x128xf32>
    %15 = vector.extract_strided_slice %1 {offsets = [0, 2, 0], sizes = [16, 16, 8], strides = [1, 1, 1]} : vector<18x18x8xbf16> to vector<16x16x8xbf16>
    %16 = vector.shape_cast %15 : vector<16x16x8xbf16> to vector<256x8xbf16>
    %c2 = arith.constant 2 : index
    %c0_10 = arith.constant 0 : index
    %c0_11 = arith.constant 0 : index
    %17 = vector.load %arg2[%c2, %c0_10, %c0_11] : memref<9x8x128xbf16, #tpu.memory_space<vmem>>, vector<1x8x128xbf16>
    %18 = vector.shape_cast %17 : vector<1x8x128xbf16> to vector<8x128xbf16>
    %cst_12 = arith.constant dense<0.000000e+00> : vector<256x128xf32>
    %19 = tpu.matmul %16, %18, %cst_12 {dimension_numbers = #tpu.dot_dimension_numbers<[1], [0], [0], [1], [0, 0, 1, 1], [], []>} : vector<256x8xbf16>, vector<8x128xbf16>, vector<256x128xf32> -> vector<256x128xf32>
    %20 = arith.addf %14, %19 : vector<256x128xf32>
    %21 = vector.extract_strided_slice %1 {offsets = [1, 0, 0], sizes = [16, 16, 8], strides = [1, 1, 1]} : vector<18x18x8xbf16> to vector<16x16x8xbf16>
    %22 = vector.shape_cast %21 : vector<16x16x8xbf16> to vector<256x8xbf16>
    %c3 = arith.constant 3 : index
    %c0_13 = arith.constant 0 : index
    %c0_14 = arith.constant 0 : index
    %23 = vector.load %arg2[%c3, %c0_13, %c0_14] : memref<9x8x128xbf16, #tpu.memory_space<vmem>>, vector<1x8x128xbf16>
    %24 = vector.shape_cast %23 : vector<1x8x128xbf16> to vector<8x128xbf16>
    %cst_15 = arith.constant dense<0.000000e+00> : vector<256x128xf32>
    %25 = tpu.matmul %22, %24, %cst_15 {dimension_numbers = #tpu.dot_dimension_numbers<[1], [0], [0], [1], [0, 0, 1, 1], [], []>} : vector<256x8xbf16>, vector<8x128xbf16>, vector<256x128xf32> -> vector<256x128xf32>
    %26 = arith.addf %20, %25 : vector<256x128xf32>
    %27 = vector.extract_strided_slice %1 {offsets = [1, 1, 0], sizes = [16, 16, 8], strides = [1, 1, 1]} : vector<18x18x8xbf16> to vector<16x16x8xbf16>
    %28 = vector.shape_cast %27 : vector<16x16x8xbf16> to vector<256x8xbf16>
    %c4 = arith.constant 4 : index
    %c0_16 = arith.constant 0 : index
    %c0_17 = arith.constant 0 : index
    %29 = vector.load %arg2[%c4, %c0_16, %c0_17] : memref<9x8x128xbf16, #tpu.memory_space<vmem>>, vector<1x8x128xbf16>
    %30 = vector.shape_cast %29 : vector<1x8x128xbf16> to vector<8x128xbf16>
    %cst_18 = arith.constant dense<0.000000e+00> : vector<256x128xf32>
    %31 = tpu.matmul %28, %30, %cst_18 {dimension_numbers = #tpu.dot_dimension_numbers<[1], [0], [0], [1], [0, 0, 1, 1], [], []>} : vector<256x8xbf16>, vector<8x128xbf16>, vector<256x128xf32> -> vector<256x128xf32>
    %32 = arith.addf %26, %31 : vector<256x128xf32>
    %33 = vector.extract_strided_slice %1 {offsets = [1, 2, 0], sizes = [16, 16, 8], strides = [1, 1, 1]} : vector<18x18x8xbf16> to vector<16x16x8xbf16>
    %34 = vector.shape_cast %33 : vector<16x16x8xbf16> to vector<256x8xbf16>
    %c5 = arith.constant 5 : index
    %c0_19 = arith.constant 0 : index
    %c0_20 = arith.constant 0 : index
    %35 = vector.load %arg2[%c5, %c0_19, %c0_20] : memref<9x8x128xbf16, #tpu.memory_space<vmem>>, vector<1x8x128xbf16>
    %36 = vector.shape_cast %35 : vector<1x8x128xbf16> to vector<8x128xbf16>
    %cst_21 = arith.constant dense<0.000000e+00> : vector<256x128xf32>
    %37 = tpu.matmul %34, %36, %cst_21 {dimension_numbers = #tpu.dot_dimension_numbers<[1], [0], [0], [1], [0, 0, 1, 1], [], []>} : vector<256x8xbf16>, vector<8x128xbf16>, vector<256x128xf32> -> vector<256x128xf32>
    %38 = arith.addf %32, %37 : vector<256x128xf32>
    %39 = vector.extract_strided_slice %1 {offsets = [2, 0, 0], sizes = [16, 16, 8], strides = [1, 1, 1]} : vector<18x18x8xbf16> to vector<16x16x8xbf16>
    %40 = vector.shape_cast %39 : vector<16x16x8xbf16> to vector<256x8xbf16>
    %c6 = arith.constant 6 : index
    %c0_22 = arith.constant 0 : index
    %c0_23 = arith.constant 0 : index
    %41 = vector.load %arg2[%c6, %c0_22, %c0_23] : memref<9x8x128xbf16, #tpu.memory_space<vmem>>, vector<1x8x128xbf16>
    %42 = vector.shape_cast %41 : vector<1x8x128xbf16> to vector<8x128xbf16>
    %cst_24 = arith.constant dense<0.000000e+00> : vector<256x128xf32>
    %43 = tpu.matmul %40, %42, %cst_24 {dimension_numbers = #tpu.dot_dimension_numbers<[1], [0], [0], [1], [0, 0, 1, 1], [], []>} : vector<256x8xbf16>, vector<8x128xbf16>, vector<256x128xf32> -> vector<256x128xf32>
    %44 = arith.addf %38, %43 : vector<256x128xf32>
    %45 = vector.extract_strided_slice %1 {offsets = [2, 1, 0], sizes = [16, 16, 8], strides = [1, 1, 1]} : vector<18x18x8xbf16> to vector<16x16x8xbf16>
    %46 = vector.shape_cast %45 : vector<16x16x8xbf16> to vector<256x8xbf16>
    %c7 = arith.constant 7 : index
    %c0_25 = arith.constant 0 : index
    %c0_26 = arith.constant 0 : index
    %47 = vector.load %arg2[%c7, %c0_25, %c0_26] : memref<9x8x128xbf16, #tpu.memory_space<vmem>>, vector<1x8x128xbf16>
    %48 = vector.shape_cast %47 : vector<1x8x128xbf16> to vector<8x128xbf16>
    %cst_27 = arith.constant dense<0.000000e+00> : vector<256x128xf32>
    %49 = tpu.matmul %46, %48, %cst_27 {dimension_numbers = #tpu.dot_dimension_numbers<[1], [0], [0], [1], [0, 0, 1, 1], [], []>} : vector<256x8xbf16>, vector<8x128xbf16>, vector<256x128xf32> -> vector<256x128xf32>
    %50 = arith.addf %44, %49 : vector<256x128xf32>
    %51 = vector.extract_strided_slice %1 {offsets = [2, 2, 0], sizes = [16, 16, 8], strides = [1, 1, 1]} : vector<18x18x8xbf16> to vector<16x16x8xbf16>
    %52 = vector.shape_cast %51 : vector<16x16x8xbf16> to vector<256x8xbf16>
    %c8 = arith.constant 8 : index
    %c0_28 = arith.constant 0 : index
    %c0_29 = arith.constant 0 : index
    %53 = vector.load %arg2[%c8, %c0_28, %c0_29] : memref<9x8x128xbf16, #tpu.memory_space<vmem>>, vector<1x8x128xbf16>
    %54 = vector.shape_cast %53 : vector<1x8x128xbf16> to vector<8x128xbf16>
    %cst_30 = arith.constant dense<0.000000e+00> : vector<256x128xf32>
    %55 = tpu.matmul %52, %54, %cst_30 {dimension_numbers = #tpu.dot_dimension_numbers<[1], [0], [0], [1], [0, 0, 1, 1], [], []>} : vector<256x8xbf16>, vector<8x128xbf16>, vector<256x128xf32> -> vector<256x128xf32>
    %56 = arith.addf %50, %55 : vector<256x128xf32>
    %57 = vector.extract_strided_slice %56 {offsets = [0, 0], sizes = [256, 8], strides = [1, 1]} : vector<256x128xf32> to vector<256x8xf32>
    %cst_31 = arith.constant dense<0.000000e+00> : vector<8xf32>
    %58 = vector.multi_reduction <add>, %57, %cst_31 [0] : vector<256x8xf32> to vector<8xf32>
    %59 = vector.shape_cast %58 : vector<8xf32> to vector<1x8xf32>
    %60 = arith.mulf %57, %57 : vector<256x8xf32>
    %cst_32 = arith.constant dense<0.000000e+00> : vector<8xf32>
    %61 = vector.multi_reduction <add>, %60, %cst_32 [0] : vector<256x8xf32> to vector<8xf32>
    %62 = vector.shape_cast %61 : vector<8xf32> to vector<1x8xf32>
    %63 = vector.shape_cast %59 : vector<1x8xf32> to vector<1x1x8xf32>
    %64 = vector.broadcast %63 : vector<1x1x8xf32> to vector<1x8x8xf32>
    %c0_33 = arith.constant 0 : index
    %c0_34 = arith.constant 0 : index
    %c0_35 = arith.constant 0 : index
    %65 = vector.load %arg3[%c0_33, %c0_34, %c0_35] : memref<1x8x8xf32, #tpu.memory_space<vmem>>, vector<1x8x8xf32>
    tpu.vector_store %arg3[%c0_33, %c0_34, %c0_35], %64 {strides = array<i32>} : memref<1x8x8xf32, #tpu.memory_space<vmem>>, vector<1x8x8xf32>,
    %66 = vector.shape_cast %62 : vector<1x8xf32> to vector<1x1x8xf32>
    %67 = vector.broadcast %66 : vector<1x1x8xf32> to vector<1x8x8xf32>
    %c0_36 = arith.constant 0 : index
    %c0_37 = arith.constant 0 : index
    %c0_38 = arith.constant 0 : index
    %68 = vector.load %arg4[%c0_36, %c0_37, %c0_38] : memref<1x8x8xf32, #tpu.memory_space<vmem>>, vector<1x8x8xf32>
    tpu.vector_store %arg4[%c0_36, %c0_37, %c0_38], %67 {strides = array<i32>} : memref<1x8x8xf32, #tpu.memory_space<vmem>>, vector<1x8x8xf32>,
    return
  }
  func.func @transform_0(%arg0: i32) -> (i32, i32, i32, i32) {
    %c0_i32 = arith.constant 0 : i32
    %c0_i32_0 = arith.constant 0 : i32
    %c0_i32_1 = arith.constant 0 : i32
    %c0_i32_2 = arith.constant 0 : i32
    return %arg0, %c0_i32, %c0_i32_0, %c0_i32_1 : i32, i32, i32, i32
  }
  func.func @transform_1(%arg0: i32) -> (i32, i32, i32) {
    %c0_i32 = arith.constant 0 : i32
    %c0_i32_0 = arith.constant 0 : i32
    %c0_i32_1 = arith.constant 0 : i32
    %c0_i32_2 = arith.constant 0 : i32
    return %c0_i32, %c0_i32_0, %c0_i32_1 : i32, i32, i32
  }
  func.func @transform_2(%arg0: i32) -> (i32, i32, i32) {
    %c0_i32 = arith.constant 0 : i32
    %c0_i32_0 = arith.constant 0 : i32
    %c0_i32_1 = arith.constant 0 : i32
    return %arg0, %c0_i32, %c0_i32_0 : i32, i32, i32
  }
  func.func @transform_3(%arg0: i32) -> (i32, i32, i32) {
    %c0_i32 = arith.constant 0 : i32
    %c0_i32_0 = arith.constant 0 : i32
    %c0_i32_1 = arith.constant 0 : i32
    return %arg0, %c0_i32, %c0_i32_0 : i32, i32, i32
  }
}

module attributes {stable_mosaic.version = 11 : i64} {
  func.func @_conv_bn_relu_kernel(%arg0: i32, %arg1: memref<1x18x18x8xbf16, #tpu.memory_space<vmem>>, %arg2: memref<9x8x128xbf16, #tpu.memory_space<vmem>>, %arg3: memref<1x8xf32, #tpu.memory_space<vmem>>, %arg4: memref<1x8xf32, #tpu.memory_space<vmem>>, %arg5: memref<1x16x16x8xf32, #tpu.memory_space<vmem>>) attributes {dimension_semantics = [#tpu.dimension_semantics<parallel>], iteration_bounds = array<i64: 2>, scalar_prefetch = 0 : i64, scratch_operands = 0 : i64, tpu.core_type = #tpu.core_type<tc>, window_params = [{transform_indices = @transform_0, window_bounds = array<i64: 1, 18, 18, 8>}, {pipeline_mode = #tpu.pipeline_mode<synchronous>, transform_indices = @transform_1, window_bounds = array<i64: 9, 8, 128>}, {pipeline_mode = #tpu.pipeline_mode<synchronous>, transform_indices = @transform_2, window_bounds = array<i64: 1, 8>}, {pipeline_mode = #tpu.pipeline_mode<synchronous>, transform_indices = @transform_3, window_bounds = array<i64: 1, 8>}, {transform_indices = @transform_4, window_bounds = array<i64: 1, 16, 16, 8>}]} {
    %c0 = arith.constant 0 : index
    %c0_0 = arith.constant 0 : index
    %c0_1 = arith.constant 0 : index
    %c0_2 = arith.constant 0 : index
    %0 = vector.load %arg1[%c0, %c0_0, %c0_1, %c0_2] : memref<1x18x18x8xbf16, #tpu.memory_space<vmem>>, vector<1x18x18x8xbf16>
    %1 = vector.shape_cast %0 : vector<1x18x18x8xbf16> to vector<18x18x8xbf16>
    %cst = arith.constant 0.000000e+00 : f32
    %2 = vector.broadcast %cst : f32 to vector<256x128xf32>
    %3 = vector.extract_strided_slice %1 {offsets = [0, 0, 0], sizes = [16, 16, 8], strides = [1, 1, 1]} : vector<18x18x8xbf16> to vector<16x16x8xbf16>
    %4 = vector.shape_cast %3 : vector<16x16x8xbf16> to vector<256x8xbf16>
    %c0_3 = arith.constant 0 : index
    %c0_4 = arith.constant 0 : index
    %c0_5 = arith.constant 0 : index
    %5 = vector.load %arg2[%c0_3, %c0_4, %c0_5] : memref<9x8x128xbf16, #tpu.memory_space<vmem>>, vector<1x8x128xbf16>
    %6 = vector.shape_cast %5 : vector<1x8x128xbf16> to vector<8x128xbf16>
    %cst_6 = arith.constant dense<0.000000e+00> : vector<256x128xf32>
    %7 = tpu.matmul %4, %6, %cst_6 {dimension_numbers = #tpu.dot_dimension_numbers<[1], [0], [0], [1], [0, 0, 1, 1], [], []>} : vector<256x8xbf16>, vector<8x128xbf16>, vector<256x128xf32> -> vector<256x128xf32>
    %8 = arith.addf %2, %7 : vector<256x128xf32>
    %9 = vector.extract_strided_slice %1 {offsets = [0, 1, 0], sizes = [16, 16, 8], strides = [1, 1, 1]} : vector<18x18x8xbf16> to vector<16x16x8xbf16>
    %10 = vector.shape_cast %9 : vector<16x16x8xbf16> to vector<256x8xbf16>
    %c1 = arith.constant 1 : index
    %c0_7 = arith.constant 0 : index
    %c0_8 = arith.constant 0 : index
    %11 = vector.load %arg2[%c1, %c0_7, %c0_8] : memref<9x8x128xbf16, #tpu.memory_space<vmem>>, vector<1x8x128xbf16>
    %12 = vector.shape_cast %11 : vector<1x8x128xbf16> to vector<8x128xbf16>
    %cst_9 = arith.constant dense<0.000000e+00> : vector<256x128xf32>
    %13 = tpu.matmul %10, %12, %cst_9 {dimension_numbers = #tpu.dot_dimension_numbers<[1], [0], [0], [1], [0, 0, 1, 1], [], []>} : vector<256x8xbf16>, vector<8x128xbf16>, vector<256x128xf32> -> vector<256x128xf32>
    %14 = arith.addf %8, %13 : vector<256x128xf32>
    %15 = vector.extract_strided_slice %1 {offsets = [0, 2, 0], sizes = [16, 16, 8], strides = [1, 1, 1]} : vector<18x18x8xbf16> to vector<16x16x8xbf16>
    %16 = vector.shape_cast %15 : vector<16x16x8xbf16> to vector<256x8xbf16>
    %c2 = arith.constant 2 : index
    %c0_10 = arith.constant 0 : index
    %c0_11 = arith.constant 0 : index
    %17 = vector.load %arg2[%c2, %c0_10, %c0_11] : memref<9x8x128xbf16, #tpu.memory_space<vmem>>, vector<1x8x128xbf16>
    %18 = vector.shape_cast %17 : vector<1x8x128xbf16> to vector<8x128xbf16>
    %cst_12 = arith.constant dense<0.000000e+00> : vector<256x128xf32>
    %19 = tpu.matmul %16, %18, %cst_12 {dimension_numbers = #tpu.dot_dimension_numbers<[1], [0], [0], [1], [0, 0, 1, 1], [], []>} : vector<256x8xbf16>, vector<8x128xbf16>, vector<256x128xf32> -> vector<256x128xf32>
    %20 = arith.addf %14, %19 : vector<256x128xf32>
    %21 = vector.extract_strided_slice %1 {offsets = [1, 0, 0], sizes = [16, 16, 8], strides = [1, 1, 1]} : vector<18x18x8xbf16> to vector<16x16x8xbf16>
    %22 = vector.shape_cast %21 : vector<16x16x8xbf16> to vector<256x8xbf16>
    %c3 = arith.constant 3 : index
    %c0_13 = arith.constant 0 : index
    %c0_14 = arith.constant 0 : index
    %23 = vector.load %arg2[%c3, %c0_13, %c0_14] : memref<9x8x128xbf16, #tpu.memory_space<vmem>>, vector<1x8x128xbf16>
    %24 = vector.shape_cast %23 : vector<1x8x128xbf16> to vector<8x128xbf16>
    %cst_15 = arith.constant dense<0.000000e+00> : vector<256x128xf32>
    %25 = tpu.matmul %22, %24, %cst_15 {dimension_numbers = #tpu.dot_dimension_numbers<[1], [0], [0], [1], [0, 0, 1, 1], [], []>} : vector<256x8xbf16>, vector<8x128xbf16>, vector<256x128xf32> -> vector<256x128xf32>
    %26 = arith.addf %20, %25 : vector<256x128xf32>
    %27 = vector.extract_strided_slice %1 {offsets = [1, 1, 0], sizes = [16, 16, 8], strides = [1, 1, 1]} : vector<18x18x8xbf16> to vector<16x16x8xbf16>
    %28 = vector.shape_cast %27 : vector<16x16x8xbf16> to vector<256x8xbf16>
    %c4 = arith.constant 4 : index
    %c0_16 = arith.constant 0 : index
    %c0_17 = arith.constant 0 : index
    %29 = vector.load %arg2[%c4, %c0_16, %c0_17] : memref<9x8x128xbf16, #tpu.memory_space<vmem>>, vector<1x8x128xbf16>
    %30 = vector.shape_cast %29 : vector<1x8x128xbf16> to vector<8x128xbf16>
    %cst_18 = arith.constant dense<0.000000e+00> : vector<256x128xf32>
    %31 = tpu.matmul %28, %30, %cst_18 {dimension_numbers = #tpu.dot_dimension_numbers<[1], [0], [0], [1], [0, 0, 1, 1], [], []>} : vector<256x8xbf16>, vector<8x128xbf16>, vector<256x128xf32> -> vector<256x128xf32>
    %32 = arith.addf %26, %31 : vector<256x128xf32>
    %33 = vector.extract_strided_slice %1 {offsets = [1, 2, 0], sizes = [16, 16, 8], strides = [1, 1, 1]} : vector<18x18x8xbf16> to vector<16x16x8xbf16>
    %34 = vector.shape_cast %33 : vector<16x16x8xbf16> to vector<256x8xbf16>
    %c5 = arith.constant 5 : index
    %c0_19 = arith.constant 0 : index
    %c0_20 = arith.constant 0 : index
    %35 = vector.load %arg2[%c5, %c0_19, %c0_20] : memref<9x8x128xbf16, #tpu.memory_space<vmem>>, vector<1x8x128xbf16>
    %36 = vector.shape_cast %35 : vector<1x8x128xbf16> to vector<8x128xbf16>
    %cst_21 = arith.constant dense<0.000000e+00> : vector<256x128xf32>
    %37 = tpu.matmul %34, %36, %cst_21 {dimension_numbers = #tpu.dot_dimension_numbers<[1], [0], [0], [1], [0, 0, 1, 1], [], []>} : vector<256x8xbf16>, vector<8x128xbf16>, vector<256x128xf32> -> vector<256x128xf32>
    %38 = arith.addf %32, %37 : vector<256x128xf32>
    %39 = vector.extract_strided_slice %1 {offsets = [2, 0, 0], sizes = [16, 16, 8], strides = [1, 1, 1]} : vector<18x18x8xbf16> to vector<16x16x8xbf16>
    %40 = vector.shape_cast %39 : vector<16x16x8xbf16> to vector<256x8xbf16>
    %c6 = arith.constant 6 : index
    %c0_22 = arith.constant 0 : index
    %c0_23 = arith.constant 0 : index
    %41 = vector.load %arg2[%c6, %c0_22, %c0_23] : memref<9x8x128xbf16, #tpu.memory_space<vmem>>, vector<1x8x128xbf16>
    %42 = vector.shape_cast %41 : vector<1x8x128xbf16> to vector<8x128xbf16>
    %cst_24 = arith.constant dense<0.000000e+00> : vector<256x128xf32>
    %43 = tpu.matmul %40, %42, %cst_24 {dimension_numbers = #tpu.dot_dimension_numbers<[1], [0], [0], [1], [0, 0, 1, 1], [], []>} : vector<256x8xbf16>, vector<8x128xbf16>, vector<256x128xf32> -> vector<256x128xf32>
    %44 = arith.addf %38, %43 : vector<256x128xf32>
    %45 = vector.extract_strided_slice %1 {offsets = [2, 1, 0], sizes = [16, 16, 8], strides = [1, 1, 1]} : vector<18x18x8xbf16> to vector<16x16x8xbf16>
    %46 = vector.shape_cast %45 : vector<16x16x8xbf16> to vector<256x8xbf16>
    %c7 = arith.constant 7 : index
    %c0_25 = arith.constant 0 : index
    %c0_26 = arith.constant 0 : index
    %47 = vector.load %arg2[%c7, %c0_25, %c0_26] : memref<9x8x128xbf16, #tpu.memory_space<vmem>>, vector<1x8x128xbf16>
    %48 = vector.shape_cast %47 : vector<1x8x128xbf16> to vector<8x128xbf16>
    %cst_27 = arith.constant dense<0.000000e+00> : vector<256x128xf32>
    %49 = tpu.matmul %46, %48, %cst_27 {dimension_numbers = #tpu.dot_dimension_numbers<[1], [0], [0], [1], [0, 0, 1, 1], [], []>} : vector<256x8xbf16>, vector<8x128xbf16>, vector<256x128xf32> -> vector<256x128xf32>
    %50 = arith.addf %44, %49 : vector<256x128xf32>
    %51 = vector.extract_strided_slice %1 {offsets = [2, 2, 0], sizes = [16, 16, 8], strides = [1, 1, 1]} : vector<18x18x8xbf16> to vector<16x16x8xbf16>
    %52 = vector.shape_cast %51 : vector<16x16x8xbf16> to vector<256x8xbf16>
    %c8 = arith.constant 8 : index
    %c0_28 = arith.constant 0 : index
    %c0_29 = arith.constant 0 : index
    %53 = vector.load %arg2[%c8, %c0_28, %c0_29] : memref<9x8x128xbf16, #tpu.memory_space<vmem>>, vector<1x8x128xbf16>
    %54 = vector.shape_cast %53 : vector<1x8x128xbf16> to vector<8x128xbf16>
    %cst_30 = arith.constant dense<0.000000e+00> : vector<256x128xf32>
    %55 = tpu.matmul %52, %54, %cst_30 {dimension_numbers = #tpu.dot_dimension_numbers<[1], [0], [0], [1], [0, 0, 1, 1], [], []>} : vector<256x8xbf16>, vector<8x128xbf16>, vector<256x128xf32> -> vector<256x128xf32>
    %56 = arith.addf %50, %55 : vector<256x128xf32>
    %57 = vector.extract_strided_slice %56 {offsets = [0, 0], sizes = [256, 8], strides = [1, 1]} : vector<256x128xf32> to vector<256x8xf32>
    %c0_31 = arith.constant 0 : index
    %c0_32 = arith.constant 0 : index
    %58 = vector.load %arg3[%c0_31, %c0_32] : memref<1x8xf32, #tpu.memory_space<vmem>>, vector<1x8xf32>
    %59 = vector.broadcast %58 : vector<1x8xf32> to vector<256x8xf32>
    %60 = arith.mulf %57, %59 : vector<256x8xf32>
    %c0_33 = arith.constant 0 : index
    %c0_34 = arith.constant 0 : index
    %61 = vector.load %arg4[%c0_33, %c0_34] : memref<1x8xf32, #tpu.memory_space<vmem>>, vector<1x8xf32>
    %62 = vector.broadcast %61 : vector<1x8xf32> to vector<256x8xf32>
    %63 = arith.addf %60, %62 : vector<256x8xf32>
    %cst_35 = arith.constant 0.000000e+00 : f32
    %64 = vector.broadcast %cst_35 : f32 to vector<256x8xf32>
    %65 = arith.maximumf %63, %64 : vector<256x8xf32>
    %66 = vector.shape_cast %65 : vector<256x8xf32> to vector<16x16x8xf32>
    %c0_36 = arith.constant 0 : index
    %c0_37 = arith.constant 0 : index
    %c0_38 = arith.constant 0 : index
    %c0_39 = arith.constant 0 : index
    %67 = vector.load %arg5[%c0_36, %c0_37, %c0_38, %c0_39] : memref<1x16x16x8xf32, #tpu.memory_space<vmem>>, vector<1x16x16x8xf32>
    %68 = vector.shape_cast %67 : vector<1x16x16x8xf32> to vector<16x16x8xf32>
    %69 = vector.shape_cast %66 : vector<16x16x8xf32> to vector<1x16x16x8xf32>
    tpu.vector_store %arg5[%c0_36, %c0_37, %c0_38, %c0_39], %69 {strides = array<i32>} : memref<1x16x16x8xf32, #tpu.memory_space<vmem>>, vector<1x16x16x8xf32>,
    return
  }
  func.func @transform_0(%arg0: i32) -> (i32, i32, i32, i32) {
    %c0_i32 = arith.constant 0 : i32
    %c0_i32_0 = arith.constant 0 : i32
    %c0_i32_1 = arith.constant 0 : i32
    %c0_i32_2 = arith.constant 0 : i32
    return %arg0, %c0_i32, %c0_i32_0, %c0_i32_1 : i32, i32, i32, i32
  }
  func.func @transform_1(%arg0: i32) -> (i32, i32, i32) {
    %c0_i32 = arith.constant 0 : i32
    %c0_i32_0 = arith.constant 0 : i32
    %c0_i32_1 = arith.constant 0 : i32
    %c0_i32_2 = arith.constant 0 : i32
    return %c0_i32, %c0_i32_0, %c0_i32_1 : i32, i32, i32
  }
  func.func @transform_2(%arg0: i32) -> (i32, i32) {
    %c0_i32 = arith.constant 0 : i32
    %c0_i32_0 = arith.constant 0 : i32
    %c0_i32_1 = arith.constant 0 : i32
    return %c0_i32, %c0_i32_0 : i32, i32
  }
  func.func @transform_3(%arg0: i32) -> (i32, i32) {
    %c0_i32 = arith.constant 0 : i32
    %c0_i32_0 = arith.constant 0 : i32
    %c0_i32_1 = arith.constant 0 : i32
    return %c0_i32, %c0_i32_0 : i32, i32
  }
  func.func @transform_4(%arg0: i32) -> (i32, i32, i32, i32) {
    %c0_i32 = arith.constant 0 : i32
    %c0_i32_0 = arith.constant 0 : i32
    %c0_i32_1 = arith.constant 0 : i32
    %c0_i32_2 = arith.constant 0 : i32
    return %arg0, %c0_i32, %c0_i32_0, %c0_i32_1 : i32, i32, i32, i32
  }
}

module attributes {stable_mosaic.version = 11 : i64} {
  func.func @_conv_stats_kernel(%arg0: i32, %arg1: memref<1x18x18x8xbf16, #tpu.memory_space<vmem>>, %arg2: memref<9x8x128xbf16, #tpu.memory_space<vmem>>, %arg3: memref<1x8x16xf32, #tpu.memory_space<vmem>>, %arg4: memref<1x8x16xf32, #tpu.memory_space<vmem>>) attributes {dimension_semantics = [#tpu.dimension_semantics<parallel>], iteration_bounds = array<i64: 2>, scalar_prefetch = 0 : i64, scratch_operands = 0 : i64, tpu.core_type = #tpu.core_type<tc>, window_params = [{transform_indices = @transform_0, window_bounds = array<i64: 1, 18, 18, 8>}, {pipeline_mode = #tpu.pipeline_mode<synchronous>, transform_indices = @transform_1, window_bounds = array<i64: 9, 8, 128>}, {transform_indices = @transform_2, window_bounds = array<i64: 1, 8, 16>}, {transform_indices = @transform_3, window_bounds = array<i64: 1, 8, 16>}]} {
    %c0 = arith.constant 0 : index
    %c0_0 = arith.constant 0 : index
    %c0_1 = arith.constant 0 : index
    %c0_2 = arith.constant 0 : index
    %0 = vector.load %arg1[%c0, %c0_0, %c0_1, %c0_2] : memref<1x18x18x8xbf16, #tpu.memory_space<vmem>>, vector<1x18x18x8xbf16>
    %1 = vector.shape_cast %0 : vector<1x18x18x8xbf16> to vector<18x18x8xbf16>
    %cst = arith.constant 0.000000e+00 : f32
    %2 = vector.broadcast %cst : f32 to vector<256x128xf32>
    %3 = vector.extract_strided_slice %1 {offsets = [0, 0, 0], sizes = [16, 16, 8], strides = [1, 1, 1]} : vector<18x18x8xbf16> to vector<16x16x8xbf16>
    %4 = vector.shape_cast %3 : vector<16x16x8xbf16> to vector<256x8xbf16>
    %c0_3 = arith.constant 0 : index
    %c0_4 = arith.constant 0 : index
    %c0_5 = arith.constant 0 : index
    %5 = vector.load %arg2[%c0_3, %c0_4, %c0_5] : memref<9x8x128xbf16, #tpu.memory_space<vmem>>, vector<1x8x128xbf16>
    %6 = vector.shape_cast %5 : vector<1x8x128xbf16> to vector<8x128xbf16>
    %cst_6 = arith.constant dense<0.000000e+00> : vector<256x128xf32>
    %7 = tpu.matmul %4, %6, %cst_6 {dimension_numbers = #tpu.dot_dimension_numbers<[1], [0], [0], [1], [0, 0, 1, 1], [], []>} : vector<256x8xbf16>, vector<8x128xbf16>, vector<256x128xf32> -> vector<256x128xf32>
    %8 = arith.addf %2, %7 : vector<256x128xf32>
    %9 = vector.extract_strided_slice %1 {offsets = [0, 1, 0], sizes = [16, 16, 8], strides = [1, 1, 1]} : vector<18x18x8xbf16> to vector<16x16x8xbf16>
    %10 = vector.shape_cast %9 : vector<16x16x8xbf16> to vector<256x8xbf16>
    %c1 = arith.constant 1 : index
    %c0_7 = arith.constant 0 : index
    %c0_8 = arith.constant 0 : index
    %11 = vector.load %arg2[%c1, %c0_7, %c0_8] : memref<9x8x128xbf16, #tpu.memory_space<vmem>>, vector<1x8x128xbf16>
    %12 = vector.shape_cast %11 : vector<1x8x128xbf16> to vector<8x128xbf16>
    %cst_9 = arith.constant dense<0.000000e+00> : vector<256x128xf32>
    %13 = tpu.matmul %10, %12, %cst_9 {dimension_numbers = #tpu.dot_dimension_numbers<[1], [0], [0], [1], [0, 0, 1, 1], [], []>} : vector<256x8xbf16>, vector<8x128xbf16>, vector<256x128xf32> -> vector<256x128xf32>
    %14 = arith.addf %8, %13 : vector<256x128xf32>
    %15 = vector.extract_strided_slice %1 {offsets = [0, 2, 0], sizes = [16, 16, 8], strides = [1, 1, 1]} : vector<18x18x8xbf16> to vector<16x16x8xbf16>
    %16 = vector.shape_cast %15 : vector<16x16x8xbf16> to vector<256x8xbf16>
    %c2 = arith.constant 2 : index
    %c0_10 = arith.constant 0 : index
    %c0_11 = arith.constant 0 : index
    %17 = vector.load %arg2[%c2, %c0_10, %c0_11] : memref<9x8x128xbf16, #tpu.memory_space<vmem>>, vector<1x8x128xbf16>
    %18 = vector.shape_cast %17 : vector<1x8x128xbf16> to vector<8x128xbf16>
    %cst_12 = arith.constant dense<0.000000e+00> : vector<256x128xf32>
    %19 = tpu.matmul %16, %18, %cst_12 {dimension_numbers = #tpu.dot_dimension_numbers<[1], [0], [0], [1], [0, 0, 1, 1], [], []>} : vector<256x8xbf16>, vector<8x128xbf16>, vector<256x128xf32> -> vector<256x128xf32>
    %20 = arith.addf %14, %19 : vector<256x128xf32>
    %21 = vector.extract_strided_slice %1 {offsets = [1, 0, 0], sizes = [16, 16, 8], strides = [1, 1, 1]} : vector<18x18x8xbf16> to vector<16x16x8xbf16>
    %22 = vector.shape_cast %21 : vector<16x16x8xbf16> to vector<256x8xbf16>
    %c3 = arith.constant 3 : index
    %c0_13 = arith.constant 0 : index
    %c0_14 = arith.constant 0 : index
    %23 = vector.load %arg2[%c3, %c0_13, %c0_14] : memref<9x8x128xbf16, #tpu.memory_space<vmem>>, vector<1x8x128xbf16>
    %24 = vector.shape_cast %23 : vector<1x8x128xbf16> to vector<8x128xbf16>
    %cst_15 = arith.constant dense<0.000000e+00> : vector<256x128xf32>
    %25 = tpu.matmul %22, %24, %cst_15 {dimension_numbers = #tpu.dot_dimension_numbers<[1], [0], [0], [1], [0, 0, 1, 1], [], []>} : vector<256x8xbf16>, vector<8x128xbf16>, vector<256x128xf32> -> vector<256x128xf32>
    %26 = arith.addf %20, %25 : vector<256x128xf32>
    %27 = vector.extract_strided_slice %1 {offsets = [1, 1, 0], sizes = [16, 16, 8], strides = [1, 1, 1]} : vector<18x18x8xbf16> to vector<16x16x8xbf16>
    %28 = vector.shape_cast %27 : vector<16x16x8xbf16> to vector<256x8xbf16>
    %c4 = arith.constant 4 : index
    %c0_16 = arith.constant 0 : index
    %c0_17 = arith.constant 0 : index
    %29 = vector.load %arg2[%c4, %c0_16, %c0_17] : memref<9x8x128xbf16, #tpu.memory_space<vmem>>, vector<1x8x128xbf16>
    %30 = vector.shape_cast %29 : vector<1x8x128xbf16> to vector<8x128xbf16>
    %cst_18 = arith.constant dense<0.000000e+00> : vector<256x128xf32>
    %31 = tpu.matmul %28, %30, %cst_18 {dimension_numbers = #tpu.dot_dimension_numbers<[1], [0], [0], [1], [0, 0, 1, 1], [], []>} : vector<256x8xbf16>, vector<8x128xbf16>, vector<256x128xf32> -> vector<256x128xf32>
    %32 = arith.addf %26, %31 : vector<256x128xf32>
    %33 = vector.extract_strided_slice %1 {offsets = [1, 2, 0], sizes = [16, 16, 8], strides = [1, 1, 1]} : vector<18x18x8xbf16> to vector<16x16x8xbf16>
    %34 = vector.shape_cast %33 : vector<16x16x8xbf16> to vector<256x8xbf16>
    %c5 = arith.constant 5 : index
    %c0_19 = arith.constant 0 : index
    %c0_20 = arith.constant 0 : index
    %35 = vector.load %arg2[%c5, %c0_19, %c0_20] : memref<9x8x128xbf16, #tpu.memory_space<vmem>>, vector<1x8x128xbf16>
    %36 = vector.shape_cast %35 : vector<1x8x128xbf16> to vector<8x128xbf16>
    %cst_21 = arith.constant dense<0.000000e+00> : vector<256x128xf32>
    %37 = tpu.matmul %34, %36, %cst_21 {dimension_numbers = #tpu.dot_dimension_numbers<[1], [0], [0], [1], [0, 0, 1, 1], [], []>} : vector<256x8xbf16>, vector<8x128xbf16>, vector<256x128xf32> -> vector<256x128xf32>
    %38 = arith.addf %32, %37 : vector<256x128xf32>
    %39 = vector.extract_strided_slice %1 {offsets = [2, 0, 0], sizes = [16, 16, 8], strides = [1, 1, 1]} : vector<18x18x8xbf16> to vector<16x16x8xbf16>
    %40 = vector.shape_cast %39 : vector<16x16x8xbf16> to vector<256x8xbf16>
    %c6 = arith.constant 6 : index
    %c0_22 = arith.constant 0 : index
    %c0_23 = arith.constant 0 : index
    %41 = vector.load %arg2[%c6, %c0_22, %c0_23] : memref<9x8x128xbf16, #tpu.memory_space<vmem>>, vector<1x8x128xbf16>
    %42 = vector.shape_cast %41 : vector<1x8x128xbf16> to vector<8x128xbf16>
    %cst_24 = arith.constant dense<0.000000e+00> : vector<256x128xf32>
    %43 = tpu.matmul %40, %42, %cst_24 {dimension_numbers = #tpu.dot_dimension_numbers<[1], [0], [0], [1], [0, 0, 1, 1], [], []>} : vector<256x8xbf16>, vector<8x128xbf16>, vector<256x128xf32> -> vector<256x128xf32>
    %44 = arith.addf %38, %43 : vector<256x128xf32>
    %45 = vector.extract_strided_slice %1 {offsets = [2, 1, 0], sizes = [16, 16, 8], strides = [1, 1, 1]} : vector<18x18x8xbf16> to vector<16x16x8xbf16>
    %46 = vector.shape_cast %45 : vector<16x16x8xbf16> to vector<256x8xbf16>
    %c7 = arith.constant 7 : index
    %c0_25 = arith.constant 0 : index
    %c0_26 = arith.constant 0 : index
    %47 = vector.load %arg2[%c7, %c0_25, %c0_26] : memref<9x8x128xbf16, #tpu.memory_space<vmem>>, vector<1x8x128xbf16>
    %48 = vector.shape_cast %47 : vector<1x8x128xbf16> to vector<8x128xbf16>
    %cst_27 = arith.constant dense<0.000000e+00> : vector<256x128xf32>
    %49 = tpu.matmul %46, %48, %cst_27 {dimension_numbers = #tpu.dot_dimension_numbers<[1], [0], [0], [1], [0, 0, 1, 1], [], []>} : vector<256x8xbf16>, vector<8x128xbf16>, vector<256x128xf32> -> vector<256x128xf32>
    %50 = arith.addf %44, %49 : vector<256x128xf32>
    %51 = vector.extract_strided_slice %1 {offsets = [2, 2, 0], sizes = [16, 16, 8], strides = [1, 1, 1]} : vector<18x18x8xbf16> to vector<16x16x8xbf16>
    %52 = vector.shape_cast %51 : vector<16x16x8xbf16> to vector<256x8xbf16>
    %c8 = arith.constant 8 : index
    %c0_28 = arith.constant 0 : index
    %c0_29 = arith.constant 0 : index
    %53 = vector.load %arg2[%c8, %c0_28, %c0_29] : memref<9x8x128xbf16, #tpu.memory_space<vmem>>, vector<1x8x128xbf16>
    %54 = vector.shape_cast %53 : vector<1x8x128xbf16> to vector<8x128xbf16>
    %cst_30 = arith.constant dense<0.000000e+00> : vector<256x128xf32>
    %55 = tpu.matmul %52, %54, %cst_30 {dimension_numbers = #tpu.dot_dimension_numbers<[1], [0], [0], [1], [0, 0, 1, 1], [], []>} : vector<256x8xbf16>, vector<8x128xbf16>, vector<256x128xf32> -> vector<256x128xf32>
    %56 = arith.addf %50, %55 : vector<256x128xf32>
    %57 = vector.extract_strided_slice %56 {offsets = [0, 0], sizes = [256, 16], strides = [1, 1]} : vector<256x128xf32> to vector<256x16xf32>
    %cst_31 = arith.constant dense<0.000000e+00> : vector<16xf32>
    %58 = vector.multi_reduction <add>, %57, %cst_31 [0] : vector<256x16xf32> to vector<16xf32>
    %59 = vector.shape_cast %58 : vector<16xf32> to vector<1x16xf32>
    %60 = arith.mulf %57, %57 : vector<256x16xf32>
    %cst_32 = arith.constant dense<0.000000e+00> : vector<16xf32>
    %61 = vector.multi_reduction <add>, %60, %cst_32 [0] : vector<256x16xf32> to vector<16xf32>
    %62 = vector.shape_cast %61 : vector<16xf32> to vector<1x16xf32>
    %63 = vector.shape_cast %59 : vector<1x16xf32> to vector<1x1x16xf32>
    %64 = vector.broadcast %63 : vector<1x1x16xf32> to vector<1x8x16xf32>
    %c0_33 = arith.constant 0 : index
    %c0_34 = arith.constant 0 : index
    %c0_35 = arith.constant 0 : index
    %65 = vector.load %arg3[%c0_33, %c0_34, %c0_35] : memref<1x8x16xf32, #tpu.memory_space<vmem>>, vector<1x8x16xf32>
    tpu.vector_store %arg3[%c0_33, %c0_34, %c0_35], %64 {strides = array<i32>} : memref<1x8x16xf32, #tpu.memory_space<vmem>>, vector<1x8x16xf32>,
    %66 = vector.shape_cast %62 : vector<1x16xf32> to vector<1x1x16xf32>
    %67 = vector.broadcast %66 : vector<1x1x16xf32> to vector<1x8x16xf32>
    %c0_36 = arith.constant 0 : index
    %c0_37 = arith.constant 0 : index
    %c0_38 = arith.constant 0 : index
    %68 = vector.load %arg4[%c0_36, %c0_37, %c0_38] : memref<1x8x16xf32, #tpu.memory_space<vmem>>, vector<1x8x16xf32>
    tpu.vector_store %arg4[%c0_36, %c0_37, %c0_38], %67 {strides = array<i32>} : memref<1x8x16xf32, #tpu.memory_space<vmem>>, vector<1x8x16xf32>,
    return
  }
  func.func @transform_0(%arg0: i32) -> (i32, i32, i32, i32) {
    %c0_i32 = arith.constant 0 : i32
    %c0_i32_0 = arith.constant 0 : i32
    %c0_i32_1 = arith.constant 0 : i32
    %c0_i32_2 = arith.constant 0 : i32
    return %arg0, %c0_i32, %c0_i32_0, %c0_i32_1 : i32, i32, i32, i32
  }
  func.func @transform_1(%arg0: i32) -> (i32, i32, i32) {
    %c0_i32 = arith.constant 0 : i32
    %c0_i32_0 = arith.constant 0 : i32
    %c0_i32_1 = arith.constant 0 : i32
    %c0_i32_2 = arith.constant 0 : i32
    return %c0_i32, %c0_i32_0, %c0_i32_1 : i32, i32, i32
  }
  func.func @transform_2(%arg0: i32) -> (i32, i32, i32) {
    %c0_i32 = arith.constant 0 : i32
    %c0_i32_0 = arith.constant 0 : i32
    %c0_i32_1 = arith.constant 0 : i32
    return %arg0, %c0_i32, %c0_i32_0 : i32, i32, i32
  }
  func.func @transform_3(%arg0: i32) -> (i32, i32, i32) {
    %c0_i32 = arith.constant 0 : i32
    %c0_i32_0 = arith.constant 0 : i32
    %c0_i32_1 = arith.constant 0 : i32
    return %arg0, %c0_i32, %c0_i32_0 : i32, i32, i32
  }
}

module attributes {stable_mosaic.version = 11 : i64} {
  func.func @_conv_bn_relu_kernel(%arg0: i32, %arg1: memref<1x18x18x8xbf16, #tpu.memory_space<vmem>>, %arg2: memref<9x8x128xbf16, #tpu.memory_space<vmem>>, %arg3: memref<1x16xf32, #tpu.memory_space<vmem>>, %arg4: memref<1x16xf32, #tpu.memory_space<vmem>>, %arg5: memref<1x16x16x16xf32, #tpu.memory_space<vmem>>) attributes {dimension_semantics = [#tpu.dimension_semantics<parallel>], iteration_bounds = array<i64: 2>, scalar_prefetch = 0 : i64, scratch_operands = 0 : i64, tpu.core_type = #tpu.core_type<tc>, window_params = [{transform_indices = @transform_0, window_bounds = array<i64: 1, 18, 18, 8>}, {pipeline_mode = #tpu.pipeline_mode<synchronous>, transform_indices = @transform_1, window_bounds = array<i64: 9, 8, 128>}, {pipeline_mode = #tpu.pipeline_mode<synchronous>, transform_indices = @transform_2, window_bounds = array<i64: 1, 16>}, {pipeline_mode = #tpu.pipeline_mode<synchronous>, transform_indices = @transform_3, window_bounds = array<i64: 1, 16>}, {transform_indices = @transform_4, window_bounds = array<i64: 1, 16, 16, 16>}]} {
    %c0 = arith.constant 0 : index
    %c0_0 = arith.constant 0 : index
    %c0_1 = arith.constant 0 : index
    %c0_2 = arith.constant 0 : index
    %0 = vector.load %arg1[%c0, %c0_0, %c0_1, %c0_2] : memref<1x18x18x8xbf16, #tpu.memory_space<vmem>>, vector<1x18x18x8xbf16>
    %1 = vector.shape_cast %0 : vector<1x18x18x8xbf16> to vector<18x18x8xbf16>
    %cst = arith.constant 0.000000e+00 : f32
    %2 = vector.broadcast %cst : f32 to vector<256x128xf32>
    %3 = vector.extract_strided_slice %1 {offsets = [0, 0, 0], sizes = [16, 16, 8], strides = [1, 1, 1]} : vector<18x18x8xbf16> to vector<16x16x8xbf16>
    %4 = vector.shape_cast %3 : vector<16x16x8xbf16> to vector<256x8xbf16>
    %c0_3 = arith.constant 0 : index
    %c0_4 = arith.constant 0 : index
    %c0_5 = arith.constant 0 : index
    %5 = vector.load %arg2[%c0_3, %c0_4, %c0_5] : memref<9x8x128xbf16, #tpu.memory_space<vmem>>, vector<1x8x128xbf16>
    %6 = vector.shape_cast %5 : vector<1x8x128xbf16> to vector<8x128xbf16>
    %cst_6 = arith.constant dense<0.000000e+00> : vector<256x128xf32>
    %7 = tpu.matmul %4, %6, %cst_6 {dimension_numbers = #tpu.dot_dimension_numbers<[1], [0], [0], [1], [0, 0, 1, 1], [], []>} : vector<256x8xbf16>, vector<8x128xbf16>, vector<256x128xf32> -> vector<256x128xf32>
    %8 = arith.addf %2, %7 : vector<256x128xf32>
    %9 = vector.extract_strided_slice %1 {offsets = [0, 1, 0], sizes = [16, 16, 8], strides = [1, 1, 1]} : vector<18x18x8xbf16> to vector<16x16x8xbf16>
    %10 = vector.shape_cast %9 : vector<16x16x8xbf16> to vector<256x8xbf16>
    %c1 = arith.constant 1 : index
    %c0_7 = arith.constant 0 : index
    %c0_8 = arith.constant 0 : index
    %11 = vector.load %arg2[%c1, %c0_7, %c0_8] : memref<9x8x128xbf16, #tpu.memory_space<vmem>>, vector<1x8x128xbf16>
    %12 = vector.shape_cast %11 : vector<1x8x128xbf16> to vector<8x128xbf16>
    %cst_9 = arith.constant dense<0.000000e+00> : vector<256x128xf32>
    %13 = tpu.matmul %10, %12, %cst_9 {dimension_numbers = #tpu.dot_dimension_numbers<[1], [0], [0], [1], [0, 0, 1, 1], [], []>} : vector<256x8xbf16>, vector<8x128xbf16>, vector<256x128xf32> -> vector<256x128xf32>
    %14 = arith.addf %8, %13 : vector<256x128xf32>
    %15 = vector.extract_strided_slice %1 {offsets = [0, 2, 0], sizes = [16, 16, 8], strides = [1, 1, 1]} : vector<18x18x8xbf16> to vector<16x16x8xbf16>
    %16 = vector.shape_cast %15 : vector<16x16x8xbf16> to vector<256x8xbf16>
    %c2 = arith.constant 2 : index
    %c0_10 = arith.constant 0 : index
    %c0_11 = arith.constant 0 : index
    %17 = vector.load %arg2[%c2, %c0_10, %c0_11] : memref<9x8x128xbf16, #tpu.memory_space<vmem>>, vector<1x8x128xbf16>
    %18 = vector.shape_cast %17 : vector<1x8x128xbf16> to vector<8x128xbf16>
    %cst_12 = arith.constant dense<0.000000e+00> : vector<256x128xf32>
    %19 = tpu.matmul %16, %18, %cst_12 {dimension_numbers = #tpu.dot_dimension_numbers<[1], [0], [0], [1], [0, 0, 1, 1], [], []>} : vector<256x8xbf16>, vector<8x128xbf16>, vector<256x128xf32> -> vector<256x128xf32>
    %20 = arith.addf %14, %19 : vector<256x128xf32>
    %21 = vector.extract_strided_slice %1 {offsets = [1, 0, 0], sizes = [16, 16, 8], strides = [1, 1, 1]} : vector<18x18x8xbf16> to vector<16x16x8xbf16>
    %22 = vector.shape_cast %21 : vector<16x16x8xbf16> to vector<256x8xbf16>
    %c3 = arith.constant 3 : index
    %c0_13 = arith.constant 0 : index
    %c0_14 = arith.constant 0 : index
    %23 = vector.load %arg2[%c3, %c0_13, %c0_14] : memref<9x8x128xbf16, #tpu.memory_space<vmem>>, vector<1x8x128xbf16>
    %24 = vector.shape_cast %23 : vector<1x8x128xbf16> to vector<8x128xbf16>
    %cst_15 = arith.constant dense<0.000000e+00> : vector<256x128xf32>
    %25 = tpu.matmul %22, %24, %cst_15 {dimension_numbers = #tpu.dot_dimension_numbers<[1], [0], [0], [1], [0, 0, 1, 1], [], []>} : vector<256x8xbf16>, vector<8x128xbf16>, vector<256x128xf32> -> vector<256x128xf32>
    %26 = arith.addf %20, %25 : vector<256x128xf32>
    %27 = vector.extract_strided_slice %1 {offsets = [1, 1, 0], sizes = [16, 16, 8], strides = [1, 1, 1]} : vector<18x18x8xbf16> to vector<16x16x8xbf16>
    %28 = vector.shape_cast %27 : vector<16x16x8xbf16> to vector<256x8xbf16>
    %c4 = arith.constant 4 : index
    %c0_16 = arith.constant 0 : index
    %c0_17 = arith.constant 0 : index
    %29 = vector.load %arg2[%c4, %c0_16, %c0_17] : memref<9x8x128xbf16, #tpu.memory_space<vmem>>, vector<1x8x128xbf16>
    %30 = vector.shape_cast %29 : vector<1x8x128xbf16> to vector<8x128xbf16>
    %cst_18 = arith.constant dense<0.000000e+00> : vector<256x128xf32>
    %31 = tpu.matmul %28, %30, %cst_18 {dimension_numbers = #tpu.dot_dimension_numbers<[1], [0], [0], [1], [0, 0, 1, 1], [], []>} : vector<256x8xbf16>, vector<8x128xbf16>, vector<256x128xf32> -> vector<256x128xf32>
    %32 = arith.addf %26, %31 : vector<256x128xf32>
    %33 = vector.extract_strided_slice %1 {offsets = [1, 2, 0], sizes = [16, 16, 8], strides = [1, 1, 1]} : vector<18x18x8xbf16> to vector<16x16x8xbf16>
    %34 = vector.shape_cast %33 : vector<16x16x8xbf16> to vector<256x8xbf16>
    %c5 = arith.constant 5 : index
    %c0_19 = arith.constant 0 : index
    %c0_20 = arith.constant 0 : index
    %35 = vector.load %arg2[%c5, %c0_19, %c0_20] : memref<9x8x128xbf16, #tpu.memory_space<vmem>>, vector<1x8x128xbf16>
    %36 = vector.shape_cast %35 : vector<1x8x128xbf16> to vector<8x128xbf16>
    %cst_21 = arith.constant dense<0.000000e+00> : vector<256x128xf32>
    %37 = tpu.matmul %34, %36, %cst_21 {dimension_numbers = #tpu.dot_dimension_numbers<[1], [0], [0], [1], [0, 0, 1, 1], [], []>} : vector<256x8xbf16>, vector<8x128xbf16>, vector<256x128xf32> -> vector<256x128xf32>
    %38 = arith.addf %32, %37 : vector<256x128xf32>
    %39 = vector.extract_strided_slice %1 {offsets = [2, 0, 0], sizes = [16, 16, 8], strides = [1, 1, 1]} : vector<18x18x8xbf16> to vector<16x16x8xbf16>
    %40 = vector.shape_cast %39 : vector<16x16x8xbf16> to vector<256x8xbf16>
    %c6 = arith.constant 6 : index
    %c0_22 = arith.constant 0 : index
    %c0_23 = arith.constant 0 : index
    %41 = vector.load %arg2[%c6, %c0_22, %c0_23] : memref<9x8x128xbf16, #tpu.memory_space<vmem>>, vector<1x8x128xbf16>
    %42 = vector.shape_cast %41 : vector<1x8x128xbf16> to vector<8x128xbf16>
    %cst_24 = arith.constant dense<0.000000e+00> : vector<256x128xf32>
    %43 = tpu.matmul %40, %42, %cst_24 {dimension_numbers = #tpu.dot_dimension_numbers<[1], [0], [0], [1], [0, 0, 1, 1], [], []>} : vector<256x8xbf16>, vector<8x128xbf16>, vector<256x128xf32> -> vector<256x128xf32>
    %44 = arith.addf %38, %43 : vector<256x128xf32>
    %45 = vector.extract_strided_slice %1 {offsets = [2, 1, 0], sizes = [16, 16, 8], strides = [1, 1, 1]} : vector<18x18x8xbf16> to vector<16x16x8xbf16>
    %46 = vector.shape_cast %45 : vector<16x16x8xbf16> to vector<256x8xbf16>
    %c7 = arith.constant 7 : index
    %c0_25 = arith.constant 0 : index
    %c0_26 = arith.constant 0 : index
    %47 = vector.load %arg2[%c7, %c0_25, %c0_26] : memref<9x8x128xbf16, #tpu.memory_space<vmem>>, vector<1x8x128xbf16>
    %48 = vector.shape_cast %47 : vector<1x8x128xbf16> to vector<8x128xbf16>
    %cst_27 = arith.constant dense<0.000000e+00> : vector<256x128xf32>
    %49 = tpu.matmul %46, %48, %cst_27 {dimension_numbers = #tpu.dot_dimension_numbers<[1], [0], [0], [1], [0, 0, 1, 1], [], []>} : vector<256x8xbf16>, vector<8x128xbf16>, vector<256x128xf32> -> vector<256x128xf32>
    %50 = arith.addf %44, %49 : vector<256x128xf32>
    %51 = vector.extract_strided_slice %1 {offsets = [2, 2, 0], sizes = [16, 16, 8], strides = [1, 1, 1]} : vector<18x18x8xbf16> to vector<16x16x8xbf16>
    %52 = vector.shape_cast %51 : vector<16x16x8xbf16> to vector<256x8xbf16>
    %c8 = arith.constant 8 : index
    %c0_28 = arith.constant 0 : index
    %c0_29 = arith.constant 0 : index
    %53 = vector.load %arg2[%c8, %c0_28, %c0_29] : memref<9x8x128xbf16, #tpu.memory_space<vmem>>, vector<1x8x128xbf16>
    %54 = vector.shape_cast %53 : vector<1x8x128xbf16> to vector<8x128xbf16>
    %cst_30 = arith.constant dense<0.000000e+00> : vector<256x128xf32>
    %55 = tpu.matmul %52, %54, %cst_30 {dimension_numbers = #tpu.dot_dimension_numbers<[1], [0], [0], [1], [0, 0, 1, 1], [], []>} : vector<256x8xbf16>, vector<8x128xbf16>, vector<256x128xf32> -> vector<256x128xf32>
    %56 = arith.addf %50, %55 : vector<256x128xf32>
    %57 = vector.extract_strided_slice %56 {offsets = [0, 0], sizes = [256, 16], strides = [1, 1]} : vector<256x128xf32> to vector<256x16xf32>
    %c0_31 = arith.constant 0 : index
    %c0_32 = arith.constant 0 : index
    %58 = vector.load %arg3[%c0_31, %c0_32] : memref<1x16xf32, #tpu.memory_space<vmem>>, vector<1x16xf32>
    %59 = vector.broadcast %58 : vector<1x16xf32> to vector<256x16xf32>
    %60 = arith.mulf %57, %59 : vector<256x16xf32>
    %c0_33 = arith.constant 0 : index
    %c0_34 = arith.constant 0 : index
    %61 = vector.load %arg4[%c0_33, %c0_34] : memref<1x16xf32, #tpu.memory_space<vmem>>, vector<1x16xf32>
    %62 = vector.broadcast %61 : vector<1x16xf32> to vector<256x16xf32>
    %63 = arith.addf %60, %62 : vector<256x16xf32>
    %cst_35 = arith.constant 0.000000e+00 : f32
    %64 = vector.broadcast %cst_35 : f32 to vector<256x16xf32>
    %65 = arith.maximumf %63, %64 : vector<256x16xf32>
    %66 = vector.shape_cast %65 : vector<256x16xf32> to vector<16x16x16xf32>
    %c0_36 = arith.constant 0 : index
    %c0_37 = arith.constant 0 : index
    %c0_38 = arith.constant 0 : index
    %c0_39 = arith.constant 0 : index
    %67 = vector.load %arg5[%c0_36, %c0_37, %c0_38, %c0_39] : memref<1x16x16x16xf32, #tpu.memory_space<vmem>>, vector<1x16x16x16xf32>
    %68 = vector.shape_cast %67 : vector<1x16x16x16xf32> to vector<16x16x16xf32>
    %69 = vector.shape_cast %66 : vector<16x16x16xf32> to vector<1x16x16x16xf32>
    tpu.vector_store %arg5[%c0_36, %c0_37, %c0_38, %c0_39], %69 {strides = array<i32>} : memref<1x16x16x16xf32, #tpu.memory_space<vmem>>, vector<1x16x16x16xf32>,
    return
  }
  func.func @transform_0(%arg0: i32) -> (i32, i32, i32, i32) {
    %c0_i32 = arith.constant 0 : i32
    %c0_i32_0 = arith.constant 0 : i32
    %c0_i32_1 = arith.constant 0 : i32
    %c0_i32_2 = arith.constant 0 : i32
    return %arg0, %c0_i32, %c0_i32_0, %c0_i32_1 : i32, i32, i32, i32
  }
  func.func @transform_1(%arg0: i32) -> (i32, i32, i32) {
    %c0_i32 = arith.constant 0 : i32
    %c0_i32_0 = arith.constant 0 : i32
    %c0_i32_1 = arith.constant 0 : i32
    %c0_i32_2 = arith.constant 0 : i32
    return %c0_i32, %c0_i32_0, %c0_i32_1 : i32, i32, i32
  }
  func.func @transform_2(%arg0: i32) -> (i32, i32) {
    %c0_i32 = arith.constant 0 : i32
    %c0_i32_0 = arith.constant 0 : i32
    %c0_i32_1 = arith.constant 0 : i32
    return %c0_i32, %c0_i32_0 : i32, i32
  }
  func.func @transform_3(%arg0: i32) -> (i32, i32) {
    %c0_i32 = arith.constant 0 : i32
    %c0_i32_0 = arith.constant 0 : i32
    %c0_i32_1 = arith.constant 0 : i32
    return %c0_i32, %c0_i32_0 : i32, i32
  }
  func.func @transform_4(%arg0: i32) -> (i32, i32, i32, i32) {
    %c0_i32 = arith.constant 0 : i32
    %c0_i32_0 = arith.constant 0 : i32
    %c0_i32_1 = arith.constant 0 : i32
    %c0_i32_2 = arith.constant 0 : i32
    return %arg0, %c0_i32, %c0_i32_0, %c0_i32_1 : i32, i32, i32, i32
  }
}

</mosaic_0001>

<bundles_post_ra>
// kernel: conv_layer_forward.5
= control target key start
LH: loop header
LB: loop body
LE: loop exit
PB: predicated region body
PF: predicated region fallthrough
CT: control target
= control target key end

     0   :  { %s2783_s15 = smov 0   ;;  %s3989_s0 = inlined_call_operand.vmem [shape: bf16[2,18,18,8], index: 0, kind: input, shape index: {}]   ;;  %s3990_s1 = inlined_call_operand.vmem [shape: bf16[9,8,128], index: 1, kind: input, shape index: {}]   ;;  %s3991_s2 = inlined_call_operand.vmem [shape: f32[1,8], index: 2, kind: input, shape index: {}]   ;;  %s3992_s3 = inlined_call_operand.vmem [shape: f32[1,8], index: 3, kind: input, shape index: {}]   ;;  %s3993_s4 = inlined_call_operand.vmem [shape: f32[2,16,16,8], index: 4, kind: output, shape index: {}]  }
   0x1 LB: > { %s2457_s16 = sadd.s32 4294967295, %s2756_s15   ;;  %p2461_p0 = scmp.ge.s32.totalorder %s2756_s15, 1  ;;  %s2756_s15 = sphi %s2783_s15, %s14_s15  }
   0x2   : > { %p162_p1 = scmp.lt.s32.totalorder %s2756_s15, 3 }
   0x4   : > { %p163_p2 = pnand %p2461_p0, %p162_p1 }
   0x6   : > { %166 = sbr.rel (%p163_p2) target bundleno = 760 (0x2f8), region = 36 }
   0xb   : > { %v2465_v0 = vld [vmem:[%s3990_s1 + $0x4] sm:$0xf]  ;;  %vm740_vm0 = vcmask 1043456   ;;  %p188_p3 = scmp.lt.s32.totalorder %s2457_s16, 1  ;;  %v2578_v2 = vld [vmem:[%s3990_s1 + $0x8] sm:$0xf] }
   0xc   : > { %v742_v1 = vsel %vm740_vm0, %v2465_v0, 0  ;;  %v1283_v3 = vsel %vm740_vm0, %v2578_v2, 0  ;;  %v2595_v4 = vld [vmem:[%s3990_s1 + $0xc] sm:$0xf]  ;;  %v253_v5 = vld [vmem:[%s3990_s1] sm:$0xf] }
   0xd   : > { %2728 = vmatpush.bf16.msra.mxu1 %v742_v1  ;;  %2729 = vmatpush.bf16.msra.mxu2 %v742_v1  ;;  %s4133_s16 = smov (!%p188_p3, %s2457_s16), 1  ;;  %v2616_v6 = vld [vmem:[%s3990_s1 + $0x10] sm:$0xf]  ;;  %v1417_v7 = vsel %vm740_vm0, %v2595_v4, 0  ;;  %v962_v8 = vsel %vm740_vm0, %v253_v5, 0  ;;  %vm691_vm4 = vcmask 64512  }
   0xe   : > { %2730 = vmatpush.bf16.msra.mxu3 %v742_v1  ;;  %751 = vmatpush.bf16.msra.mxu0 %v742_v1  ;;  %s2731_s27 = smul.u32 216, %s4133_s16  ;;  %v1573_v9 = vsel %vm740_vm0, %v2616_v6, 0  ;;  %vm254_vm1 = vsmask.f32 3328  ;;  %vm255_vm2 = vsmask.f32 7440 }
   0xf   : > { %vm2844_vm3 = vmor %vm254_vm1, %vm255_vm2  ;;  %vm1069_vm5 = vcmask 1042432   ;;  %vm1070_vm6 = vcmask 1046532   ;;  %s2709_s19 = sshll.u32 %s4133_s16, 8 }
  0x10   : > { %s2817_s30 = scalar_lea.vmem %s3989_s0, %s2731_s27  ;;  %vm3147_vm7 = vmor %vm1069_vm5, %vm1070_vm6  ;;  %s3750_s22 = scalar_lea.vmem %s3993_s4, %s2709_s19 }
  0x11   : > { %1292 = vmatpush.bf16.msrb.mxu2 %v1283_v3  ;;  %971 = vmatpush.bf16.msrb.mxu1 %v962_v8  ;;  %v2820_v10 = vld [vmem:[%s2817_s30 + $0x30] sm:$0xf]  ;;  %v2823_v11 = vld [vmem:[%s2817_s30 + $0x34] sm:$0xf]  ;;  %v2826_v12 = vld [vmem:[%s2817_s30 + $0x38] sm:$0x1] }
  0x12   : > { %1426 = vmatpush.bf16.msrb.mxu3 %v1417_v7  ;;  %1582 = vmatpush.bf16.msrb.mxu0 %v1573_v9  ;;  %v354_v13 = vshrl.u32 %v2820_v10, 16  ;;  %v357_v14 = vshll.u32 %v2820_v10, 16  ;;  %v363_v15 = vshll.u32 %v2823_v11, 16  ;;  %v367_v16 = vshrl.u32 %v2823_v11, 16  ;;  %v223_v17 = vld [vmem:[%s2817_s30 + $0x60] sm:$0xf] }
  0x13   : > { %v373_v18 = vshll.u32 %v2826_v12, 16  ;;  %v2835_v19 = vld [vmem:[%s2817_s30 + $0x64] sm:$0xf]  ;;  %v225_v20 = vld [vmem:[%s2817_s30 + $0x68] sm:$0x1]  ;;  %v450_v21 = vshrl.u32 %v223_v17, 16 }
  0x14   : > { %v356_v22 = vrot.slane %v354_v13, 4  ;;  %v359_v23 = vrot.slane %v357_v14, 5  ;;  %v365_v24 = vrot.slane %v363_v15, 5  ;;  %v369_v25 = vrot.slane %v367_v16, 4  ;;  %v235_v26 = vld [vmem:[%s2817_s30 + $0x90] sm:$0xf] }
  0x15   : > { %v375_v27 = vrot.slane %v373_v18, 5  ;;  %v452_v28 = vrot.slane %v450_v21, 4  ;;  %v453_v29 = vshll.u32 %v223_v17, 16  ;;  %v459_v30 = vshll.u32 %v2835_v19, 16  ;;  %v236_v35 = vld [vmem:[%s2817_s30 + $0x94] sm:$0xf] }
  0x16   : > { %v360_v31 = vor.u32 %v359_v23, %v356_v22  ;;  %v370_v32 = vor.u32 %v369_v25, %v365_v24  ;;  %v463_v33 = vshrl.u32 %v2835_v19, 16  ;;  %v469_v34 = vshll.u32 %v225_v20, 16  ;;  %v237_v45 = vld [vmem:[%s2817_s30 + $0x98] sm:$0x1]  ;;  %v2854_v61 = vld [vmem:[%s2817_s30] sm:$0xf] }
  0x17   : > { %v455_v37 = vrot.slane %v453_v29, 5  ;;  %v461_v38 = vrot.slane %v459_v30, 5  ;;  %v546_v39 = vshrl.u32 %v235_v26, 16  ;;  %v549_v47 = vshll.u32 %v235_v26, 16  ;;  %v2861_v1 = vld [vmem:[%s2817_s30 + $0x4] sm:$0xf] }
  0x18   : > { %v361_v40 = vrot.slane %v360_v31, 4  ;;  %v371_v41 = vrot.slane %v370_v32, 4  ;;  %v465_v42 = vrot.slane %v463_v33, 4  ;;  %v471_v43 = vrot.slane %v469_v34, 5  ;;  %v2864_v2 = vld [vmem:[%s2817_s30 + $0x8] sm:$0x1] }
  0x19   : > { %v456_v44 = vor.u32 %v455_v37, %v452_v28  ;;  %v548_v46 = vrot.slane %v546_v39, 4  ;;  %v555_v48 = vshll.u32 %v236_v35, 16  ;;  %v559_v52 = vshrl.u32 %v236_v35, 16  ;;  %v2880_v23 = vld [vmem:[%s2817_s30 + $0x3c] sm:$0xf] }
  0x1a   : > { %v366_v49 = vsel %vm2844_vm3, %v361_v40, %v365_v24  ;;  %v376_v50 = vsel %vm2844_vm3, %v371_v41, %v375_v27  ;;  %v466_v51 = vor.u32 %v465_v42, %v461_v38  ;;  %v551_v56 = vrot.slane %v549_v47, 5  ;;  %v2883_v24 = vld [vmem:[%s2817_s30 + $0x40] sm:$0xf]  ;;  %v2888_v29 = vld [vmem:[%s2817_s30 + $0x44] sm:$0x1] }
  0x1b   : > { %v651_v53 = vunpack.c.l.b16 %v366_v49  ;;  %v652_v54 = vunpack.c.l.b16 %v376_v50  ;;  %v457_v55 = vrot.slane %v456_v44, 4  ;;  %v557_v58 = vrot.slane %v555_v48, 5  ;;  %v2903_v47 = vld [vmem:[%s2817_s30 + $0x70] sm:$0xf] }
  0x1c   : > { %v467_v57 = vrot.slane %v466_v51, 4  ;;  %v561_v59 = vrot.slane %v559_v52, 4  ;;  %v565_v60 = vshll.u32 %v237_v45, 16  ;;  %v552_v0 = vor.u32 %v551_v56, %v548_v46  ;;  %v2910_v51 = vld [vmem:[%s2817_s30 + $0x74] sm:$0x1] }
  0x1d   : > { %v2856_v62 = vpack.c.b16 %v652_v54, %v651_v53  ;;  %v462_v63 = vsel %vm2844_vm3, %v457_v55, %v461_v38  ;;  %v258_v9 = vshrl.u32 %v2854_v61, 16  ;;  %v261_v13 = vshll.u32 %v2854_v61, 16  ;;  %v2896_v38 = vld [vmem:[%s2817_s30 + $0x6c] sm:$0xf] }
  0x1e   : > { %v472_v3 = vsel %vm2844_vm3, %v467_v57, %v471_v43  ;;  %v659_v4 = vunpack.c.l.b16 %v462_v63  ;;  %v562_v5 = vor.u32 %v561_v59, %v557_v58  ;;  %v567_v6 = vrot.slane %v565_v60, 5 }
  0x1f   : > { %2470 = vmatmul.msk.bf16.vlgmr.msra.gmra.mxu1 %vm691_vm4, %v2856_v62  ;;  %v660_v7 = vunpack.c.l.b16 %v472_v3  ;;  %v553_v8 = vrot.slane %v552_v0, 4  ;;  %v267_v15 = vshll.u32 %v2861_v1, 16  ;;  %v271_v16 = vshrl.u32 %v2861_v1, 16 }
  0x20   : > { %v563_v14 = vrot.slane %v562_v5, 4  ;;  %v277_v17 = vshll.u32 %v2864_v2, 16  ;;  %v260_v21 = vrot.slane %v258_v9, 4  ;;  %v263_v22 = vrot.slane %v261_v13, 5  ;;  %v238_v5 = vld [vmem:[%s2817_s30 + $0x9c] sm:$0xf] }
  0x21   : > { %v2875_v18 = vpack.c.b16 %v660_v7, %v659_v4  ;;  %v558_v20 = vsel %vm2844_vm3, %v553_v8, %v557_v58  ;;  %v269_v27 = vrot.slane %v267_v15, 5  ;;  %v273_v28 = vrot.slane %v271_v16, 4  ;;  %v239_v9 = vld [vmem:[%s2817_s30 + $0xa0] sm:$0xf] }
  0x22   : > { %v568_v25 = vsel %vm2844_vm3, %v563_v14, %v567_v6  ;;  %v667_v26 = vunpack.c.l.b16 %v558_v20  ;;  %v264_v31 = vor.u32 %v263_v22, %v260_v21  ;;  %v279_v32 = vrot.slane %v277_v17, 5  ;;  %v240_v17 = vld [vmem:[%s2817_s30 + $0xa4] sm:$0x1] }
  0x23   : > { %4036 = vst [vmem:[#allocation2_spill] sm:$0xff] %v2875_v18  ;;  %2474 = vmatmul.msk.bf16.vlgmr.msra.gmra.mxu2 %vm691_vm4, %v2875_v18  ;;  %v668_v30 = vunpack.c.l.b16 %v568_v25  ;;  %v274_v33 = vor.u32 %v273_v28, %v269_v27  ;;  %v378_v34 = vshrl.u32 %v2880_v23, 16  ;;  %v381_v35 = vshll.u32 %v2880_v23, 16 }
  0x24   : > { %v387_v37 = vshll.u32 %v2883_v24, 16  ;;  %v265_v40 = vrot.slane %v264_v31, 4  ;;  %v391_v41 = vshrl.u32 %v2883_v24, 16  ;;  %v397_v42 = vshll.u32 %v2888_v29, 16 }
  0x25   : > { %v2898_v39 = vpack.c.b16 %v668_v30, %v667_v26  ;;  %v275_v43 = vrot.slane %v274_v33, 4  ;;  %v380_v44 = vrot.slane %v378_v34, 4  ;;  %v383_v45 = vrot.slane %v381_v35, 5  ;;  %v2928_v35 = vld [vmem:[%s2817_s30 + $0xc] sm:$0xf] }
  0x26   : > { %v389_v46 = vrot.slane %v387_v37, 5  ;;  %v270_v48 = vsel %vm2844_vm3, %v265_v40, %v269_v27  ;;  %v393_v49 = vrot.slane %v391_v41, 4  ;;  %v399_v50 = vrot.slane %v397_v42, 5 }
  0x27   : > { %4037 = vst [vmem:[#allocation3_spill] sm:$0xff] %v2898_v39  ;;  %2478 = vmatmul.msk.bf16.vlgmr.msra.gmra.mxu3 %vm691_vm4, %v2898_v39  ;;  %v474_v52 = vshrl.u32 %v2896_v38, 16  ;;  %v280_v53 = vsel %vm2844_vm3, %v275_v43, %v279_v32  ;;  %v643_v54 = vunpack.c.l.b16 %v270_v48  ;;  %v384_v55 = vor.u32 %v383_v45, %v380_v44  ;;  %v2935_v43 = vld [vmem:[%s2817_s30 + $0x10] sm:$0xf]  ;;  %v2938_v48 = vld [vmem:[%s2817_s30 + $0x14] sm:$0x1] }
  0x28   : > { %v477_v56 = vshll.u32 %v2896_v38, 16  ;;  %v644_v57 = vunpack.c.l.b16 %v280_v53  ;;  %v394_v58 = vor.u32 %v393_v49, %v389_v46  ;;  %v483_v60 = vshll.u32 %v2903_v47, 16  ;;  %v3115_v39 = vld [vmem:[%s2817_s30 + $0x2c] sm:$0x1] }
  0x29   : > { %v476_v59 = vrot.slane %v474_v52, 4  ;;  %v385_v63 = vrot.slane %v384_v55, 4  ;;  %v487_v3 = vshrl.u32 %v2903_v47, 16  ;;  %v493_v4 = vshll.u32 %v2910_v51, 16 }
  0x2a   : > { %v479_v0 = vrot.slane %v477_v56, 5  ;;  %v675_v6 = vpack.c.b16 %v644_v57, %v643_v54  ;;  %v395_v7 = vrot.slane %v394_v58, 4  ;;  %v485_v8 = vrot.slane %v483_v60, 5  ;;  %v2948_v58 = vld [vmem:[%s2817_s30 + $0x48] sm:$0xf] }
  0x2b   : > { %v390_v13 = vsel %vm2844_vm3, %v385_v63, %v389_v46  ;;  %v489_v15 = vrot.slane %v487_v3, 4  ;;  %v495_v16 = vrot.slane %v493_v4, 5  ;;  %v570_v22 = vshrl.u32 %v238_v5, 16  ;;  %v2953_v3 = vld [vmem:[%s2817_s30 + $0x4c] sm:$0xf] }
  0x2c   : > { %v480_v14 = vor.u32 %v479_v0, %v476_v59  ;;  %2466 = vmatmul.msk.bf16.vlgmr.msra.gmra.mxu0 %vm691_vm4, %v675_v6  ;;  %v400_v20 = vsel %vm2844_vm3, %v395_v7, %v399_v50  ;;  %v653_v21 = vunpack.c.l.b16 %v390_v13  ;;  %v573_v25 = vshll.u32 %v238_v5, 16 }
  0x2d   : > { %v654_v26 = vunpack.c.l.b16 %v400_v20  ;;  %v490_v28 = vor.u32 %v489_v15, %v485_v8  ;;  %v579_v30 = vshll.u32 %v239_v9, 16  ;;  %v572_v31 = vrot.slane %v570_v22, 4  ;;  %v2960_v15 = vld [vmem:[%s2817_s30 + $0x50] sm:$0x1] }
  0x2e   : > { %v481_v27 = vrot.slane %v480_v14, 4  ;;  %v575_v32 = vrot.slane %v573_v25, 5  ;;  %v583_v33 = vshrl.u32 %v239_v9, 16  ;;  %v589_v34 = vshll.u32 %v240_v17, 16 }
  0x2f   : > { %v2930_v37 = vpack.c.b16 %v654_v26, %v653_v21  ;;  %v491_v41 = vrot.slane %v490_v28, 4  ;;  %v581_v42 = vrot.slane %v579_v30, 5  ;;  %v282_v52 = vshrl.u32 %v2928_v35, 16  ;;  %v2971_v28 = vld [vmem:[%s2817_s30 + $0x78] sm:$0xf] }
  0x30   : > { %v486_v40 = vsel %vm2844_vm3, %v481_v27, %v485_v8  ;;  %v576_v45 = vor.u32 %v575_v32, %v572_v31  ;;  %v585_v46 = vrot.slane %v583_v33, 4  ;;  %v591_v50 = vrot.slane %v589_v34, 5  ;;  %v2975_v34 = vld [vmem:[%s2817_s30 + $0x7c] sm:$0xf] }
  0x31   : > { %v661_v44 = vunpack.c.l.b16 %v486_v40  ;;  %2471 = vmatmul.msk.bf16.gmra.mxu1 %vm691_vm4, %v2930_v37  ;;  %v496_v49 = vsel %vm2844_vm3, %v491_v41, %v495_v16  ;;  %v285_v53 = vshll.u32 %v2928_v35, 16  ;;  %v291_v57 = vshll.u32 %v2935_v43, 16 }
  0x32   : > { %v662_v54 = vunpack.c.l.b16 %v496_v49  ;;  %v577_v55 = vrot.slane %v576_v45, 4  ;;  %v586_v56 = vor.u32 %v585_v46, %v581_v42  ;;  %v284_v59 = vrot.slane %v282_v52, 4 }
  0x33   : > { %v287_v60 = vrot.slane %v285_v53, 5  ;;  %v295_v63 = vshrl.u32 %v2935_v43, 16  ;;  %v301_v0 = vshll.u32 %v2938_v48, 16  ;;  %v293_v7 = vrot.slane %v291_v57, 5 }
  0x34   : > { %v2955_v4 = vpack.c.b16 %v662_v54, %v661_v44  ;;  %v582_v5 = vsel %vm2844_vm3, %v577_v55, %v581_v42  ;;  %v587_v6 = vrot.slane %v586_v56, 4  ;;  %v402_v17 = vshrl.u32 %v2948_v58, 16 }
  0x35   : > { %v669_v8 = vunpack.c.l.b16 %v582_v5  ;;  %v288_v9 = vor.u32 %v287_v60, %v284_v59  ;;  %v297_v13 = vrot.slane %v295_v63, 4  ;;  %v303_v14 = vrot.slane %v301_v0, 5 }
  0x36   : > { %2475 = vmatmul.msk.bf16.gmra.mxu2 %vm691_vm4, %v2955_v4  ;;  %v592_v16 = vsel %vm2844_vm3, %v587_v6, %v591_v50  ;;  %v405_v20 = vshll.u32 %v2948_v58, 16  ;;  %v411_v21 = vshll.u32 %v2953_v3, 16  ;;  %v415_v27 = vshrl.u32 %v2953_v3, 16  ;;  %v2982_v50 = vld [vmem:[%s2817_s30 + $0x80] sm:$0x1] }
  0x37   : > { %v670_v22 = vunpack.c.l.b16 %v592_v16  ;;  %v289_v25 = vrot.slane %v288_v9, 4  ;;  %v298_v26 = vor.u32 %v297_v13, %v293_v7  ;;  %v404_v30 = vrot.slane %v402_v17, 4  ;;  %v3001_v16 = vld [vmem:[%s2817_s30 + $0xac] sm:$0xf]  ;;  %v3004_v17 = vld [vmem:[%s2817_s30 + $0xb0] sm:$0x1] }
  0x38   : > { %v407_v31 = vrot.slane %v405_v20, 5  ;;  %v413_v32 = vrot.slane %v411_v21, 5  ;;  %v421_v33 = vshll.u32 %v2960_v15, 16  ;;  %v417_v44 = vrot.slane %v415_v27, 4  ;;  %4040 = vst [vmem:[#allocation6_spill] sm:$0xff] %v3001_v16 }
  0x39   : > { %v2977_v40 = vpack.c.b16 %v670_v22, %v669_v8  ;;  %v294_v41 = vsel %vm2844_vm3, %v289_v25, %v293_v7  ;;  %v299_v42 = vrot.slane %v298_v26, 4  ;;  %v498_v52 = vshrl.u32 %v2971_v28, 16  ;;  %v2994_v8 = vld [vmem:[%s2817_s30 + $0xa8] sm:$0xf]  ;;  %4041 = vst [vmem:[#allocation7_spill] sm:$0xff] %v3004_v17 }
  0x3a   : > { %v645_v45 = vunpack.c.l.b16 %v294_v41  ;;  %v408_v46 = vor.u32 %v407_v31, %v404_v30  ;;  %v423_v49 = vrot.slane %v421_v33, 5  ;;  %v418_v54 = vor.u32 %v417_v44, %v413_v32  ;;  %4039 = vst [vmem:[#allocation5_spill] sm:$0xff] %v2994_v8 }
  0x3b   : > { %4038 = vst [vmem:[#allocation4_spill] sm:$0xff] %v2977_v40  ;;  %2479 = vmatmul.msk.bf16.gmra.mxu3 %vm691_vm4, %v2977_v40  ;;  %v304_v53 = vsel %vm2844_vm3, %v299_v42, %v303_v14  ;;  %v501_v55 = vshll.u32 %v2971_v28, 16  ;;  %v507_v56 = vshll.u32 %v2975_v34, 16  ;;  %v500_v60 = vrot.slane %v498_v52, 4  ;;  %v3018_v52 = vld [vmem:[%s2817_s30 + $0x18] sm:$0xf] }
  0x3c   : > { %v646_v57 = vunpack.c.l.b16 %v304_v53  ;;  %v409_v59 = vrot.slane %v408_v46, 4  ;;  %v511_v63 = vshrl.u32 %v2975_v34, 16  ;;  %v419_v0 = vrot.slane %v418_v54, 4  ;;  %v3104_v40 = vld [vmem:[%s2817_s30 + $0x24] sm:$0xf] }
  0x3d   : > { %v503_v5 = vrot.slane %v501_v55, 5  ;;  %v509_v6 = vrot.slane %v507_v56, 5  ;;  %v517_v7 = vshll.u32 %v2982_v50, 16  ;;  %v594_v30 = vshrl.u32 %v2994_v8, 16  ;;  %v3023_v56 = vld [vmem:[%s2817_s30 + $0x1c] sm:$0xf] }
  0x3e   : > { %v2996_v9 = vpack.c.b16 %v646_v57, %v645_v45  ;;  %v414_v13 = vsel %vm2844_vm3, %v409_v59, %v413_v32  ;;  %v513_v14 = vrot.slane %v511_v63, 4  ;;  %v424_v20 = vsel %vm2844_vm3, %v419_v0, %v423_v49  ;;  %v3026_v57 = vld [vmem:[%s2817_s30 + $0x20] sm:$0x1] }
  0x3f   : > { %v655_v21 = vunpack.c.l.b16 %v414_v13  ;;  %v504_v22 = vor.u32 %v503_v5, %v500_v60  ;;  %v519_v25 = vrot.slane %v517_v7, 5  ;;  %v656_v26 = vunpack.c.l.b16 %v424_v20 }
  0x40   : > { %2467 = vmatmul.msk.bf16.gmra.mxu0 %vm691_vm4, %v2996_v9  ;;  %v514_v27 = vor.u32 %v513_v14, %v509_v6  ;;  %v597_v31 = vshll.u32 %v2994_v8, 16  ;;  %v603_v33 = vshll.u32 %v3001_v16, 16  ;;  %v607_v41 = vshrl.u32 %v3001_v16, 16 }
  0x41   : > { %v505_v32 = vrot.slane %v504_v22, 4  ;;  %v613_v42 = vshll.u32 %v3004_v17, 16  ;;  %v3015_v44 = vpack.c.b16 %v656_v26, %v655_v21  ;;  %v596_v46 = vrot.slane %v594_v30, 4  ;;  %v3038_v26 = vld [vmem:[%s2817_s30 + $0x54] sm:$0xf] }
  0x42   : > { %v515_v45 = vrot.slane %v514_v27, 4  ;;  %v599_v49 = vrot.slane %v597_v31, 5  ;;  %v605_v54 = vrot.slane %v603_v33, 5  ;;  %v609_v55 = vrot.slane %v607_v41, 4  ;;  %v3082_v17 = vld [vmem:[%s2817_s30 + $0xb4] sm:$0xf] }
  0x43   : > { %4042 = vst [vmem:[#allocation8_spill] sm:$0xff] %v3015_v44  ;;  %v510_v53 = vsel %vm2844_vm3, %v505_v32, %v509_v6  ;;  %2472 = vmatmul.msk.bf16.gmra.mxu1 %vm691_vm4, %v3015_v44  ;;  %v615_v0 = vrot.slane %v613_v42, 5  ;;  %v306_v6 = vshrl.u32 %v3018_v52, 16  ;;  %v309_v13 = vshll.u32 %v3018_v52, 16  ;;  %v3043_v32 = vld [vmem:[%s2817_s30 + $0x58] sm:$0xf] }
  0x44   : > { %v520_v59 = vsel %vm2844_vm3, %v515_v45, %v519_v25  ;;  %v663_v60 = vunpack.c.l.b16 %v510_v53  ;;  %v600_v63 = vor.u32 %v599_v49, %v596_v46  ;;  %v610_v7 = vor.u32 %v609_v55, %v605_v54  ;;  %v3048_v46 = vld [vmem:[%s2817_s30 + $0x5c] sm:$0x1]  ;;  %4045 = vst [vmem:[#allocation11_spill] sm:$0xff] %v3082_v17 }
  0x45   : > { %v664_v5 = vunpack.c.l.b16 %v520_v59  ;;  %v315_v20 = vshll.u32 %v3023_v56, 16  ;;  %v319_v21 = vshrl.u32 %v3023_v56, 16  ;;  %v325_v22 = vshll.u32 %v3026_v57, 16 }
  0x46   : > { %v601_v14 = vrot.slane %v600_v63, 4  ;;  %v611_v27 = vrot.slane %v610_v7, 4  ;;  %v308_v30 = vrot.slane %v306_v6, 4  ;;  %v311_v31 = vrot.slane %v309_v13, 5  ;;  %v3058_v7 = vld [vmem:[%s2817_s30 + $0x84] sm:$0xf] }
  0x47   : > { %v3040_v25 = vpack.c.b16 %v664_v5, %v663_v60  ;;  %v317_v41 = vrot.slane %v315_v20, 5  ;;  %v321_v42 = vrot.slane %v319_v21, 4  ;;  %v327_v45 = vrot.slane %v325_v22, 5  ;;  %4043 = vst [vmem:[#allocation9_spill] sm:$0xff] %v3058_v7 }
  0x48   : > { %v606_v33 = vsel %vm2844_vm3, %v601_v14, %v605_v54  ;;  %v616_v49 = vsel %vm2844_vm3, %v611_v27, %v615_v0  ;;  %v312_v55 = vor.u32 %v311_v31, %v308_v30  ;;  %v426_v59 = vshrl.u32 %v3038_v26, 16  ;;  %v3065_v30 = vld [vmem:[%s2817_s30 + $0x88] sm:$0xf] }
  0x49   : > { %2476 = vmatmul.msk.bf16.gmra.mxu2 %vm691_vm4, %v3040_v25  ;;  %v671_v53 = vunpack.c.l.b16 %v606_v33  ;;  %v672_v60 = vunpack.c.l.b16 %v616_v49  ;;  %v322_v63 = vor.u32 %v321_v42, %v317_v41  ;;  %v429_v54 = vshll.u32 %v3038_v26, 16  ;;  %v3070_v49 = vld [vmem:[%s2817_s30 + $0x8c] sm:$0x1] }
  0x4a   : > { %v435_v5 = vshll.u32 %v3043_v32, 16  ;;  %v313_v6 = vrot.slane %v312_v55, 4  ;;  %v428_v13 = vrot.slane %v426_v59, 4  ;;  %v439_v14 = vshrl.u32 %v3043_v32, 16 }
  0x4b   : > { %v445_v0 = vshll.u32 %v3048_v46, 16  ;;  %v3062_v20 = vpack.c.b16 %v672_v60, %v671_v53  ;;  %v323_v21 = vrot.slane %v322_v63, 4  ;;  %v431_v22 = vrot.slane %v429_v54, 5 }
  0x4c   : > { %v437_v27 = vrot.slane %v435_v5, 5  ;;  %v318_v31 = vsel %vm2844_vm3, %v313_v6, %v317_v41  ;;  %v441_v33 = vrot.slane %v439_v14, 4  ;;  %v522_v55 = vshrl.u32 %v3058_v7, 16 }
  0x4d   : > { %4044 = vst [vmem:[#allocation10_spill] sm:$0xff] %v3062_v20  ;;  %v447_v42 = vrot.slane %v445_v0, 5  ;;  %2480 = vmatmul.msk.bf16.gmra.mxu3 %vm691_vm4, %v3062_v20  ;;  %v328_v53 = vsel %vm2844_vm3, %v323_v21, %v327_v45  ;;  %v647_v59 = vunpack.c.l.b16 %v318_v31  ;;  %v432_v60 = vor.u32 %v431_v22, %v428_v13  ;;  %v3087_v22 = vld [vmem:[%s2817_s30 + $0xb8] sm:$0xf] }
  0x4e   : > { %v525_v63 = vshll.u32 %v3058_v7, 16  ;;  %v648_v54 = vunpack.c.l.b16 %v328_v53  ;;  %v442_v41 = vor.u32 %v441_v33, %v437_v27  ;;  %v524_v5 = vrot.slane %v522_v55, 4  ;;  %4046 = vst [vmem:[#allocation12_spill] sm:$0xff] %v3087_v22 }
  0x4f   : > { %v531_v6 = vshll.u32 %v3065_v30, 16  ;;  %v433_v14 = vrot.slane %v432_v60, 4  ;;  %v535_v8 = vshrl.u32 %v3065_v30, 16  ;;  %v541_v20 = vshll.u32 %v3070_v49, 16  ;;  %v3092_v60 = vld [vmem:[%s2817_s30 + $0xbc] sm:$0x1] }
  0x50   : > { %v527_v0 = vrot.slane %v525_v63, 5  ;;  %v3084_v45 = vpack.c.b16 %v648_v54, %v647_v59  ;;  %v443_v21 = vrot.slane %v442_v41, 4  ;;  %4047 = vst [vmem:[#allocation13_spill] sm:$0xff] %v3092_v60  ;;  %v618_v54 = vshrl.u32 %v3082_v17, 16 }
  0x51   : > { %v533_v13 = vrot.slane %v531_v6, 5  ;;  %v438_v31 = vsel %vm2844_vm3, %v433_v14, %v437_v27  ;;  %v537_v55 = vrot.slane %v535_v8, 4  ;;  %v543_v53 = vrot.slane %v541_v20, 5 }
  0x52   : > { %v528_v33 = vor.u32 %v527_v0, %v524_v5  ;;  %2468 = vmatmul.msk.bf16.gmra.mxu0 %vm691_vm4, %v3084_v45  ;;  %v448_v59 = vsel %vm2844_vm3, %v443_v21, %v447_v42  ;;  %v657_v63 = vunpack.c.l.b16 %v438_v31  ;;  %v621_v41 = vshll.u32 %v3082_v17, 16 }
  0x53   : > { %v658_v6 = vunpack.c.l.b16 %v448_v59  ;;  %v538_v5 = vor.u32 %v537_v55, %v533_v13  ;;  %v627_v8 = vshll.u32 %v3087_v22, 16  ;;  %v620_v20 = vrot.slane %v618_v54, 4 }
  0x54   : > { %v529_v27 = vrot.slane %v528_v33, 4  ;;  %v623_v14 = vrot.slane %v621_v41, 5  ;;  %v631_v0 = vshrl.u32 %v3087_v22, 16  ;;  %v637_v16 = vshll.u32 %v3092_v60, 16  ;;  %v3111_v33 = vld [vmem:[%s2817_s30 + $0x28] sm:$0xf] }
  0x55   : > { %v3106_v42 = vpack.c.b16 %v658_v6, %v657_v63  ;;  %v539_v31 = vrot.slane %v538_v5, 4  ;;  %v629_v59 = vrot.slane %v627_v8, 5  ;;  %v1077_v55 = vrot.slane %v2864_v2, 5 }
  0x56   : > { %v534_v21 = vsel %vm2844_vm3, %v529_v27, %v533_v13  ;;  %v624_v54 = vor.u32 %v623_v14, %v620_v20  ;;  %v633_v41 = vrot.slane %v631_v0, 4  ;;  %v639_v6 = vrot.slane %v637_v16, 5 }
  0x57   : > { %4048 = vst [vmem:[#allocation14_spill] sm:$0xff] %v3106_v42  ;;  %v665_v17 = vunpack.c.l.b16 %v534_v21  ;;  %2473 = vmatmul.msk.bf16.gmra.mxu1 %vm691_vm4, %v3106_v42  ;;  %v544_v63 = vsel %vm2844_vm3, %v539_v31, %v543_v53  ;;  %v330_v13 = vshrl.u32 %v3104_v40, 16  ;;  %v333_v27 = vshll.u32 %v3104_v40, 16 }
  0x58   : > { %v666_v5 = vunpack.c.l.b16 %v544_v63  ;;  %v625_v8 = vrot.slane %v624_v54, 4  ;;  %v634_v60 = vor.u32 %v633_v41, %v629_v59  ;;  %v339_v2 = vshll.u32 %v3111_v33, 16  ;;  %v2651_v54 = vld [vmem:[%s3990_s1 + $0x18] sm:$0xf]  ;;  %v2672_v41 = vld [vmem:[%s3990_s1 + $0x1c] sm:$0xf] }
  0x59   : > { %v332_v20 = vrot.slane %v330_v13, 4  ;;  %v335_v14 = vrot.slane %v333_v27, 5  ;;  %v343_v0 = vshrl.u32 %v3111_v33, 16  ;;  %v349_v21 = vshll.u32 %v3115_v39, 16 }
  0x5a   : > { %v3126_v22 = vpack.c.b16 %v666_v5, %v665_v17  ;;  %v630_v16 = vsel %vm2844_vm3, %v625_v8, %v629_v59  ;;  %v635_v53 = vrot.slane %v634_v60, 4  ;;  %v341_v31 = vrot.slane %v339_v2, 5  ;;  %v2634_v17 = vld [vmem:[%s3990_s1 + $0x14] sm:$0xf]  ;;  %v2690_v60 = vld [vmem:[%s3990_s1 + $0x20] sm:$0xf] }
  0x5b   : > { %v673_v63 = vunpack.c.l.b16 %v630_v16  ;;  %v336_v13 = vor.u32 %v335_v14, %v332_v20  ;;  %v345_v27 = vrot.slane %v343_v0, 4  ;;  %v351_v7 = vrot.slane %v349_v21, 5 }
  0x5c   : > { %4049 = vst [vmem:[#allocation15_spill] sm:$0xff] %v3126_v22  ;;  %2477 = vmatmul.msk.bf16.gmra.mxu2 %vm691_vm4, %v3126_v22  ;;  %v640_v59 = vsel %vm2844_vm3, %v635_v53, %v639_v6  ;;  %v2562_v5 = vrot.slane %v2854_v61, 9  ;;  %v1074_v0 = vrot.slane %v2861_v1, 5  ;;  %v1847_v21 = vsel %vm740_vm0, %v2651_v54, 0 }
  0x5d   : > { %v674_v8 = vunpack.c.l.b16 %v640_v59  ;;  %v337_v2 = vrot.slane %v336_v13, 4  ;;  %v346_v20 = vor.u32 %v345_v27, %v341_v31  ;;  %v2003_v16 = vsel %vm740_vm0, %v2672_v41, 0  ;;  %1856 = vmatpush.bf16.msra.mxu2 %v1847_v21  ;;  %v2711_v21 = vld [vmem:[%s2817_s30 + $0xc] sm:$0xff] }
  0x5e   : > { %v1713_v22 = vsel %vm740_vm0, %v2634_v17, 0  ;;  %v2143_v6 = vsel %vm740_vm0, %v2690_v60, 0  ;;  %v1075_v27 = vsel %vm3147_vm7, %v2562_v5, %v1074_v0  ;;  %2012 = vmatpush.bf16.msra.mxu3 %v2003_v16  ;;  %v1076_v54 = vrot.slane %v1074_v0, 4 }
  0x5f   : > { %v3156_v53 = vpack.c.b16 %v674_v8, %v673_v63  ;;  %v342_v61 = vsel %vm2844_vm3, %v337_v2, %v341_v31  ;;  %v347_v13 = vrot.slane %v346_v20, 4  ;;  %1722 = vmatpush.bf16.msra.mxu1 %v1713_v22  ;;  %2152 = vmatpush.bf16.msra.mxu0 %v2143_v6  ;;  %v2563_v41 = vrot.slane %v2928_v35, 9  ;;  %v2710_v22 = vld [vmem:[%s2817_s30] sm:$0xff]  ;;  %v3193_v6 = vld [vmem:[%s2817_s30 + $0x18] sm:$0xff] }
  0x60   : > { %v649_v1 = vunpack.c.l.b16 %v342_v61  ;;  %v1186_v31 = vunpack.c.l.b16 %v1075_v27  ;;  %v1081_v17 = vrot.slane %v2935_v43, 5  ;;  %v1084_v60 = vrot.slane %v2938_v48, 5 }
  0x61   : > { %2481 = vmatmul.msk.bf16.gmra.mxu3 %vm691_vm4, %v3156_v53  ;;  %v352_v63 = vsel %vm2844_vm3, %v347_v13, %v351_v7  ;;  %v1078_v5 = vsel %vm3147_vm7, %v1076_v54, %v1077_v55  ;;  %v1088_v16 = vrot.slane %v3023_v56, 5  ;;  %v2564_v61 = vrot.slane %v3018_v52, 9 }
  0x62   : > { %v650_v59 = vunpack.c.l.b16 %v352_v63  ;;  %v1187_v8 = vunpack.c.l.b16 %v1078_v5  ;;  %v1082_v35 = vsel %vm3147_vm7, %v2563_v41, %v1081_v17  ;;  %v1083_v2 = vrot.slane %v1081_v17, 4  ;;  %v3213_v41 = vld [vmem:[%s2817_s30 + $0x24] sm:$0xff] }
  0x63   : > { %v1188_v7 = vunpack.c.l.b16 %v1082_v35  ;;  %v1090_v13 = vrot.slane %v1088_v16, 4  ;;  %v1091_v27 = vrot.slane %v3026_v57, 5  ;;  %v1095_v57 = vrot.slane %v3111_v33, 5 }
  0x64   : > { %v3174_v20 = vpack.c.b16 %v650_v59, %v649_v1  ;;  %v1218_v0 = vpack.c.b16 %v1187_v8, %v1186_v31  ;;  %v1085_v43 = vsel %vm3147_vm7, %v1083_v2, %v1084_v60  ;;  %v2565_v63 = vrot.slane %v3104_v40, 9  ;;  %v3235_v8 = vld [vmem:[%s2817_s30 + $0x30] sm:$0xff] }
  0x65   : > { %v1189_v48 = vunpack.c.l.b16 %v1085_v43  ;;  %v1092_v56 = vsel %vm3147_vm7, %v1090_v13, %v1091_v27  ;;  %v1097_v31 = vrot.slane %v1095_v57, 4  ;;  %v1098_v17 = vrot.slane %v3115_v39, 5  ;;  %v3263_v27 = vld [vmem:[%s2817_s30 + $0x3c] sm:$0xff] }
  0x66   : > { %2469 = vmatmul.msk.bf16.gmra.mxu0 %vm691_vm4, %v3174_v20  ;;  %v1191_v54 = vunpack.c.l.b16 %v1092_v56  ;;  %v1096_v60 = vsel %vm3147_vm7, %v2565_v63, %v1095_v57  ;;  %v1102_v39 = vrot.slane %v2823_v11, 5  ;;  %v2566_v35 = vrot.slane %v2820_v10, 9 }
  0x67   : > { %2546 = vmatmul.msk.bf16.vlgmr.msrb.gmra.mxu1 %vm691_vm4, %v2710_v22  ;;  %v3181_v55 = vpack.c.b16 %v1189_v48, %v1188_v7  ;;  %v1099_v33 = vsel %vm3147_vm7, %v1097_v31, %v1098_v17  ;;  %v1192_v59 = vunpack.c.l.b16 %v1096_v60  ;;  %v1105_v7 = vrot.slane %v2826_v12, 5 }
  0x68   : > { %v1193_v5 = vunpack.c.l.b16 %v1099_v33  ;;  %v1104_v2 = vrot.slane %v1102_v39, 4  ;;  %v1109_v13 = vrot.slane %v2883_v24, 5  ;;  %v2567_v56 = vrot.slane %v2880_v23, 9 }
  0x6a   : > { %v3227_v40 = vpack.c.b16 %v1193_v5, %v1192_v59  ;;  %v1106_v11 = vsel %vm3147_vm7, %v1104_v2, %v1105_v7  ;;  %v1110_v24 = vsel %vm3147_vm7, %v2567_v56, %v1109_v13  ;;  %v1116_v5 = vrot.slane %v2953_v3, 5 }
  0x6b   : > { %v1196_v23 = vunpack.c.l.b16 %v1110_v24  ;;  %v2568_v7 = vrot.slane %v2948_v58, 9  ;;  %v1123_v24 = vrot.slane %v3043_v32, 5 }
  0x6c   : > { %2579 = vmatmul.msk.bf16.vlgmr.msrb.gmra.mxu2 %vm691_vm4, %v1218_v0  ;;  %v1103_v0 = vsel %vm3147_vm7, %v2566_v35, %v1102_v39  ;;  %v3297_v35 = vld [vmem:[%s2817_s30 + $0x48] sm:$0xff] }
  0x6d   : > { %v1194_v48 = vunpack.c.l.b16 %v1103_v0  ;;  %4054 = vst [vmem:[#allocation18_spill] sm:$0xff] %v3297_v35  ;;  %v1118_v0 = vrot.slane %v1116_v5, 4 }
  0x71   : > { %2600 = vmatmul.msk.bf16.vlgmr.msrb.gmra.mxu3 %vm691_vm4, %v2711_v21 }
  0x76   : > { %2617 = vmatmul.msk.bf16.vlgmr.msrb.gmra.mxu0 %vm691_vm4, %v2996_v9  ;;  %v1089_v9 = vsel %vm3147_vm7, %v2564_v61, %v1088_v16 }
  0x77   : > { %2547 = vmatmul.msk.bf16.gmra.mxu1 %vm691_vm4, %v2711_v21  ;;  %v1190_v1 = vunpack.c.l.b16 %v1089_v9  ;;  %v1195_v21 = vunpack.c.l.b16 %v1106_v11  ;;  %v1119_v11 = vrot.slane %v2960_v15, 5 }
  0x79   : > { %v3207_v52 = vpack.c.b16 %v1191_v54, %v1190_v1  ;;  %v3255_v12 = vpack.c.b16 %v1195_v21, %v1194_v48  ;;  %v1111_v1 = vrot.slane %v1109_v13, 4  ;;  %v1112_v54 = vrot.slane %v2888_v29, 5 }
  0x7a   : > { %v1117_v21 = vsel %vm3147_vm7, %v2568_v7, %v1116_v5  ;;  %v1120_v13 = vsel %vm3147_vm7, %v1118_v0, %v1119_v11  ;;  %v2569_v5 = vrot.slane %v3038_v26, 9  ;;  %v1125_v7 = vrot.slane %v1123_v24, 4 }
  0x7b   : > { %v1113_v63 = vsel %vm3147_vm7, %v1111_v1, %v1112_v54  ;;  %v1198_v56 = vunpack.c.l.b16 %v1117_v21  ;;  %v1199_v1 = vunpack.c.l.b16 %v1120_v13  ;;  %v1126_v0 = vrot.slane %v3048_v46, 5 }
  0x7c   : > { %2580 = vmatmul.msk.bf16.gmra.mxu2 %vm691_vm4, %v3181_v55  ;;  %v1197_v60 = vunpack.c.l.b16 %v1113_v63  ;;  %v1124_v32 = vsel %vm3147_vm7, %v2569_v5, %v1123_v24  ;;  %v1130_v5 = vrot.slane %v2835_v19, 5 }
  0x7d   : > { %v3321_v54 = vpack.c.b16 %v1199_v1, %v1198_v56  ;;  %v1127_v13 = vsel %vm3147_vm7, %v1125_v7, %v1126_v0  ;;  %v1200_v56 = vunpack.c.l.b16 %v1124_v32  ;;  %v2742_v32 = vld [vmem:[%s2817_s30 + $0x68] sm:$0x1] }
  0x7e   : > { %v3287_v33 = vpack.c.b16 %v1197_v60, %v1196_v23  ;;  %v3331_v60 = vld [vmem:[%s2817_s30 + $0x54] sm:$0xff]  ;;  %v1201_v46 = vunpack.c.l.b16 %v1127_v13  ;;  %v1133_v13 = vrot.slane %v2742_v32, 5 }
  0x7f   : > { %4057 = vst [vmem:[#allocation21_spill] sm:$0xff] %v3321_v54 }
  0x80   : > { %4058 = vst [vmem:[#allocation22_spill] sm:$0xff] %v3331_v60 }
  0x81   : > { %2601 = vmatmul.msk.bf16.gmra.mxu3 %vm691_vm4, %v3193_v6 }
  0x86   : > { %2618 = vmatmul.msk.bf16.gmra.mxu0 %vm691_vm4, %v3084_v45 }
  0x87   : > { %2548 = vmatmul.msk.bf16.gmra.mxu1 %vm691_vm4, %v3193_v6 }
  0x8c   : > { %2581 = vmatmul.msk.bf16.gmra.mxu2 %vm691_vm4, %v3207_v52 }
  0x91   : > { %2602 = vmatmul.msk.bf16.gmra.mxu3 %vm691_vm4, %v3213_v41 }
  0x96   : > { %2619 = vmatmul.msk.bf16.gmra.mxu0 %vm691_vm4, %v3174_v20 }
  0x97   : > { %2549 = vmatmul.msk.bf16.gmra.mxu1 %vm691_vm4, %v3213_v41 }
  0x9c   : > { %v3230_v22 = vpop.f32.mrf.mxu1  ;;  %2582 = vmatmul.msk.bf16.gmra.mxu2 %vm691_vm4, %v3227_v40 }
  0xa1   : > { %2603 = vmatmul.msk.bf16.gmra.mxu3 %vm691_vm4, %v3235_v8 }
  0xa4   : > { %v3245_v43 = vpop.f32.mrf.mxu1 }
  0xa6   : > { %v3247_v16 = vpop.f32.mrf.mxu2  ;;  %2620 = vmatmul.msk.bf16.gmra.mxu0 %vm691_vm4, %v2856_v62 }
  0xa7   : > { %2550 = vmatmul.msk.bf16.gmra.mxu1 %vm691_vm4, %v3235_v8 }
  0xa9   : > { %v3253_v10 = vpop.f32.mrf.mxu0 }
  0xaa   : > { %v3257_v61 = vpop.f32.mrf.mxu3 }
  0xab   : > { %4052 = vst [vmem:[#allocation16_spill] sm:$0xff] %v3257_v61 }
  0xac   : > { %2583 = vmatmul.msk.bf16.gmra.mxu2 %vm691_vm4, %v3255_v12 }
  0xae   : > { %v3265_v9 = vpop.f32.mrf.mxu1  ;;  %v3269_v57 = vpop.f32.mrf.mxu2 }
  0xb1   : > { %2604 = vmatmul.msk.bf16.gmra.mxu3 %vm691_vm4, %v3263_v27  ;;  %v3277_v31 = vpop.f32.mrf.mxu0 }
  0xb2   : > { %v3279_v17 = vpop.f32.mrf.mxu3 }
  0xb3   : > { %4053 = vst [vmem:[#allocation17_spill] sm:$0xff] %v3279_v17 }
  0xb6   : > { %2621 = vmatmul.msk.bf16.gmra.mxu0 %vm691_vm4, %v2930_v37  ;;  %v3283_v29 = vpop.f32.mrf.mxu1 }
  0xb7   : > { %2551 = vmatmul.msk.bf16.gmra.mxu1 %vm691_vm4, %v3263_v27 }
  0xb9   : > { %v3289_v59 = vpop.f32.mrf.mxu2 }
  0xbc   : > { %2584 = vmatmul.msk.bf16.gmra.mxu2 %vm691_vm4, %v3287_v33 }
  0xbd   : > { %v3292_v39 = vpop.f32.mrf.mxu0 }
  0xbe   : > { %v3299_v2 = vpop.f32.mrf.mxu3 }
  0xbf   : > { %4055 = vst [vmem:[#allocation19_spill] sm:$0xff] %v3299_v2 }
  0xc0   : > { %v3303_v48 = vpop.f32.mrf.mxu1 }
  0xc1   : > { %2605 = vmatmul.msk.bf16.gmra.mxu3 %vm691_vm4, %v3297_v35  ;;  %v3307_v3 = vpop.f32.mrf.mxu2 }
  0xc5   : > { %v3313_v58 = vpop.f32.mrf.mxu0 }
  0xc6   : > { %2622 = vmatmul.msk.bf16.gmra.mxu0 %vm691_vm4, %v3015_v44  ;;  %v3317_v15 = vpop.f32.mrf.mxu3 }
  0xc7   : > { %4056 = vst [vmem:[#allocation20_spill] sm:$0xff] %v3317_v15  ;;  %2552 = vmatmul.msk.bf16.gmra.mxu1 %vm691_vm4, %v3297_v35  ;;  %v3366_v15 = vld [vmem:[%s2817_s30 + $0x60] sm:$0xff] }
  0xc8   : > { %v3324_v63 = vpop.f32.mrf.mxu1  ;;  %4062 = vst [vmem:[#allocation26_spill] sm:$0xff] %v3366_v15 }
  0xcc   : > { %v3326_v23 = vpop.f32.mrf.mxu2  ;;  %2585 = vmatmul.msk.bf16.gmra.mxu2 %vm691_vm4, %v3321_v54 }
  0xcf   : > { %v3335_v11 = vpop.f32.mrf.mxu0 }
  0xd0   : > { %v3337_v21 = vpop.f32.mrf.mxu3 }
  0xd1   : > { %4059 = vst [vmem:[#allocation23_spill] sm:$0xff] %v3337_v21  ;;  %2606 = vmatmul.msk.bf16.gmra.mxu3 %vm691_vm4, %v3331_v60  ;;  %v3353_v21 = vpack.c.b16 %v1201_v46, %v1200_v56 }
  0xd3   : > { %4060 = vst [vmem:[#allocation24_spill] sm:$0xff] %v3353_v21 }
  0xd4   : > { %v3345_v26 = vpop.f32.mrf.mxu1  ;;  %v3347_v1 = vpop.f32.mrf.mxu2 }
  0xd6   : > { %2623 = vmatmul.msk.bf16.gmra.mxu0 %vm691_vm4, %v3106_v42  ;;  %v2743_v42 = vld [vmem:[%s2817_s30 + $0x60] sm:$0xf] }
  0xd7   : > { %2553 = vmatmul.msk.bf16.gmra.mxu1 %vm691_vm4, %v3331_v60  ;;  %v3355_v24 = vpop.f32.mrf.mxu0  ;;  %v2570_v2 = vrot.slane %v2743_v42, 9  ;;  %v1132_v60 = vrot.slane %v1130_v5, 4 }
  0xd8   : > { %v3358_v7 = vpop.f32.mrf.mxu3 }
  0xd9   : > { %4061 = vst [vmem:[#allocation25_spill] sm:$0xff] %v3358_v7  ;;  %v1131_v19 = vsel %vm3147_vm7, %v2570_v2, %v1130_v5  ;;  %v1134_v46 = vsel %vm3147_vm7, %v1132_v60, %v1133_v13  ;;  %v1137_v60 = vrot.slane %v2903_v47, 5 }
  0xda   : > { %v1202_v17 = vunpack.c.l.b16 %v1131_v19  ;;  %v1203_v42 = vunpack.c.l.b16 %v1134_v46  ;;  %v3399_v19 = vld [vmem:[%s2817_s30 + $0x6c] sm:$0xff] }
  0xdc   : > { %2586 = vmatmul.msk.bf16.gmra.mxu2 %vm691_vm4, %v3353_v21  ;;  %v3362_v0 = vpop.f32.mrf.mxu1  ;;  %v3388_v2 = vpack.c.b16 %v1203_v42, %v1202_v17  ;;  %v1139_v17 = vrot.slane %v1137_v60, 4 }
  0xde   : > { %4064 = vst [vmem:[#allocation28_spill] sm:$0xff] %v3388_v2 }
  0xdf   : > { %v3369_v56 = vpop.f32.mrf.mxu2 }
  0xe1   : > { %2607 = vmatmul.msk.bf16.gmra.mxu3 %vm691_vm4, %v3366_v15 }
  0xe3   : > { %v3377_v7 = vpop.f32.mrf.mxu0 }
  0xe4   : > { %v3379_v32 = vpop.f32.mrf.mxu3  ;;  %v973_v21 = vpop.f32.mrf.mxu1 }
  0xe5   : > { %4063 = vst [vmem:[#allocation27_spill] sm:$0xff] %v3379_v32  ;;  %v974_v54 = vadd.f32 %v973_v21, %v3253_v10  ;;  %v1140_v21 = vrot.slane %v2910_v51, 5  ;;  %v2571_v32 = vrot.slane %v2896_v38, 9 }
  0xe6   : > { %2624 = vmatmul.msk.bf16.gmra.mxu0 %vm691_vm4, %v2875_v18 }
  0xe7   : > { %v3384_v44 = vpop.f32.mrf.mxu2  ;;  %2554 = vmatmul.msk.bf16.gmra.mxu1 %vm691_vm4, %v3366_v15  ;;  %v1138_v47 = vsel %vm3147_vm7, %v2571_v32, %v1137_v60 }
  0xe8   : > { %v1204_v61 = vunpack.c.l.b16 %v1138_v47 }
  0xeb   : > { %v3391_v5 = vpop.f32.mrf.mxu0 }
  0xec   : > { %v3393_v13 = vpop.f32.mrf.mxu3  ;;  %2587 = vmatmul.msk.bf16.gmra.mxu2 %vm691_vm4, %v3388_v2  ;;  %v975_v10 = vpop.f32.mrf.mxu1 }
  0xed   : > { %4065 = vst [vmem:[#allocation29_spill] sm:$0xff] %v3393_v13  ;;  %v976_v46 = vadd.f32 %v975_v10, %v3277_v31  ;;  %v1141_v13 = vsel %vm3147_vm7, %v1139_v17, %v1140_v21  ;;  %v1144_v21 = vrot.slane %v2975_v34, 5 }
  0xee   : > { %v1205_v35 = vunpack.c.l.b16 %v1141_v13  ;;  %v1147_v13 = vrot.slane %v2982_v50, 5 }
  0xef   : > { %v1294_v42 = vpop.f32.mrf.mxu2 }
  0xf0   : > { %v1374_v18 = vadd.f32 %v1294_v42, %v974_v54  ;;  %v3416_v10 = vpack.c.b16 %v1205_v35, %v1204_v61  ;;  %v3423_v42 = vld [vmem:[%s2817_s30 + $0x78] sm:$0xff] }
  0xf1   : > { %2608 = vmatmul.msk.bf16.gmra.mxu3 %vm691_vm4, %v3399_v19 }
  0xf3   : > { %v1584_v2 = vpop.f32.mrf.mxu0 }
  0xf4   : > { %v1428_v51 = vpop.f32.mrf.mxu3  ;;  %v978_v15 = vpop.f32.mrf.mxu1 }
  0xf5   : > { %v1508_v31 = vadd.f32 %v1428_v51, %v1374_v18  ;;  %v979_v38 = vadd.f32 %v978_v15, %v3292_v39 }
  0xf6   : > { %2625 = vmatmul.msk.bf16.gmra.mxu0 %vm691_vm4, %v2955_v4 }
  0xf7   : > { %v1296_v54 = vpop.f32.mrf.mxu2  ;;  %2555 = vmatmul.msk.bf16.gmra.mxu1 %vm691_vm4, %v3399_v19  ;;  %v3414_v32 = vadd.f32 %v1584_v2, %v1508_v31  ;;  %v2572_v2 = vrot.slane %v2971_v28, 9 }
  0xf8   : > { %v1375_v60 = vadd.f32 %v1296_v54, %v976_v46  ;;  %v1146_v46 = vrot.slane %v1144_v21, 4 }
  0xf9   : > { %v1145_v50 = vsel %vm3147_vm7, %v2572_v2, %v1144_v21 }
  0xfa   : > { %v1148_v51 = vsel %vm3147_vm7, %v1146_v46, %v1147_v13  ;;  %v1154_v46 = vrot.slane %v3070_v49, 5 }
  0xfb   : > { %v1586_v17 = vpop.f32.mrf.mxu0 }
  0xfc   : > { %v1430_v18 = vpop.f32.mrf.mxu3  ;;  %2588 = vmatmul.msk.bf16.gmra.mxu2 %vm691_vm4, %v3416_v10  ;;  %v980_v39 = vpop.f32.mrf.mxu1 }
  0xfd   : > { %v1509_v15 = vadd.f32 %v1430_v18, %v1375_v60  ;;  %v981_v47 = vadd.f32 %v980_v39, %v3313_v58  ;;  %v1206_v58 = vunpack.c.l.b16 %v1145_v50  ;;  %v1207_v18 = vunpack.c.l.b16 %v1148_v51  ;;  %v3449_v50 = vld [vmem:[%s2817_s30 + $0x84] sm:$0xff] }
  0xff   : > { %v1299_v61 = vpop.f32.mrf.mxu2  ;;  %v3427_v35 = vadd.f32 %v1586_v17, %v1509_v15  ;;  %v3442_v13 = vpack.c.b16 %v1207_v18, %v1206_v58  ;;  %v1151_v15 = vrot.slane %v3065_v30, 5 }
 0x100   : > { %v1376_v34 = vadd.f32 %v1299_v61, %v979_v38 }
 0x101   : > { %2609 = vmatmul.msk.bf16.gmra.mxu3 %vm691_vm4, %v3423_v42 }
 0x103   : > { %v1589_v31 = vpop.f32.mrf.mxu0 }
 0x104   : > { %v1433_v54 = vpop.f32.mrf.mxu3  ;;  %v983_v60 = vpop.f32.mrf.mxu1 }
 0x105   : > { %v1510_v28 = vadd.f32 %v1433_v54, %v1376_v34  ;;  %v984_v17 = vadd.f32 %v983_v60, %v3335_v11 }
 0x106   : > { %2626 = vmatmul.msk.bf16.gmra.mxu0 %vm691_vm4, %v3040_v25 }
 0x107   : > { %v1301_v38 = vpop.f32.mrf.mxu2  ;;  %2556 = vmatmul.msk.bf16.gmra.mxu1 %vm691_vm4, %v3423_v42  ;;  %v3440_v21 = vadd.f32 %v1589_v31, %v1510_v28  ;;  %v4066_v31 = vld [vmem:[#allocation9_spill] sm:$0xff] }
 0x108   : > { %v1377_v39 = vadd.f32 %v1301_v38, %v981_v47  ;;  %v2573_v54 = vrot.slane %v4066_v31, 9  ;;  %v1153_v47 = vrot.slane %v1151_v15, 4 }
 0x10a   : > { %v1152_v49 = vsel %vm3147_vm7, %v2573_v54, %v1151_v15  ;;  %v1155_v18 = vsel %vm3147_vm7, %v1153_v47, %v1154_v46  ;;  %v2744_v54 = vld [vmem:[%s2817_s30 + $0x94] sm:$0xf] }
 0x10b   : > { %v1591_v2 = vpop.f32.mrf.mxu0  ;;  %v1158_v47 = vrot.slane %v2744_v54, 5 }
 0x10c   : > { %v1435_v61 = vpop.f32.mrf.mxu3  ;;  %2589 = vmatmul.msk.bf16.gmra.mxu2 %vm691_vm4, %v3442_v13  ;;  %v985_v11 = vpop.f32.mrf.mxu1 }
 0x10d   : > { %v1511_v34 = vadd.f32 %v1435_v61, %v1377_v39  ;;  %v986_v51 = vadd.f32 %v985_v11, %v3355_v24  ;;  %v1208_v39 = vunpack.c.l.b16 %v1152_v49  ;;  %v1209_v61 = vunpack.c.l.b16 %v1155_v18 }
 0x10f   : > { %v1304_v60 = vpop.f32.mrf.mxu2  ;;  %v3453_v58 = vadd.f32 %v1591_v2, %v1511_v34  ;;  %v3468_v31 = vpack.c.b16 %v1209_v61, %v1208_v39 }
 0x110   : > { %v1378_v30 = vadd.f32 %v1304_v60, %v984_v17  ;;  %v4068_v17 = vld [vmem:[#allocation15_spill] sm:$0xff] }
 0x111   : > { %4067 = vst [vmem:[#allocation9_spill] sm:$0xff] %v3453_v58  ;;  %2610 = vmatmul.msk.bf16.gmra.mxu3 %vm691_vm4, %v3449_v50 }
 0x112   : > { %4070 = vst [vmem:[#allocation31_spill] sm:$0xff] %v3468_v31 }
 0x113   : > { %v1594_v28 = vpop.f32.mrf.mxu0 }
 0x114   : > { %v1438_v24 = vpop.f32.mrf.mxu3  ;;  %v988_v38 = vpop.f32.mrf.mxu1 }
 0x115   : > { %v1512_v11 = vadd.f32 %v1438_v24, %v1378_v30  ;;  %v989_v2 = vadd.f32 %v988_v38, %v3377_v7  ;;  %v2745_v30 = vld [vmem:[%s2817_s30 + $0x98] sm:$0x1]  ;;  %v3475_v38 = vld [vmem:[%s2817_s30 + $0x90] sm:$0xff] }
 0x116   : > { %2627 = vmatmul.msk.bf16.gmra.mxu0 %vm691_vm4, %v4068_v17  ;;  %v1161_v49 = vrot.slane %v2745_v30, 5  ;;  %4071 = vst [vmem:[#allocation32_spill] sm:$0xff] %v3475_v38 }
 0x117   : > { %v1306_v34 = vpop.f32.mrf.mxu2  ;;  %2557 = vmatmul.msk.bf16.gmra.mxu1 %vm691_vm4, %v3449_v50  ;;  %v3466_v15 = vadd.f32 %v1594_v28, %v1512_v11  ;;  %v2746_v28 = vld [vmem:[%s2817_s30 + $0x90] sm:$0xf] }
 0x118   : > { %v1379_v46 = vadd.f32 %v1306_v34, %v986_v51  ;;  %v2574_v11 = vrot.slane %v2746_v28, 9  ;;  %v1160_v51 = vrot.slane %v1158_v47, 4 }
 0x119   : > { %4069 = vst [vmem:[#allocation30_spill] sm:$0xff] %v3466_v15 }
 0x11a   : > { %v1159_v54 = vsel %vm3147_vm7, %v2574_v11, %v1158_v47  ;;  %v2747_v11 = vld [vmem:[%s2817_s30 + $0xa0] sm:$0xf] }
 0x11b   : > { %v1596_v60 = vpop.f32.mrf.mxu0 }
 0x11c   : > { %v1440_v7 = vpop.f32.mrf.mxu3  ;;  %2590 = vmatmul.msk.bf16.gmra.mxu2 %vm691_vm4, %v3468_v31  ;;  %v990_v18 = vpop.f32.mrf.mxu1  ;;  %v2749_v31 = vld [vmem:[%s2817_s30 + $0x9c] sm:$0xf] }
 0x11d   : > { %v1513_v24 = vadd.f32 %v1440_v7, %v1379_v46  ;;  %v991_v58 = vadd.f32 %v990_v18, %v3391_v5  ;;  %v1162_v46 = vsel %vm3147_vm7, %v1160_v51, %v1161_v49  ;;  %v1210_v18 = vunpack.c.l.b16 %v1159_v54 }
 0x11e   : > { %v1211_v28 = vunpack.c.l.b16 %v1162_v46  ;;  %v1165_v51 = vrot.slane %v2747_v11, 5  ;;  %v2748_v46 = vld [vmem:[%s2817_s30 + $0xa4] sm:$0x1] }
 0x11f   : > { %v1309_v39 = vpop.f32.mrf.mxu2  ;;  %v3479_v61 = vadd.f32 %v1596_v60, %v1513_v24  ;;  %v4073_v60 = vld [vmem:[#allocation3_spill] sm:$0xff] }
 0x120   : > { %v1380_v34 = vadd.f32 %v1309_v39, %v989_v2  ;;  %v3493_v49 = vpack.c.b16 %v1211_v28, %v1210_v18 }
 0x121   : > { %4072 = vst [vmem:[#allocation33_spill] sm:$0xff] %v3479_v61  ;;  %2611 = vmatmul.msk.bf16.gmra.mxu3 %vm691_vm4, %v3475_v38 }
 0x122   : > { %4075 = vst [vmem:[#allocation35_spill] sm:$0xff] %v3493_v49 }
 0x123   : > { %v1599_v30 = vpop.f32.mrf.mxu0 }
 0x124   : > { %v1443_v7 = vpop.f32.mrf.mxu3  ;;  %v993_v5 = vpop.f32.mrf.mxu1 }
 0x125   : > { %v1514_v15 = vadd.f32 %v1443_v7, %v1380_v34  ;;  %v1168_v7 = vrot.slane %v2748_v46, 5 }
 0x126   : > { %2628 = vmatmul.msk.bf16.gmra.mxu0 %vm691_vm4, %v4073_v60  ;;  %v3500_v60 = vld [vmem:[%s2817_s30 + $0x9c] sm:$0xff] }
 0x127   : > { %v1311_v2 = vpop.f32.mrf.mxu2  ;;  %2558 = vmatmul.msk.bf16.gmra.mxu1 %vm691_vm4, %v3475_v38  ;;  %v3491_v47 = vadd.f32 %v1599_v30, %v1514_v15  ;;  %4076 = vst [vmem:[#allocation36_spill] sm:$0xff] %v3500_v60  ;;  %v2575_v38 = vrot.slane %v2749_v31, 9  ;;  %v1167_v15 = vrot.slane %v1165_v51, 4 }
 0x128   : > { %v1381_v24 = vadd.f32 %v1311_v2, %v991_v58  ;;  %v994_v58 = vadd.f32 %v993_v5, %v3230_v22  ;;  %v4078_v5 = vld [vmem:[#allocation4_spill] sm:$0xff] }
 0x129   : > { %4074 = vst [vmem:[#allocation34_spill] sm:$0xff] %v3491_v47  ;;  %v1166_v2 = vsel %vm3147_vm7, %v2575_v38, %v1165_v51 }
 0x12a   : > { %v1212_v31 = vunpack.c.l.b16 %v1166_v2 }
 0x12b   : > { %v1601_v39 = vpop.f32.mrf.mxu0 }
 0x12c   : > { %v1445_v54 = vpop.f32.mrf.mxu3  ;;  %2591 = vmatmul.msk.bf16.gmra.mxu2 %vm691_vm4, %v3493_v49  ;;  %v995_v34 = vpop.f32.mrf.mxu1 }
 0x12d   : > { %v1515_v61 = vadd.f32 %v1445_v54, %v1381_v24  ;;  %v1169_v24 = vsel %vm3147_vm7, %v1167_v15, %v1168_v7  ;;  %v4081_v15 = vld [vmem:[#allocation6_spill] sm:$0xff] }
 0x12e   : > { %v1213_v47 = vunpack.c.l.b16 %v1169_v24  ;;  %v4082_v24 = vld [vmem:[#allocation7_spill] sm:$0xff] }
 0x12f   : > { %v1314_v30 = vpop.f32.mrf.mxu2  ;;  %v3504_v18 = vadd.f32 %v1601_v39, %v1515_v61  ;;  %v996_v61 = vadd.f32 %v995_v34, %v3245_v43  ;;  %v3526_v34 = vld [vmem:[%s2817_s30 + $0xa8] sm:$0xff] }
 0x130   : > { %v1382_v28 = vadd.f32 %v1314_v30, %v994_v58  ;;  %v3519_v7 = vpack.c.b16 %v1213_v47, %v1212_v31  ;;  %v1172_v58 = vrot.slane %v4081_v15, 5  ;;  %4083 = vst [vmem:[#allocation6_spill] sm:$0xff] %v3526_v34 }
 0x131   : > { %4077 = vst [vmem:[#allocation37_spill] sm:$0xff] %v3504_v18  ;;  %2612 = vmatmul.msk.bf16.gmra.mxu3 %vm691_vm4, %v3500_v60  ;;  %v4084_v18 = vld [vmem:[#allocation5_spill] sm:$0xff] }
 0x132   : > { %4080 = vst [vmem:[#allocation39_spill] sm:$0xff] %v3519_v7 }
 0x133   : > { %v1604_v11 = vpop.f32.mrf.mxu0 }
 0x134   : > { %v1448_v54 = vpop.f32.mrf.mxu3  ;;  %v998_v46 = vpop.f32.mrf.mxu1 }
 0x135   : > { %v1516_v22 = vadd.f32 %v1448_v54, %v1382_v28  ;;  %v1175_v54 = vrot.slane %v4082_v24, 5 }
 0x136   : > { %2629 = vmatmul.msk.bf16.gmra.mxu0 %vm691_vm4, %v4078_v5  ;;  %v2576_v5 = vrot.slane %v4084_v18, 9 }
 0x137   : > { %v1316_v39 = vpop.f32.mrf.mxu2  ;;  %2559 = vmatmul.msk.bf16.gmra.mxu1 %vm691_vm4, %v3500_v60  ;;  %v3517_v38 = vadd.f32 %v1604_v11, %v1516_v22  ;;  %v1174_v11 = vrot.slane %v1172_v58, 4  ;;  %v999_v22 = vadd.f32 %v998_v46, %v3265_v9 }
 0x138   : > { %v1383_v51 = vadd.f32 %v1316_v39, %v996_v61  ;;  %v1173_v39 = vsel %vm3147_vm7, %v2576_v5, %v1172_v58  ;;  %v3544_v5 = vld [vmem:[%s2817_s30 + $0xc0] sm:$0xf] }
 0x139   : > { %4079 = vst [vmem:[#allocation38_spill] sm:$0xff] %v3517_v38  ;;  %v1214_v24 = vunpack.c.l.b16 %v1173_v39  ;;  %v4086_v38 = vld [vmem:[#allocation10_spill] sm:$0xff]  ;;  %v1541_v39 = vshrl.u32 %v3544_v5, 16 }
 0x13a   : > { %4087 = vst [vmem:[#allocation5_spill] sm:$0xff] %v3544_v5 }
 0x13b   : > { %v1606_v30 = vpop.f32.mrf.mxu0 }
 0x13c   : > { %v1450_v2 = vpop.f32.mrf.mxu3  ;;  %2592 = vmatmul.msk.bf16.gmra.mxu2 %vm691_vm4, %v3519_v7  ;;  %v1000_v28 = vpop.f32.mrf.mxu1 }
 0x13d   : > { %v1517_v43 = vadd.f32 %v1450_v2, %v1383_v51  ;;  %v1176_v51 = vsel %vm3147_vm7, %v1174_v11, %v1175_v54 }
 0x13e   : > { %v1215_v9 = vunpack.c.l.b16 %v1176_v51 }
 0x13f   : > { %v1319_v47 = vpop.f32.mrf.mxu2  ;;  %v3530_v31 = vadd.f32 %v1606_v30, %v1517_v43  ;;  %v1001_v30 = vadd.f32 %v1000_v28, %v3283_v29  ;;  %v1544_v29 = vshll.u32 %v3544_v5, 16 }
 0x140   : > { %v1384_v61 = vadd.f32 %v1319_v47, %v999_v22  ;;  %v3548_v11 = vpack.c.b16 %v1215_v9, %v1214_v24  ;;  %v3551_v22 = vld [vmem:[%s2817_s30 + $0xc4] sm:$0xf]  ;;  %v4091_v47 = vld [vmem:[#allocation12_spill] sm:$0xff]  ;;  %v4092_v24 = vld [vmem:[#allocation13_spill] sm:$0xff] }
 0x141   : > { %4085 = vst [vmem:[#allocation7_spill] sm:$0xff] %v3530_v31  ;;  %2613 = vmatmul.msk.bf16.gmra.mxu3 %vm691_vm4, %v3526_v34  ;;  %v1550_v28 = vshll.u32 %v3551_v22, 16  ;;  %v1182_v9 = vrot.slane %v4092_v24, 5  ;;  %v1546_v7 = vrot.slane %v1544_v29, 5 }
 0x142   : > { %4089 = vst [vmem:[#allocation41_spill] sm:$0xff] %v3548_v11 }
 0x143   : > { %v1609_v15 = vpop.f32.mrf.mxu0  ;;  %4090 = vst [vmem:[#allocation42_spill] sm:$0xff] %v3551_v22 }
 0x144   : > { %v1453_v18 = vpop.f32.mrf.mxu3  ;;  %v1003_v2 = vpop.f32.mrf.mxu1 }
 0x145   : > { %v1518_v46 = vadd.f32 %v1453_v18, %v1384_v61  ;;  %v1179_v61 = vrot.slane %v4091_v47, 5  ;;  %v1554_v18 = vshrl.u32 %v3551_v22, 16  ;;  %v1004_v5 = vadd.f32 %v1003_v2, %v3303_v48 }
 0x146   : > { %2630 = vmatmul.msk.bf16.gmra.mxu0 %vm691_vm4, %v4086_v38  ;;  %v1543_v38 = vrot.slane %v1541_v39, 4  ;;  %v1552_v22 = vrot.slane %v1550_v28, 5 }
 0x147   : > { %v1321_v43 = vpop.f32.mrf.mxu2  ;;  %2560 = vmatmul.msk.bf16.gmra.mxu1 %vm691_vm4, %v3526_v34  ;;  %v3546_v58 = vadd.f32 %v1609_v15, %v1518_v46  ;;  %v1556_v60 = vrot.slane %v1554_v18, 4 }
 0x148   : > { %v1385_v54 = vadd.f32 %v1321_v43, %v1001_v30  ;;  %v3562_v30 = vld [vmem:[%s2817_s30 + $0xb4] sm:$0xff]  ;;  %v4093_v43 = vld [vmem:[#allocation11_spill] sm:$0xff]  ;;  %v1547_v2 = vor.u32 %v1546_v7, %v1543_v38 }
 0x149   : > { %4088 = vst [vmem:[#allocation40_spill] sm:$0xff] %v3546_v58  ;;  %v2577_v47 = vrot.slane %v4093_v43, 9  ;;  %v1181_v58 = vrot.slane %v1179_v61, 4  ;;  %v1557_v39 = vor.u32 %v1556_v60, %v1552_v22 }
 0x14b   : > { %v1611_v51 = vpop.f32.mrf.mxu0  ;;  %v1558_v38 = vrot.slane %v1557_v39, 4 }
 0x14c   : > { %v1455_v31 = vpop.f32.mrf.mxu3  ;;  %2593 = vmatmul.msk.bf16.gmra.mxu2 %vm691_vm4, %v3548_v11  ;;  %v1005_v15 = vpop.f32.mrf.mxu1  ;;  %v3569_v11 = vld [vmem:[%s2817_s30 + $0xc8] sm:$0x1] }
 0x14d   : > { %v1519_v46 = vadd.f32 %v1455_v31, %v1385_v54  ;;  %v1180_v31 = vsel %vm3147_vm7, %v2577_v47, %v1179_v61  ;;  %v1183_v54 = vsel %vm3147_vm7, %v1181_v58, %v1182_v9  ;;  %v1560_v29 = vshll.u32 %v3569_v11, 16 }
 0x14e   : > { %v1216_v18 = vunpack.c.l.b16 %v1180_v31  ;;  %v1006_v24 = vadd.f32 %v1005_v15, %v3324_v63  ;;  %v1548_v58 = vrot.slane %v1547_v2, 4 }
 0x14f   : > { %v1324_v34 = vpop.f32.mrf.mxu2  ;;  %v3566_v49 = vadd.f32 %v1611_v51, %v1519_v46  ;;  %v1562_v60 = vrot.slane %v1560_v29, 5 }
 0x150   : > { %v1386_v17 = vadd.f32 %v1324_v34, %v1004_v5  ;;  %v1217_v34 = vunpack.c.l.b16 %v1183_v54  ;;  %v3594_v54 = vld [vmem:[%s2817_s30 + $0xc0] sm:$0xff] }
 0x151   : > { %2614 = vmatmul.msk.bf16.gmra.mxu3 %vm691_vm4, %v3562_v30  ;;  %v1563_v63 = vsel %vm2844_vm3, %v1558_v38, %v1562_v60 }
 0x152   : > { %v3585_v46 = vpack.c.b16 %v1217_v34, %v1216_v18  ;;  %v1567_v39 = vunpack.c.l.b16 %v1563_v63 }
 0x153   : > { %v1614_v48 = vpop.f32.mrf.mxu0 }
 0x154   : > { %v1458_v28 = vpop.f32.mrf.mxu3  ;;  %v1008_v51 = vpop.f32.mrf.mxu1 }
 0x155   : > { %v1520_v5 = vadd.f32 %v1458_v28, %v1386_v17  ;;  %v1553_v17 = vsel %vm2844_vm3, %v1548_v58, %v1552_v22 }
 0x156   : > { %2631 = vmatmul.msk.bf16.gmra.mxu0 %vm691_vm4, %v3156_v53  ;;  %v1566_v2 = vunpack.c.l.b16 %v1553_v17 }
 0x157   : > { %v1326_v61 = vpop.f32.mrf.mxu2  ;;  %2561 = vmatmul.msk.bf16.gmra.mxu1 %vm691_vm4, %v3562_v30  ;;  %v3583_v7 = vadd.f32 %v1614_v48, %v1520_v5  ;;  %v1009_v48 = vadd.f32 %v1008_v51, %v3345_v26 }
 0x158   : > { %v1387_v9 = vadd.f32 %v1326_v61, %v1006_v24  ;;  %v3601_v22 = vpack.c.b16 %v1567_v39, %v1566_v2 }
 0x15b   : > { %v1616_v43 = vpop.f32.mrf.mxu0 }
 0x15c   : > { %v1460_v15 = vpop.f32.mrf.mxu3  ;;  %2594 = vmatmul.msk.bf16.gmra.mxu2 %vm691_vm4, %v3585_v46  ;;  %v1010_v47 = vpop.f32.mrf.mxu1 }
 0x15d   : > { %v1521_v31 = vadd.f32 %v1460_v15, %v1387_v9  ;;  %v1011_v26 = vadd.f32 %v1010_v47, %v3362_v0 }
 0x15f   : > { %v1329_v29 = vpop.f32.mrf.mxu2  ;;  %v3597_v28 = vadd.f32 %v1616_v43, %v1521_v31 }
 0x160   : > { %v1388_v18 = vadd.f32 %v1329_v29, %v1009_v48 }
 0x161   : > { %2615 = vmatmul.msk.bf16.gmra.mxu3 %vm691_vm4, %v3594_v54 }
 0x163   : > { %v1619_v34 = vpop.f32.mrf.mxu0 }
 0x164   : > { %v1463_v5 = vpop.f32.mrf.mxu3  ;;  %v1013_v24 = vpop.f32.mrf.mxu1 }
 0x165   : > { %v1522_v61 = vadd.f32 %v1463_v5, %v1388_v18  ;;  %v1014_v63 = vadd.f32 %v1013_v24, %v3247_v16 }
 0x166   : > { %2632 = vmatmul.msk.bf16.gmra.mxu0 %vm691_vm4, %v3601_v22 }
 0x167   : > { %v1331_v51 = vpop.f32.mrf.mxu2  ;;  %2635 = vmatmul.msk.bf16.vlgmr.msra.gmra.mxu1 %vm691_vm4, %v3181_v55  ;;  %v3608_v58 = vadd.f32 %v1619_v34, %v1522_v61 }
 0x168   : > { %v1389_v38 = vadd.f32 %v1331_v51, %v1011_v26 }
 0x16b   : > { %v1621_v60 = vpop.f32.mrf.mxu0 }
 0x16c   : > { %v1465_v9 = vpop.f32.mrf.mxu3  ;;  %2656 = vmatmul.msk.bf16.vlgmr.msra.gmra.mxu2 %vm691_vm4, %v3193_v6  ;;  %v1015_v43 = vpop.f32.mrf.mxu1 }
 0x16d   : > { %v1523_v17 = vadd.f32 %v1465_v9, %v1389_v38  ;;  %v1016_v6 = vadd.f32 %v1015_v43, %v3269_v57 }
 0x16f   : > { %v1334_v15 = vpop.f32.mrf.mxu2  ;;  %v3613_v31 = vadd.f32 %v1621_v60, %v1523_v17 }
 0x170   : > { %v1390_v0 = vadd.f32 %v1334_v15, %v1014_v63 }
 0x171   : > { %2673 = vmatmul.msk.bf16.vlgmr.msra.gmra.mxu3 %vm691_vm4, %v3084_v45 }
 0x173   : > { %v1624_v55 = vpop.f32.mrf.mxu0 }
 0x174   : > { %v1468_v47 = vpop.f32.mrf.mxu3  ;;  %v1018_v48 = vpop.f32.mrf.mxu1 }
 0x175   : > { %v1524_v2 = vadd.f32 %v1468_v47, %v1390_v0  ;;  %v1019_v24 = vadd.f32 %v1018_v48, %v3289_v59 }
 0x176   : > { %2691 = vmatmul.msk.bf16.vlgmr.msra.gmra.mxu0 %vm691_vm4, %v3207_v52 }
 0x177   : > { %v1336_v39 = vpop.f32.mrf.mxu2  ;;  %2636 = vmatmul.msk.bf16.gmra.mxu1 %vm691_vm4, %v3207_v52  ;;  %v3622_v16 = vadd.f32 %v1624_v55, %v1524_v2 }
 0x178   : > { %v1391_v29 = vadd.f32 %v1336_v39, %v1016_v6 }
 0x17b   : > { %v1626_v18 = vpop.f32.mrf.mxu0 }
 0x17c   : > { %v1470_v34 = vpop.f32.mrf.mxu3  ;;  %2657 = vmatmul.msk.bf16.gmra.mxu2 %vm691_vm4, %v3213_v41  ;;  %v1020_v45 = vpop.f32.mrf.mxu1 }
 0x17d   : > { %v1525_v5 = vadd.f32 %v1470_v34, %v1391_v29  ;;  %v1021_v41 = vadd.f32 %v1020_v45, %v3307_v3 }
 0x17f   : > { %v1339_v61 = vpop.f32.mrf.mxu2  ;;  %v3627_v26 = vadd.f32 %v1626_v18, %v1525_v5 }
 0x180   : > { %v1392_v57 = vadd.f32 %v1339_v61, %v1019_v24 }
 0x181   : > { %2674 = vmatmul.msk.bf16.gmra.mxu3 %vm691_vm4, %v3174_v20 }
 0x183   : > { %v1629_v52 = vpop.f32.mrf.mxu0 }
 0x184   : > { %v1473_v51 = vpop.f32.mrf.mxu3  ;;  %v1023_v38 = vpop.f32.mrf.mxu1 }
 0x185   : > { %v1526_v60 = vadd.f32 %v1473_v51, %v1392_v57  ;;  %v1024_v0 = vadd.f32 %v1023_v38, %v3326_v23 }
 0x186   : > { %2692 = vmatmul.msk.bf16.gmra.mxu0 %vm691_vm4, %v3227_v40 }
 0x187   : > { %v1341_v9 = vpop.f32.mrf.mxu2  ;;  %2637 = vmatmul.msk.bf16.gmra.mxu1 %vm691_vm4, %v3227_v40  ;;  %v3636_v59 = vadd.f32 %v1629_v52, %v1526_v60 }
 0x188   : > { %v1393_v43 = vadd.f32 %v1341_v9, %v1021_v41 }
 0x18b   : > { %v1631_v17 = vpop.f32.mrf.mxu0 }
 0x18c   : > { %v1475_v63 = vpop.f32.mrf.mxu3  ;;  %2658 = vmatmul.msk.bf16.gmra.mxu2 %vm691_vm4, %v3235_v8  ;;  %v1025_v20 = vpop.f32.mrf.mxu1 }
 0x18d   : > { %v1527_v15 = vadd.f32 %v1475_v63, %v1393_v43  ;;  %v1026_v8 = vadd.f32 %v1025_v20, %v3347_v1  ;;  %v4094_v43 = vld [vmem:[#allocation18_spill] sm:$0xff]  ;;  %v4095_v63 = vld [vmem:[#allocation16_spill] sm:$0xff] }
 0x18f   : > { %v1344_v55 = vpop.f32.mrf.mxu2  ;;  %v3641_v47 = vadd.f32 %v1631_v17, %v1527_v15 }
 0x190   : > { %v1394_v3 = vadd.f32 %v1344_v55, %v1024_v0  ;;  %v4096_v55 = vld [vmem:[#allocation8_spill] sm:$0xff] }
 0x191   : > { %2675 = vmatmul.msk.bf16.gmra.mxu3 %vm691_vm4, %v2856_v62 }
 0x193   : > { %v1634_v40 = vpop.f32.mrf.mxu0 }
 0x194   : > { %v1478_v48 = vpop.f32.mrf.mxu3  ;;  %v1028_v2 = vpop.f32.mrf.mxu1 }
 0x195   : > { %v1528_v6 = vadd.f32 %v1478_v48, %v1394_v3  ;;  %v1029_v5 = vadd.f32 %v1028_v2, %v3369_v56  ;;  %v4097_v2 = vld [vmem:[#allocation21_spill] sm:$0xff] }
 0x196   : > { %2693 = vmatmul.msk.bf16.gmra.mxu0 %vm691_vm4, %v3255_v12 }
 0x197   : > { %v1346_v39 = vpop.f32.mrf.mxu2  ;;  %2638 = vmatmul.msk.bf16.gmra.mxu1 %vm691_vm4, %v3255_v12  ;;  %v3650_v23 = vadd.f32 %v1634_v40, %v1528_v6  ;;  %v4098_v6 = vld [vmem:[#allocation17_spill] sm:$0xff] }
 0x198   : > { %v1395_v29 = vadd.f32 %v1346_v39, %v1026_v8 }
 0x19b   : > { %v1636_v18 = vpop.f32.mrf.mxu0 }
 0x19c   : > { %v1480_v34 = vpop.f32.mrf.mxu3  ;;  %2659 = vmatmul.msk.bf16.gmra.mxu2 %vm691_vm4, %v3263_v27  ;;  %v1030_v62 = vpop.f32.mrf.mxu1 }
 0x19d   : > { %v1529_v45 = vadd.f32 %v1480_v34, %v1395_v29  ;;  %v1031_v27 = vadd.f32 %v1030_v62, %v3384_v44 }
 0x19f   : > { %v1349_v24 = vpop.f32.mrf.mxu2  ;;  %v3655_v61 = vadd.f32 %v1636_v18, %v1529_v45  ;;  %v4099_v45 = vld [vmem:[#allocation22_spill] sm:$0xff] }
 0x1a0   : > { %v1396_v1 = vadd.f32 %v1349_v24, %v1029_v5 }
 0x1a1   : > { %2676 = vmatmul.msk.bf16.gmra.mxu3 %vm691_vm4, %v2930_v37 }
 0x1a3   : > { %v1639_v12 = vpop.f32.mrf.mxu0 }
 0x1a4   : > { %v1483_v57 = vpop.f32.mrf.mxu3  ;;  %v1033_v52 = vpop.f32.mrf.mxu1 }
 0x1a5   : > { %v1530_v51 = vadd.f32 %v1483_v57, %v1396_v1  ;;  %v1034_v20 = vadd.f32 %v1033_v52, %v4095_v63  ;;  %v4100_v1 = vld [vmem:[#allocation19_spill] sm:$0xff] }
 0x1a6   : > { %2694 = vmatmul.msk.bf16.gmra.mxu0 %vm691_vm4, %v3287_v33 }
 0x1a7   : > { %v1351_v38 = vpop.f32.mrf.mxu2  ;;  %2639 = vmatmul.msk.bf16.gmra.mxu1 %vm691_vm4, %v3287_v33  ;;  %v3664_v56 = vadd.f32 %v1639_v12, %v1530_v51 }
 0x1a8   : > { %v1397_v60 = vadd.f32 %v1351_v38, %v1031_v27  ;;  %v4101_v27 = vld [vmem:[#allocation14_spill] sm:$0xff] }
 0x1ab   : > { %v1641_v41 = vpop.f32.mrf.mxu0 }
 0x1ac   : > { %v1485_v9 = vpop.f32.mrf.mxu3  ;;  %2660 = vmatmul.msk.bf16.gmra.mxu2 %vm691_vm4, %v4094_v43  ;;  %v1035_v37 = vpop.f32.mrf.mxu1  ;;  %v4102_v43 = vld [vmem:[#allocation24_spill] sm:$0xff] }
 0x1ad   : > { %v1531_v17 = vadd.f32 %v1485_v9, %v1397_v60  ;;  %v1036_v8 = vadd.f32 %v1035_v37, %v4098_v6  ;;  %v4103_v37 = vld [vmem:[#allocation20_spill] sm:$0xff] }
 0x1af   : > { %v1354_v15 = vpop.f32.mrf.mxu2  ;;  %v3669_v0 = vadd.f32 %v1641_v41, %v1531_v17 }
 0x1b0   : > { %v1398_v44 = vadd.f32 %v1354_v15, %v1034_v20 }
 0x1b1   : > { %2677 = vmatmul.msk.bf16.gmra.mxu3 %vm691_vm4, %v4096_v55 }
 0x1b3   : > { %v1644_v33 = vpop.f32.mrf.mxu0 }
 0x1b4   : > { %v1488_v3 = vpop.f32.mrf.mxu3  ;;  %v1038_v40 = vpop.f32.mrf.mxu1 }
 0x1b5   : > { %v1532_v48 = vadd.f32 %v1488_v3, %v1398_v44  ;;  %v1039_v12 = vadd.f32 %v1038_v40, %v4100_v1  ;;  %v4108_v1 = vld [vmem:[#allocation25_spill] sm:$0xff] }
 0x1b6   : > { %2695 = vmatmul.msk.bf16.gmra.mxu0 %vm691_vm4, %v4097_v2 }
 0x1b7   : > { %v1356_v39 = vpop.f32.mrf.mxu2  ;;  %2640 = vmatmul.msk.bf16.gmra.mxu1 %vm691_vm4, %v4097_v2  ;;  %v3678_v29 = vadd.f32 %v1644_v33, %v1532_v48  ;;  %v4104_v33 = vld [vmem:[#allocation26_spill] sm:$0xff]  ;;  %v4105_v48 = vld [vmem:[#allocation23_spill] sm:$0xff] }
 0x1b8   : > { %v1399_v18 = vadd.f32 %v1356_v39, %v1036_v8 }
 0x1bb   : > { %v1646_v34 = vpop.f32.mrf.mxu0 }
 0x1bc   : > { %v1490_v62 = vpop.f32.mrf.mxu3  ;;  %2661 = vmatmul.msk.bf16.gmra.mxu2 %vm691_vm4, %v4099_v45  ;;  %v1040_v5 = vpop.f32.mrf.mxu1 }
 0x1bd   : > { %v1533_v24 = vadd.f32 %v1490_v62, %v1399_v18  ;;  %v1041_v17 = vadd.f32 %v1040_v5, %v4103_v37  ;;  %v4106_v18 = vld [vmem:[#allocation2_spill] sm:$0xff] }
 0x1bf   : > { %v1359_v57 = vpop.f32.mrf.mxu2  ;;  %v3683_v52 = vadd.f32 %v1646_v34, %v1533_v24  ;;  %v4107_v24 = vld [vmem:[#allocation28_spill] sm:$0xff] }
 0x1c0   : > { %v1400_v51 = vadd.f32 %v1359_v57, %v1039_v12 }
 0x1c1   : > { %2678 = vmatmul.msk.bf16.gmra.mxu3 %vm691_vm4, %v4101_v27 }
 0x1c3   : > { %v1649_v38 = vpop.f32.mrf.mxu0 }
 0x1c4   : > { %v1493_v60 = vpop.f32.mrf.mxu3  ;;  %v1043_v41 = vpop.f32.mrf.mxu1 }
 0x1c5   : > { %v1534_v9 = vadd.f32 %v1493_v60, %v1400_v51  ;;  %v1044_v2 = vadd.f32 %v1043_v41, %v4105_v48 }
 0x1c6   : > { %2696 = vmatmul.msk.bf16.gmra.mxu0 %vm691_vm4, %v4102_v43 }
 0x1c7   : > { %v1361_v63 = vpop.f32.mrf.mxu2  ;;  %2641 = vmatmul.msk.bf16.gmra.mxu1 %vm691_vm4, %v4102_v43  ;;  %v3692_v20 = vadd.f32 %v1649_v38, %v1534_v9  ;;  %v4109_v43 = vld [vmem:[#allocation27_spill] sm:$0xff] }
 0x1c8   : > { %v1401_v15 = vadd.f32 %v1361_v63, %v1041_v17 }
 0x1cb   : > { %v1651_v44 = vpop.f32.mrf.mxu0 }
 0x1cc   : > { %v1495_v55 = vpop.f32.mrf.mxu3  ;;  %2662 = vmatmul.msk.bf16.gmra.mxu2 %vm691_vm4, %v4104_v33  ;;  %v1045_v3 = vpop.f32.mrf.mxu1 }
 0x1cd   : > { %v1535_v40 = vadd.f32 %v1495_v55, %v1401_v15  ;;  %v1046_v12 = vadd.f32 %v1045_v3, %v4108_v1 }
 0x1cf   : > { %v1364_v6 = vpop.f32.mrf.mxu2  ;;  %v3697_v8 = vadd.f32 %v1651_v44, %v1535_v40  ;;  %v4110_v40 = vld [vmem:[#allocation29_spill] sm:$0xff] }
 0x1d0   : > { %v1402_v39 = vadd.f32 %v1364_v6, %v1044_v2 }
 0x1d1   : > { %2679 = vmatmul.msk.bf16.gmra.mxu3 %vm691_vm4, %v4106_v18 }
 0x1d3   : > { %v1654_v34 = vpop.f32.mrf.mxu0 }
 0x1d4   : > { %v1498_v62 = vpop.f32.mrf.mxu3  ;;  %v1048_v45 = vpop.f32.mrf.mxu1 }
 0x1d5   : > { %v1536_v5 = vadd.f32 %v1498_v62, %v1402_v39  ;;  %v1049_v37 = vadd.f32 %v1048_v45, %v4109_v43 }
 0x1d6   : > { %2697 = vmatmul.msk.bf16.gmra.mxu0 %vm691_vm4, %v4107_v24 }
 0x1d7   : > { %v1366_v57 = vpop.f32.mrf.mxu2  ;;  %2642 = vmatmul.msk.bf16.gmra.mxu1 %vm691_vm4, %v4107_v24  ;;  %v3706_v51 = vadd.f32 %v1654_v34, %v1536_v5 }
 0x1d8   : > { %v1403_v27 = vadd.f32 %v1366_v57, %v1046_v12 }
 0x1db   : > { %v1656_v38 = vpop.f32.mrf.mxu0 }
 0x1dc   : > { %v1500_v60 = vpop.f32.mrf.mxu3  ;;  %2663 = vmatmul.msk.bf16.gmra.mxu2 %vm691_vm4, %v3399_v19  ;;  %v1050_v41 = vpop.f32.mrf.mxu1 }
 0x1dd   : > { %v1537_v9 = vadd.f32 %v1500_v60, %v1403_v27  ;;  %v1051_v19 = vadd.f32 %v1050_v41, %v4110_v40  ;;  %v3739_v27 = vld [vmem:[%s3992_s3] ss:$0 sm:$0xff] }
 0x1df   : > { %v1369_v17 = vpop.f32.mrf.mxu2  ;;  %v3711_v63 = vadd.f32 %v1656_v38, %v1537_v9 }
 0x1e0   : > { %v1404_v15 = vadd.f32 %v1369_v17, %v1049_v37 }
 0x1e1   : > { %2680 = vmatmul.msk.bf16.gmra.mxu3 %vm691_vm4, %v2955_v4 }
 0x1e3   : > { %v1659_v44 = vpop.f32.mrf.mxu0 }
 0x1e4   : > { %v1503_v55 = vpop.f32.mrf.mxu3  ;;  %v1724_v33 = vpop.f32.mrf.mxu1 }
 0x1e5   : > { %v1538_v3 = vadd.f32 %v1503_v55, %v1404_v15  ;;  %v1804_v62 = vadd.f32 %v1724_v33, %v3414_v32 }
 0x1e6   : > { %2698 = vmatmul.msk.bf16.gmra.mxu0 %vm691_vm4, %v3416_v10 }
 0x1e7   : > { %v1371_v48 = vpop.f32.mrf.mxu2  ;;  %2643 = vmatmul.msk.bf16.gmra.mxu1 %vm691_vm4, %v3416_v10  ;;  %v3720_v2 = vadd.f32 %v1659_v44, %v1538_v3  ;;  %v4111_v3 = vld [vmem:[#allocation15_spill] sm:$0xff] }
 0x1e8   : > { %v1405_v6 = vadd.f32 %v1371_v48, %v1051_v19 }
 0x1eb   : > { %v1661_v39 = vpop.f32.mrf.mxu0 }
 0x1ec   : > { %v1505_v18 = vpop.f32.mrf.mxu3  ;;  %2664 = vmatmul.msk.bf16.gmra.mxu2 %vm691_vm4, %v3423_v42  ;;  %v1726_v4 = vpop.f32.mrf.mxu1  ;;  %v3732_v42 = vld [vmem:[%s3991_s2] ss:$0 sm:$0xff] }
 0x1ed   : > { %v1539_v34 = vadd.f32 %v1505_v18, %v1405_v6 }
 0x1ef   : > { %v1858_v45 = vpop.f32.mrf.mxu2  ;;  %v3725_v5 = vadd.f32 %v1661_v39, %v1539_v34  ;;  %v4113_v34 = vld [vmem:[#allocation9_spill] sm:$0xff] }
 0x1f0   : > { %v1938_v10 = vadd.f32 %v1858_v45, %v1804_v62 }
 0x1f1   : > { %2681 = vmatmul.msk.bf16.gmra.mxu3 %vm691_vm4, %v3040_v25  ;;  %v1805_v25 = vadd.f32 %v1726_v4, %v3427_v35  ;;  %v4112_v4 = vld [vmem:[#allocation31_spill] sm:$0xff] }
 0x1f3   : > { %v2154_v24 = vpop.f32.mrf.mxu0 }
 0x1f4   : > { %v2014_v1 = vpop.f32.mrf.mxu3  ;;  %v1729_v12 = vpop.f32.mrf.mxu1 }
 0x1f5   : > { %v2094_v57 = vadd.f32 %v2014_v1, %v1938_v10  ;;  %v1806_v44 = vadd.f32 %v1729_v12, %v3440_v21 }
 0x1f6   : > { %2699 = vmatmul.msk.bf16.gmra.mxu0 %vm691_vm4, %v3442_v13 }
 0x1f7   : > { %v2234_v32 = vadd.f32 %v2154_v24, %v2094_v57  ;;  %v1860_v38 = vpop.f32.mrf.mxu2  ;;  %2644 = vmatmul.msk.bf16.gmra.mxu1 %vm691_vm4, %v3442_v13 }
 0x1f8   : > { %v1939_v41 = vadd.f32 %v1860_v38, %v1805_v25 }
 0x1f9   : > { %v2270_v60 = vmul.f32 %v3732_v42, %v2234_v32  ;;  %v4114_v32 = vld [vmem:[#allocation32_spill] sm:$0xff] }
 0x1fb   : > { %v2306_v9 = vadd.f32 %v3739_v27, %v2270_v60  ;;  %v2156_v43 = vpop.f32.mrf.mxu0 }
 0x1fc   : > { %v2016_v37 = vpop.f32.mrf.mxu3  ;;  %2665 = vmatmul.msk.bf16.gmra.mxu2 %vm691_vm4, %v3449_v50  ;;  %v1731_v35 = vpop.f32.mrf.mxu1 }
 0x1fd   : > { %v2338_v17 = vmax.f32 %v2306_v9, 0.0  ;;  %v2095_v13 = vadd.f32 %v2016_v37, %v1939_v41  ;;  %v1807_v62 = vadd.f32 %v1731_v35, %v4113_v34  ;;  %v4115_v9 = vld [vmem:[#allocation30_spill] sm:$0xff] }
 0x1ff   : > { %2370 = vst.msk [vmem:[%s3750_s22] sm:$0xff] %vm691_vm4, %v2338_v17  ;;  %v2235_v15 = vadd.f32 %v2156_v43, %v2095_v13  ;;  %v1863_v55 = vpop.f32.mrf.mxu2  ;;  %v4116_v17 = vld [vmem:[#allocation3_spill] sm:$0xff] }
 0x200   : > { %v1940_v40 = vadd.f32 %v1863_v55, %v1806_v44 }
 0x201   : > { %v2271_v33 = vmul.f32 %v3732_v42, %v2235_v15  ;;  %2682 = vmatmul.msk.bf16.gmra.mxu3 %vm691_vm4, %v4111_v3 }
 0x203   : > { %v2307_v19 = vadd.f32 %v3739_v27, %v2271_v33  ;;  %v2159_v48 = vpop.f32.mrf.mxu0 }
 0x204   : > { %v2019_v50 = vpop.f32.mrf.mxu3  ;;  %v1734_v6 = vpop.f32.mrf.mxu1 }
 0x205   : > { %v2339_v39 = vmax.f32 %v2307_v19, 0.0  ;;  %v2096_v18 = vadd.f32 %v2019_v50, %v1940_v40  ;;  %v1808_v43 = vadd.f32 %v1734_v6, %v4115_v9  ;;  %v4117_v19 = vld [vmem:[#allocation35_spill] sm:$0xff]  ;;  %v4118_v50 = vld [vmem:[#allocation33_spill] sm:$0xff] }
 0x206   : > { %2700 = vmatmul.msk.bf16.gmra.mxu0 %vm691_vm4, %v4112_v4 }
 0x207   : > { %2371 = vst.msk [vmem:[%s3750_s22 + $0x8] sm:$0xff] %vm691_vm4, %v2339_v39  ;;  %v2236_v21 = vadd.f32 %v2159_v48, %v2096_v18  ;;  %v1865_v45 = vpop.f32.mrf.mxu2  ;;  %2645 = vmatmul.msk.bf16.gmra.mxu1 %vm691_vm4, %v4112_v4 }
 0x208   : > { %v1941_v24 = vadd.f32 %v1865_v45, %v1807_v62  ;;  %v4119_v45 = vld [vmem:[#allocation36_spill] sm:$0xff] }
 0x209   : > { %v2272_v10 = vmul.f32 %v3732_v42, %v2236_v21 }
 0x20b   : > { %v2308_v1 = vadd.f32 %v3739_v27, %v2272_v10  ;;  %v2161_v12 = vpop.f32.mrf.mxu0 }
 0x20c   : > { %v2021_v57 = vpop.f32.mrf.mxu3  ;;  %2666 = vmatmul.msk.bf16.gmra.mxu2 %vm691_vm4, %v4114_v32  ;;  %v1736_v25 = vpop.f32.mrf.mxu1 }
 0x20d   : > { %v2340_v38 = vmax.f32 %v2308_v1, 0.0  ;;  %v2097_v60 = vadd.f32 %v2021_v57, %v1941_v24  ;;  %v1809_v6 = vadd.f32 %v1736_v25, %v4118_v50  ;;  %v4120_v57 = vld [vmem:[#allocation34_spill] sm:$0xff] }
 0x20f   : > { %2372 = vst.msk [vmem:[%s3750_s22 + $0x10] sm:$0xff] %vm691_vm4, %v2340_v38  ;;  %v2237_v41 = vadd.f32 %v2161_v12, %v2097_v60  ;;  %v1868_v37 = vpop.f32.mrf.mxu2  ;;  %v4121_v60 = vld [vmem:[#allocation4_spill] sm:$0xff] }
 0x210   : > { %v1942_v13 = vadd.f32 %v1868_v37, %v1808_v43 }
 0x211   : > { %v2273_v35 = vmul.f32 %v3732_v42, %v2237_v41  ;;  %2683 = vmatmul.msk.bf16.gmra.mxu3 %vm691_vm4, %v4116_v17 }
 0x213   : > { %v2309_v15 = vadd.f32 %v3739_v27, %v2273_v35  ;;  %v2164_v44 = vpop.f32.mrf.mxu0 }
 0x214   : > { %v2024_v55 = vpop.f32.mrf.mxu3  ;;  %v1739_v33 = vpop.f32.mrf.mxu1 }
 0x215   : > { %v2341_v3 = vmax.f32 %v2309_v15, 0.0  ;;  %v2098_v40 = vadd.f32 %v2024_v55, %v1942_v13  ;;  %v1810_v32 = vadd.f32 %v1739_v33, %v4120_v57  ;;  %v4122_v15 = vld [vmem:[#allocation39_spill] sm:$0xff]  ;;  %v4123_v55 = vld [vmem:[#allocation37_spill] sm:$0xff] }
 0x216   : > { %2701 = vmatmul.msk.bf16.gmra.mxu0 %vm691_vm4, %v4117_v19 }
 0x217   : > { %2373 = vst.msk [vmem:[%s3750_s22 + $0x18] sm:$0xff] %vm691_vm4, %v2341_v3  ;;  %v2238_v48 = vadd.f32 %v2164_v44, %v2098_v40  ;;  %v1870_v39 = vpop.f32.mrf.mxu2  ;;  %2646 = vmatmul.msk.bf16.gmra.mxu1 %vm691_vm4, %v4117_v19 }
 0x218   : > { %v1943_v4 = vadd.f32 %v1870_v39, %v1809_v6  ;;  %v4124_v39 = vld [vmem:[#allocation6_spill] sm:$0xff] }
 0x219   : > { %v2274_v18 = vmul.f32 %v3732_v42, %v2238_v48 }
 0x21b   : > { %v2310_v21 = vadd.f32 %v3739_v27, %v2274_v18  ;;  %v2166_v34 = vpop.f32.mrf.mxu0 }
 0x21c   : > { %v2026_v62 = vpop.f32.mrf.mxu3  ;;  %2667 = vmatmul.msk.bf16.gmra.mxu2 %vm691_vm4, %v4119_v45  ;;  %v1741_v10 = vpop.f32.mrf.mxu1 }
 0x21d   : > { %v2342_v24 = vmax.f32 %v2310_v21, 0.0  ;;  %v2099_v1 = vadd.f32 %v2026_v62, %v1943_v4  ;;  %v1811_v33 = vadd.f32 %v1741_v10, %v4123_v55  ;;  %v4125_v62 = vld [vmem:[#allocation38_spill] sm:$0xff] }
 0x21f   : > { %2374 = vst.msk [vmem:[%s3750_s22 + $0x20] sm:$0xff] %vm691_vm4, %v2342_v24  ;;  %v2239_v12 = vadd.f32 %v2166_v34, %v2099_v1  ;;  %v1873_v25 = vpop.f32.mrf.mxu2  ;;  %v4126_v1 = vld [vmem:[#allocation10_spill] sm:$0xff] }
 0x220   : > { %v1944_v41 = vadd.f32 %v1873_v25, %v1810_v32 }
 0x221   : > { %v2275_v38 = vmul.f32 %v3732_v42, %v2239_v12  ;;  %2684 = vmatmul.msk.bf16.gmra.mxu3 %vm691_vm4, %v4121_v60 }
 0x223   : > { %v2311_v9 = vadd.f32 %v3739_v27, %v2275_v38  ;;  %v2169_v43 = vpop.f32.mrf.mxu0 }
 0x224   : > { %v2029_v37 = vpop.f32.mrf.mxu3  ;;  %v1744_v35 = vpop.f32.mrf.mxu1 }
 0x225   : > { %v2343_v17 = vmax.f32 %v2311_v9, 0.0  ;;  %v2100_v13 = vadd.f32 %v2029_v37, %v1944_v41  ;;  %v1812_v45 = vadd.f32 %v1744_v35, %v4125_v62  ;;  %v4127_v9 = vld [vmem:[#allocation41_spill] sm:$0xff]  ;;  %v4128_v37 = vld [vmem:[#allocation7_spill] sm:$0xff] }
 0x226   : > { %2702 = vmatmul.msk.bf16.gmra.mxu0 %vm691_vm4, %v4122_v15 }
 0x227   : > { %2375 = vst.msk [vmem:[%s3750_s22 + $0x28] sm:$0xff] %vm691_vm4, %v2343_v17  ;;  %v2240_v44 = vadd.f32 %v2169_v43, %v2100_v13  ;;  %v1875_v3 = vpop.f32.mrf.mxu2  ;;  %2647 = vmatmul.msk.bf16.gmra.mxu1 %vm691_vm4, %v4122_v15 }
 0x228   : > { %v1945_v19 = vadd.f32 %v1875_v3, %v1811_v33 }
 0x229   : > { %v2276_v40 = vmul.f32 %v3732_v42, %v2240_v44 }
 0x22b   : > { %v2312_v48 = vadd.f32 %v3739_v27, %v2276_v40  ;;  %v2171_v50 = vpop.f32.mrf.mxu0 }
 0x22c   : > { %v2031_v6 = vpop.f32.mrf.mxu3  ;;  %2668 = vmatmul.msk.bf16.gmra.mxu2 %vm691_vm4, %v4124_v39  ;;  %v1746_v18 = vpop.f32.mrf.mxu1 }
 0x22d   : > { %v2344_v4 = vmax.f32 %v2312_v48, 0.0  ;;  %v2101_v21 = vadd.f32 %v2031_v6, %v1945_v19  ;;  %v1813_v35 = vadd.f32 %v1746_v18, %v4128_v37 }
 0x22f   : > { %2376 = vst.msk [vmem:[%s3750_s22 + $0x30] sm:$0xff] %vm691_vm4, %v2344_v4  ;;  %v2241_v34 = vadd.f32 %v2171_v50, %v2101_v21  ;;  %v1878_v10 = vpop.f32.mrf.mxu2  ;;  %v4129_v50 = vld [vmem:[#allocation40_spill] sm:$0xff] }
 0x230   : > { %v1946_v12 = vadd.f32 %v1878_v10, %v1812_v45  ;;  %v3835_v45 = vld [vmem:[%s2817_s30 + $0xcc] sm:$0xf]  ;;  %v3838_v10 = vld [vmem:[%s2817_s30 + $0xd0] sm:$0xf] }
 0x231   : > { %v2277_v24 = vmul.f32 %v3732_v42, %v2241_v34  ;;  %2685 = vmatmul.msk.bf16.gmra.mxu3 %vm691_vm4, %v4126_v1 }
 0x233   : > { %v2313_v57 = vadd.f32 %v3739_v27, %v2277_v24  ;;  %v2174_v32 = vpop.f32.mrf.mxu0 }
 0x234   : > { %v2034_v25 = vpop.f32.mrf.mxu3  ;;  %v1749_v38 = vpop.f32.mrf.mxu1 }
 0x235   : > { %v2345_v60 = vmax.f32 %v2313_v57, 0.0  ;;  %v2102_v41 = vadd.f32 %v2034_v25, %v1946_v12  ;;  %v1814_v6 = vadd.f32 %v1749_v38, %v4129_v50  ;;  %v1974_v38 = vshll.u32 %v3835_v45, 16 }
 0x236   : > { %2703 = vmatmul.msk.bf16.gmra.mxu0 %vm691_vm4, %v4127_v9 }
 0x237   : > { %2377 = vst.msk [vmem:[%s3750_s22 + $0x38] sm:$0xff] %vm691_vm4, %v2345_v60  ;;  %v2242_v43 = vadd.f32 %v2174_v32, %v2102_v41  ;;  %v1880_v17 = vpop.f32.mrf.mxu2  ;;  %2648 = vmatmul.msk.bf16.gmra.mxu1 %vm691_vm4, %v4127_v9  ;;  %v4131_v32 = vld [vmem:[#allocation5_spill] sm:$0xff]  ;;  %v1980_v60 = vshll.u32 %v3838_v10, 16  ;;  %v1984_v41 = vshrl.u32 %v3838_v10, 16 }
 0x238   : > { %v1947_v15 = vadd.f32 %v1880_v17, %v1813_v35  ;;  %v2633_v25 = vrot.slane %v4131_v32, 9  ;;  %v1702_v17 = vrot.slane %v3569_v11, 5 }
 0x239   : > { %v2278_v13 = vmul.f32 %v3732_v42, %v2242_v43 }
 0x23b   : > { %v2314_v44 = vadd.f32 %v3739_v27, %v2278_v13  ;;  %v2176_v55 = vpop.f32.mrf.mxu0 }
 0x23c   : > { %v2036_v33 = vpop.f32.mrf.mxu3  ;;  %2669 = vmatmul.msk.bf16.gmra.mxu2 %vm691_vm4, %v3562_v30  ;;  %v1751_v3 = vpop.f32.mrf.mxu1  ;;  %v4130_v30 = vld [vmem:[#allocation42_spill] sm:$0xff] }
 0x23d   : > { %v2346_v40 = vmax.f32 %v2314_v44, 0.0  ;;  %v2103_v19 = vadd.f32 %v2036_v33, %v1947_v15  ;;  %v1699_v62 = vrot.slane %v4130_v30, 5  ;;  %v1815_v43 = vadd.f32 %v1751_v3, %v3566_v49 }
 0x23e   : > { %v1976_v33 = vrot.slane %v1974_v38, 5 }
 0x23f   : > { %2378 = vst.msk [vmem:[%s3750_s22 + $0x40] sm:$0xff] %vm691_vm4, %v2346_v40  ;;  %v2243_v48 = vadd.f32 %v2176_v55, %v2103_v19  ;;  %v1883_v39 = vpop.f32.mrf.mxu2  ;;  %v1701_v35 = vrot.slane %v1699_v62, 4  ;;  %v1700_v44 = vsel %vm3147_vm7, %v2633_v25, %v1699_v62  ;;  %v1982_v40 = vrot.slane %v1980_v60, 5 }
 0x240   : > { %v1948_v4 = vadd.f32 %v1883_v39, %v1814_v6  ;;  %v1986_v19 = vrot.slane %v1984_v41, 4 }
 0x241   : > { %v2279_v18 = vmul.f32 %v3732_v42, %v2243_v48  ;;  %2686 = vmatmul.msk.bf16.gmra.mxu3 %vm691_vm4, %v3156_v53  ;;  %v1971_v53 = vshrl.u32 %v3835_v45, 16  ;;  %v252_v48 = vld [vmem:[%s2817_s30 + $0xd4] sm:$0x1] }
 0x242   : > { %v1990_v30 = vshll.u32 %v252_v48, 16 }
 0x243   : > { %v2315_v21 = vadd.f32 %v3739_v27, %v2279_v18  ;;  %v2179_v34 = vpop.f32.mrf.mxu0  ;;  %v1973_v55 = vrot.slane %v1971_v53, 4  ;;  %v1706_v18 = vunpack.c.l.b16 %v1700_v44 }
 0x244   : > { %v2039_v24 = vpop.f32.mrf.mxu3  ;;  %v1754_v1 = vpop.f32.mrf.mxu1  ;;  %v1992_v38 = vrot.slane %v1990_v30, 5 }
 0x245   : > { %v2347_v12 = vmax.f32 %v2315_v21, 0.0  ;;  %v2104_v57 = vadd.f32 %v2039_v24, %v1948_v4  ;;  %v1977_v21 = vor.u32 %v1976_v33, %v1973_v55  ;;  %v1816_v24 = vadd.f32 %v1754_v1, %v3583_v7  ;;  %v2727_v33 = vld [vmem:[%s2817_s30 + $0xcc] sm:$0xff] }
 0x246   : > { %2704 = vmatmul.msk.bf16.gmra.mxu0 %vm691_vm4, %v3585_v46  ;;  %v2132_v55 = vrot.slane %v252_v48, 5 }
 0x247   : > { %2379 = vst.msk [vmem:[%s3750_s22 + $0x48] sm:$0xff] %vm691_vm4, %v2347_v12  ;;  %v2244_v9 = vadd.f32 %v2179_v34, %v2104_v57  ;;  %v1885_v37 = vpop.f32.mrf.mxu2  ;;  %2649 = vmatmul.msk.bf16.gmra.mxu1 %vm691_vm4, %v3585_v46  ;;  %v1703_v46 = vsel %vm3147_vm7, %v1701_v35, %v1702_v17  ;;  %v1987_v34 = vor.u32 %v1986_v19, %v1982_v40  ;;  %v1978_v25 = vrot.slane %v1977_v21, 4 }
 0x248   : > { %v1949_v15 = vadd.f32 %v1885_v37, %v1815_v43  ;;  %v1707_v4 = vunpack.c.l.b16 %v1703_v46  ;;  %v2689_v17 = vrot.slane %v3835_v45, 9 }
 0x249   : > { %v2280_v13 = vmul.f32 %v3732_v42, %v2244_v9  ;;  %v1988_v53 = vrot.slane %v1987_v34, 4  ;;  %v2129_v9 = vrot.slane %v3838_v10, 5 }
 0x24a   : > { %v1708_v32 = vpack.c.b16 %v1707_v4, %v1706_v18 }
 0x24b   : > { %v2316_v49 = vadd.f32 %v3739_v27, %v2280_v13  ;;  %v2181_v3 = vpop.f32.mrf.mxu0  ;;  %v1993_v35 = vsel %vm2844_vm3, %v1988_v53, %v1992_v38  ;;  %v2131_v44 = vrot.slane %v2129_v9, 4  ;;  %v2130_v46 = vsel %vm3147_vm7, %v2689_v17, %v2129_v9 }
 0x24c   : > { %v2041_v50 = vpop.f32.mrf.mxu3  ;;  %2670 = vmatmul.msk.bf16.gmra.mxu2 %vm691_vm4, %v3594_v54  ;;  %v1756_v11 = vpop.f32.mrf.mxu1  ;;  %v1997_v36 = vunpack.c.l.b16 %v1993_v35  ;;  %v2136_v18 = vunpack.c.l.b16 %v2130_v46 }
 0x24d   : > { %v2348_v6 = vmax.f32 %v2316_v49, 0.0  ;;  %v2105_v39 = vadd.f32 %v2041_v50, %v1949_v15  ;;  %v1817_v10 = vadd.f32 %v1756_v11, %v3597_v28  ;;  %v2133_v28 = vsel %vm3147_vm7, %v2131_v44, %v2132_v55 }
 0x24e   : > { %v2137_v4 = vunpack.c.l.b16 %v2133_v28 }
 0x24f   : > { %2380 = vst.msk [vmem:[%s3750_s22 + $0x50] sm:$0xff] %vm691_vm4, %v2348_v6  ;;  %v2245_v62 = vadd.f32 %v2181_v3, %v2105_v39  ;;  %v1888_v12 = vpop.f32.mrf.mxu2 }
 0x250   : > { %v1950_v54 = vadd.f32 %v1888_v12, %v1816_v24  ;;  %v2138_v24 = vpack.c.b16 %v2137_v4, %v2136_v18 }
 0x251   : > { %v2281_v57 = vmul.f32 %v3732_v42, %v2245_v62  ;;  %2687 = vmatmul.msk.bf16.gmra.mxu3 %vm691_vm4, %v3601_v22  ;;  %v1983_v22 = vsel %vm2844_vm3, %v1978_v25, %v1982_v40 }
 0x252   : > { %v1996_v49 = vunpack.c.l.b16 %v1983_v22 }
 0x253   : > { %v2317_v60 = vadd.f32 %v3739_v27, %v2281_v57  ;;  %v2184_v41 = vpop.f32.mrf.mxu0 }
 0x254   : > { %v2044_v43 = vpop.f32.mrf.mxu3  ;;  %v1759_v7 = vpop.f32.mrf.mxu1  ;;  %v1998_v39 = vpack.c.b16 %v1997_v36, %v1996_v49 }
 0x255   : > { %v2349_v1 = vmax.f32 %v2317_v60, 0.0  ;;  %v2106_v37 = vadd.f32 %v2044_v43, %v1950_v54  ;;  %v1818_v34 = vadd.f32 %v1759_v7, %v3608_v58 }
 0x256   : > { %2705 = vmatmul.msk.bf16.gmra.mxu0 %vm691_vm4, %v1708_v32 }
 0x257   : > { %2381 = vst.msk [vmem:[%s3750_s22 + $0x58] sm:$0xff] %vm691_vm4, %v2349_v1  ;;  %v2246_v13 = vadd.f32 %v2184_v41, %v2106_v37  ;;  %v1890_v15 = vpop.f32.mrf.mxu2  ;;  %2650 = vmatmul.msk.bf16.gmra.mxu1 %vm691_vm4, %v1708_v32 }
 0x258   : > { %v1951_v40 = vadd.f32 %v1890_v15, %v1817_v10 }
 0x259   : > { %v2282_v19 = vmul.f32 %v3732_v42, %v2246_v13 }
 0x25b   : > { %v2318_v3 = vadd.f32 %v3739_v27, %v2282_v19  ;;  %v2186_v45 = vpop.f32.mrf.mxu0 }
 0x25c   : > { %v2046_v50 = vpop.f32.mrf.mxu3  ;;  %2671 = vmatmul.msk.bf16.gmra.mxu2 %vm691_vm4, %v2727_v33  ;;  %v1761_v48 = vpop.f32.mrf.mxu1 }
 0x25d   : > { %v2350_v11 = vmax.f32 %v2318_v3, 0.0  ;;  %v2107_v6 = vadd.f32 %v2046_v50, %v1951_v40  ;;  %v1819_v38 = vadd.f32 %v1761_v48, %v3613_v31 }
 0x25f   : > { %2382 = vst.msk [vmem:[%s3750_s22 + $0x60] sm:$0xff] %vm691_vm4, %v2350_v11  ;;  %v2247_v21 = vadd.f32 %v2186_v45, %v2107_v6  ;;  %v1893_v30 = vpop.f32.mrf.mxu2 }
 0x260   : > { %v1952_v14 = vadd.f32 %v1893_v30, %v1818_v34 }
 0x261   : > { %v2283_v62 = vmul.f32 %v3732_v42, %v2247_v21  ;;  %2688 = vmatmul.msk.bf16.gmra.mxu3 %vm691_vm4, %v1998_v39 }
 0x263   : > { %v2319_v12 = vadd.f32 %v3739_v27, %v2283_v62  ;;  %v2189_v57 = vpop.f32.mrf.mxu0 }
 0x264   : > { %v2049_v54 = vpop.f32.mrf.mxu3  ;;  %v1764_v32 = vpop.f32.mrf.mxu1 }
 0x265   : > { %v2351_v25 = vmax.f32 %v2319_v12, 0.0  ;;  %v2108_v53 = vadd.f32 %v2049_v54, %v1952_v14  ;;  %v1820_v13 = vadd.f32 %v1764_v32, %v3622_v16 }
 0x266   : > { %2706 = vmatmul.msk.bf16.gmra.mxu0 %vm691_vm4, %v2138_v24 }
 0x267   : > { %2383 = vst.msk [vmem:[%s3750_s22 + $0x68] sm:$0xff] %vm691_vm4, %v2351_v25  ;;  %v2248_v58 = vadd.f32 %v2189_v57, %v2108_v53  ;;  %v1895_v60 = vpop.f32.mrf.mxu2 }
 0x268   : > { %v1953_v9 = vadd.f32 %v1895_v60, %v1819_v38 }
 0x269   : > { %v2284_v41 = vmul.f32 %v3732_v42, %v2248_v58 }
 0x26b   : > { %v2320_v43 = vadd.f32 %v3739_v27, %v2284_v41  ;;  %v2191_v7 = vpop.f32.mrf.mxu0 }
 0x26c   : > { %v2051_v1 = vpop.f32.mrf.mxu3  ;;  %v1766_v37 = vpop.f32.mrf.mxu1 }
 0x26d   : > { %v2352_v22 = vmax.f32 %v2320_v43, 0.0  ;;  %v2109_v35 = vadd.f32 %v2051_v1, %v1953_v9  ;;  %v1821_v3 = vadd.f32 %v1766_v37, %v3627_v26 }
 0x26f   : > { %2384 = vst.msk [vmem:[%s3750_s22 + $0x70] sm:$0xff] %vm691_vm4, %v2352_v22  ;;  %v2249_v17 = vadd.f32 %v2191_v7, %v2109_v35  ;;  %v1898_v10 = vpop.f32.mrf.mxu2 }
 0x270   : > { %v1954_v15 = vadd.f32 %v1898_v10, %v1820_v13 }
 0x271   : > { %v2285_v31 = vmul.f32 %v3732_v42, %v2249_v17 }
 0x273   : > { %v2321_v44 = vadd.f32 %v3739_v27, %v2285_v31  ;;  %v2194_v55 = vpop.f32.mrf.mxu0 }
 0x274   : > { %v2054_v33 = vpop.f32.mrf.mxu3  ;;  %v1769_v19 = vpop.f32.mrf.mxu1 }
 0x275   : > { %v2353_v40 = vmax.f32 %v2321_v44, 0.0  ;;  %v2110_v49 = vadd.f32 %v2054_v33, %v1954_v15  ;;  %v1822_v4 = vadd.f32 %v1769_v19, %v3636_v59 }
 0x277   : > { %2385 = vst.msk [vmem:[%s3750_s22 + $0x78] sm:$0xff] %vm691_vm4, %v2353_v40  ;;  %v2250_v36 = vadd.f32 %v2194_v55, %v2110_v49  ;;  %v1900_v45 = vpop.f32.mrf.mxu2 }
 0x278   : > { %v1955_v46 = vadd.f32 %v1900_v45, %v1821_v3 }
 0x279   : > { %v2286_v16 = vmul.f32 %v3732_v42, %v2250_v36 }
 0x27b   : > { %v2322_v28 = vadd.f32 %v3739_v27, %v2286_v16  ;;  %v2196_v50 = vpop.f32.mrf.mxu0 }
 0x27c   : > { %v2056_v48 = vpop.f32.mrf.mxu3  ;;  %v1771_v11 = vpop.f32.mrf.mxu1 }
 0x27d   : > { %v2354_v6 = vmax.f32 %v2322_v28, 0.0  ;;  %v2111_v39 = vadd.f32 %v2056_v48, %v1955_v46  ;;  %v1823_v32 = vadd.f32 %v1771_v11, %v3641_v47 }
 0x27f   : > { %2386 = vst.msk [vmem:[%s3750_s22 + $0x80] sm:$0xff] %vm691_vm4, %v2354_v6  ;;  %v2251_v18 = vadd.f32 %v2196_v50, %v2111_v39  ;;  %v1903_v21 = vpop.f32.mrf.mxu2 }
 0x280   : > { %v1956_v34 = vadd.f32 %v1903_v21, %v1822_v4 }
 0x281   : > { %v2287_v26 = vmul.f32 %v3732_v42, %v2251_v18 }
 0x283   : > { %v2323_v30 = vadd.f32 %v3739_v27, %v2287_v26  ;;  %v2199_v62 = vpop.f32.mrf.mxu0 }
 0x284   : > { %v2059_v14 = vpop.f32.mrf.mxu3  ;;  %v1774_v24 = vpop.f32.mrf.mxu1 }
 0x285   : > { %v2355_v12 = vmax.f32 %v2323_v30, 0.0  ;;  %v2112_v57 = vadd.f32 %v2059_v14, %v1956_v34  ;;  %v1824_v1 = vadd.f32 %v1774_v24, %v3650_v23 }
 0x287   : > { %2387 = vst.msk [vmem:[%s3750_s22 + $0x88] sm:$0xff] %vm691_vm4, %v2355_v12  ;;  %v2252_v54 = vadd.f32 %v2199_v62, %v2112_v57  ;;  %v1905_v25 = vpop.f32.mrf.mxu2 }
 0x288   : > { %v1957_v53 = vadd.f32 %v1905_v25, %v1823_v32 }
 0x289   : > { %v2288_v59 = vmul.f32 %v3732_v42, %v2252_v54 }
 0x28b   : > { %v2324_v58 = vadd.f32 %v3739_v27, %v2288_v59  ;;  %v2201_v38 = vpop.f32.mrf.mxu0 }
 0x28c   : > { %v2061_v60 = vpop.f32.mrf.mxu3  ;;  %v1776_v41 = vpop.f32.mrf.mxu1 }
 0x28d   : > { %v2356_v9 = vmax.f32 %v2324_v58, 0.0  ;;  %v2113_v43 = vadd.f32 %v2061_v60, %v1957_v53  ;;  %v1825_v55 = vadd.f32 %v1776_v41, %v3655_v61 }
 0x28f   : > { %2388 = vst.msk [vmem:[%s3750_s22 + $0x90] sm:$0xff] %vm691_vm4, %v2356_v9  ;;  %v2253_v7 = vadd.f32 %v2201_v38, %v2113_v43  ;;  %v1908_v37 = vpop.f32.mrf.mxu2 }
 0x290   : > { %v1958_v22 = vadd.f32 %v1908_v37, %v1824_v1 }
 0x291   : > { %v2289_v47 = vmul.f32 %v3732_v42, %v2253_v7 }
 0x293   : > { %v2325_v35 = vadd.f32 %v3739_v27, %v2289_v47  ;;  %v2204_v17 = vpop.f32.mrf.mxu0 }
 0x294   : > { %v2064_v13 = vpop.f32.mrf.mxu3  ;;  %v1779_v10 = vpop.f32.mrf.mxu1 }
 0x295   : > { %v2357_v31 = vmax.f32 %v2325_v35, 0.0  ;;  %v2114_v15 = vadd.f32 %v2064_v13, %v1958_v22  ;;  %v1826_v28 = vadd.f32 %v1779_v10, %v3664_v56 }
 0x297   : > { %2389 = vst.msk [vmem:[%s3750_s22 + $0x98] sm:$0xff] %vm691_vm4, %v2357_v31  ;;  %v2254_v44 = vadd.f32 %v2204_v17, %v2114_v15  ;;  %v1910_v33 = vpop.f32.mrf.mxu2 }
 0x298   : > { %v1959_v19 = vadd.f32 %v1910_v33, %v1825_v55 }
 0x299   : > { %v2290_v23 = vmul.f32 %v3732_v42, %v2254_v44 }
 0x29b   : > { %v2326_v40 = vadd.f32 %v3739_v27, %v2290_v23  ;;  %v2206_v49 = vpop.f32.mrf.mxu0 }
 0x29c   : > { %v2066_v36 = vpop.f32.mrf.mxu3  ;;  %v1781_v3 = vpop.f32.mrf.mxu1 }
 0x29d   : > { %v2358_v45 = vmax.f32 %v2326_v40, 0.0  ;;  %v2115_v16 = vadd.f32 %v2066_v36, %v1959_v19  ;;  %v1827_v34 = vadd.f32 %v1781_v3, %v3669_v0 }
 0x29f   : > { %2390 = vst.msk [vmem:[%s3750_s22 + $0xa0] sm:$0xff] %vm691_vm4, %v2358_v45  ;;  %v2255_v46 = vadd.f32 %v2206_v49, %v2115_v16  ;;  %v1913_v50 = vpop.f32.mrf.mxu2 }
 0x2a0   : > { %v1960_v48 = vadd.f32 %v1913_v50, %v1826_v28 }
 0x2a1   : > { %v2291_v61 = vmul.f32 %v3732_v42, %v2255_v46 }
 0x2a3   : > { %v2327_v11 = vadd.f32 %v3739_v27, %v2291_v61  ;;  %v2209_v6 = vpop.f32.mrf.mxu0 }
 0x2a4   : > { %v2069_v39 = vpop.f32.mrf.mxu3  ;;  %v1784_v18 = vpop.f32.mrf.mxu1 }
 0x2a5   : > { %v2359_v4 = vmax.f32 %v2327_v11, 0.0  ;;  %v2116_v21 = vadd.f32 %v2069_v39, %v1960_v48  ;;  %v1828_v59 = vadd.f32 %v1784_v18, %v3678_v29 }
 0x2a7   : > { %2391 = vst.msk [vmem:[%s3750_s22 + $0xa8] sm:$0xff] %vm691_vm4, %v2359_v4  ;;  %v2256_v26 = vadd.f32 %v2209_v6, %v2116_v21  ;;  %v1915_v30 = vpop.f32.mrf.mxu2 }
 0x2a8   : > { %v1961_v62 = vadd.f32 %v1915_v30, %v1827_v34 }
 0x2a9   : > { %v2292_v56 = vmul.f32 %v3732_v42, %v2256_v26 }
 0x2ab   : > { %v2328_v14 = vadd.f32 %v3739_v27, %v2292_v56  ;;  %v2211_v24 = vpop.f32.mrf.mxu0 }
 0x2ac   : > { %v2071_v12 = vpop.f32.mrf.mxu3  ;;  %v1786_v57 = vpop.f32.mrf.mxu1 }
 0x2ad   : > { %v2360_v54 = vmax.f32 %v2328_v14, 0.0  ;;  %v2117_v32 = vadd.f32 %v2071_v12, %v1961_v62  ;;  %v1829_v37 = vadd.f32 %v1786_v57, %v3683_v52 }
 0x2af   : > { %2392 = vst.msk [vmem:[%s3750_s22 + $0xb0] sm:$0xff] %vm691_vm4, %v2360_v54  ;;  %v2257_v25 = vadd.f32 %v2211_v24, %v2117_v32  ;;  %v1918_v53 = vpop.f32.mrf.mxu2 }
 0x2b0   : > { %v1962_v58 = vadd.f32 %v1918_v53, %v1828_v59 }
 0x2b1   : > { %v2293_v0 = vmul.f32 %v3732_v42, %v2257_v25 }
 0x2b3   : > { %v2329_v38 = vadd.f32 %v3739_v27, %v2293_v0  ;;  %v2214_v60 = vpop.f32.mrf.mxu0 }
 0x2b4   : > { %v2074_v41 = vpop.f32.mrf.mxu3  ;;  %v1789_v9 = vpop.f32.mrf.mxu1 }
 0x2b5   : > { %v2361_v43 = vmax.f32 %v2329_v38, 0.0  ;;  %v2118_v7 = vadd.f32 %v2074_v41, %v1962_v58  ;;  %v1830_v55 = vadd.f32 %v1789_v9, %v3692_v20 }
 0x2b7   : > { %2393 = vst.msk [vmem:[%s3750_s22 + $0xb8] sm:$0xff] %vm691_vm4, %v2361_v43  ;;  %v2258_v1 = vadd.f32 %v2214_v60, %v2118_v7  ;;  %v1920_v47 = vpop.f32.mrf.mxu2 }
 0x2b8   : > { %v1963_v22 = vadd.f32 %v1920_v47, %v1829_v37 }
 0x2b9   : > { %v2294_v29 = vmul.f32 %v3732_v42, %v2258_v1 }
 0x2bb   : > { %v2330_v35 = vadd.f32 %v3739_v27, %v2294_v29  ;;  %v2216_v17 = vpop.f32.mrf.mxu0 }
 0x2bc   : > { %v2076_v13 = vpop.f32.mrf.mxu3  ;;  %v1791_v10 = vpop.f32.mrf.mxu1 }
 0x2bd   : > { %v2362_v31 = vmax.f32 %v2330_v35, 0.0  ;;  %v2119_v15 = vadd.f32 %v2076_v13, %v1963_v22  ;;  %v1831_v46 = vadd.f32 %v1791_v10, %v3697_v8 }
 0x2bf   : > { %2394 = vst.msk [vmem:[%s3750_s22 + $0xc0] sm:$0xff] %vm691_vm4, %v2362_v31  ;;  %v2259_v44 = vadd.f32 %v2216_v17, %v2119_v15  ;;  %v1923_v33 = vpop.f32.mrf.mxu2 }
 0x2c0   : > { %v1964_v23 = vadd.f32 %v1923_v33, %v1830_v55 }
 0x2c1   : > { %v2295_v52 = vmul.f32 %v3732_v42, %v2259_v44 }
 0x2c3   : > { %v2331_v19 = vadd.f32 %v3739_v27, %v2295_v52  ;;  %v2219_v40 = vpop.f32.mrf.mxu0 }
 0x2c4   : > { %v2079_v49 = vpop.f32.mrf.mxu3  ;;  %v1794_v45 = vpop.f32.mrf.mxu1 }
 0x2c5   : > { %v2363_v36 = vmax.f32 %v2331_v19, 0.0  ;;  %v2120_v3 = vadd.f32 %v2079_v49, %v1964_v23  ;;  %v1832_v4 = vadd.f32 %v1794_v45, %v3706_v51 }
 0x2c7   : > { %2395 = vst.msk [vmem:[%s3750_s22 + $0xc8] sm:$0xff] %vm691_vm4, %v2363_v36  ;;  %v2260_v16 = vadd.f32 %v2219_v40, %v2120_v3  ;;  %v1925_v28 = vpop.f32.mrf.mxu2 }
 0x2c8   : > { %v1965_v50 = vadd.f32 %v1925_v28, %v1831_v46 }
 0x2c9   : > { %v2296_v20 = vmul.f32 %v3732_v42, %v2260_v16 }
 0x2cb   : > { %v2332_v61 = vadd.f32 %v3739_v27, %v2296_v20  ;;  %v2221_v48 = vpop.f32.mrf.mxu0 }
 0x2cc   : > { %v2081_v11 = vpop.f32.mrf.mxu3  ;;  %v1796_v26 = vpop.f32.mrf.mxu1 }
 0x2cd   : > { %v2364_v6 = vmax.f32 %v2332_v61, 0.0  ;;  %v2121_v39 = vadd.f32 %v2081_v11, %v1965_v50  ;;  %v1833_v57 = vadd.f32 %v1796_v26, %v3711_v63 }
 0x2cf   : > { %2396 = vst.msk [vmem:[%s3750_s22 + $0xd0] sm:$0xff] %vm691_vm4, %v2364_v6  ;;  %v2261_v18 = vadd.f32 %v2221_v48, %v2121_v39  ;;  %v1928_v21 = vpop.f32.mrf.mxu2 }
 0x2d0   : > { %v1966_v34 = vadd.f32 %v1928_v21, %v1832_v4 }
 0x2d1   : > { %v2297_v8 = vmul.f32 %v3732_v42, %v2261_v18 }
 0x2d3   : > { %v2333_v30 = vadd.f32 %v3739_v27, %v2297_v8  ;;  %v2224_v56 = vpop.f32.mrf.mxu0 }
 0x2d4   : > { %v2084_v62 = vpop.f32.mrf.mxu3  ;;  %v1799_v25 = vpop.f32.mrf.mxu1 }
 0x2d5   : > { %v2365_v14 = vmax.f32 %v2333_v30, 0.0  ;;  %v2122_v24 = vadd.f32 %v2084_v62, %v1966_v34  ;;  %v1834_v41 = vadd.f32 %v1799_v25, %v3720_v2 }
 0x2d7   : > { %2397 = vst.msk [vmem:[%s3750_s22 + $0xd8] sm:$0xff] %vm691_vm4, %v2365_v14  ;;  %v2262_v12 = vadd.f32 %v2224_v56, %v2122_v24  ;;  %v1930_v54 = vpop.f32.mrf.mxu2 }
 0x2d8   : > { %v1967_v32 = vadd.f32 %v1930_v54, %v1833_v57 }
 0x2d9   : > { %v2298_v51 = vmul.f32 %v3732_v42, %v2262_v12 }
 0x2db   : > { %v2334_v59 = vadd.f32 %v3739_v27, %v2298_v51  ;;  %v2226_v53 = vpop.f32.mrf.mxu0 }
 0x2dc   : > { %v2086_v0 = vpop.f32.mrf.mxu3  ;;  %v1801_v1 = vpop.f32.mrf.mxu1 }
 0x2dd   : > { %v2366_v58 = vmax.f32 %v2334_v59, 0.0  ;;  %v2123_v38 = vadd.f32 %v2086_v0, %v1967_v32  ;;  %v1835_v17 = vadd.f32 %v1801_v1, %v3725_v5 }
 0x2df   : > { %2398 = vst.msk [vmem:[%s3750_s22 + $0xe0] sm:$0xff] %vm691_vm4, %v2366_v58  ;;  %v2263_v60 = vadd.f32 %v2226_v53, %v2123_v38  ;;  %v1933_v9 = vpop.f32.mrf.mxu2 }
 0x2e0   : > { %v1968_v43 = vadd.f32 %v1933_v9, %v1834_v41 }
 0x2e1   : > { %v2299_v63 = vmul.f32 %v3732_v42, %v2263_v60 }
 0x2e3   : > { %v2335_v7 = vadd.f32 %v3739_v27, %v2299_v63  ;;  %v2229_v37 = vpop.f32.mrf.mxu0 }
 0x2e4   : > { %v2089_v47 = vpop.f32.mrf.mxu3 }
 0x2e5   : > { %v2367_v29 = vmax.f32 %v2335_v7, 0.0  ;;  %v2124_v22 = vadd.f32 %v2089_v47, %v1968_v43 }
 0x2e7   : > { %2399 = vst.msk [vmem:[%s3750_s22 + $0xe8] sm:$0xff] %vm691_vm4, %v2367_v29  ;;  %v2264_v35 = vadd.f32 %v2229_v37, %v2124_v22  ;;  %v1935_v13 = vpop.f32.mrf.mxu2 }
 0x2e8   : > { %v1969_v10 = vadd.f32 %v1935_v13, %v1835_v17 }
 0x2e9   : > { %v2300_v2 = vmul.f32 %v3732_v42, %v2264_v35 }
 0x2eb   : > { %v2336_v31 = vadd.f32 %v3739_v27, %v2300_v2  ;;  %v2231_v33 = vpop.f32.mrf.mxu0 }
 0x2ec   : > { %v2091_v15 = vpop.f32.mrf.mxu3 }
 0x2ed   : > { %v2368_v44 = vmax.f32 %v2336_v31, 0.0  ;;  %v2125_v55 = vadd.f32 %v2091_v15, %v1969_v10 }
 0x2ef   : > { %2400 = vst.msk [vmem:[%s3750_s22 + $0xf0] sm:$0xff] %vm691_vm4, %v2368_v44  ;;  %v2265_v52 = vadd.f32 %v2231_v33, %v2125_v55 }
 0x2f1   : > { %v2301_v23 = vmul.f32 %v3732_v42, %v2265_v52 }
 0x2f3   : > { %v2337_v19 = vadd.f32 %v3739_v27, %v2301_v23 }
 0x2f5   : > { %v2369_v40 = vmax.f32 %v2337_v19, 0.0 }
 0x2f7   : > { %2401 = vst.msk [vmem:[%s3750_s22 + $0xf8] sm:$0xff] %vm691_vm4, %v2369_v40 }
 0x2f8 PF: > { %s14_s15 = sadd.s32 1, %s2756_s15  }
 0x2f9   : > { %p11_p4 = scmp.ge.s32.totalorder %s14_s15, 4  }
 0x2fb   :  { %13 = sbr.rel (!%p11_p4) target bundleno = 1 (0x1), region = 74 }

// kernel: conv_layer_forward.4
= control target key start
LH: loop header
LB: loop body
LE: loop exit
PB: predicated region body
PF: predicated region fallthrough
CT: control target
= control target key end

     0   :  { %s2822_s12 = smov 0   ;;  %s3957_s0 = inlined_call_operand.vmem [shape: bf16[2,18,18,8], index: 0, kind: input, shape index: {}]   ;;  %s3958_s1 = inlined_call_operand.vmem [shape: bf16[9,8,128], index: 1, kind: input, shape index: {}]   ;;  %s3959_s2 = inlined_call_operand.vmem [shape: f32[2,8,8], index: 2, kind: output, shape index: {0}]   ;;  %s3960_s3 = inlined_call_operand.vmem [shape: f32[2,8,8], index: 3, kind: output, shape index: {1}]  }
   0x1 LB: > { %s2504_s13 = sadd.s32 4294967295, %s2800_s12   ;;  %p2508_p0 = scmp.ge.s32.totalorder %s2800_s12, 1  ;;  %s2800_s12 = sphi %s2822_s12, %s14_s12  }
   0x2   : > { %p140_p1 = scmp.lt.s32.totalorder %s2800_s12, 3 }
   0x4   : > { %p141_p2 = pnand %p2508_p0, %p140_p1 }
   0x6   : > { %144 = sbr.rel (%p141_p2) target bundleno = 771 (0x303), region = 28 }
   0xb   : > { %v2512_v0 = vld [vmem:[%s3958_s1 + $0x4] sm:$0xf]  ;;  %vm722_vm0 = vcmask 1043456   ;;  %p167_p3 = scmp.lt.s32.totalorder %s2504_s13, 1  ;;  %v2625_v2 = vld [vmem:[%s3958_s1 + $0x8] sm:$0xf] }
   0xc   : > { %v724_v1 = vsel %vm722_vm0, %v2512_v0, 0  ;;  %v1265_v3 = vsel %vm722_vm0, %v2625_v2, 0  ;;  %v2642_v4 = vld [vmem:[%s3958_s1 + $0xc] sm:$0xf]  ;;  %v235_v5 = vld [vmem:[%s3958_s1] sm:$0xf] }
   0xd   : > { %2774 = vmatpush.bf16.msra.mxu1 %v724_v1  ;;  %2775 = vmatpush.bf16.msra.mxu2 %v724_v1  ;;  %s4100_s13 = smov (!%p167_p3, %s2504_s13), 1  ;;  %v2663_v6 = vld [vmem:[%s3958_s1 + $0x10] sm:$0xf]  ;;  %v1399_v7 = vsel %vm722_vm0, %v2642_v4, 0  ;;  %v944_v8 = vsel %vm722_vm0, %v235_v5, 0  ;;  %vm673_vm4 = vcmask 64512  }
   0xe   : > { %2776 = vmatpush.bf16.msra.mxu3 %v724_v1  ;;  %733 = vmatpush.bf16.msra.mxu0 %v724_v1  ;;  %s2777_s24 = smul.u32 216, %s4100_s13  ;;  %v1555_v9 = vsel %vm722_vm0, %v2663_v6, 0  ;;  %vm236_vm1 = vsmask.f32 3328  ;;  %vm237_vm2 = vsmask.f32 7440 }
   0xf   : > { %vm2883_vm3 = vmor %vm236_vm1, %vm237_vm2  ;;  %vm1051_vm5 = vcmask 1042432   ;;  %vm1052_vm6 = vcmask 1046532   ;;  %s2510_s9 = sshll.u32 %s4100_s13, 3 }
  0x10   : > { %s2856_s27 = scalar_lea.vmem %s3957_s0, %s2777_s24  ;;  %vm3186_vm7 = vmor %vm1051_vm5, %vm1052_vm6  ;;  %s175_s14 = scalar_lea.vmem %s3959_s2, %s2510_s9 }
  0x11   : > { %1274 = vmatpush.bf16.msrb.mxu2 %v1265_v3  ;;  %953 = vmatpush.bf16.msrb.mxu1 %v944_v8  ;;  %v2859_v10 = vld [vmem:[%s2856_s27 + $0x30] sm:$0xf]  ;;  %v2862_v11 = vld [vmem:[%s2856_s27 + $0x34] sm:$0xf]  ;;  %v2865_v12 = vld [vmem:[%s2856_s27 + $0x38] sm:$0x1]  ;;  %s179_s17 = scalar_lea.vmem %s3960_s3, %s2510_s9 }
  0x12   : > { %1408 = vmatpush.bf16.msrb.mxu3 %v1399_v7  ;;  %1564 = vmatpush.bf16.msrb.mxu0 %v1555_v9  ;;  %v336_v13 = vshrl.u32 %v2859_v10, 16  ;;  %v339_v14 = vshll.u32 %v2859_v10, 16  ;;  %v345_v15 = vshll.u32 %v2862_v11, 16  ;;  %v349_v16 = vshrl.u32 %v2862_v11, 16  ;;  %v205_v17 = vld [vmem:[%s2856_s27 + $0x60] sm:$0xf] }
  0x13   : > { %v355_v18 = vshll.u32 %v2865_v12, 16  ;;  %v2874_v19 = vld [vmem:[%s2856_s27 + $0x64] sm:$0xf]  ;;  %v207_v20 = vld [vmem:[%s2856_s27 + $0x68] sm:$0x1]  ;;  %v432_v21 = vshrl.u32 %v205_v17, 16 }
  0x14   : > { %v338_v22 = vrot.slane %v336_v13, 4  ;;  %v341_v23 = vrot.slane %v339_v14, 5  ;;  %v347_v24 = vrot.slane %v345_v15, 5  ;;  %v351_v25 = vrot.slane %v349_v16, 4  ;;  %v217_v26 = vld [vmem:[%s2856_s27 + $0x90] sm:$0xf] }
  0x15   : > { %v357_v27 = vrot.slane %v355_v18, 5  ;;  %v434_v28 = vrot.slane %v432_v21, 4  ;;  %v435_v29 = vshll.u32 %v205_v17, 16  ;;  %v441_v30 = vshll.u32 %v2874_v19, 16  ;;  %v218_v35 = vld [vmem:[%s2856_s27 + $0x94] sm:$0xf] }
  0x16   : > { %v342_v31 = vor.u32 %v341_v23, %v338_v22  ;;  %v352_v32 = vor.u32 %v351_v25, %v347_v24  ;;  %v445_v33 = vshrl.u32 %v2874_v19, 16  ;;  %v451_v34 = vshll.u32 %v207_v20, 16  ;;  %v219_v45 = vld [vmem:[%s2856_s27 + $0x98] sm:$0x1]  ;;  %v2893_v61 = vld [vmem:[%s2856_s27] sm:$0xf] }
  0x17   : > { %v437_v37 = vrot.slane %v435_v29, 5  ;;  %v443_v38 = vrot.slane %v441_v30, 5  ;;  %v528_v39 = vshrl.u32 %v217_v26, 16  ;;  %v531_v47 = vshll.u32 %v217_v26, 16  ;;  %v2900_v1 = vld [vmem:[%s2856_s27 + $0x4] sm:$0xf] }
  0x18   : > { %v343_v40 = vrot.slane %v342_v31, 4  ;;  %v353_v41 = vrot.slane %v352_v32, 4  ;;  %v447_v42 = vrot.slane %v445_v33, 4  ;;  %v453_v43 = vrot.slane %v451_v34, 5  ;;  %v2903_v2 = vld [vmem:[%s2856_s27 + $0x8] sm:$0x1] }
  0x19   : > { %v438_v44 = vor.u32 %v437_v37, %v434_v28  ;;  %v530_v46 = vrot.slane %v528_v39, 4  ;;  %v537_v48 = vshll.u32 %v218_v35, 16  ;;  %v541_v52 = vshrl.u32 %v218_v35, 16  ;;  %v2919_v23 = vld [vmem:[%s2856_s27 + $0x3c] sm:$0xf] }
  0x1a   : > { %v348_v49 = vsel %vm2883_vm3, %v343_v40, %v347_v24  ;;  %v358_v50 = vsel %vm2883_vm3, %v353_v41, %v357_v27  ;;  %v448_v51 = vor.u32 %v447_v42, %v443_v38  ;;  %v533_v56 = vrot.slane %v531_v47, 5  ;;  %v2922_v24 = vld [vmem:[%s2856_s27 + $0x40] sm:$0xf]  ;;  %v2927_v29 = vld [vmem:[%s2856_s27 + $0x44] sm:$0x1] }
  0x1b   : > { %v633_v53 = vunpack.c.l.b16 %v348_v49  ;;  %v634_v54 = vunpack.c.l.b16 %v358_v50  ;;  %v439_v55 = vrot.slane %v438_v44, 4  ;;  %v539_v58 = vrot.slane %v537_v48, 5  ;;  %v2942_v47 = vld [vmem:[%s2856_s27 + $0x70] sm:$0xf] }
  0x1c   : > { %v449_v57 = vrot.slane %v448_v51, 4  ;;  %v543_v59 = vrot.slane %v541_v52, 4  ;;  %v547_v60 = vshll.u32 %v219_v45, 16  ;;  %v534_v0 = vor.u32 %v533_v56, %v530_v46  ;;  %v2949_v51 = vld [vmem:[%s2856_s27 + $0x74] sm:$0x1] }
  0x1d   : > { %v2895_v62 = vpack.c.b16 %v634_v54, %v633_v53  ;;  %v444_v63 = vsel %vm2883_vm3, %v439_v55, %v443_v38  ;;  %v240_v9 = vshrl.u32 %v2893_v61, 16  ;;  %v243_v13 = vshll.u32 %v2893_v61, 16  ;;  %v2935_v38 = vld [vmem:[%s2856_s27 + $0x6c] sm:$0xf] }
  0x1e   : > { %v454_v3 = vsel %vm2883_vm3, %v449_v57, %v453_v43  ;;  %v641_v4 = vunpack.c.l.b16 %v444_v63  ;;  %v544_v5 = vor.u32 %v543_v59, %v539_v58  ;;  %v549_v6 = vrot.slane %v547_v60, 5 }
  0x1f   : > { %2517 = vmatmul.msk.bf16.vlgmr.msra.gmra.mxu1 %vm673_vm4, %v2895_v62  ;;  %v642_v7 = vunpack.c.l.b16 %v454_v3  ;;  %v535_v8 = vrot.slane %v534_v0, 4  ;;  %v249_v15 = vshll.u32 %v2900_v1, 16  ;;  %v253_v16 = vshrl.u32 %v2900_v1, 16 }
  0x20   : > { %v545_v14 = vrot.slane %v544_v5, 4  ;;  %v259_v17 = vshll.u32 %v2903_v2, 16  ;;  %v242_v21 = vrot.slane %v240_v9, 4  ;;  %v245_v22 = vrot.slane %v243_v13, 5  ;;  %v220_v5 = vld [vmem:[%s2856_s27 + $0x9c] sm:$0xf] }
  0x21   : > { %v2914_v18 = vpack.c.b16 %v642_v7, %v641_v4  ;;  %v540_v20 = vsel %vm2883_vm3, %v535_v8, %v539_v58  ;;  %v251_v27 = vrot.slane %v249_v15, 5  ;;  %v255_v28 = vrot.slane %v253_v16, 4  ;;  %v221_v9 = vld [vmem:[%s2856_s27 + $0xa0] sm:$0xf] }
  0x22   : > { %v550_v25 = vsel %vm2883_vm3, %v545_v14, %v549_v6  ;;  %v649_v26 = vunpack.c.l.b16 %v540_v20  ;;  %v246_v31 = vor.u32 %v245_v22, %v242_v21  ;;  %v261_v32 = vrot.slane %v259_v17, 5  ;;  %v222_v17 = vld [vmem:[%s2856_s27 + $0xa4] sm:$0x1] }
  0x23   : > { %4003 = vst [vmem:[#allocation2_spill] sm:$0xff] %v2914_v18  ;;  %2521 = vmatmul.msk.bf16.vlgmr.msra.gmra.mxu2 %vm673_vm4, %v2914_v18  ;;  %v650_v30 = vunpack.c.l.b16 %v550_v25  ;;  %v256_v33 = vor.u32 %v255_v28, %v251_v27  ;;  %v360_v34 = vshrl.u32 %v2919_v23, 16  ;;  %v363_v35 = vshll.u32 %v2919_v23, 16 }
  0x24   : > { %v369_v37 = vshll.u32 %v2922_v24, 16  ;;  %v247_v40 = vrot.slane %v246_v31, 4  ;;  %v373_v41 = vshrl.u32 %v2922_v24, 16  ;;  %v379_v42 = vshll.u32 %v2927_v29, 16 }
  0x25   : > { %v2937_v39 = vpack.c.b16 %v650_v30, %v649_v26  ;;  %v257_v43 = vrot.slane %v256_v33, 4  ;;  %v362_v44 = vrot.slane %v360_v34, 4  ;;  %v365_v45 = vrot.slane %v363_v35, 5  ;;  %v2967_v35 = vld [vmem:[%s2856_s27 + $0xc] sm:$0xf] }
  0x26   : > { %v371_v46 = vrot.slane %v369_v37, 5  ;;  %v252_v48 = vsel %vm2883_vm3, %v247_v40, %v251_v27  ;;  %v375_v49 = vrot.slane %v373_v41, 4  ;;  %v381_v50 = vrot.slane %v379_v42, 5 }
  0x27   : > { %4004 = vst [vmem:[#allocation3_spill] sm:$0xff] %v2937_v39  ;;  %2525 = vmatmul.msk.bf16.vlgmr.msra.gmra.mxu3 %vm673_vm4, %v2937_v39  ;;  %v456_v52 = vshrl.u32 %v2935_v38, 16  ;;  %v262_v53 = vsel %vm2883_vm3, %v257_v43, %v261_v32  ;;  %v625_v54 = vunpack.c.l.b16 %v252_v48  ;;  %v366_v55 = vor.u32 %v365_v45, %v362_v44  ;;  %v2974_v43 = vld [vmem:[%s2856_s27 + $0x10] sm:$0xf]  ;;  %v2977_v48 = vld [vmem:[%s2856_s27 + $0x14] sm:$0x1] }
  0x28   : > { %v459_v56 = vshll.u32 %v2935_v38, 16  ;;  %v626_v57 = vunpack.c.l.b16 %v262_v53  ;;  %v376_v58 = vor.u32 %v375_v49, %v371_v46  ;;  %v465_v60 = vshll.u32 %v2942_v47, 16  ;;  %v3154_v39 = vld [vmem:[%s2856_s27 + $0x2c] sm:$0x1] }
  0x29   : > { %v458_v59 = vrot.slane %v456_v52, 4  ;;  %v367_v63 = vrot.slane %v366_v55, 4  ;;  %v469_v3 = vshrl.u32 %v2942_v47, 16  ;;  %v475_v4 = vshll.u32 %v2949_v51, 16 }
  0x2a   : > { %v461_v0 = vrot.slane %v459_v56, 5  ;;  %v657_v6 = vpack.c.b16 %v626_v57, %v625_v54  ;;  %v377_v7 = vrot.slane %v376_v58, 4  ;;  %v467_v8 = vrot.slane %v465_v60, 5  ;;  %v2987_v58 = vld [vmem:[%s2856_s27 + $0x48] sm:$0xf] }
  0x2b   : > { %v372_v13 = vsel %vm2883_vm3, %v367_v63, %v371_v46  ;;  %v471_v15 = vrot.slane %v469_v3, 4  ;;  %v477_v16 = vrot.slane %v475_v4, 5  ;;  %v552_v22 = vshrl.u32 %v220_v5, 16  ;;  %v2992_v3 = vld [vmem:[%s2856_s27 + $0x4c] sm:$0xf] }
  0x2c   : > { %v462_v14 = vor.u32 %v461_v0, %v458_v59  ;;  %2513 = vmatmul.msk.bf16.vlgmr.msra.gmra.mxu0 %vm673_vm4, %v657_v6  ;;  %v382_v20 = vsel %vm2883_vm3, %v377_v7, %v381_v50  ;;  %v635_v21 = vunpack.c.l.b16 %v372_v13  ;;  %v555_v25 = vshll.u32 %v220_v5, 16 }
  0x2d   : > { %v636_v26 = vunpack.c.l.b16 %v382_v20  ;;  %v472_v28 = vor.u32 %v471_v15, %v467_v8  ;;  %v561_v30 = vshll.u32 %v221_v9, 16  ;;  %v554_v31 = vrot.slane %v552_v22, 4  ;;  %v2999_v15 = vld [vmem:[%s2856_s27 + $0x50] sm:$0x1] }
  0x2e   : > { %v463_v27 = vrot.slane %v462_v14, 4  ;;  %v557_v32 = vrot.slane %v555_v25, 5  ;;  %v565_v33 = vshrl.u32 %v221_v9, 16  ;;  %v571_v34 = vshll.u32 %v222_v17, 16 }
  0x2f   : > { %v2969_v37 = vpack.c.b16 %v636_v26, %v635_v21  ;;  %v473_v41 = vrot.slane %v472_v28, 4  ;;  %v563_v42 = vrot.slane %v561_v30, 5  ;;  %v264_v52 = vshrl.u32 %v2967_v35, 16  ;;  %v3010_v28 = vld [vmem:[%s2856_s27 + $0x78] sm:$0xf] }
  0x30   : > { %v468_v40 = vsel %vm2883_vm3, %v463_v27, %v467_v8  ;;  %v558_v45 = vor.u32 %v557_v32, %v554_v31  ;;  %v567_v46 = vrot.slane %v565_v33, 4  ;;  %v573_v50 = vrot.slane %v571_v34, 5  ;;  %v3014_v34 = vld [vmem:[%s2856_s27 + $0x7c] sm:$0xf] }
  0x31   : > { %v643_v44 = vunpack.c.l.b16 %v468_v40  ;;  %2518 = vmatmul.msk.bf16.gmra.mxu1 %vm673_vm4, %v2969_v37  ;;  %v478_v49 = vsel %vm2883_vm3, %v473_v41, %v477_v16  ;;  %v267_v53 = vshll.u32 %v2967_v35, 16  ;;  %v273_v57 = vshll.u32 %v2974_v43, 16 }
  0x32   : > { %v644_v54 = vunpack.c.l.b16 %v478_v49  ;;  %v559_v55 = vrot.slane %v558_v45, 4  ;;  %v568_v56 = vor.u32 %v567_v46, %v563_v42  ;;  %v266_v59 = vrot.slane %v264_v52, 4 }
  0x33   : > { %v269_v60 = vrot.slane %v267_v53, 5  ;;  %v277_v63 = vshrl.u32 %v2974_v43, 16  ;;  %v283_v0 = vshll.u32 %v2977_v48, 16  ;;  %v275_v7 = vrot.slane %v273_v57, 5 }
  0x34   : > { %v2994_v4 = vpack.c.b16 %v644_v54, %v643_v44  ;;  %v564_v5 = vsel %vm2883_vm3, %v559_v55, %v563_v42  ;;  %v569_v6 = vrot.slane %v568_v56, 4  ;;  %v384_v17 = vshrl.u32 %v2987_v58, 16 }
  0x35   : > { %v651_v8 = vunpack.c.l.b16 %v564_v5  ;;  %v270_v9 = vor.u32 %v269_v60, %v266_v59  ;;  %v279_v13 = vrot.slane %v277_v63, 4  ;;  %v285_v14 = vrot.slane %v283_v0, 5 }
  0x36   : > { %2522 = vmatmul.msk.bf16.gmra.mxu2 %vm673_vm4, %v2994_v4  ;;  %v574_v16 = vsel %vm2883_vm3, %v569_v6, %v573_v50  ;;  %v387_v20 = vshll.u32 %v2987_v58, 16  ;;  %v393_v21 = vshll.u32 %v2992_v3, 16  ;;  %v397_v27 = vshrl.u32 %v2992_v3, 16  ;;  %v3021_v50 = vld [vmem:[%s2856_s27 + $0x80] sm:$0x1] }
  0x37   : > { %v652_v22 = vunpack.c.l.b16 %v574_v16  ;;  %v271_v25 = vrot.slane %v270_v9, 4  ;;  %v280_v26 = vor.u32 %v279_v13, %v275_v7  ;;  %v386_v30 = vrot.slane %v384_v17, 4  ;;  %v3040_v16 = vld [vmem:[%s2856_s27 + $0xac] sm:$0xf]  ;;  %v3043_v17 = vld [vmem:[%s2856_s27 + $0xb0] sm:$0x1] }
  0x38   : > { %v389_v31 = vrot.slane %v387_v20, 5  ;;  %v395_v32 = vrot.slane %v393_v21, 5  ;;  %v403_v33 = vshll.u32 %v2999_v15, 16  ;;  %v399_v44 = vrot.slane %v397_v27, 4  ;;  %4007 = vst [vmem:[#allocation6_spill] sm:$0xff] %v3040_v16 }
  0x39   : > { %v3016_v40 = vpack.c.b16 %v652_v22, %v651_v8  ;;  %v276_v41 = vsel %vm2883_vm3, %v271_v25, %v275_v7  ;;  %v281_v42 = vrot.slane %v280_v26, 4  ;;  %v480_v52 = vshrl.u32 %v3010_v28, 16  ;;  %v3033_v8 = vld [vmem:[%s2856_s27 + $0xa8] sm:$0xf]  ;;  %4008 = vst [vmem:[#allocation7_spill] sm:$0xff] %v3043_v17 }
  0x3a   : > { %v627_v45 = vunpack.c.l.b16 %v276_v41  ;;  %v390_v46 = vor.u32 %v389_v31, %v386_v30  ;;  %v405_v49 = vrot.slane %v403_v33, 5  ;;  %v400_v54 = vor.u32 %v399_v44, %v395_v32  ;;  %4006 = vst [vmem:[#allocation5_spill] sm:$0xff] %v3033_v8 }
  0x3b   : > { %4005 = vst [vmem:[#allocation4_spill] sm:$0xff] %v3016_v40  ;;  %2526 = vmatmul.msk.bf16.gmra.mxu3 %vm673_vm4, %v3016_v40  ;;  %v286_v53 = vsel %vm2883_vm3, %v281_v42, %v285_v14  ;;  %v483_v55 = vshll.u32 %v3010_v28, 16  ;;  %v489_v56 = vshll.u32 %v3014_v34, 16  ;;  %v482_v60 = vrot.slane %v480_v52, 4  ;;  %v3057_v52 = vld [vmem:[%s2856_s27 + $0x18] sm:$0xf] }
  0x3c   : > { %v628_v57 = vunpack.c.l.b16 %v286_v53  ;;  %v391_v59 = vrot.slane %v390_v46, 4  ;;  %v493_v63 = vshrl.u32 %v3014_v34, 16  ;;  %v401_v0 = vrot.slane %v400_v54, 4  ;;  %v3143_v40 = vld [vmem:[%s2856_s27 + $0x24] sm:$0xf] }
  0x3d   : > { %v485_v5 = vrot.slane %v483_v55, 5  ;;  %v491_v6 = vrot.slane %v489_v56, 5  ;;  %v499_v7 = vshll.u32 %v3021_v50, 16  ;;  %v576_v30 = vshrl.u32 %v3033_v8, 16  ;;  %v3062_v56 = vld [vmem:[%s2856_s27 + $0x1c] sm:$0xf] }
  0x3e   : > { %v3035_v9 = vpack.c.b16 %v628_v57, %v627_v45  ;;  %v396_v13 = vsel %vm2883_vm3, %v391_v59, %v395_v32  ;;  %v495_v14 = vrot.slane %v493_v63, 4  ;;  %v406_v20 = vsel %vm2883_vm3, %v401_v0, %v405_v49  ;;  %v3065_v57 = vld [vmem:[%s2856_s27 + $0x20] sm:$0x1] }
  0x3f   : > { %v637_v21 = vunpack.c.l.b16 %v396_v13  ;;  %v486_v22 = vor.u32 %v485_v5, %v482_v60  ;;  %v501_v25 = vrot.slane %v499_v7, 5  ;;  %v638_v26 = vunpack.c.l.b16 %v406_v20 }
  0x40   : > { %2514 = vmatmul.msk.bf16.gmra.mxu0 %vm673_vm4, %v3035_v9  ;;  %v496_v27 = vor.u32 %v495_v14, %v491_v6  ;;  %v579_v31 = vshll.u32 %v3033_v8, 16  ;;  %v585_v33 = vshll.u32 %v3040_v16, 16  ;;  %v589_v41 = vshrl.u32 %v3040_v16, 16 }
  0x41   : > { %v487_v32 = vrot.slane %v486_v22, 4  ;;  %v595_v42 = vshll.u32 %v3043_v17, 16  ;;  %v3054_v44 = vpack.c.b16 %v638_v26, %v637_v21  ;;  %v578_v46 = vrot.slane %v576_v30, 4  ;;  %v3077_v26 = vld [vmem:[%s2856_s27 + $0x54] sm:$0xf] }
  0x42   : > { %v497_v45 = vrot.slane %v496_v27, 4  ;;  %v581_v49 = vrot.slane %v579_v31, 5  ;;  %v587_v54 = vrot.slane %v585_v33, 5  ;;  %v591_v55 = vrot.slane %v589_v41, 4  ;;  %v3121_v17 = vld [vmem:[%s2856_s27 + $0xb4] sm:$0xf] }
  0x43   : > { %4009 = vst [vmem:[#allocation8_spill] sm:$0xff] %v3054_v44  ;;  %v492_v53 = vsel %vm2883_vm3, %v487_v32, %v491_v6  ;;  %2519 = vmatmul.msk.bf16.gmra.mxu1 %vm673_vm4, %v3054_v44  ;;  %v597_v0 = vrot.slane %v595_v42, 5  ;;  %v288_v6 = vshrl.u32 %v3057_v52, 16  ;;  %v291_v13 = vshll.u32 %v3057_v52, 16  ;;  %v3082_v32 = vld [vmem:[%s2856_s27 + $0x58] sm:$0xf] }
  0x44   : > { %v502_v59 = vsel %vm2883_vm3, %v497_v45, %v501_v25  ;;  %v645_v60 = vunpack.c.l.b16 %v492_v53  ;;  %v582_v63 = vor.u32 %v581_v49, %v578_v46  ;;  %v592_v7 = vor.u32 %v591_v55, %v587_v54  ;;  %v3087_v46 = vld [vmem:[%s2856_s27 + $0x5c] sm:$0x1]  ;;  %4012 = vst [vmem:[#allocation11_spill] sm:$0xff] %v3121_v17 }
  0x45   : > { %v646_v5 = vunpack.c.l.b16 %v502_v59  ;;  %v297_v20 = vshll.u32 %v3062_v56, 16  ;;  %v301_v21 = vshrl.u32 %v3062_v56, 16  ;;  %v307_v22 = vshll.u32 %v3065_v57, 16 }
  0x46   : > { %v583_v14 = vrot.slane %v582_v63, 4  ;;  %v593_v27 = vrot.slane %v592_v7, 4  ;;  %v290_v30 = vrot.slane %v288_v6, 4  ;;  %v293_v31 = vrot.slane %v291_v13, 5  ;;  %v3097_v7 = vld [vmem:[%s2856_s27 + $0x84] sm:$0xf] }
  0x47   : > { %v3079_v25 = vpack.c.b16 %v646_v5, %v645_v60  ;;  %v299_v41 = vrot.slane %v297_v20, 5  ;;  %v303_v42 = vrot.slane %v301_v21, 4  ;;  %v309_v45 = vrot.slane %v307_v22, 5  ;;  %4010 = vst [vmem:[#allocation9_spill] sm:$0xff] %v3097_v7 }
  0x48   : > { %v588_v33 = vsel %vm2883_vm3, %v583_v14, %v587_v54  ;;  %v598_v49 = vsel %vm2883_vm3, %v593_v27, %v597_v0  ;;  %v294_v55 = vor.u32 %v293_v31, %v290_v30  ;;  %v408_v59 = vshrl.u32 %v3077_v26, 16  ;;  %v3104_v30 = vld [vmem:[%s2856_s27 + $0x88] sm:$0xf] }
  0x49   : > { %2523 = vmatmul.msk.bf16.gmra.mxu2 %vm673_vm4, %v3079_v25  ;;  %v653_v53 = vunpack.c.l.b16 %v588_v33  ;;  %v654_v60 = vunpack.c.l.b16 %v598_v49  ;;  %v304_v63 = vor.u32 %v303_v42, %v299_v41  ;;  %v411_v54 = vshll.u32 %v3077_v26, 16  ;;  %v3109_v49 = vld [vmem:[%s2856_s27 + $0x8c] sm:$0x1] }
  0x4a   : > { %v417_v5 = vshll.u32 %v3082_v32, 16  ;;  %v295_v6 = vrot.slane %v294_v55, 4  ;;  %v410_v13 = vrot.slane %v408_v59, 4  ;;  %v421_v14 = vshrl.u32 %v3082_v32, 16 }
  0x4b   : > { %v427_v0 = vshll.u32 %v3087_v46, 16  ;;  %v3101_v20 = vpack.c.b16 %v654_v60, %v653_v53  ;;  %v305_v21 = vrot.slane %v304_v63, 4  ;;  %v413_v22 = vrot.slane %v411_v54, 5 }
  0x4c   : > { %v419_v27 = vrot.slane %v417_v5, 5  ;;  %v300_v31 = vsel %vm2883_vm3, %v295_v6, %v299_v41  ;;  %v423_v33 = vrot.slane %v421_v14, 4  ;;  %v504_v55 = vshrl.u32 %v3097_v7, 16 }
  0x4d   : > { %4011 = vst [vmem:[#allocation10_spill] sm:$0xff] %v3101_v20  ;;  %v429_v42 = vrot.slane %v427_v0, 5  ;;  %2527 = vmatmul.msk.bf16.gmra.mxu3 %vm673_vm4, %v3101_v20  ;;  %v310_v53 = vsel %vm2883_vm3, %v305_v21, %v309_v45  ;;  %v629_v59 = vunpack.c.l.b16 %v300_v31  ;;  %v414_v60 = vor.u32 %v413_v22, %v410_v13  ;;  %v3126_v22 = vld [vmem:[%s2856_s27 + $0xb8] sm:$0xf] }
  0x4e   : > { %v507_v63 = vshll.u32 %v3097_v7, 16  ;;  %v630_v54 = vunpack.c.l.b16 %v310_v53  ;;  %v424_v41 = vor.u32 %v423_v33, %v419_v27  ;;  %v506_v5 = vrot.slane %v504_v55, 4  ;;  %4013 = vst [vmem:[#allocation12_spill] sm:$0xff] %v3126_v22 }
  0x4f   : > { %v513_v6 = vshll.u32 %v3104_v30, 16  ;;  %v415_v14 = vrot.slane %v414_v60, 4  ;;  %v517_v8 = vshrl.u32 %v3104_v30, 16  ;;  %v523_v20 = vshll.u32 %v3109_v49, 16  ;;  %v3131_v60 = vld [vmem:[%s2856_s27 + $0xbc] sm:$0x1] }
  0x50   : > { %v509_v0 = vrot.slane %v507_v63, 5  ;;  %v3123_v45 = vpack.c.b16 %v630_v54, %v629_v59  ;;  %v425_v21 = vrot.slane %v424_v41, 4  ;;  %4014 = vst [vmem:[#allocation13_spill] sm:$0xff] %v3131_v60  ;;  %v600_v54 = vshrl.u32 %v3121_v17, 16 }
  0x51   : > { %v515_v13 = vrot.slane %v513_v6, 5  ;;  %v420_v31 = vsel %vm2883_vm3, %v415_v14, %v419_v27  ;;  %v519_v55 = vrot.slane %v517_v8, 4  ;;  %v525_v53 = vrot.slane %v523_v20, 5 }
  0x52   : > { %v510_v33 = vor.u32 %v509_v0, %v506_v5  ;;  %2515 = vmatmul.msk.bf16.gmra.mxu0 %vm673_vm4, %v3123_v45  ;;  %v430_v59 = vsel %vm2883_vm3, %v425_v21, %v429_v42  ;;  %v639_v63 = vunpack.c.l.b16 %v420_v31  ;;  %v603_v41 = vshll.u32 %v3121_v17, 16 }
  0x53   : > { %v640_v6 = vunpack.c.l.b16 %v430_v59  ;;  %v520_v5 = vor.u32 %v519_v55, %v515_v13  ;;  %v609_v8 = vshll.u32 %v3126_v22, 16  ;;  %v602_v20 = vrot.slane %v600_v54, 4 }
  0x54   : > { %v511_v27 = vrot.slane %v510_v33, 4  ;;  %v605_v14 = vrot.slane %v603_v41, 5  ;;  %v613_v0 = vshrl.u32 %v3126_v22, 16  ;;  %v619_v16 = vshll.u32 %v3131_v60, 16  ;;  %v3150_v33 = vld [vmem:[%s2856_s27 + $0x28] sm:$0xf] }
  0x55   : > { %v3145_v42 = vpack.c.b16 %v640_v6, %v639_v63  ;;  %v521_v31 = vrot.slane %v520_v5, 4  ;;  %v611_v59 = vrot.slane %v609_v8, 5  ;;  %v1059_v55 = vrot.slane %v2903_v2, 5 }
  0x56   : > { %v516_v21 = vsel %vm2883_vm3, %v511_v27, %v515_v13  ;;  %v606_v54 = vor.u32 %v605_v14, %v602_v20  ;;  %v615_v41 = vrot.slane %v613_v0, 4  ;;  %v621_v6 = vrot.slane %v619_v16, 5 }
  0x57   : > { %4015 = vst [vmem:[#allocation14_spill] sm:$0xff] %v3145_v42  ;;  %v647_v17 = vunpack.c.l.b16 %v516_v21  ;;  %2520 = vmatmul.msk.bf16.gmra.mxu1 %vm673_vm4, %v3145_v42  ;;  %v526_v63 = vsel %vm2883_vm3, %v521_v31, %v525_v53  ;;  %v312_v13 = vshrl.u32 %v3143_v40, 16  ;;  %v315_v27 = vshll.u32 %v3143_v40, 16 }
  0x58   : > { %v648_v5 = vunpack.c.l.b16 %v526_v63  ;;  %v607_v8 = vrot.slane %v606_v54, 4  ;;  %v616_v60 = vor.u32 %v615_v41, %v611_v59  ;;  %v321_v2 = vshll.u32 %v3150_v33, 16  ;;  %v2698_v54 = vld [vmem:[%s3958_s1 + $0x18] sm:$0xf]  ;;  %v2719_v41 = vld [vmem:[%s3958_s1 + $0x1c] sm:$0xf] }
  0x59   : > { %v314_v20 = vrot.slane %v312_v13, 4  ;;  %v317_v14 = vrot.slane %v315_v27, 5  ;;  %v325_v0 = vshrl.u32 %v3150_v33, 16  ;;  %v331_v21 = vshll.u32 %v3154_v39, 16 }
  0x5a   : > { %v3165_v22 = vpack.c.b16 %v648_v5, %v647_v17  ;;  %v612_v16 = vsel %vm2883_vm3, %v607_v8, %v611_v59  ;;  %v617_v53 = vrot.slane %v616_v60, 4  ;;  %v323_v31 = vrot.slane %v321_v2, 5  ;;  %v2681_v17 = vld [vmem:[%s3958_s1 + $0x14] sm:$0xf]  ;;  %v2737_v60 = vld [vmem:[%s3958_s1 + $0x20] sm:$0xf] }
  0x5b   : > { %v655_v63 = vunpack.c.l.b16 %v612_v16  ;;  %v318_v13 = vor.u32 %v317_v14, %v314_v20  ;;  %v327_v27 = vrot.slane %v325_v0, 4  ;;  %v333_v7 = vrot.slane %v331_v21, 5 }
  0x5c   : > { %4016 = vst [vmem:[#allocation15_spill] sm:$0xff] %v3165_v22  ;;  %2524 = vmatmul.msk.bf16.gmra.mxu2 %vm673_vm4, %v3165_v22  ;;  %v622_v59 = vsel %vm2883_vm3, %v617_v53, %v621_v6  ;;  %v2609_v5 = vrot.slane %v2893_v61, 9  ;;  %v1056_v0 = vrot.slane %v2900_v1, 5  ;;  %v1829_v21 = vsel %vm722_vm0, %v2698_v54, 0 }
  0x5d   : > { %v656_v8 = vunpack.c.l.b16 %v622_v59  ;;  %v319_v2 = vrot.slane %v318_v13, 4  ;;  %v328_v20 = vor.u32 %v327_v27, %v323_v31  ;;  %v1985_v16 = vsel %vm722_vm0, %v2719_v41, 0  ;;  %1838 = vmatpush.bf16.msra.mxu2 %v1829_v21  ;;  %v2757_v21 = vld [vmem:[%s2856_s27 + $0xc] sm:$0xff] }
  0x5e   : > { %v1695_v22 = vsel %vm722_vm0, %v2681_v17, 0  ;;  %v2125_v6 = vsel %vm722_vm0, %v2737_v60, 0  ;;  %v1057_v27 = vsel %vm3186_vm7, %v2609_v5, %v1056_v0  ;;  %1994 = vmatpush.bf16.msra.mxu3 %v1985_v16  ;;  %v1058_v54 = vrot.slane %v1056_v0, 4 }
  0x5f   : > { %v3195_v53 = vpack.c.b16 %v656_v8, %v655_v63  ;;  %v324_v61 = vsel %vm2883_vm3, %v319_v2, %v323_v31  ;;  %v329_v13 = vrot.slane %v328_v20, 4  ;;  %1704 = vmatpush.bf16.msra.mxu1 %v1695_v22  ;;  %2134 = vmatpush.bf16.msra.mxu0 %v2125_v6  ;;  %v2610_v41 = vrot.slane %v2967_v35, 9  ;;  %v2756_v22 = vld [vmem:[%s2856_s27] sm:$0xff]  ;;  %v3232_v6 = vld [vmem:[%s2856_s27 + $0x18] sm:$0xff] }
  0x60   : > { %v631_v1 = vunpack.c.l.b16 %v324_v61  ;;  %v1168_v31 = vunpack.c.l.b16 %v1057_v27  ;;  %v1063_v17 = vrot.slane %v2974_v43, 5  ;;  %v1066_v60 = vrot.slane %v2977_v48, 5 }
  0x61   : > { %2528 = vmatmul.msk.bf16.gmra.mxu3 %vm673_vm4, %v3195_v53  ;;  %v334_v63 = vsel %vm2883_vm3, %v329_v13, %v333_v7  ;;  %v1060_v5 = vsel %vm3186_vm7, %v1058_v54, %v1059_v55  ;;  %v1070_v16 = vrot.slane %v3062_v56, 5  ;;  %v2611_v61 = vrot.slane %v3057_v52, 9 }
  0x62   : > { %v632_v59 = vunpack.c.l.b16 %v334_v63  ;;  %v1169_v8 = vunpack.c.l.b16 %v1060_v5  ;;  %v1064_v35 = vsel %vm3186_vm7, %v2610_v41, %v1063_v17  ;;  %v1065_v2 = vrot.slane %v1063_v17, 4  ;;  %v3252_v41 = vld [vmem:[%s2856_s27 + $0x24] sm:$0xff] }
  0x63   : > { %v1170_v7 = vunpack.c.l.b16 %v1064_v35  ;;  %v1072_v13 = vrot.slane %v1070_v16, 4  ;;  %v1073_v27 = vrot.slane %v3065_v57, 5  ;;  %v1077_v57 = vrot.slane %v3150_v33, 5 }
  0x64   : > { %v3213_v20 = vpack.c.b16 %v632_v59, %v631_v1  ;;  %v1200_v0 = vpack.c.b16 %v1169_v8, %v1168_v31  ;;  %v1067_v43 = vsel %vm3186_vm7, %v1065_v2, %v1066_v60  ;;  %v2612_v63 = vrot.slane %v3143_v40, 9  ;;  %v3274_v8 = vld [vmem:[%s2856_s27 + $0x30] sm:$0xff] }
  0x65   : > { %v1171_v48 = vunpack.c.l.b16 %v1067_v43  ;;  %v1074_v56 = vsel %vm3186_vm7, %v1072_v13, %v1073_v27  ;;  %v1079_v31 = vrot.slane %v1077_v57, 4  ;;  %v1080_v17 = vrot.slane %v3154_v39, 5  ;;  %v3302_v27 = vld [vmem:[%s2856_s27 + $0x3c] sm:$0xff] }
  0x66   : > { %2516 = vmatmul.msk.bf16.gmra.mxu0 %vm673_vm4, %v3213_v20  ;;  %v1173_v54 = vunpack.c.l.b16 %v1074_v56  ;;  %v1078_v60 = vsel %vm3186_vm7, %v2612_v63, %v1077_v57  ;;  %v1084_v39 = vrot.slane %v2862_v11, 5  ;;  %v2613_v35 = vrot.slane %v2859_v10, 9 }
  0x67   : > { %2593 = vmatmul.msk.bf16.vlgmr.msrb.gmra.mxu1 %vm673_vm4, %v2756_v22  ;;  %v3220_v55 = vpack.c.b16 %v1171_v48, %v1170_v7  ;;  %v1081_v33 = vsel %vm3186_vm7, %v1079_v31, %v1080_v17  ;;  %v1174_v59 = vunpack.c.l.b16 %v1078_v60  ;;  %v1087_v7 = vrot.slane %v2865_v12, 5 }
  0x68   : > { %v1175_v5 = vunpack.c.l.b16 %v1081_v33  ;;  %v1086_v2 = vrot.slane %v1084_v39, 4  ;;  %v1091_v13 = vrot.slane %v2922_v24, 5  ;;  %v2614_v56 = vrot.slane %v2919_v23, 9 }
  0x6a   : > { %v3266_v40 = vpack.c.b16 %v1175_v5, %v1174_v59  ;;  %v1088_v11 = vsel %vm3186_vm7, %v1086_v2, %v1087_v7  ;;  %v1092_v24 = vsel %vm3186_vm7, %v2614_v56, %v1091_v13  ;;  %v1098_v5 = vrot.slane %v2992_v3, 5 }
  0x6b   : > { %v1178_v23 = vunpack.c.l.b16 %v1092_v24  ;;  %v2615_v7 = vrot.slane %v2987_v58, 9  ;;  %v1105_v24 = vrot.slane %v3082_v32, 5 }
  0x6c   : > { %2626 = vmatmul.msk.bf16.vlgmr.msrb.gmra.mxu2 %vm673_vm4, %v1200_v0  ;;  %v1085_v0 = vsel %vm3186_vm7, %v2613_v35, %v1084_v39  ;;  %v3336_v35 = vld [vmem:[%s2856_s27 + $0x48] sm:$0xff] }
  0x6d   : > { %v1176_v48 = vunpack.c.l.b16 %v1085_v0  ;;  %4021 = vst [vmem:[#allocation18_spill] sm:$0xff] %v3336_v35  ;;  %v1100_v0 = vrot.slane %v1098_v5, 4 }
  0x71   : > { %2647 = vmatmul.msk.bf16.vlgmr.msrb.gmra.mxu3 %vm673_vm4, %v2757_v21 }
  0x76   : > { %2664 = vmatmul.msk.bf16.vlgmr.msrb.gmra.mxu0 %vm673_vm4, %v3035_v9  ;;  %v1071_v9 = vsel %vm3186_vm7, %v2611_v61, %v1070_v16 }
  0x77   : > { %2594 = vmatmul.msk.bf16.gmra.mxu1 %vm673_vm4, %v2757_v21  ;;  %v1172_v1 = vunpack.c.l.b16 %v1071_v9  ;;  %v1177_v21 = vunpack.c.l.b16 %v1088_v11  ;;  %v1101_v11 = vrot.slane %v2999_v15, 5 }
  0x79   : > { %v3246_v52 = vpack.c.b16 %v1173_v54, %v1172_v1  ;;  %v3294_v12 = vpack.c.b16 %v1177_v21, %v1176_v48  ;;  %v1093_v1 = vrot.slane %v1091_v13, 4  ;;  %v1094_v54 = vrot.slane %v2927_v29, 5 }
  0x7a   : > { %v1099_v21 = vsel %vm3186_vm7, %v2615_v7, %v1098_v5  ;;  %v1102_v13 = vsel %vm3186_vm7, %v1100_v0, %v1101_v11  ;;  %v2616_v5 = vrot.slane %v3077_v26, 9  ;;  %v1107_v7 = vrot.slane %v1105_v24, 4 }
  0x7b   : > { %v1095_v63 = vsel %vm3186_vm7, %v1093_v1, %v1094_v54  ;;  %v1180_v56 = vunpack.c.l.b16 %v1099_v21  ;;  %v1181_v1 = vunpack.c.l.b16 %v1102_v13  ;;  %v1108_v0 = vrot.slane %v3087_v46, 5 }
  0x7c   : > { %2627 = vmatmul.msk.bf16.gmra.mxu2 %vm673_vm4, %v3220_v55  ;;  %v1179_v60 = vunpack.c.l.b16 %v1095_v63  ;;  %v1106_v32 = vsel %vm3186_vm7, %v2616_v5, %v1105_v24  ;;  %v1112_v5 = vrot.slane %v2874_v19, 5 }
  0x7d   : > { %v3360_v54 = vpack.c.b16 %v1181_v1, %v1180_v56  ;;  %v1109_v13 = vsel %vm3186_vm7, %v1107_v7, %v1108_v0  ;;  %v1182_v56 = vunpack.c.l.b16 %v1106_v32  ;;  %v2786_v32 = vld [vmem:[%s2856_s27 + $0x68] sm:$0x1] }
  0x7e   : > { %v3326_v33 = vpack.c.b16 %v1179_v60, %v1178_v23  ;;  %v3370_v60 = vld [vmem:[%s2856_s27 + $0x54] sm:$0xff]  ;;  %v1183_v46 = vunpack.c.l.b16 %v1109_v13  ;;  %v1115_v13 = vrot.slane %v2786_v32, 5 }
  0x7f   : > { %4024 = vst [vmem:[#allocation21_spill] sm:$0xff] %v3360_v54 }
  0x80   : > { %4025 = vst [vmem:[#allocation22_spill] sm:$0xff] %v3370_v60 }
  0x81   : > { %2648 = vmatmul.msk.bf16.gmra.mxu3 %vm673_vm4, %v3232_v6 }
  0x86   : > { %2665 = vmatmul.msk.bf16.gmra.mxu0 %vm673_vm4, %v3123_v45 }
  0x87   : > { %2595 = vmatmul.msk.bf16.gmra.mxu1 %vm673_vm4, %v3232_v6 }
  0x8c   : > { %2628 = vmatmul.msk.bf16.gmra.mxu2 %vm673_vm4, %v3246_v52 }
  0x91   : > { %2649 = vmatmul.msk.bf16.gmra.mxu3 %vm673_vm4, %v3252_v41 }
  0x96   : > { %2666 = vmatmul.msk.bf16.gmra.mxu0 %vm673_vm4, %v3213_v20 }
  0x97   : > { %2596 = vmatmul.msk.bf16.gmra.mxu1 %vm673_vm4, %v3252_v41 }
  0x9c   : > { %v3269_v22 = vpop.f32.mrf.mxu1  ;;  %2629 = vmatmul.msk.bf16.gmra.mxu2 %vm673_vm4, %v3266_v40 }
  0xa1   : > { %2650 = vmatmul.msk.bf16.gmra.mxu3 %vm673_vm4, %v3274_v8 }
  0xa4   : > { %v3284_v43 = vpop.f32.mrf.mxu1 }
  0xa6   : > { %v3286_v16 = vpop.f32.mrf.mxu2  ;;  %2667 = vmatmul.msk.bf16.gmra.mxu0 %vm673_vm4, %v2895_v62 }
  0xa7   : > { %2597 = vmatmul.msk.bf16.gmra.mxu1 %vm673_vm4, %v3274_v8 }
  0xa9   : > { %v3292_v10 = vpop.f32.mrf.mxu0 }
  0xaa   : > { %v3296_v61 = vpop.f32.mrf.mxu3 }
  0xab   : > { %4019 = vst [vmem:[#allocation16_spill] sm:$0xff] %v3296_v61 }
  0xac   : > { %2630 = vmatmul.msk.bf16.gmra.mxu2 %vm673_vm4, %v3294_v12 }
  0xae   : > { %v3304_v9 = vpop.f32.mrf.mxu1  ;;  %v3308_v57 = vpop.f32.mrf.mxu2 }
  0xb1   : > { %2651 = vmatmul.msk.bf16.gmra.mxu3 %vm673_vm4, %v3302_v27  ;;  %v3316_v31 = vpop.f32.mrf.mxu0 }
  0xb2   : > { %v3318_v17 = vpop.f32.mrf.mxu3 }
  0xb3   : > { %4020 = vst [vmem:[#allocation17_spill] sm:$0xff] %v3318_v17 }
  0xb6   : > { %2668 = vmatmul.msk.bf16.gmra.mxu0 %vm673_vm4, %v2969_v37  ;;  %v3322_v29 = vpop.f32.mrf.mxu1 }
  0xb7   : > { %2598 = vmatmul.msk.bf16.gmra.mxu1 %vm673_vm4, %v3302_v27 }
  0xb9   : > { %v3328_v59 = vpop.f32.mrf.mxu2 }
  0xbc   : > { %2631 = vmatmul.msk.bf16.gmra.mxu2 %vm673_vm4, %v3326_v33 }
  0xbd   : > { %v3331_v39 = vpop.f32.mrf.mxu0 }
  0xbe   : > { %v3338_v2 = vpop.f32.mrf.mxu3 }
  0xbf   : > { %4022 = vst [vmem:[#allocation19_spill] sm:$0xff] %v3338_v2 }
  0xc0   : > { %v3342_v48 = vpop.f32.mrf.mxu1 }
  0xc1   : > { %2652 = vmatmul.msk.bf16.gmra.mxu3 %vm673_vm4, %v3336_v35  ;;  %v3346_v3 = vpop.f32.mrf.mxu2 }
  0xc5   : > { %v3352_v58 = vpop.f32.mrf.mxu0 }
  0xc6   : > { %2669 = vmatmul.msk.bf16.gmra.mxu0 %vm673_vm4, %v3054_v44  ;;  %v3356_v15 = vpop.f32.mrf.mxu3 }
  0xc7   : > { %4023 = vst [vmem:[#allocation20_spill] sm:$0xff] %v3356_v15  ;;  %2599 = vmatmul.msk.bf16.gmra.mxu1 %vm673_vm4, %v3336_v35  ;;  %v3405_v15 = vld [vmem:[%s2856_s27 + $0x60] sm:$0xff] }
  0xc8   : > { %v3363_v63 = vpop.f32.mrf.mxu1  ;;  %4029 = vst [vmem:[#allocation26_spill] sm:$0xff] %v3405_v15 }
  0xcc   : > { %v3365_v23 = vpop.f32.mrf.mxu2  ;;  %2632 = vmatmul.msk.bf16.gmra.mxu2 %vm673_vm4, %v3360_v54 }
  0xcf   : > { %v3374_v11 = vpop.f32.mrf.mxu0 }
  0xd0   : > { %v3376_v21 = vpop.f32.mrf.mxu3 }
  0xd1   : > { %4026 = vst [vmem:[#allocation23_spill] sm:$0xff] %v3376_v21  ;;  %2653 = vmatmul.msk.bf16.gmra.mxu3 %vm673_vm4, %v3370_v60  ;;  %v3392_v21 = vpack.c.b16 %v1183_v46, %v1182_v56 }
  0xd3   : > { %4027 = vst [vmem:[#allocation24_spill] sm:$0xff] %v3392_v21 }
  0xd4   : > { %v3384_v26 = vpop.f32.mrf.mxu1  ;;  %v3386_v1 = vpop.f32.mrf.mxu2 }
  0xd6   : > { %2670 = vmatmul.msk.bf16.gmra.mxu0 %vm673_vm4, %v3145_v42  ;;  %v2787_v42 = vld [vmem:[%s2856_s27 + $0x60] sm:$0xf] }
  0xd7   : > { %2600 = vmatmul.msk.bf16.gmra.mxu1 %vm673_vm4, %v3370_v60  ;;  %v3394_v24 = vpop.f32.mrf.mxu0  ;;  %v2617_v2 = vrot.slane %v2787_v42, 9  ;;  %v1114_v60 = vrot.slane %v1112_v5, 4 }
  0xd8   : > { %v3397_v7 = vpop.f32.mrf.mxu3 }
  0xd9   : > { %4028 = vst [vmem:[#allocation25_spill] sm:$0xff] %v3397_v7  ;;  %v1113_v19 = vsel %vm3186_vm7, %v2617_v2, %v1112_v5  ;;  %v1116_v46 = vsel %vm3186_vm7, %v1114_v60, %v1115_v13  ;;  %v1119_v60 = vrot.slane %v2942_v47, 5 }
  0xda   : > { %v1184_v17 = vunpack.c.l.b16 %v1113_v19  ;;  %v1185_v42 = vunpack.c.l.b16 %v1116_v46  ;;  %v3438_v19 = vld [vmem:[%s2856_s27 + $0x6c] sm:$0xff] }
  0xdc   : > { %2633 = vmatmul.msk.bf16.gmra.mxu2 %vm673_vm4, %v3392_v21  ;;  %v3401_v0 = vpop.f32.mrf.mxu1  ;;  %v3427_v2 = vpack.c.b16 %v1185_v42, %v1184_v17  ;;  %v1121_v17 = vrot.slane %v1119_v60, 4 }
  0xde   : > { %4031 = vst [vmem:[#allocation28_spill] sm:$0xff] %v3427_v2 }
  0xdf   : > { %v3408_v56 = vpop.f32.mrf.mxu2 }
  0xe1   : > { %2654 = vmatmul.msk.bf16.gmra.mxu3 %vm673_vm4, %v3405_v15 }
  0xe3   : > { %v3416_v7 = vpop.f32.mrf.mxu0 }
  0xe4   : > { %v3418_v32 = vpop.f32.mrf.mxu3  ;;  %v955_v21 = vpop.f32.mrf.mxu1 }
  0xe5   : > { %4030 = vst [vmem:[#allocation27_spill] sm:$0xff] %v3418_v32  ;;  %v956_v54 = vadd.f32 %v955_v21, %v3292_v10  ;;  %v1122_v21 = vrot.slane %v2949_v51, 5  ;;  %v2618_v32 = vrot.slane %v2935_v38, 9 }
  0xe6   : > { %2671 = vmatmul.msk.bf16.gmra.mxu0 %vm673_vm4, %v2914_v18 }
  0xe7   : > { %v3423_v44 = vpop.f32.mrf.mxu2  ;;  %2601 = vmatmul.msk.bf16.gmra.mxu1 %vm673_vm4, %v3405_v15  ;;  %v1120_v47 = vsel %vm3186_vm7, %v2618_v32, %v1119_v60 }
  0xe8   : > { %v1186_v61 = vunpack.c.l.b16 %v1120_v47 }
  0xeb   : > { %v3430_v5 = vpop.f32.mrf.mxu0 }
  0xec   : > { %v3432_v13 = vpop.f32.mrf.mxu3  ;;  %2634 = vmatmul.msk.bf16.gmra.mxu2 %vm673_vm4, %v3427_v2  ;;  %v957_v10 = vpop.f32.mrf.mxu1 }
  0xed   : > { %4032 = vst [vmem:[#allocation29_spill] sm:$0xff] %v3432_v13  ;;  %v958_v46 = vadd.f32 %v957_v10, %v3316_v31  ;;  %v1123_v13 = vsel %vm3186_vm7, %v1121_v17, %v1122_v21  ;;  %v1126_v21 = vrot.slane %v3014_v34, 5 }
  0xee   : > { %v1187_v35 = vunpack.c.l.b16 %v1123_v13  ;;  %v1129_v13 = vrot.slane %v3021_v50, 5 }
  0xef   : > { %v1276_v42 = vpop.f32.mrf.mxu2 }
  0xf0   : > { %v1356_v18 = vadd.f32 %v1276_v42, %v956_v54  ;;  %v3455_v10 = vpack.c.b16 %v1187_v35, %v1186_v61  ;;  %v3462_v42 = vld [vmem:[%s2856_s27 + $0x78] sm:$0xff] }
  0xf1   : > { %2655 = vmatmul.msk.bf16.gmra.mxu3 %vm673_vm4, %v3438_v19 }
  0xf3   : > { %v1566_v2 = vpop.f32.mrf.mxu0 }
  0xf4   : > { %v1410_v51 = vpop.f32.mrf.mxu3  ;;  %v960_v15 = vpop.f32.mrf.mxu1 }
  0xf5   : > { %v1490_v31 = vadd.f32 %v1410_v51, %v1356_v18  ;;  %v961_v38 = vadd.f32 %v960_v15, %v3331_v39 }
  0xf6   : > { %2672 = vmatmul.msk.bf16.gmra.mxu0 %vm673_vm4, %v2994_v4 }
  0xf7   : > { %v1278_v54 = vpop.f32.mrf.mxu2  ;;  %2602 = vmatmul.msk.bf16.gmra.mxu1 %vm673_vm4, %v3438_v19  ;;  %v3453_v32 = vadd.f32 %v1566_v2, %v1490_v31  ;;  %v2619_v2 = vrot.slane %v3010_v28, 9 }
  0xf8   : > { %v1357_v60 = vadd.f32 %v1278_v54, %v958_v46  ;;  %v1128_v46 = vrot.slane %v1126_v21, 4 }
  0xf9   : > { %v1127_v50 = vsel %vm3186_vm7, %v2619_v2, %v1126_v21 }
  0xfa   : > { %v1130_v51 = vsel %vm3186_vm7, %v1128_v46, %v1129_v13  ;;  %v1136_v46 = vrot.slane %v3109_v49, 5 }
  0xfb   : > { %v1568_v17 = vpop.f32.mrf.mxu0 }
  0xfc   : > { %v1412_v18 = vpop.f32.mrf.mxu3  ;;  %2635 = vmatmul.msk.bf16.gmra.mxu2 %vm673_vm4, %v3455_v10  ;;  %v962_v39 = vpop.f32.mrf.mxu1 }
  0xfd   : > { %v1491_v15 = vadd.f32 %v1412_v18, %v1357_v60  ;;  %v963_v47 = vadd.f32 %v962_v39, %v3352_v58  ;;  %v1188_v58 = vunpack.c.l.b16 %v1127_v50  ;;  %v1189_v18 = vunpack.c.l.b16 %v1130_v51  ;;  %v3488_v50 = vld [vmem:[%s2856_s27 + $0x84] sm:$0xff] }
  0xff   : > { %v1281_v61 = vpop.f32.mrf.mxu2  ;;  %v3466_v35 = vadd.f32 %v1568_v17, %v1491_v15  ;;  %v3481_v13 = vpack.c.b16 %v1189_v18, %v1188_v58  ;;  %v1133_v15 = vrot.slane %v3104_v30, 5 }
 0x100   : > { %v1358_v34 = vadd.f32 %v1281_v61, %v961_v38 }
 0x101   : > { %2656 = vmatmul.msk.bf16.gmra.mxu3 %vm673_vm4, %v3462_v42 }
 0x103   : > { %v1571_v31 = vpop.f32.mrf.mxu0 }
 0x104   : > { %v1415_v54 = vpop.f32.mrf.mxu3  ;;  %v965_v60 = vpop.f32.mrf.mxu1 }
 0x105   : > { %v1492_v28 = vadd.f32 %v1415_v54, %v1358_v34  ;;  %v966_v17 = vadd.f32 %v965_v60, %v3374_v11 }
 0x106   : > { %2673 = vmatmul.msk.bf16.gmra.mxu0 %vm673_vm4, %v3079_v25 }
 0x107   : > { %v1283_v38 = vpop.f32.mrf.mxu2  ;;  %2603 = vmatmul.msk.bf16.gmra.mxu1 %vm673_vm4, %v3462_v42  ;;  %v3479_v21 = vadd.f32 %v1571_v31, %v1492_v28  ;;  %v4033_v31 = vld [vmem:[#allocation9_spill] sm:$0xff] }
 0x108   : > { %v1359_v39 = vadd.f32 %v1283_v38, %v963_v47  ;;  %v2620_v54 = vrot.slane %v4033_v31, 9  ;;  %v1135_v47 = vrot.slane %v1133_v15, 4 }
 0x10a   : > { %v1134_v49 = vsel %vm3186_vm7, %v2620_v54, %v1133_v15  ;;  %v1137_v18 = vsel %vm3186_vm7, %v1135_v47, %v1136_v46  ;;  %v2788_v54 = vld [vmem:[%s2856_s27 + $0x94] sm:$0xf] }
 0x10b   : > { %v1573_v2 = vpop.f32.mrf.mxu0  ;;  %v1140_v47 = vrot.slane %v2788_v54, 5 }
 0x10c   : > { %v1417_v61 = vpop.f32.mrf.mxu3  ;;  %2636 = vmatmul.msk.bf16.gmra.mxu2 %vm673_vm4, %v3481_v13  ;;  %v967_v11 = vpop.f32.mrf.mxu1 }
 0x10d   : > { %v1493_v34 = vadd.f32 %v1417_v61, %v1359_v39  ;;  %v968_v51 = vadd.f32 %v967_v11, %v3394_v24  ;;  %v1190_v39 = vunpack.c.l.b16 %v1134_v49  ;;  %v1191_v61 = vunpack.c.l.b16 %v1137_v18 }
 0x10f   : > { %v1286_v60 = vpop.f32.mrf.mxu2  ;;  %v3492_v58 = vadd.f32 %v1573_v2, %v1493_v34  ;;  %v3507_v31 = vpack.c.b16 %v1191_v61, %v1190_v39 }
 0x110   : > { %v1360_v30 = vadd.f32 %v1286_v60, %v966_v17  ;;  %v4035_v17 = vld [vmem:[#allocation15_spill] sm:$0xff] }
 0x111   : > { %4034 = vst [vmem:[#allocation9_spill] sm:$0xff] %v3492_v58  ;;  %2657 = vmatmul.msk.bf16.gmra.mxu3 %vm673_vm4, %v3488_v50 }
 0x112   : > { %4037 = vst [vmem:[#allocation31_spill] sm:$0xff] %v3507_v31 }
 0x113   : > { %v1576_v28 = vpop.f32.mrf.mxu0 }
 0x114   : > { %v1420_v24 = vpop.f32.mrf.mxu3  ;;  %v970_v38 = vpop.f32.mrf.mxu1 }
 0x115   : > { %v1494_v11 = vadd.f32 %v1420_v24, %v1360_v30  ;;  %v971_v2 = vadd.f32 %v970_v38, %v3416_v7  ;;  %v2789_v30 = vld [vmem:[%s2856_s27 + $0x98] sm:$0x1]  ;;  %v3514_v38 = vld [vmem:[%s2856_s27 + $0x90] sm:$0xff] }
 0x116   : > { %2674 = vmatmul.msk.bf16.gmra.mxu0 %vm673_vm4, %v4035_v17  ;;  %v1143_v49 = vrot.slane %v2789_v30, 5  ;;  %4038 = vst [vmem:[#allocation32_spill] sm:$0xff] %v3514_v38 }
 0x117   : > { %v1288_v34 = vpop.f32.mrf.mxu2  ;;  %2604 = vmatmul.msk.bf16.gmra.mxu1 %vm673_vm4, %v3488_v50  ;;  %v3505_v15 = vadd.f32 %v1576_v28, %v1494_v11  ;;  %v2790_v28 = vld [vmem:[%s2856_s27 + $0x90] sm:$0xf] }
 0x118   : > { %v1361_v46 = vadd.f32 %v1288_v34, %v968_v51  ;;  %v2621_v11 = vrot.slane %v2790_v28, 9  ;;  %v1142_v51 = vrot.slane %v1140_v47, 4 }
 0x119   : > { %4036 = vst [vmem:[#allocation30_spill] sm:$0xff] %v3505_v15  ;;  %v2793_v15 = vld [vmem:[%s2856_s27 + $0x9c] sm:$0xf] }
 0x11a   : > { %v1141_v54 = vsel %vm3186_vm7, %v2621_v11, %v1140_v47  ;;  %v2791_v11 = vld [vmem:[%s2856_s27 + $0xa0] sm:$0xf] }
 0x11b   : > { %v1578_v60 = vpop.f32.mrf.mxu0 }
 0x11c   : > { %v1422_v7 = vpop.f32.mrf.mxu3  ;;  %2637 = vmatmul.msk.bf16.gmra.mxu2 %vm673_vm4, %v3507_v31  ;;  %v972_v18 = vpop.f32.mrf.mxu1 }
 0x11d   : > { %v1495_v24 = vadd.f32 %v1422_v7, %v1361_v46  ;;  %v973_v17 = vadd.f32 %v972_v18, %v3430_v5  ;;  %v1144_v46 = vsel %vm3186_vm7, %v1142_v51, %v1143_v49  ;;  %v1192_v18 = vunpack.c.l.b16 %v1141_v54 }
 0x11e   : > { %v1193_v28 = vunpack.c.l.b16 %v1144_v46  ;;  %v1147_v51 = vrot.slane %v2791_v11, 5  ;;  %v2792_v46 = vld [vmem:[%s2856_s27 + $0xa4] sm:$0x1] }
 0x11f   : > { %v1291_v39 = vpop.f32.mrf.mxu2  ;;  %v3518_v61 = vadd.f32 %v1578_v60, %v1495_v24  ;;  %v4040_v60 = vld [vmem:[#allocation3_spill] sm:$0xff] }
 0x120   : > { %v1362_v34 = vadd.f32 %v1291_v39, %v971_v2  ;;  %v3532_v49 = vpack.c.b16 %v1193_v28, %v1192_v18 }
 0x121   : > { %4039 = vst [vmem:[#allocation33_spill] sm:$0xff] %v3518_v61  ;;  %2658 = vmatmul.msk.bf16.gmra.mxu3 %vm673_vm4, %v3514_v38  ;;  %v3539_v61 = vld [vmem:[%s2856_s27 + $0x9c] sm:$0xff] }
 0x122   : > { %4042 = vst [vmem:[#allocation35_spill] sm:$0xff] %v3532_v49 }
 0x123   : > { %v1581_v30 = vpop.f32.mrf.mxu0  ;;  %4043 = vst [vmem:[#allocation36_spill] sm:$0xff] %v3539_v61 }
 0x124   : > { %v1425_v7 = vpop.f32.mrf.mxu3  ;;  %v975_v5 = vpop.f32.mrf.mxu1 }
 0x125   : > { %v1496_v31 = vadd.f32 %v1425_v7, %v1362_v34  ;;  %v1150_v7 = vrot.slane %v2792_v46, 5 }
 0x126   : > { %2675 = vmatmul.msk.bf16.gmra.mxu0 %vm673_vm4, %v4040_v60 }
 0x127   : > { %v1293_v2 = vpop.f32.mrf.mxu2  ;;  %2605 = vmatmul.msk.bf16.gmra.mxu1 %vm673_vm4, %v3514_v38  ;;  %v3530_v47 = vadd.f32 %v1581_v30, %v1496_v31  ;;  %v2622_v38 = vrot.slane %v2793_v15, 9  ;;  %v1149_v31 = vrot.slane %v1147_v51, 4 }
 0x128   : > { %v1363_v24 = vadd.f32 %v1293_v2, %v973_v17  ;;  %v976_v17 = vadd.f32 %v975_v5, %v3269_v22  ;;  %v4045_v5 = vld [vmem:[#allocation4_spill] sm:$0xff] }
 0x129   : > { %4041 = vst [vmem:[#allocation34_spill] sm:$0xff] %v3530_v47  ;;  %v1148_v2 = vsel %vm3186_vm7, %v2622_v38, %v1147_v51 }
 0x12a   : > { %v1194_v15 = vunpack.c.l.b16 %v1148_v2 }
 0x12b   : > { %v1583_v39 = vpop.f32.mrf.mxu0 }
 0x12c   : > { %v1427_v54 = vpop.f32.mrf.mxu3  ;;  %2638 = vmatmul.msk.bf16.gmra.mxu2 %vm673_vm4, %v3532_v49  ;;  %v977_v34 = vpop.f32.mrf.mxu1 }
 0x12d   : > { %v1497_v60 = vadd.f32 %v1427_v54, %v1363_v24  ;;  %v1151_v24 = vsel %vm3186_vm7, %v1149_v31, %v1150_v7  ;;  %v4048_v31 = vld [vmem:[#allocation6_spill] sm:$0xff] }
 0x12e   : > { %v1195_v49 = vunpack.c.l.b16 %v1151_v24  ;;  %v4049_v24 = vld [vmem:[#allocation7_spill] sm:$0xff] }
 0x12f   : > { %v1296_v30 = vpop.f32.mrf.mxu2  ;;  %v3543_v18 = vadd.f32 %v1583_v39, %v1497_v60  ;;  %v978_v60 = vadd.f32 %v977_v34, %v3284_v43  ;;  %v3565_v34 = vld [vmem:[%s2856_s27 + $0xa8] sm:$0xff] }
 0x130   : > { %v1364_v28 = vadd.f32 %v1296_v30, %v976_v17  ;;  %v3558_v7 = vpack.c.b16 %v1195_v49, %v1194_v15  ;;  %v1154_v17 = vrot.slane %v4048_v31, 5  ;;  %4050 = vst [vmem:[#allocation6_spill] sm:$0xff] %v3565_v34 }
 0x131   : > { %4044 = vst [vmem:[#allocation37_spill] sm:$0xff] %v3543_v18  ;;  %2659 = vmatmul.msk.bf16.gmra.mxu3 %vm673_vm4, %v3539_v61 }
 0x132   : > { %4047 = vst [vmem:[#allocation39_spill] sm:$0xff] %v3558_v7 }
 0x133   : > { %v1586_v11 = vpop.f32.mrf.mxu0 }
 0x134   : > { %v1430_v54 = vpop.f32.mrf.mxu3  ;;  %v980_v46 = vpop.f32.mrf.mxu1 }
 0x135   : > { %v1498_v22 = vadd.f32 %v1430_v54, %v1364_v28  ;;  %v1157_v54 = vrot.slane %v4049_v24, 5 }
 0x136   : > { %2676 = vmatmul.msk.bf16.gmra.mxu0 %vm673_vm4, %v4045_v5  ;;  %v4051_v5 = vld [vmem:[#allocation5_spill] sm:$0xff] }
 0x137   : > { %v1298_v39 = vpop.f32.mrf.mxu2  ;;  %2606 = vmatmul.msk.bf16.gmra.mxu1 %vm673_vm4, %v3539_v61  ;;  %v3556_v38 = vadd.f32 %v1586_v11, %v1498_v22  ;;  %v2623_v18 = vrot.slane %v4051_v5, 9  ;;  %v1156_v11 = vrot.slane %v1154_v17, 4  ;;  %v981_v22 = vadd.f32 %v980_v46, %v3304_v9 }
 0x138   : > { %v1365_v51 = vadd.f32 %v1298_v39, %v978_v60 }
 0x139   : > { %4046 = vst [vmem:[#allocation38_spill] sm:$0xff] %v3556_v38  ;;  %v1155_v39 = vsel %vm3186_vm7, %v2623_v18, %v1154_v17  ;;  %v3583_v18 = vld [vmem:[%s2856_s27 + $0xc0] sm:$0xf] }
 0x13a   : > { %v1196_v24 = vunpack.c.l.b16 %v1155_v39  ;;  %4054 = vst [vmem:[#allocation5_spill] sm:$0xff] %v3583_v18  ;;  %v1523_v39 = vshrl.u32 %v3583_v18, 16 }
 0x13b   : > { %v1588_v30 = vpop.f32.mrf.mxu0 }
 0x13c   : > { %v1432_v2 = vpop.f32.mrf.mxu3  ;;  %2639 = vmatmul.msk.bf16.gmra.mxu2 %vm673_vm4, %v3558_v7  ;;  %v982_v28 = vpop.f32.mrf.mxu1  ;;  %v4053_v7 = vld [vmem:[#allocation10_spill] sm:$0xff] }
 0x13d   : > { %v1499_v43 = vadd.f32 %v1432_v2, %v1365_v51  ;;  %v1158_v51 = vsel %vm3186_vm7, %v1156_v11, %v1157_v54 }
 0x13e   : > { %v1197_v9 = vunpack.c.l.b16 %v1158_v51 }
 0x13f   : > { %v1301_v49 = vpop.f32.mrf.mxu2  ;;  %v3569_v15 = vadd.f32 %v1588_v30, %v1499_v43  ;;  %v983_v30 = vadd.f32 %v982_v28, %v3322_v29  ;;  %v1526_v29 = vshll.u32 %v3583_v18, 16 }
 0x140   : > { %v1366_v60 = vadd.f32 %v1301_v49, %v981_v22  ;;  %v3587_v11 = vpack.c.b16 %v1197_v9, %v1196_v24  ;;  %v3590_v22 = vld [vmem:[%s2856_s27 + $0xc4] sm:$0xf]  ;;  %v4058_v49 = vld [vmem:[#allocation12_spill] sm:$0xff]  ;;  %v4059_v24 = vld [vmem:[#allocation13_spill] sm:$0xff] }
 0x141   : > { %4052 = vst [vmem:[#allocation7_spill] sm:$0xff] %v3569_v15  ;;  %2660 = vmatmul.msk.bf16.gmra.mxu3 %vm673_vm4, %v3565_v34  ;;  %v1532_v28 = vshll.u32 %v3590_v22, 16  ;;  %v1164_v9 = vrot.slane %v4059_v24, 5  ;;  %v1525_v15 = vrot.slane %v1523_v39, 4  ;;  %v1528_v38 = vrot.slane %v1526_v29, 5 }
 0x142   : > { %4056 = vst [vmem:[#allocation41_spill] sm:$0xff] %v3587_v11 }
 0x143   : > { %v1591_v31 = vpop.f32.mrf.mxu0  ;;  %4057 = vst [vmem:[#allocation42_spill] sm:$0xff] %v3590_v22 }
 0x144   : > { %v1435_v5 = vpop.f32.mrf.mxu3  ;;  %v985_v2 = vpop.f32.mrf.mxu1 }
 0x145   : > { %v1500_v46 = vadd.f32 %v1435_v5, %v1366_v60  ;;  %v1161_v60 = vrot.slane %v4058_v49, 5  ;;  %v1536_v5 = vshrl.u32 %v3590_v22, 16  ;;  %v986_v18 = vadd.f32 %v985_v2, %v3342_v48 }
 0x146   : > { %2677 = vmatmul.msk.bf16.gmra.mxu0 %vm673_vm4, %v4053_v7  ;;  %v1534_v22 = vrot.slane %v1532_v28, 5  ;;  %v1529_v2 = vor.u32 %v1528_v38, %v1525_v15 }
 0x147   : > { %v1303_v43 = vpop.f32.mrf.mxu2  ;;  %2607 = vmatmul.msk.bf16.gmra.mxu1 %vm673_vm4, %v3565_v34  ;;  %v3585_v17 = vadd.f32 %v1591_v31, %v1500_v46  ;;  %v1538_v61 = vrot.slane %v1536_v5, 4 }
 0x148   : > { %v1367_v54 = vadd.f32 %v1303_v43, %v983_v30  ;;  %v3601_v30 = vld [vmem:[%s2856_s27 + $0xb4] sm:$0xff]  ;;  %v4060_v43 = vld [vmem:[#allocation11_spill] sm:$0xff] }
 0x149   : > { %4055 = vst [vmem:[#allocation40_spill] sm:$0xff] %v3585_v17  ;;  %v2624_v49 = vrot.slane %v4060_v43, 9  ;;  %v1163_v17 = vrot.slane %v1161_v60, 4  ;;  %v1539_v39 = vor.u32 %v1538_v61, %v1534_v22 }
 0x14b   : > { %v1593_v51 = vpop.f32.mrf.mxu0  ;;  %v1540_v38 = vrot.slane %v1539_v39, 4 }
 0x14c   : > { %v1437_v7 = vpop.f32.mrf.mxu3  ;;  %2640 = vmatmul.msk.bf16.gmra.mxu2 %vm673_vm4, %v3587_v11  ;;  %v987_v31 = vpop.f32.mrf.mxu1  ;;  %v3608_v11 = vld [vmem:[%s2856_s27 + $0xc8] sm:$0x1] }
 0x14d   : > { %v1501_v46 = vadd.f32 %v1437_v7, %v1367_v54  ;;  %v1162_v7 = vsel %vm3186_vm7, %v2624_v49, %v1161_v60  ;;  %v1165_v54 = vsel %vm3186_vm7, %v1163_v17, %v1164_v9  ;;  %v1542_v29 = vshll.u32 %v3608_v11, 16 }
 0x14e   : > { %v1198_v5 = vunpack.c.l.b16 %v1162_v7  ;;  %v988_v24 = vadd.f32 %v987_v31, %v3363_v63  ;;  %v1530_v17 = vrot.slane %v1529_v2, 4 }
 0x14f   : > { %v1306_v34 = vpop.f32.mrf.mxu2  ;;  %v3605_v47 = vadd.f32 %v1593_v51, %v1501_v46  ;;  %v1544_v61 = vrot.slane %v1542_v29, 5 }
 0x150   : > { %v1368_v58 = vadd.f32 %v1306_v34, %v986_v18  ;;  %v1199_v34 = vunpack.c.l.b16 %v1165_v54  ;;  %v3633_v54 = vld [vmem:[%s2856_s27 + $0xc0] sm:$0xff] }
 0x151   : > { %2661 = vmatmul.msk.bf16.gmra.mxu3 %vm673_vm4, %v3601_v30  ;;  %v1545_v63 = vsel %vm2883_vm3, %v1540_v38, %v1544_v61 }
 0x152   : > { %v3624_v46 = vpack.c.b16 %v1199_v34, %v1198_v5  ;;  %v1549_v39 = vunpack.c.l.b16 %v1545_v63 }
 0x153   : > { %v1596_v48 = vpop.f32.mrf.mxu0 }
 0x154   : > { %v1440_v28 = vpop.f32.mrf.mxu3  ;;  %v990_v51 = vpop.f32.mrf.mxu1 }
 0x155   : > { %v1502_v18 = vadd.f32 %v1440_v28, %v1368_v58  ;;  %v1535_v58 = vsel %vm2883_vm3, %v1530_v17, %v1534_v22 }
 0x156   : > { %2678 = vmatmul.msk.bf16.gmra.mxu0 %vm673_vm4, %v3195_v53  ;;  %v1548_v2 = vunpack.c.l.b16 %v1535_v58 }
 0x157   : > { %v1308_v60 = vpop.f32.mrf.mxu2  ;;  %2608 = vmatmul.msk.bf16.gmra.mxu1 %vm673_vm4, %v3601_v30  ;;  %v3622_v15 = vadd.f32 %v1596_v48, %v1502_v18  ;;  %v991_v48 = vadd.f32 %v990_v51, %v3384_v26 }
 0x158   : > { %v1369_v9 = vadd.f32 %v1308_v60, %v988_v24  ;;  %v3640_v22 = vpack.c.b16 %v1549_v39, %v1548_v2 }
 0x15b   : > { %v1598_v43 = vpop.f32.mrf.mxu0 }
 0x15c   : > { %v1442_v31 = vpop.f32.mrf.mxu3  ;;  %2641 = vmatmul.msk.bf16.gmra.mxu2 %vm673_vm4, %v3624_v46  ;;  %v992_v49 = vpop.f32.mrf.mxu1 }
 0x15d   : > { %v1503_v7 = vadd.f32 %v1442_v31, %v1369_v9  ;;  %v993_v26 = vadd.f32 %v992_v49, %v3401_v0 }
 0x15f   : > { %v1311_v29 = vpop.f32.mrf.mxu2  ;;  %v3636_v28 = vadd.f32 %v1598_v43, %v1503_v7 }
 0x160   : > { %v1370_v5 = vadd.f32 %v1311_v29, %v991_v48 }
 0x161   : > { %2662 = vmatmul.msk.bf16.gmra.mxu3 %vm673_vm4, %v3633_v54 }
 0x163   : > { %v1601_v34 = vpop.f32.mrf.mxu0 }
 0x164   : > { %v1445_v18 = vpop.f32.mrf.mxu3  ;;  %v995_v24 = vpop.f32.mrf.mxu1 }
 0x165   : > { %v1504_v60 = vadd.f32 %v1445_v18, %v1370_v5  ;;  %v996_v63 = vadd.f32 %v995_v24, %v3286_v16 }
 0x166   : > { %2679 = vmatmul.msk.bf16.gmra.mxu0 %vm673_vm4, %v3640_v22 }
 0x167   : > { %v1313_v51 = vpop.f32.mrf.mxu2  ;;  %2682 = vmatmul.msk.bf16.vlgmr.msra.gmra.mxu1 %vm673_vm4, %v3220_v55  ;;  %v3647_v17 = vadd.f32 %v1601_v34, %v1504_v60 }
 0x168   : > { %v1371_v38 = vadd.f32 %v1313_v51, %v993_v26 }
 0x16b   : > { %v1603_v61 = vpop.f32.mrf.mxu0 }
 0x16c   : > { %v1447_v9 = vpop.f32.mrf.mxu3  ;;  %2703 = vmatmul.msk.bf16.vlgmr.msra.gmra.mxu2 %vm673_vm4, %v3232_v6  ;;  %v997_v43 = vpop.f32.mrf.mxu1 }
 0x16d   : > { %v1505_v58 = vadd.f32 %v1447_v9, %v1371_v38  ;;  %v998_v6 = vadd.f32 %v997_v43, %v3308_v57 }
 0x16f   : > { %v1316_v31 = vpop.f32.mrf.mxu2  ;;  %v3652_v7 = vadd.f32 %v1603_v61, %v1505_v58 }
 0x170   : > { %v1372_v0 = vadd.f32 %v1316_v31, %v996_v63 }
 0x171   : > { %2720 = vmatmul.msk.bf16.vlgmr.msra.gmra.mxu3 %vm673_vm4, %v3123_v45 }
 0x173   : > { %v1606_v55 = vpop.f32.mrf.mxu0 }
 0x174   : > { %v1450_v49 = vpop.f32.mrf.mxu3  ;;  %v1000_v48 = vpop.f32.mrf.mxu1 }
 0x175   : > { %v1506_v2 = vadd.f32 %v1450_v49, %v1372_v0  ;;  %v1001_v24 = vadd.f32 %v1000_v48, %v3328_v59 }
 0x176   : > { %2738 = vmatmul.msk.bf16.vlgmr.msra.gmra.mxu0 %vm673_vm4, %v3246_v52 }
 0x177   : > { %v1318_v39 = vpop.f32.mrf.mxu2  ;;  %2683 = vmatmul.msk.bf16.gmra.mxu1 %vm673_vm4, %v3246_v52  ;;  %v3661_v16 = vadd.f32 %v1606_v55, %v1506_v2 }
 0x178   : > { %v1373_v29 = vadd.f32 %v1318_v39, %v998_v6 }
 0x17b   : > { %v1608_v5 = vpop.f32.mrf.mxu0 }
 0x17c   : > { %v1452_v34 = vpop.f32.mrf.mxu3  ;;  %2704 = vmatmul.msk.bf16.gmra.mxu2 %vm673_vm4, %v3252_v41  ;;  %v1002_v45 = vpop.f32.mrf.mxu1 }
 0x17d   : > { %v1507_v18 = vadd.f32 %v1452_v34, %v1373_v29  ;;  %v1003_v41 = vadd.f32 %v1002_v45, %v3346_v3 }
 0x17f   : > { %v1321_v60 = vpop.f32.mrf.mxu2  ;;  %v3666_v26 = vadd.f32 %v1608_v5, %v1507_v18 }
 0x180   : > { %v1374_v57 = vadd.f32 %v1321_v60, %v1001_v24 }
 0x181   : > { %2721 = vmatmul.msk.bf16.gmra.mxu3 %vm673_vm4, %v3213_v20 }
 0x183   : > { %v1611_v52 = vpop.f32.mrf.mxu0 }
 0x184   : > { %v1455_v51 = vpop.f32.mrf.mxu3  ;;  %v1005_v38 = vpop.f32.mrf.mxu1 }
 0x185   : > { %v1508_v61 = vadd.f32 %v1455_v51, %v1374_v57  ;;  %v1006_v0 = vadd.f32 %v1005_v38, %v3365_v23 }
 0x186   : > { %2739 = vmatmul.msk.bf16.gmra.mxu0 %vm673_vm4, %v3266_v40 }
 0x187   : > { %v1323_v9 = vpop.f32.mrf.mxu2  ;;  %2684 = vmatmul.msk.bf16.gmra.mxu1 %vm673_vm4, %v3266_v40  ;;  %v3675_v59 = vadd.f32 %v1611_v52, %v1508_v61 }
 0x188   : > { %v1375_v43 = vadd.f32 %v1323_v9, %v1003_v41 }
 0x18b   : > { %v1613_v58 = vpop.f32.mrf.mxu0 }
 0x18c   : > { %v1457_v63 = vpop.f32.mrf.mxu3  ;;  %2705 = vmatmul.msk.bf16.gmra.mxu2 %vm673_vm4, %v3274_v8  ;;  %v1007_v20 = vpop.f32.mrf.mxu1 }
 0x18d   : > { %v1509_v31 = vadd.f32 %v1457_v63, %v1375_v43  ;;  %v1008_v8 = vadd.f32 %v1007_v20, %v3386_v1  ;;  %v4061_v43 = vld [vmem:[#allocation18_spill] sm:$0xff]  ;;  %v4062_v63 = vld [vmem:[#allocation16_spill] sm:$0xff] }
 0x18f   : > { %v1326_v55 = vpop.f32.mrf.mxu2  ;;  %v3680_v49 = vadd.f32 %v1613_v58, %v1509_v31 }
 0x190   : > { %v1376_v3 = vadd.f32 %v1326_v55, %v1006_v0  ;;  %v4063_v55 = vld [vmem:[#allocation8_spill] sm:$0xff] }
 0x191   : > { %2722 = vmatmul.msk.bf16.gmra.mxu3 %vm673_vm4, %v2895_v62 }
 0x193   : > { %v1616_v40 = vpop.f32.mrf.mxu0 }
 0x194   : > { %v1460_v48 = vpop.f32.mrf.mxu3  ;;  %v1010_v2 = vpop.f32.mrf.mxu1 }
 0x195   : > { %v1510_v6 = vadd.f32 %v1460_v48, %v1376_v3  ;;  %v1011_v18 = vadd.f32 %v1010_v2, %v3408_v56  ;;  %v4064_v2 = vld [vmem:[#allocation21_spill] sm:$0xff] }
 0x196   : > { %2740 = vmatmul.msk.bf16.gmra.mxu0 %vm673_vm4, %v3294_v12 }
 0x197   : > { %v1328_v39 = vpop.f32.mrf.mxu2  ;;  %2685 = vmatmul.msk.bf16.gmra.mxu1 %vm673_vm4, %v3294_v12  ;;  %v3689_v23 = vadd.f32 %v1616_v40, %v1510_v6  ;;  %v4065_v6 = vld [vmem:[#allocation17_spill] sm:$0xff] }
 0x198   : > { %v1377_v29 = vadd.f32 %v1328_v39, %v1008_v8 }
 0x19b   : > { %v1618_v5 = vpop.f32.mrf.mxu0 }
 0x19c   : > { %v1462_v34 = vpop.f32.mrf.mxu3  ;;  %2706 = vmatmul.msk.bf16.gmra.mxu2 %vm673_vm4, %v3302_v27  ;;  %v1012_v62 = vpop.f32.mrf.mxu1 }
 0x19d   : > { %v1511_v45 = vadd.f32 %v1462_v34, %v1377_v29  ;;  %v1013_v27 = vadd.f32 %v1012_v62, %v3423_v44 }
 0x19f   : > { %v1331_v24 = vpop.f32.mrf.mxu2  ;;  %v3694_v60 = vadd.f32 %v1618_v5, %v1511_v45  ;;  %v4066_v45 = vld [vmem:[#allocation22_spill] sm:$0xff] }
 0x1a0   : > { %v1378_v1 = vadd.f32 %v1331_v24, %v1011_v18 }
 0x1a1   : > { %2723 = vmatmul.msk.bf16.gmra.mxu3 %vm673_vm4, %v2969_v37 }
 0x1a3   : > { %v1621_v12 = vpop.f32.mrf.mxu0 }
 0x1a4   : > { %v1465_v57 = vpop.f32.mrf.mxu3  ;;  %v1015_v52 = vpop.f32.mrf.mxu1 }
 0x1a5   : > { %v1512_v51 = vadd.f32 %v1465_v57, %v1378_v1  ;;  %v1016_v20 = vadd.f32 %v1015_v52, %v4062_v63  ;;  %v4067_v1 = vld [vmem:[#allocation19_spill] sm:$0xff] }
 0x1a6   : > { %2741 = vmatmul.msk.bf16.gmra.mxu0 %vm673_vm4, %v3326_v33 }
 0x1a7   : > { %v1333_v38 = vpop.f32.mrf.mxu2  ;;  %2686 = vmatmul.msk.bf16.gmra.mxu1 %vm673_vm4, %v3326_v33  ;;  %v3703_v56 = vadd.f32 %v1621_v12, %v1512_v51 }
 0x1a8   : > { %v1379_v61 = vadd.f32 %v1333_v38, %v1013_v27  ;;  %v4068_v27 = vld [vmem:[#allocation14_spill] sm:$0xff] }
 0x1ab   : > { %v1623_v41 = vpop.f32.mrf.mxu0 }
 0x1ac   : > { %v1467_v9 = vpop.f32.mrf.mxu3  ;;  %2707 = vmatmul.msk.bf16.gmra.mxu2 %vm673_vm4, %v4061_v43  ;;  %v1017_v37 = vpop.f32.mrf.mxu1  ;;  %v4069_v43 = vld [vmem:[#allocation24_spill] sm:$0xff] }
 0x1ad   : > { %v1513_v58 = vadd.f32 %v1467_v9, %v1379_v61  ;;  %v1018_v8 = vadd.f32 %v1017_v37, %v4065_v6  ;;  %v4070_v37 = vld [vmem:[#allocation20_spill] sm:$0xff] }
 0x1af   : > { %v1336_v31 = vpop.f32.mrf.mxu2  ;;  %v3708_v0 = vadd.f32 %v1623_v41, %v1513_v58 }
 0x1b0   : > { %v1380_v44 = vadd.f32 %v1336_v31, %v1016_v20 }
 0x1b1   : > { %2724 = vmatmul.msk.bf16.gmra.mxu3 %vm673_vm4, %v4063_v55 }
 0x1b3   : > { %v1626_v33 = vpop.f32.mrf.mxu0 }
 0x1b4   : > { %v1470_v3 = vpop.f32.mrf.mxu3  ;;  %v1020_v40 = vpop.f32.mrf.mxu1 }
 0x1b5   : > { %v1514_v48 = vadd.f32 %v1470_v3, %v1380_v44  ;;  %v1021_v12 = vadd.f32 %v1020_v40, %v4067_v1  ;;  %v4075_v1 = vld [vmem:[#allocation25_spill] sm:$0xff] }
 0x1b6   : > { %2742 = vmatmul.msk.bf16.gmra.mxu0 %vm673_vm4, %v4064_v2 }
 0x1b7   : > { %v1338_v39 = vpop.f32.mrf.mxu2  ;;  %2687 = vmatmul.msk.bf16.gmra.mxu1 %vm673_vm4, %v4064_v2  ;;  %v3717_v29 = vadd.f32 %v1626_v33, %v1514_v48  ;;  %v4071_v33 = vld [vmem:[#allocation26_spill] sm:$0xff]  ;;  %v4072_v48 = vld [vmem:[#allocation23_spill] sm:$0xff] }
 0x1b8   : > { %v1381_v5 = vadd.f32 %v1338_v39, %v1018_v8 }
 0x1bb   : > { %v1628_v34 = vpop.f32.mrf.mxu0 }
 0x1bc   : > { %v1472_v62 = vpop.f32.mrf.mxu3  ;;  %2708 = vmatmul.msk.bf16.gmra.mxu2 %vm673_vm4, %v4066_v45  ;;  %v1022_v18 = vpop.f32.mrf.mxu1 }
 0x1bd   : > { %v1515_v24 = vadd.f32 %v1472_v62, %v1381_v5  ;;  %v1023_v58 = vadd.f32 %v1022_v18, %v4070_v37  ;;  %v4073_v5 = vld [vmem:[#allocation2_spill] sm:$0xff] }
 0x1bf   : > { %v1341_v57 = vpop.f32.mrf.mxu2  ;;  %v3722_v52 = vadd.f32 %v1628_v34, %v1515_v24  ;;  %v4074_v24 = vld [vmem:[#allocation28_spill] sm:$0xff] }
 0x1c0   : > { %v1382_v51 = vadd.f32 %v1341_v57, %v1021_v12 }
 0x1c1   : > { %2725 = vmatmul.msk.bf16.gmra.mxu3 %vm673_vm4, %v4068_v27 }
 0x1c3   : > { %v1631_v38 = vpop.f32.mrf.mxu0 }
 0x1c4   : > { %v1475_v61 = vpop.f32.mrf.mxu3  ;;  %v1025_v41 = vpop.f32.mrf.mxu1 }
 0x1c5   : > { %v1516_v9 = vadd.f32 %v1475_v61, %v1382_v51  ;;  %v1026_v2 = vadd.f32 %v1025_v41, %v4072_v48 }
 0x1c6   : > { %2743 = vmatmul.msk.bf16.gmra.mxu0 %vm673_vm4, %v4069_v43 }
 0x1c7   : > { %v1343_v63 = vpop.f32.mrf.mxu2  ;;  %2688 = vmatmul.msk.bf16.gmra.mxu1 %vm673_vm4, %v4069_v43  ;;  %v3731_v20 = vadd.f32 %v1631_v38, %v1516_v9  ;;  %v4076_v43 = vld [vmem:[#allocation27_spill] sm:$0xff] }
 0x1c8   : > { %v1383_v31 = vadd.f32 %v1343_v63, %v1023_v58 }
 0x1cb   : > { %v1633_v44 = vpop.f32.mrf.mxu0 }
 0x1cc   : > { %v1477_v55 = vpop.f32.mrf.mxu3  ;;  %2709 = vmatmul.msk.bf16.gmra.mxu2 %vm673_vm4, %v4071_v33  ;;  %v1027_v3 = vpop.f32.mrf.mxu1 }
 0x1cd   : > { %v1517_v40 = vadd.f32 %v1477_v55, %v1383_v31  ;;  %v1028_v12 = vadd.f32 %v1027_v3, %v4075_v1 }
 0x1cf   : > { %v1346_v6 = vpop.f32.mrf.mxu2  ;;  %v3736_v8 = vadd.f32 %v1633_v44, %v1517_v40 }
 0x1d0   : > { %v1384_v39 = vadd.f32 %v1346_v6, %v1026_v2 }
 0x1d1   : > { %2726 = vmatmul.msk.bf16.gmra.mxu3 %vm673_vm4, %v4073_v5 }
 0x1d3   : > { %v1636_v34 = vpop.f32.mrf.mxu0 }
 0x1d4   : > { %v1480_v62 = vpop.f32.mrf.mxu3  ;;  %v1030_v45 = vpop.f32.mrf.mxu1 }
 0x1d5   : > { %v1518_v18 = vadd.f32 %v1480_v62, %v1384_v39  ;;  %v1031_v37 = vadd.f32 %v1030_v45, %v4076_v43  ;;  %v4078_v43 = vld [vmem:[#allocation9_spill] sm:$0xff] }
 0x1d6   : > { %2744 = vmatmul.msk.bf16.gmra.mxu0 %vm673_vm4, %v4074_v24 }
 0x1d7   : > { %v1348_v57 = vpop.f32.mrf.mxu2  ;;  %2689 = vmatmul.msk.bf16.gmra.mxu1 %vm673_vm4, %v4074_v24  ;;  %v3745_v51 = vadd.f32 %v1636_v34, %v1518_v18 }
 0x1d8   : > { %v1385_v27 = vadd.f32 %v1348_v57, %v1028_v12 }
 0x1db   : > { %v1638_v38 = vpop.f32.mrf.mxu0 }
 0x1dc   : > { %v1482_v61 = vpop.f32.mrf.mxu3  ;;  %2710 = vmatmul.msk.bf16.gmra.mxu2 %vm673_vm4, %v3438_v19  ;;  %v1032_v41 = vpop.f32.mrf.mxu1  ;;  %v4077_v19 = vld [vmem:[#allocation29_spill] sm:$0xff] }
 0x1dd   : > { %v1519_v9 = vadd.f32 %v1482_v61, %v1385_v27  ;;  %v1033_v48 = vadd.f32 %v1032_v41, %v4077_v19 }
 0x1df   : > { %v1351_v58 = vpop.f32.mrf.mxu2  ;;  %v3750_v63 = vadd.f32 %v1638_v38, %v1519_v9 }
 0x1e0   : > { %v1386_v31 = vadd.f32 %v1351_v58, %v1031_v37 }
 0x1e1   : > { %2727 = vmatmul.msk.bf16.gmra.mxu3 %vm673_vm4, %v2994_v4 }
 0x1e3   : > { %v1641_v44 = vpop.f32.mrf.mxu0 }
 0x1e4   : > { %v1485_v55 = vpop.f32.mrf.mxu3  ;;  %v1706_v33 = vpop.f32.mrf.mxu1 }
 0x1e5   : > { %v1520_v3 = vadd.f32 %v1485_v55, %v1386_v31  ;;  %v1786_v40 = vadd.f32 %v1706_v33, %v3453_v32 }
 0x1e6   : > { %2745 = vmatmul.msk.bf16.gmra.mxu0 %vm673_vm4, %v3455_v10 }
 0x1e7   : > { %v1353_v2 = vpop.f32.mrf.mxu2  ;;  %2690 = vmatmul.msk.bf16.gmra.mxu1 %vm673_vm4, %v3455_v10  ;;  %v3760_v6 = vadd.f32 %v1641_v44, %v1520_v3 }
 0x1e8   : > { %v1387_v39 = vadd.f32 %v1353_v2, %v1033_v48 }
 0x1eb   : > { %v1643_v5 = vpop.f32.mrf.mxu0 }
 0x1ec   : > { %v1487_v4 = vpop.f32.mrf.mxu3  ;;  %2711 = vmatmul.msk.bf16.gmra.mxu2 %vm673_vm4, %v3462_v42  ;;  %v1708_v34 = vpop.f32.mrf.mxu1 }
 0x1ed   : > { %v1521_v62 = vadd.f32 %v1487_v4, %v1387_v39  ;;  %v1787_v32 = vadd.f32 %v1708_v34, %v3466_v35  ;;  %v4080_v34 = vld [vmem:[#allocation30_spill] sm:$0xff] }
 0x1ef   : > { %v1840_v45 = vpop.f32.mrf.mxu2  ;;  %v3765_v18 = vadd.f32 %v1643_v5, %v1521_v62 }
 0x1f0   : > { %v1920_v24 = vadd.f32 %v1840_v45, %v1786_v40 }
 0x1f1   : > { %2728 = vmatmul.msk.bf16.gmra.mxu3 %vm673_vm4, %v3079_v25 }
 0x1f3   : > { %v2136_v10 = vpop.f32.mrf.mxu0 }
 0x1f4   : > { %v1996_v1 = vpop.f32.mrf.mxu3  ;;  %v1711_v12 = vpop.f32.mrf.mxu1 }
 0x1f5   : > { %v2076_v57 = vadd.f32 %v1996_v1, %v1920_v24  ;;  %v1788_v27 = vadd.f32 %v1711_v12, %v3479_v21 }
 0x1f6   : > { %2746 = vmatmul.msk.bf16.gmra.mxu0 %vm673_vm4, %v3481_v13 }
 0x1f7   : > { %v2216_v42 = vadd.f32 %v2136_v10, %v2076_v57  ;;  %v1842_v38 = vpop.f32.mrf.mxu2  ;;  %2691 = vmatmul.msk.bf16.gmra.mxu1 %vm673_vm4, %v3481_v13  ;;  %v4079_v13 = vld [vmem:[#allocation15_spill] sm:$0xff] }
 0x1f8   : > { %v1921_v35 = vadd.f32 %v1842_v38, %v1787_v32  ;;  %v4081_v32 = vld [vmem:[#allocation31_spill] sm:$0xff] }
 0x1f9   : > { %v2317_v58 = vmul.f32 %v2216_v42, %v2216_v42  ;;  %v2248_v55 = vsel %vm673_vm4, %v2216_v42, 0.0 }
 0x1fb   : > { %v2138_v61 = vpop.f32.mrf.mxu0  ;;  %v2349_v19 = vsel %vm673_vm4, %v2317_v58, 0.0 }
 0x1fc   : > { %v1998_v41 = vpop.f32.mrf.mxu3  ;;  %2712 = vmatmul.msk.bf16.gmra.mxu2 %vm673_vm4, %v3488_v50  ;;  %v1713_v25 = vpop.f32.mrf.mxu1 }
 0x1fd   : > { %v2077_v9 = vadd.f32 %v1998_v41, %v1921_v35  ;;  %v1789_v37 = vadd.f32 %v1713_v25, %v4078_v43 }
 0x1ff   : > { %v2217_v21 = vadd.f32 %v2138_v61, %v2077_v9  ;;  %v1845_v31 = vpop.f32.mrf.mxu2  ;;  %v4082_v61 = vld [vmem:[#allocation32_spill] sm:$0xff]  ;;  %v4083_v9 = vld [vmem:[#allocation33_spill] sm:$0xff] }
 0x200   : > { %v1922_v44 = vadd.f32 %v1845_v31, %v1788_v27 }
 0x201   : > { %v2249_v33 = vsel %vm673_vm4, %v2217_v21, 0.0  ;;  %v2318_v3 = vmul.f32 %v2217_v21, %v2217_v21  ;;  %2729 = vmatmul.msk.bf16.gmra.mxu3 %vm673_vm4, %v4079_v13 }
 0x202   : > { %v2250_v40 = vadd.f32 %v2249_v33, %v2248_v55  ;;  %v4084_v55 = vld [vmem:[#allocation3_spill] sm:$0xff] }
 0x203   : > { %v2350_v50 = vsel %vm673_vm4, %v2318_v3, 0.0  ;;  %v2141_v48 = vpop.f32.mrf.mxu0 }
 0x204   : > { %v2351_v2 = vadd.f32 %v2350_v50, %v2349_v19  ;;  %v2001_v39 = vpop.f32.mrf.mxu3  ;;  %v1716_v5 = vpop.f32.mrf.mxu1 }
 0x205   : > { %v2078_v4 = vadd.f32 %v2001_v39, %v1922_v44  ;;  %v1790_v62 = vadd.f32 %v1716_v5, %v4080_v34  ;;  %v4086_v5 = vld [vmem:[#allocation35_spill] sm:$0xff] }
 0x206   : > { %2747 = vmatmul.msk.bf16.gmra.mxu0 %vm673_vm4, %v4081_v32 }
 0x207   : > { %v2218_v45 = vadd.f32 %v2141_v48, %v2078_v4  ;;  %v1847_v24 = vpop.f32.mrf.mxu2  ;;  %2692 = vmatmul.msk.bf16.gmra.mxu1 %vm673_vm4, %v4081_v32 }
 0x208   : > { %v1923_v10 = vadd.f32 %v1847_v24, %v1789_v37 }
 0x209   : > { %v2251_v1 = vsel %vm673_vm4, %v2218_v45, 0.0  ;;  %v2319_v12 = vmul.f32 %v2218_v45, %v2218_v45 }
 0x20a   : > { %v2252_v57 = vadd.f32 %v2251_v1, %v2250_v40 }
 0x20b   : > { %v2352_v27 = vsel %vm673_vm4, %v2319_v12, 0.0  ;;  %v2143_v42 = vpop.f32.mrf.mxu0 }
 0x20c   : > { %v2353_v38 = vadd.f32 %v2352_v27, %v2351_v2  ;;  %v2003_v35 = vpop.f32.mrf.mxu3  ;;  %2713 = vmatmul.msk.bf16.gmra.mxu2 %vm673_vm4, %v4082_v61  ;;  %v1718_v41 = vpop.f32.mrf.mxu1  ;;  %v4085_v2 = vld [vmem:[#allocation34_spill] sm:$0xff]  ;;  %v4087_v27 = vld [vmem:[#allocation36_spill] sm:$0xff] }
 0x20d   : > { %v2079_v25 = vadd.f32 %v2003_v35, %v1923_v10  ;;  %v1791_v43 = vadd.f32 %v1718_v41, %v4083_v9  ;;  %v4088_v35 = vld [vmem:[#allocation37_spill] sm:$0xff] }
 0x20f   : > { %v2219_v58 = vadd.f32 %v2143_v42, %v2079_v25  ;;  %v1850_v21 = vpop.f32.mrf.mxu2 }
 0x210   : > { %v1924_v31 = vadd.f32 %v1850_v21, %v1790_v62  ;;  %v4089_v21 = vld [vmem:[#allocation4_spill] sm:$0xff] }
 0x211   : > { %v2253_v37 = vsel %vm673_vm4, %v2219_v58, 0.0  ;;  %v2320_v44 = vmul.f32 %v2219_v58, %v2219_v58  ;;  %2730 = vmatmul.msk.bf16.gmra.mxu3 %vm673_vm4, %v4084_v55 }
 0x212   : > { %v2254_v33 = vadd.f32 %v2253_v37, %v2252_v57 }
 0x213   : > { %v2354_v3 = vsel %vm673_vm4, %v2320_v44, 0.0  ;;  %v2146_v13 = vpop.f32.mrf.mxu0 }
 0x214   : > { %v2355_v40 = vadd.f32 %v2354_v3, %v2353_v38  ;;  %v2006_v19 = vpop.f32.mrf.mxu3  ;;  %v1721_v50 = vpop.f32.mrf.mxu1 }
 0x215   : > { %v2080_v48 = vadd.f32 %v2006_v19, %v1924_v31  ;;  %v1792_v39 = vadd.f32 %v1721_v50, %v4085_v2  ;;  %v4091_v50 = vld [vmem:[#allocation39_spill] sm:$0xff] }
 0x216   : > { %2748 = vmatmul.msk.bf16.gmra.mxu0 %vm673_vm4, %v4086_v5 }
 0x217   : > { %v2220_v4 = vadd.f32 %v2146_v13, %v2080_v48  ;;  %v1852_v34 = vpop.f32.mrf.mxu2  ;;  %2693 = vmatmul.msk.bf16.gmra.mxu1 %vm673_vm4, %v4086_v5 }
 0x218   : > { %v1925_v62 = vadd.f32 %v1852_v34, %v1791_v43 }
 0x219   : > { %v2255_v32 = vsel %vm673_vm4, %v2220_v4, 0.0  ;;  %v2321_v45 = vmul.f32 %v2220_v4, %v2220_v4 }
 0x21a   : > { %v2256_v24 = vadd.f32 %v2255_v32, %v2254_v33 }
 0x21b   : > { %v2356_v10 = vsel %vm673_vm4, %v2321_v45, 0.0  ;;  %v2148_v1 = vpop.f32.mrf.mxu0 }
 0x21c   : > { %v2357_v12 = vadd.f32 %v2356_v10, %v2355_v40  ;;  %v2008_v57 = vpop.f32.mrf.mxu3  ;;  %2714 = vmatmul.msk.bf16.gmra.mxu2 %vm673_vm4, %v4087_v27  ;;  %v1723_v42 = vpop.f32.mrf.mxu1  ;;  %v4090_v40 = vld [vmem:[#allocation38_spill] sm:$0xff] }
 0x21d   : > { %v2081_v38 = vadd.f32 %v2008_v57, %v1925_v62  ;;  %v1793_v61 = vadd.f32 %v1723_v42, %v4088_v35  ;;  %v4092_v10 = vld [vmem:[#allocation6_spill] sm:$0xff]  ;;  %v4093_v57 = vld [vmem:[#allocation7_spill] sm:$0xff] }
 0x21f   : > { %v2221_v41 = vadd.f32 %v2148_v1, %v2081_v38  ;;  %v1855_v25 = vpop.f32.mrf.mxu2 }
 0x220   : > { %v1926_v9 = vadd.f32 %v1855_v25, %v1792_v39  ;;  %v4094_v25 = vld [vmem:[#allocation10_spill] sm:$0xff] }
 0x221   : > { %v2257_v43 = vsel %vm673_vm4, %v2221_v41, 0.0  ;;  %v2322_v58 = vmul.f32 %v2221_v41, %v2221_v41  ;;  %2731 = vmatmul.msk.bf16.gmra.mxu3 %vm673_vm4, %v4089_v21 }
 0x222   : > { %v2258_v31 = vadd.f32 %v2257_v43, %v2256_v24 }
 0x223   : > { %v2358_v37 = vsel %vm673_vm4, %v2322_v58, 0.0  ;;  %v2151_v44 = vpop.f32.mrf.mxu0 }
 0x224   : > { %v2359_v55 = vadd.f32 %v2358_v37, %v2357_v12  ;;  %v2011_v33 = vpop.f32.mrf.mxu3  ;;  %v1726_v3 = vpop.f32.mrf.mxu1 }
 0x225   : > { %v2082_v13 = vadd.f32 %v2011_v33, %v1926_v9  ;;  %v1794_v19 = vadd.f32 %v1726_v3, %v4090_v40  ;;  %v4096_v3 = vld [vmem:[#allocation41_spill] sm:$0xff] }
 0x226   : > { %2749 = vmatmul.msk.bf16.gmra.mxu0 %vm673_vm4, %v4091_v50 }
 0x227   : > { %v2222_v48 = vadd.f32 %v2151_v44, %v2082_v13  ;;  %v1857_v2 = vpop.f32.mrf.mxu2  ;;  %2694 = vmatmul.msk.bf16.gmra.mxu1 %vm673_vm4, %v4091_v50 }
 0x228   : > { %v1927_v39 = vadd.f32 %v1857_v2, %v1793_v61 }
 0x229   : > { %v2259_v5 = vsel %vm673_vm4, %v2222_v48, 0.0  ;;  %v2323_v4 = vmul.f32 %v2222_v48, %v2222_v48 }
 0x22a   : > { %v2260_v34 = vadd.f32 %v2259_v5, %v2258_v31 }
 0x22b   : > { %v2360_v62 = vsel %vm673_vm4, %v2323_v4, 0.0  ;;  %v2153_v32 = vpop.f32.mrf.mxu0 }
 0x22c   : > { %v2361_v45 = vadd.f32 %v2360_v62, %v2359_v55  ;;  %v2013_v24 = vpop.f32.mrf.mxu3  ;;  %2715 = vmatmul.msk.bf16.gmra.mxu2 %vm673_vm4, %v4092_v10  ;;  %v1728_v1 = vpop.f32.mrf.mxu1  ;;  %v4095_v55 = vld [vmem:[#allocation40_spill] sm:$0xff] }
 0x22d   : > { %v2083_v12 = vadd.f32 %v2013_v24, %v1927_v39  ;;  %v1795_v27 = vadd.f32 %v1728_v1, %v4093_v57 }
 0x22f   : > { %v2223_v42 = vadd.f32 %v2153_v32, %v2083_v12  ;;  %v1860_v38 = vpop.f32.mrf.mxu2  ;;  %v4097_v12 = vld [vmem:[#allocation42_spill] sm:$0xff] }
 0x230   : > { %v1928_v35 = vadd.f32 %v1860_v38, %v1794_v19  ;;  %v1681_v57 = vrot.slane %v4097_v12, 5 }
 0x231   : > { %v2261_v61 = vsel %vm673_vm4, %v2223_v42, 0.0  ;;  %v2324_v41 = vmul.f32 %v2223_v42, %v2223_v42  ;;  %2732 = vmatmul.msk.bf16.gmra.mxu3 %vm673_vm4, %v4094_v25 }
 0x232   : > { %v2262_v9 = vadd.f32 %v2261_v61, %v2260_v34 }
 0x233   : > { %v2362_v43 = vsel %vm673_vm4, %v2324_v41, 0.0  ;;  %v2156_v58 = vpop.f32.mrf.mxu0  ;;  %v3844_v41 = vld [vmem:[%s2856_s27 + $0xd0] sm:$0xf] }
 0x234   : > { %v2363_v21 = vadd.f32 %v2362_v43, %v2361_v45  ;;  %v2016_v31 = vpop.f32.mrf.mxu3  ;;  %v1731_v37 = vpop.f32.mrf.mxu1  ;;  %v4098_v43 = vld [vmem:[#allocation5_spill] sm:$0xff] }
 0x235   : > { %v2084_v44 = vadd.f32 %v2016_v31, %v1928_v35  ;;  %v1796_v33 = vadd.f32 %v1731_v37, %v4095_v55  ;;  %v3840_v35 = vld [vmem:[%s2856_s27 + $0xcc] sm:$0xf] }
 0x236   : > { %2750 = vmatmul.msk.bf16.gmra.mxu0 %vm673_vm4, %v4096_v3  ;;  %v1956_v55 = vshll.u32 %v3840_v35, 16 }
 0x237   : > { %v2224_v13 = vadd.f32 %v2156_v58, %v2084_v44  ;;  %v1862_v40 = vpop.f32.mrf.mxu2  ;;  %2695 = vmatmul.msk.bf16.gmra.mxu1 %vm673_vm4, %v4096_v3  ;;  %v2680_v58 = vrot.slane %v4098_v43, 9  ;;  %v1684_v44 = vrot.slane %v3608_v11, 5  ;;  %v1966_v3 = vshrl.u32 %v3844_v41, 16 }
 0x238   : > { %v1929_v19 = vadd.f32 %v1862_v40, %v1795_v27 }
 0x239   : > { %v2263_v50 = vsel %vm673_vm4, %v2224_v13, 0.0  ;;  %v2325_v48 = vmul.f32 %v2224_v13, %v2224_v13  ;;  %v1682_v11 = vsel %vm3186_vm7, %v2680_v58, %v1681_v57 }
 0x23a   : > { %v2264_v2 = vadd.f32 %v2263_v50, %v2262_v9  ;;  %v1688_v12 = vunpack.c.l.b16 %v1682_v11 }
 0x23b   : > { %v2364_v39 = vsel %vm673_vm4, %v2325_v48, 0.0  ;;  %v2158_v5 = vpop.f32.mrf.mxu0 }
 0x23c   : > { %v2365_v4 = vadd.f32 %v2364_v39, %v2363_v21  ;;  %v2018_v34 = vpop.f32.mrf.mxu3  ;;  %2716 = vmatmul.msk.bf16.gmra.mxu2 %vm673_vm4, %v3601_v30  ;;  %v1733_v62 = vpop.f32.mrf.mxu1  ;;  %v1683_v21 = vrot.slane %v1681_v57, 4 }
 0x23d   : > { %v2085_v32 = vadd.f32 %v2018_v34, %v1929_v19  ;;  %v1797_v45 = vadd.f32 %v1733_v62, %v3605_v47  ;;  %v1968_v34 = vrot.slane %v1966_v3, 4 }
 0x23e   : > { %v1685_v48 = vsel %vm3186_vm7, %v1683_v21, %v1684_v44 }
 0x23f   : > { %v2225_v24 = vadd.f32 %v2158_v5, %v2085_v32  ;;  %v1865_v10 = vpop.f32.mrf.mxu2  ;;  %v1958_v5 = vrot.slane %v1956_v55, 5  ;;  %v1689_v57 = vunpack.c.l.b16 %v1685_v48  ;;  %v2111_v55 = vrot.slane %v3844_v41, 5 }
 0x240   : > { %v1930_v1 = vadd.f32 %v1865_v10, %v1796_v33  ;;  %v1962_v33 = vshll.u32 %v3844_v41, 16  ;;  %v2736_v41 = vrot.slane %v3840_v35, 9 }
 0x241   : > { %v2265_v27 = vsel %vm673_vm4, %v2225_v24, 0.0  ;;  %v2326_v42 = vmul.f32 %v2225_v24, %v2225_v24  ;;  %2733 = vmatmul.msk.bf16.gmra.mxu3 %vm673_vm4, %v3195_v53  ;;  %v1953_v53 = vshrl.u32 %v3840_v35, 16  ;;  %v234_v24 = vld [vmem:[%s2856_s27 + $0xd4] sm:$0x1] }
 0x242   : > { %v2266_v38 = vadd.f32 %v2265_v27, %v2264_v2  ;;  %v2114_v48 = vrot.slane %v234_v24, 5 }
 0x243   : > { %v2366_v30 = vsel %vm673_vm4, %v2326_v42, 0.0  ;;  %v2161_v61 = vpop.f32.mrf.mxu0  ;;  %v1955_v2 = vrot.slane %v1953_v53, 4 }
 0x244   : > { %v2367_v47 = vadd.f32 %v2366_v30, %v2365_v4  ;;  %v2021_v25 = vpop.f32.mrf.mxu3  ;;  %v1736_v9 = vpop.f32.mrf.mxu1  ;;  %v1964_v4 = vrot.slane %v1962_v33, 5  ;;  %v1972_v30 = vshll.u32 %v234_v24, 16 }
 0x245   : > { %v2086_v31 = vadd.f32 %v2021_v25, %v1930_v1  ;;  %v1798_v37 = vadd.f32 %v1736_v9, %v3622_v15  ;;  %v1959_v42 = vor.u32 %v1958_v5, %v1955_v2 }
 0x246   : > { %2751 = vmatmul.msk.bf16.gmra.mxu0 %vm673_vm4, %v3624_v46  ;;  %v1974_v44 = vrot.slane %v1972_v30, 5 }
 0x247   : > { %v2226_v13 = vadd.f32 %v2161_v61, %v2086_v31  ;;  %v1867_v40 = vpop.f32.mrf.mxu2  ;;  %2696 = vmatmul.msk.bf16.gmra.mxu1 %vm673_vm4, %v3624_v46  ;;  %v1960_v21 = vrot.slane %v1959_v42, 4 }
 0x248   : > { %v1931_v15 = vadd.f32 %v1867_v40, %v1797_v45 }
 0x249   : > { %v2267_v19 = vsel %vm673_vm4, %v2226_v13, 0.0  ;;  %v2327_v50 = vmul.f32 %v2226_v13, %v2226_v13 }
 0x24a   : > { %v2268_v39 = vadd.f32 %v2267_v19, %v2266_v38  ;;  %v1969_v38 = vor.u32 %v1968_v34, %v1964_v4 }
 0x24b   : > { %v2368_v62 = vsel %vm673_vm4, %v2327_v50, 0.0  ;;  %v2163_v32 = vpop.f32.mrf.mxu0  ;;  %v2113_v50 = vrot.slane %v2111_v55, 4 }
 0x24c   : > { %v2369_v46 = vadd.f32 %v2368_v62, %v2367_v47  ;;  %v2023_v45 = vpop.f32.mrf.mxu3  ;;  %2717 = vmatmul.msk.bf16.gmra.mxu2 %vm673_vm4, %v3633_v54  ;;  %v1738_v10 = vpop.f32.mrf.mxu1  ;;  %v1690_v47 = vpack.c.b16 %v1689_v57, %v1688_v12  ;;  %v1970_v31 = vrot.slane %v1969_v38, 4 }
 0x24d   : > { %v2087_v1 = vadd.f32 %v2023_v45, %v1931_v15  ;;  %v1799_v27 = vadd.f32 %v1738_v10, %v3636_v28  ;;  %v2115_v45 = vsel %vm3186_vm7, %v2113_v50, %v2114_v48 }
 0x24e   : > { %v1975_v15 = vsel %vm2883_vm3, %v1970_v31, %v1974_v44  ;;  %v2119_v42 = vunpack.c.l.b16 %v2115_v45 }
 0x24f   : > { %v2227_v61 = vadd.f32 %v2163_v32, %v2087_v1  ;;  %v1870_v25 = vpop.f32.mrf.mxu2  ;;  %v1979_v62 = vunpack.c.l.b16 %v1975_v15 }
 0x250   : > { %v1932_v9 = vadd.f32 %v1870_v25, %v1798_v37 }
 0x251   : > { %v2269_v43 = vsel %vm673_vm4, %v2227_v61, 0.0  ;;  %v2328_v58 = vmul.f32 %v2227_v61, %v2227_v61  ;;  %2734 = vmatmul.msk.bf16.gmra.mxu3 %vm673_vm4, %v3640_v22  ;;  %v1965_v22 = vsel %vm2883_vm3, %v1960_v21, %v1964_v4 }
 0x252   : > { %v2270_v54 = vadd.f32 %v2269_v43, %v2268_v39  ;;  %v2773_v39 = vld [vmem:[%s2856_s27 + $0xcc] sm:$0xff]  ;;  %v1978_v34 = vunpack.c.l.b16 %v1965_v22 }
 0x253   : > { %v2370_v53 = vsel %vm673_vm4, %v2328_v58, 0.0  ;;  %v2166_v28 = vpop.f32.mrf.mxu0 }
 0x254   : > { %v2371_v33 = vadd.f32 %v2370_v53, %v2369_v46  ;;  %v2026_v3 = vpop.f32.mrf.mxu3  ;;  %v1741_v37 = vpop.f32.mrf.mxu1  ;;  %v2112_v46 = vsel %vm3186_vm7, %v2736_v41, %v2111_v55  ;;  %v1980_v12 = vpack.c.b16 %v1979_v62, %v1978_v34 }
 0x255   : > { %v2088_v13 = vadd.f32 %v2026_v3, %v1932_v9  ;;  %v1800_v40 = vadd.f32 %v1741_v37, %v3647_v17 }
 0x256   : > { %2752 = vmatmul.msk.bf16.gmra.mxu0 %vm673_vm4, %v1690_v47 }
 0x257   : > { %v2228_v11 = vadd.f32 %v2166_v28, %v2088_v13  ;;  %v1872_v19 = vpop.f32.mrf.mxu2  ;;  %2697 = vmatmul.msk.bf16.gmra.mxu1 %vm673_vm4, %v1690_v47 }
 0x258   : > { %v1933_v2 = vadd.f32 %v1872_v19, %v1799_v27  ;;  %v2118_v27 = vunpack.c.l.b16 %v2112_v46 }
 0x259   : > { %v2271_v17 = vsel %vm673_vm4, %v2228_v11, 0.0  ;;  %v2329_v5 = vmul.f32 %v2228_v11, %v2228_v11 }
 0x25a   : > { %v2272_v32 = vadd.f32 %v2271_v17, %v2270_v54  ;;  %v2120_v43 = vpack.c.b16 %v2119_v42, %v2118_v27 }
 0x25b   : > { %v2372_v4 = vsel %vm673_vm4, %v2329_v5, 0.0  ;;  %v2168_v36 = vpop.f32.mrf.mxu0 }
 0x25c   : > { %v2373_v35 = vadd.f32 %v2372_v4, %v2371_v33  ;;  %v2028_v10 = vpop.f32.mrf.mxu3  ;;  %2718 = vmatmul.msk.bf16.gmra.mxu2 %vm673_vm4, %v2773_v39  ;;  %v1743_v24 = vpop.f32.mrf.mxu1 }
 0x25d   : > { %v2089_v1 = vadd.f32 %v2028_v10, %v1933_v2  ;;  %v1801_v57 = vadd.f32 %v1743_v24, %v3652_v7 }
 0x25f   : > { %v2229_v38 = vadd.f32 %v2168_v36, %v2089_v1  ;;  %v1875_v30 = vpop.f32.mrf.mxu2 }
 0x260   : > { %v1934_v61 = vadd.f32 %v1875_v30, %v1800_v40 }
 0x261   : > { %v2273_v25 = vsel %vm673_vm4, %v2229_v38, 0.0  ;;  %v2330_v9 = vmul.f32 %v2229_v38, %v2229_v38  ;;  %2735 = vmatmul.msk.bf16.gmra.mxu3 %vm673_vm4, %v1980_v12 }
 0x262   : > { %v2274_v14 = vadd.f32 %v2273_v25, %v2272_v32 }
 0x263   : > { %v2374_v58 = vsel %vm673_vm4, %v2330_v9, 0.0  ;;  %v2171_v47 = vpop.f32.mrf.mxu0 }
 0x264   : > { %v2375_v54 = vadd.f32 %v2374_v58, %v2373_v35  ;;  %v2031_v21 = vpop.f32.mrf.mxu3  ;;  %v1746_v31 = vpop.f32.mrf.mxu1 }
 0x265   : > { %v2090_v44 = vadd.f32 %v2031_v21, %v1934_v61  ;;  %v1802_v7 = vadd.f32 %v1746_v31, %v3661_v16 }
 0x266   : > { %2753 = vmatmul.msk.bf16.gmra.mxu0 %vm673_vm4, %v2120_v43 }
 0x267   : > { %v2230_v53 = vadd.f32 %v2171_v47, %v2090_v44  ;;  %v1877_v28 = vpop.f32.mrf.mxu2 }
 0x268   : > { %v1935_v55 = vadd.f32 %v1877_v28, %v1801_v57 }
 0x269   : > { %v2275_v33 = vsel %vm673_vm4, %v2230_v53, 0.0  ;;  %v2331_v3 = vmul.f32 %v2230_v53, %v2230_v53 }
 0x26a   : > { %v2276_v37 = vadd.f32 %v2275_v33, %v2274_v14 }
 0x26b   : > { %v2376_v13 = vsel %vm673_vm4, %v2331_v3, 0.0  ;;  %v2173_v40 = vpop.f32.mrf.mxu0 }
 0x26c   : > { %v2377_v22 = vadd.f32 %v2376_v13, %v2375_v54  ;;  %v2033_v15 = vpop.f32.mrf.mxu3  ;;  %v1748_v11 = vpop.f32.mrf.mxu1 }
 0x26d   : > { %v2091_v19 = vadd.f32 %v2033_v15, %v1935_v55  ;;  %v1803_v41 = vadd.f32 %v1748_v11, %v3666_v26 }
 0x26f   : > { %v2231_v50 = vadd.f32 %v2173_v40, %v2091_v19  ;;  %v1880_v16 = vpop.f32.mrf.mxu2 }
 0x270   : > { %v1936_v48 = vadd.f32 %v1880_v16, %v1802_v7 }
 0x271   : > { %v2277_v2 = vsel %vm673_vm4, %v2231_v50, 0.0  ;;  %v2332_v39 = vmul.f32 %v2231_v50, %v2231_v50 }
 0x272   : > { %v2278_v17 = vadd.f32 %v2277_v2, %v2276_v37 }
 0x273   : > { %v2378_v5 = vsel %vm673_vm4, %v2332_v39, 0.0  ;;  %v2176_v34 = vpop.f32.mrf.mxu0 }
 0x274   : > { %v2379_v62 = vadd.f32 %v2378_v5, %v2377_v22  ;;  %v2036_v32 = vpop.f32.mrf.mxu3  ;;  %v1751_v4 = vpop.f32.mrf.mxu1 }
 0x275   : > { %v2092_v36 = vadd.f32 %v2036_v32, %v1936_v48  ;;  %v1804_v46 = vadd.f32 %v1751_v4, %v3675_v59 }
 0x277   : > { %v2232_v45 = vadd.f32 %v2176_v34, %v2092_v36  ;;  %v1882_v35 = vpop.f32.mrf.mxu2 }
 0x278   : > { %v1937_v10 = vadd.f32 %v1882_v35, %v1803_v41 }
 0x279   : > { %v2279_v26 = vsel %vm673_vm4, %v2232_v45, 0.0  ;;  %v2333_v24 = vmul.f32 %v2232_v45, %v2232_v45 }
 0x27a   : > { %v2280_v1 = vadd.f32 %v2279_v26, %v2278_v17 }
 0x27b   : > { %v2380_v12 = vsel %vm673_vm4, %v2333_v24, 0.0  ;;  %v2178_v57 = vpop.f32.mrf.mxu0 }
 0x27c   : > { %v2381_v27 = vadd.f32 %v2380_v12, %v2379_v62  ;;  %v2038_v42 = vpop.f32.mrf.mxu3  ;;  %v1753_v38 = vpop.f32.mrf.mxu1 }
 0x27d   : > { %v2093_v30 = vadd.f32 %v2038_v42, %v1937_v10  ;;  %v1805_v61 = vadd.f32 %v1753_v38, %v3680_v49 }
 0x27f   : > { %v2233_v25 = vadd.f32 %v2178_v57, %v2093_v30  ;;  %v1885_v9 = vpop.f32.mrf.mxu2 }
 0x280   : > { %v1938_v14 = vadd.f32 %v1885_v9, %v1804_v46 }
 0x281   : > { %v2281_v59 = vsel %vm673_vm4, %v2233_v25, 0.0  ;;  %v2334_v43 = vmul.f32 %v2233_v25, %v2233_v25 }
 0x282   : > { %v2282_v58 = vadd.f32 %v2281_v59, %v2280_v1 }
 0x283   : > { %v2382_v47 = vsel %vm673_vm4, %v2334_v43, 0.0  ;;  %v2181_v54 = vpop.f32.mrf.mxu0 }
 0x284   : > { %v2383_v21 = vadd.f32 %v2382_v47, %v2381_v27  ;;  %v2041_v31 = vpop.f32.mrf.mxu3  ;;  %v1756_v44 = vpop.f32.mrf.mxu1 }
 0x285   : > { %v2094_v7 = vadd.f32 %v2041_v31, %v1938_v14  ;;  %v1806_v53 = vadd.f32 %v1756_v44, %v3689_v23 }
 0x287   : > { %v2234_v28 = vadd.f32 %v2181_v54, %v2094_v7  ;;  %v1887_v55 = vpop.f32.mrf.mxu2 }
 0x288   : > { %v1939_v33 = vadd.f32 %v1887_v55, %v1805_v61 }
 0x289   : > { %v2283_v49 = vsel %vm673_vm4, %v2234_v28, 0.0  ;;  %v2335_v3 = vmul.f32 %v2234_v28, %v2234_v28 }
 0x28a   : > { %v2284_v37 = vadd.f32 %v2283_v49, %v2282_v58 }
 0x28b   : > { %v2384_v13 = vsel %vm673_vm4, %v2335_v3, 0.0  ;;  %v2183_v40 = vpop.f32.mrf.mxu0 }
 0x28c   : > { %v2385_v22 = vadd.f32 %v2384_v13, %v2383_v21  ;;  %v2043_v15 = vpop.f32.mrf.mxu3  ;;  %v1758_v11 = vpop.f32.mrf.mxu1 }
 0x28d   : > { %v2095_v19 = vadd.f32 %v2043_v15, %v1939_v33  ;;  %v1807_v36 = vadd.f32 %v1758_v11, %v3694_v60 }
 0x28f   : > { %v2235_v41 = vadd.f32 %v2183_v40, %v2095_v19  ;;  %v1890_v50 = vpop.f32.mrf.mxu2 }
 0x290   : > { %v1940_v16 = vadd.f32 %v1890_v50, %v1806_v53 }
 0x291   : > { %v2285_v48 = vsel %vm673_vm4, %v2235_v41, 0.0  ;;  %v2336_v23 = vmul.f32 %v2235_v41, %v2235_v41 }
 0x292   : > { %v2286_v2 = vadd.f32 %v2285_v48, %v2284_v37 }
 0x293   : > { %v2386_v39 = vsel %vm673_vm4, %v2336_v23, 0.0  ;;  %v2186_v17 = vpop.f32.mrf.mxu0 }
 0x294   : > { %v2387_v5 = vadd.f32 %v2386_v39, %v2385_v22  ;;  %v2046_v34 = vpop.f32.mrf.mxu3  ;;  %v1761_v62 = vpop.f32.mrf.mxu1 }
 0x295   : > { %v2096_v32 = vadd.f32 %v2046_v34, %v1940_v16  ;;  %v1808_v30 = vadd.f32 %v1761_v62, %v3703_v56 }
 0x297   : > { %v2236_v4 = vadd.f32 %v2186_v17, %v2096_v32  ;;  %v1892_v46 = vpop.f32.mrf.mxu2 }
 0x298   : > { %v1941_v10 = vadd.f32 %v1892_v46, %v1807_v36 }
 0x299   : > { %v2287_v45 = vsel %vm673_vm4, %v2236_v4, 0.0  ;;  %v2337_v35 = vmul.f32 %v2236_v4, %v2236_v4 }
 0x29a   : > { %v2288_v26 = vadd.f32 %v2287_v45, %v2286_v2 }
 0x29b   : > { %v2388_v24 = vsel %vm673_vm4, %v2337_v35, 0.0  ;;  %v2188_v1 = vpop.f32.mrf.mxu0 }
 0x29c   : > { %v2389_v12 = vadd.f32 %v2388_v24, %v2387_v5  ;;  %v2048_v57 = vpop.f32.mrf.mxu3  ;;  %v1763_v27 = vpop.f32.mrf.mxu1 }
 0x29d   : > { %v2097_v42 = vadd.f32 %v2048_v57, %v1941_v10  ;;  %v1809_v44 = vadd.f32 %v1763_v27, %v3708_v0 }
 0x29f   : > { %v2237_v38 = vadd.f32 %v2188_v1, %v2097_v42  ;;  %v1895_v61 = vpop.f32.mrf.mxu2 }
 0x2a0   : > { %v1942_v9 = vadd.f32 %v1895_v61, %v1808_v30 }
 0x2a1   : > { %v2289_v25 = vsel %vm673_vm4, %v2237_v38, 0.0  ;;  %v2338_v60 = vmul.f32 %v2237_v38, %v2237_v38 }
 0x2a2   : > { %v2290_v14 = vadd.f32 %v2289_v25, %v2288_v26 }
 0x2a3   : > { %v2390_v59 = vsel %vm673_vm4, %v2338_v60, 0.0  ;;  %v2191_v43 = vpop.f32.mrf.mxu0 }
 0x2a4   : > { %v2391_v58 = vadd.f32 %v2390_v59, %v2389_v12  ;;  %v2051_v47 = vpop.f32.mrf.mxu3  ;;  %v1766_v54 = vpop.f32.mrf.mxu1 }
 0x2a5   : > { %v2098_v21 = vadd.f32 %v2051_v47, %v1942_v9  ;;  %v1810_v15 = vadd.f32 %v1766_v54, %v3717_v29 }
 0x2a7   : > { %v2238_v31 = vadd.f32 %v2191_v43, %v2098_v21  ;;  %v1897_v7 = vpop.f32.mrf.mxu2 }
 0x2a8   : > { %v1943_v28 = vadd.f32 %v1897_v7, %v1809_v44 }
 0x2a9   : > { %v2291_v53 = vsel %vm673_vm4, %v2238_v31, 0.0  ;;  %v2339_v56 = vmul.f32 %v2238_v31, %v2238_v31 }
 0x2aa   : > { %v2292_v55 = vadd.f32 %v2291_v53, %v2290_v14 }
 0x2ab   : > { %v2392_v33 = vsel %vm673_vm4, %v2339_v56, 0.0  ;;  %v2193_v49 = vpop.f32.mrf.mxu0 }
 0x2ac   : > { %v2393_v3 = vadd.f32 %v2392_v33, %v2391_v58  ;;  %v2053_v37 = vpop.f32.mrf.mxu3  ;;  %v1768_v13 = vpop.f32.mrf.mxu1 }
 0x2ad   : > { %v2099_v40 = vadd.f32 %v2053_v37, %v1943_v28  ;;  %v1811_v34 = vadd.f32 %v1768_v13, %v3722_v52 }
 0x2af   : > { %v2239_v22 = vadd.f32 %v2193_v49, %v2099_v40  ;;  %v1900_v11 = vpop.f32.mrf.mxu2 }
 0x2b0   : > { %v1944_v41 = vadd.f32 %v1900_v11, %v1810_v15 }
 0x2b1   : > { %v2293_v19 = vsel %vm673_vm4, %v2239_v22, 0.0  ;;  %v2340_v0 = vmul.f32 %v2239_v22, %v2239_v22 }
 0x2b2   : > { %v2294_v50 = vadd.f32 %v2293_v19, %v2292_v55 }
 0x2b3   : > { %v2394_v16 = vsel %vm673_vm4, %v2340_v0, 0.0  ;;  %v2196_v48 = vpop.f32.mrf.mxu0 }
 0x2b4   : > { %v2395_v23 = vadd.f32 %v2394_v16, %v2393_v3  ;;  %v2056_v2 = vpop.f32.mrf.mxu3  ;;  %v1771_v39 = vpop.f32.mrf.mxu1 }
 0x2b5   : > { %v2100_v17 = vadd.f32 %v2056_v2, %v1944_v41  ;;  %v1812_v12 = vadd.f32 %v1771_v39, %v3731_v20 }
 0x2b7   : > { %v2240_v5 = vadd.f32 %v2196_v48, %v2100_v17  ;;  %v1902_v62 = vpop.f32.mrf.mxu2 }
 0x2b8   : > { %v1945_v4 = vadd.f32 %v1902_v62, %v1811_v34 }
 0x2b9   : > { %v2295_v32 = vsel %vm673_vm4, %v2240_v5, 0.0  ;;  %v2341_v29 = vmul.f32 %v2240_v5, %v2240_v5 }
 0x2ba   : > { %v2296_v36 = vadd.f32 %v2295_v32, %v2294_v50 }
 0x2bb   : > { %v2396_v46 = vsel %vm673_vm4, %v2341_v29, 0.0  ;;  %v2198_v45 = vpop.f32.mrf.mxu0 }
 0x2bc   : > { %v2397_v35 = vadd.f32 %v2396_v46, %v2395_v23  ;;  %v2058_v10 = vpop.f32.mrf.mxu3  ;;  %v1773_v26 = vpop.f32.mrf.mxu1 }
 0x2bd   : > { %v2101_v24 = vadd.f32 %v2058_v10, %v1945_v4  ;;  %v1813_v43 = vadd.f32 %v1773_v26, %v3736_v8 }
 0x2bf   : > { %v2241_v1 = vadd.f32 %v2198_v45, %v2101_v24  ;;  %v1905_v57 = vpop.f32.mrf.mxu2 }
 0x2c0   : > { %v1946_v42 = vadd.f32 %v1905_v57, %v1812_v12 }
 0x2c1   : > { %v2297_v27 = vsel %vm673_vm4, %v2241_v1, 0.0  ;;  %v2342_v52 = vmul.f32 %v2241_v1, %v2241_v1 }
 0x2c2   : > { %v2298_v38 = vadd.f32 %v2297_v27, %v2296_v36 }
 0x2c3   : > { %v2398_v30 = vsel %vm673_vm4, %v2342_v52, 0.0  ;;  %v2201_v61 = vpop.f32.mrf.mxu0 }
 0x2c4   : > { %v2399_v25 = vadd.f32 %v2398_v30, %v2397_v35  ;;  %v2061_v60 = vpop.f32.mrf.mxu3  ;;  %v1776_v14 = vpop.f32.mrf.mxu1 }
 0x2c5   : > { %v2102_v9 = vadd.f32 %v2061_v60, %v1946_v42  ;;  %v1814_v55 = vadd.f32 %v1776_v14, %v3745_v51 }
 0x2c7   : > { %v2242_v59 = vadd.f32 %v2201_v61, %v2102_v9  ;;  %v1907_v58 = vpop.f32.mrf.mxu2 }
 0x2c8   : > { %v1947_v54 = vadd.f32 %v1907_v58, %v1813_v43 }
 0x2c9   : > { %v2299_v47 = vsel %vm673_vm4, %v2242_v59, 0.0  ;;  %v2343_v20 = vmul.f32 %v2242_v59, %v2242_v59 }
 0x2ca   : > { %v2300_v21 = vadd.f32 %v2299_v47, %v2298_v38 }
 0x2cb   : > { %v2400_v31 = vsel %vm673_vm4, %v2343_v20, 0.0  ;;  %v2203_v44 = vpop.f32.mrf.mxu0 }
 0x2cc   : > { %v2401_v7 = vadd.f32 %v2400_v31, %v2399_v25  ;;  %v2063_v53 = vpop.f32.mrf.mxu3  ;;  %v1778_v49 = vpop.f32.mrf.mxu1 }
 0x2cd   : > { %v2103_v56 = vadd.f32 %v2063_v53, %v1947_v54  ;;  %v1815_v41 = vadd.f32 %v1778_v49, %v3750_v63 }
 0x2cf   : > { %v2243_v28 = vadd.f32 %v2203_v44, %v2103_v56  ;;  %v1910_v33 = vpop.f32.mrf.mxu2 }
 0x2d0   : > { %v1948_v37 = vadd.f32 %v1910_v33, %v1814_v55 }
 0x2d1   : > { %v2301_v3 = vsel %vm673_vm4, %v2243_v28, 0.0  ;;  %v2344_v8 = vmul.f32 %v2243_v28, %v2243_v28 }
 0x2d2   : > { %v2302_v13 = vadd.f32 %v2301_v3, %v2300_v21 }
 0x2d3   : > { %v2402_v40 = vsel %vm673_vm4, %v2344_v8, 0.0  ;;  %v2206_v22 = vpop.f32.mrf.mxu0 }
 0x2d4   : > { %v2403_v15 = vadd.f32 %v2402_v40, %v2401_v7  ;;  %v2066_v11 = vpop.f32.mrf.mxu3  ;;  %v1781_v23 = vpop.f32.mrf.mxu1 }
 0x2d5   : > { %v2104_v19 = vadd.f32 %v2066_v11, %v1948_v37  ;;  %v1816_v29 = vadd.f32 %v1781_v23, %v3760_v6 }
 0x2d7   : > { %v2244_v0 = vadd.f32 %v2206_v22, %v2104_v19  ;;  %v1912_v50 = vpop.f32.mrf.mxu2 }
 0x2d8   : > { %v1949_v48 = vadd.f32 %v1912_v50, %v1815_v41 }
 0x2d9   : > { %v2303_v16 = vsel %vm673_vm4, %v2244_v0, 0.0  ;;  %v2345_v51 = vmul.f32 %v2244_v0, %v2244_v0 }
 0x2da   : > { %v2304_v2 = vadd.f32 %v2303_v16, %v2302_v13 }
 0x2db   : > { %v2404_v39 = vsel %vm673_vm4, %v2345_v51, 0.0  ;;  %v2208_v17 = vpop.f32.mrf.mxu0 }
 0x2dc   : > { %v2405_v5 = vadd.f32 %v2404_v39, %v2403_v15  ;;  %v2068_v34 = vpop.f32.mrf.mxu3  ;;  %v1783_v10 = vpop.f32.mrf.mxu1 }
 0x2dd   : > { %v2105_v62 = vadd.f32 %v2068_v34, %v1949_v48  ;;  %v1817_v27 = vadd.f32 %v1783_v10, %v3765_v18 }
 0x2df   : > { %v2245_v32 = vadd.f32 %v2208_v17, %v2105_v62  ;;  %v1915_v4 = vpop.f32.mrf.mxu2 }
 0x2e0   : > { %v1950_v46 = vadd.f32 %v1915_v4, %v1816_v29 }
 0x2e1   : > { %v2305_v36 = vsel %vm673_vm4, %v2245_v32, 0.0  ;;  %v2346_v63 = vmul.f32 %v2245_v32, %v2245_v32 }
 0x2e2   : > { %v2306_v45 = vadd.f32 %v2305_v36, %v2304_v2 }
 0x2e3   : > { %v2406_v35 = vsel %vm673_vm4, %v2346_v63, 0.0  ;;  %v2211_v24 = vpop.f32.mrf.mxu0 }
 0x2e4   : > { %v2407_v26 = vadd.f32 %v2406_v35, %v2405_v5  ;;  %v2071_v1 = vpop.f32.mrf.mxu3 }
 0x2e5   : > { %v2106_v12 = vadd.f32 %v2071_v1, %v1950_v46 }
 0x2e7   : > { %v2246_v57 = vadd.f32 %v2211_v24, %v2106_v12  ;;  %v1917_v52 = vpop.f32.mrf.mxu2 }
 0x2e8   : > { %v1951_v38 = vadd.f32 %v1917_v52, %v1817_v27 }
 0x2e9   : > { %v2307_v42 = vsel %vm673_vm4, %v2246_v57, 0.0  ;;  %v2347_v6 = vmul.f32 %v2246_v57, %v2246_v57 }
 0x2ea   : > { %v2308_v30 = vadd.f32 %v2307_v42, %v2306_v45 }
 0x2eb   : > { %v2408_v61 = vsel %vm673_vm4, %v2347_v6, 0.0  ;;  %v2213_v14 = vpop.f32.mrf.mxu0 }
 0x2ec   : > { %v2409_v25 = vadd.f32 %v2408_v61, %v2407_v26  ;;  %v2073_v60 = vpop.f32.mrf.mxu3 }
 0x2ed   : > { %v2107_v9 = vadd.f32 %v2073_v60, %v1951_v38 }
 0x2ef   : > { %v2247_v59 = vadd.f32 %v2213_v14, %v2107_v9 }
 0x2f1   : > { %v2309_v43 = vsel %vm673_vm4, %v2247_v59, 0.0  ;;  %v2348_v58 = vmul.f32 %v2247_v59, %v2247_v59 }
 0x2f2   : > { %v2310_v47 = vadd.f32 %v2309_v43, %v2308_v30 }
 0x2f3   : > { %v2410_v18 = vsel %vm673_vm4, %v2348_v58, 0.0 }
 0x2f4   : > { %v2311_v20 = vrot.slane %v2310_v47, 4  ;;  %v2411_v54 = vadd.f32 %v2410_v18, %v2409_v25 }
 0x2f6   : > { %v2312_v21 = vadd.f32 %v2311_v20, %v2310_v47  ;;  %v2412_v31 = vrot.slane %v2411_v54, 4 }
 0x2f8   : > { %v2313_v44 = vrot.slane %v2312_v21, 2  ;;  %v2413_v7 = vadd.f32 %v2412_v31, %v2411_v54 }
 0x2fa   : > { %v2314_v53 = vadd.f32 %v2313_v44, %v2312_v21  ;;  %v2414_v56 = vrot.slane %v2413_v7, 2 }
 0x2fc   : > { %v2315_v28 = vrot.slane %v2314_v53, 1  ;;  %v2415_v55 = vadd.f32 %v2414_v56, %v2413_v7 }
 0x2fe   : > { %v2316_v33 = vadd.f32 %v2315_v28, %v2314_v53  ;;  %v2416_v49 = vrot.slane %v2415_v55, 1 }
 0x300   : > { %v2417_v3 = vadd.f32 %v2416_v49, %v2415_v55  ;;  %2418 = vst.msk [vmem:[%s175_s14] sm:$0xff] %vm673_vm4, %v2316_v33 }
 0x302   : > { %2419 = vst.msk [vmem:[%s179_s17] sm:$0xff] %vm673_vm4, %v2417_v3 }
 0x303 PF: > { %s14_s12 = sadd.s32 1, %s2800_s12  }
 0x304   : > { %p11_p4 = scmp.ge.s32.totalorder %s14_s12, 4  }
 0x306   :  { %13 = sbr.rel (!%p11_p4) target bundleno = 1 (0x1), region = 78 }

// kernel: conv_layer_forward.6
= control target key start
LH: loop header
LB: loop body
LE: loop exit
PB: predicated region body
PF: predicated region fallthrough
CT: control target
= control target key end

     0   :  { %s2823_s12 = smov 0   ;;  %s3958_s0 = inlined_call_operand.vmem [shape: bf16[2,18,18,8], index: 0, kind: input, shape index: {}]   ;;  %s3959_s1 = inlined_call_operand.vmem [shape: bf16[9,8,128], index: 1, kind: input, shape index: {}]   ;;  %s3960_s2 = inlined_call_operand.vmem [shape: f32[2,8,16], index: 2, kind: output, shape index: {0}]   ;;  %s3961_s3 = inlined_call_operand.vmem [shape: f32[2,8,16], index: 3, kind: output, shape index: {1}]  }
   0x1 LB: > { %s2505_s13 = sadd.s32 4294967295, %s2801_s12   ;;  %p2509_p0 = scmp.ge.s32.totalorder %s2801_s12, 1  ;;  %s2801_s12 = sphi %s2823_s12, %s14_s12  }
   0x2   : > { %p140_p1 = scmp.lt.s32.totalorder %s2801_s12, 3 }
   0x4   : > { %p141_p2 = pnand %p2509_p0, %p140_p1 }
   0x6   : > { %144 = sbr.rel (%p141_p2) target bundleno = 771 (0x303), region = 28 }
   0xb   : > { %v2513_v0 = vld [vmem:[%s3959_s1 + $0x4] sm:$0xf]  ;;  %vm722_vm0 = vcmask 1043456   ;;  %p167_p3 = scmp.lt.s32.totalorder %s2505_s13, 1  ;;  %v2626_v2 = vld [vmem:[%s3959_s1 + $0x8] sm:$0xf] }
   0xc   : > { %v724_v1 = vsel %vm722_vm0, %v2513_v0, 0  ;;  %v1265_v3 = vsel %vm722_vm0, %v2626_v2, 0  ;;  %v2643_v4 = vld [vmem:[%s3959_s1 + $0xc] sm:$0xf]  ;;  %v235_v5 = vld [vmem:[%s3959_s1] sm:$0xf] }
   0xd   : > { %2775 = vmatpush.bf16.msra.mxu1 %v724_v1  ;;  %2776 = vmatpush.bf16.msra.mxu2 %v724_v1  ;;  %s4101_s13 = smov (!%p167_p3, %s2505_s13), 1  ;;  %v2664_v6 = vld [vmem:[%s3959_s1 + $0x10] sm:$0xf]  ;;  %v1399_v7 = vsel %vm722_vm0, %v2643_v4, 0  ;;  %v944_v8 = vsel %vm722_vm0, %v235_v5, 0  ;;  %vm673_vm4 = vcmask 64512  }
   0xe   : > { %2777 = vmatpush.bf16.msra.mxu3 %v724_v1  ;;  %733 = vmatpush.bf16.msra.mxu0 %v724_v1  ;;  %s2778_s24 = smul.u32 216, %s4101_s13  ;;  %v1555_v9 = vsel %vm722_vm0, %v2664_v6, 0  ;;  %vm236_vm1 = vsmask.f32 3328  ;;  %vm237_vm2 = vsmask.f32 7440 }
   0xf   : > { %vm2884_vm3 = vmor %vm236_vm1, %vm237_vm2  ;;  %vm1051_vm5 = vcmask 1042432   ;;  %vm1052_vm6 = vcmask 1046532   ;;  %vm2248_vm8 = vcmask 130048   ;;  %s2511_s9 = sshll.u32 %s4101_s13, 3 }
  0x10   : > { %s2857_s27 = scalar_lea.vmem %s3958_s0, %s2778_s24  ;;  %vm3187_vm7 = vmor %vm1051_vm5, %vm1052_vm6  ;;  %s175_s14 = scalar_lea.vmem %s3960_s2, %s2511_s9 }
  0x11   : > { %1274 = vmatpush.bf16.msrb.mxu2 %v1265_v3  ;;  %953 = vmatpush.bf16.msrb.mxu1 %v944_v8  ;;  %v2860_v10 = vld [vmem:[%s2857_s27 + $0x30] sm:$0xf]  ;;  %v2863_v11 = vld [vmem:[%s2857_s27 + $0x34] sm:$0xf]  ;;  %v2866_v12 = vld [vmem:[%s2857_s27 + $0x38] sm:$0x1]  ;;  %s179_s17 = scalar_lea.vmem %s3961_s3, %s2511_s9 }
  0x12   : > { %1408 = vmatpush.bf16.msrb.mxu3 %v1399_v7  ;;  %1564 = vmatpush.bf16.msrb.mxu0 %v1555_v9  ;;  %v336_v13 = vshrl.u32 %v2860_v10, 16  ;;  %v339_v14 = vshll.u32 %v2860_v10, 16  ;;  %v345_v15 = vshll.u32 %v2863_v11, 16  ;;  %v349_v16 = vshrl.u32 %v2863_v11, 16  ;;  %v205_v17 = vld [vmem:[%s2857_s27 + $0x60] sm:$0xf] }
  0x13   : > { %v355_v18 = vshll.u32 %v2866_v12, 16  ;;  %v2875_v19 = vld [vmem:[%s2857_s27 + $0x64] sm:$0xf]  ;;  %v207_v20 = vld [vmem:[%s2857_s27 + $0x68] sm:$0x1]  ;;  %v432_v21 = vshrl.u32 %v205_v17, 16 }
  0x14   : > { %v338_v22 = vrot.slane %v336_v13, 4  ;;  %v341_v23 = vrot.slane %v339_v14, 5  ;;  %v347_v24 = vrot.slane %v345_v15, 5  ;;  %v351_v25 = vrot.slane %v349_v16, 4  ;;  %v217_v26 = vld [vmem:[%s2857_s27 + $0x90] sm:$0xf] }
  0x15   : > { %v357_v27 = vrot.slane %v355_v18, 5  ;;  %v434_v28 = vrot.slane %v432_v21, 4  ;;  %v435_v29 = vshll.u32 %v205_v17, 16  ;;  %v441_v30 = vshll.u32 %v2875_v19, 16  ;;  %v218_v35 = vld [vmem:[%s2857_s27 + $0x94] sm:$0xf] }
  0x16   : > { %v342_v31 = vor.u32 %v341_v23, %v338_v22  ;;  %v352_v32 = vor.u32 %v351_v25, %v347_v24  ;;  %v445_v33 = vshrl.u32 %v2875_v19, 16  ;;  %v451_v34 = vshll.u32 %v207_v20, 16  ;;  %v219_v45 = vld [vmem:[%s2857_s27 + $0x98] sm:$0x1]  ;;  %v2894_v61 = vld [vmem:[%s2857_s27] sm:$0xf] }
  0x17   : > { %v437_v37 = vrot.slane %v435_v29, 5  ;;  %v443_v38 = vrot.slane %v441_v30, 5  ;;  %v528_v39 = vshrl.u32 %v217_v26, 16  ;;  %v531_v47 = vshll.u32 %v217_v26, 16  ;;  %v2901_v1 = vld [vmem:[%s2857_s27 + $0x4] sm:$0xf] }
  0x18   : > { %v343_v40 = vrot.slane %v342_v31, 4  ;;  %v353_v41 = vrot.slane %v352_v32, 4  ;;  %v447_v42 = vrot.slane %v445_v33, 4  ;;  %v453_v43 = vrot.slane %v451_v34, 5  ;;  %v2904_v2 = vld [vmem:[%s2857_s27 + $0x8] sm:$0x1] }
  0x19   : > { %v438_v44 = vor.u32 %v437_v37, %v434_v28  ;;  %v530_v46 = vrot.slane %v528_v39, 4  ;;  %v537_v48 = vshll.u32 %v218_v35, 16  ;;  %v541_v52 = vshrl.u32 %v218_v35, 16  ;;  %v2920_v23 = vld [vmem:[%s2857_s27 + $0x3c] sm:$0xf] }
  0x1a   : > { %v348_v49 = vsel %vm2884_vm3, %v343_v40, %v347_v24  ;;  %v358_v50 = vsel %vm2884_vm3, %v353_v41, %v357_v27  ;;  %v448_v51 = vor.u32 %v447_v42, %v443_v38  ;;  %v533_v56 = vrot.slane %v531_v47, 5  ;;  %v2923_v24 = vld [vmem:[%s2857_s27 + $0x40] sm:$0xf]  ;;  %v2928_v29 = vld [vmem:[%s2857_s27 + $0x44] sm:$0x1] }
  0x1b   : > { %v633_v53 = vunpack.c.l.b16 %v348_v49  ;;  %v634_v54 = vunpack.c.l.b16 %v358_v50  ;;  %v439_v55 = vrot.slane %v438_v44, 4  ;;  %v539_v58 = vrot.slane %v537_v48, 5  ;;  %v2943_v47 = vld [vmem:[%s2857_s27 + $0x70] sm:$0xf] }
  0x1c   : > { %v449_v57 = vrot.slane %v448_v51, 4  ;;  %v543_v59 = vrot.slane %v541_v52, 4  ;;  %v547_v60 = vshll.u32 %v219_v45, 16  ;;  %v534_v0 = vor.u32 %v533_v56, %v530_v46  ;;  %v2950_v51 = vld [vmem:[%s2857_s27 + $0x74] sm:$0x1] }
  0x1d   : > { %v2896_v62 = vpack.c.b16 %v634_v54, %v633_v53  ;;  %v444_v63 = vsel %vm2884_vm3, %v439_v55, %v443_v38  ;;  %v240_v9 = vshrl.u32 %v2894_v61, 16  ;;  %v243_v13 = vshll.u32 %v2894_v61, 16  ;;  %v2936_v38 = vld [vmem:[%s2857_s27 + $0x6c] sm:$0xf] }
  0x1e   : > { %v454_v3 = vsel %vm2884_vm3, %v449_v57, %v453_v43  ;;  %v641_v4 = vunpack.c.l.b16 %v444_v63  ;;  %v544_v5 = vor.u32 %v543_v59, %v539_v58  ;;  %v549_v6 = vrot.slane %v547_v60, 5 }
  0x1f   : > { %2518 = vmatmul.msk.bf16.vlgmr.msra.gmra.mxu1 %vm673_vm4, %v2896_v62  ;;  %v642_v7 = vunpack.c.l.b16 %v454_v3  ;;  %v535_v8 = vrot.slane %v534_v0, 4  ;;  %v249_v15 = vshll.u32 %v2901_v1, 16  ;;  %v253_v16 = vshrl.u32 %v2901_v1, 16 }
  0x20   : > { %v545_v14 = vrot.slane %v544_v5, 4  ;;  %v259_v17 = vshll.u32 %v2904_v2, 16  ;;  %v242_v21 = vrot.slane %v240_v9, 4  ;;  %v245_v22 = vrot.slane %v243_v13, 5  ;;  %v220_v5 = vld [vmem:[%s2857_s27 + $0x9c] sm:$0xf] }
  0x21   : > { %v2915_v18 = vpack.c.b16 %v642_v7, %v641_v4  ;;  %v540_v20 = vsel %vm2884_vm3, %v535_v8, %v539_v58  ;;  %v251_v27 = vrot.slane %v249_v15, 5  ;;  %v255_v28 = vrot.slane %v253_v16, 4  ;;  %v221_v9 = vld [vmem:[%s2857_s27 + $0xa0] sm:$0xf] }
  0x22   : > { %v550_v25 = vsel %vm2884_vm3, %v545_v14, %v549_v6  ;;  %v649_v26 = vunpack.c.l.b16 %v540_v20  ;;  %v246_v31 = vor.u32 %v245_v22, %v242_v21  ;;  %v261_v32 = vrot.slane %v259_v17, 5  ;;  %v222_v17 = vld [vmem:[%s2857_s27 + $0xa4] sm:$0x1] }
  0x23   : > { %4004 = vst [vmem:[#allocation2_spill] sm:$0xff] %v2915_v18  ;;  %2522 = vmatmul.msk.bf16.vlgmr.msra.gmra.mxu2 %vm673_vm4, %v2915_v18  ;;  %v650_v30 = vunpack.c.l.b16 %v550_v25  ;;  %v256_v33 = vor.u32 %v255_v28, %v251_v27  ;;  %v360_v34 = vshrl.u32 %v2920_v23, 16  ;;  %v363_v35 = vshll.u32 %v2920_v23, 16 }
  0x24   : > { %v369_v37 = vshll.u32 %v2923_v24, 16  ;;  %v247_v40 = vrot.slane %v246_v31, 4  ;;  %v373_v41 = vshrl.u32 %v2923_v24, 16  ;;  %v379_v42 = vshll.u32 %v2928_v29, 16 }
  0x25   : > { %v2938_v39 = vpack.c.b16 %v650_v30, %v649_v26  ;;  %v257_v43 = vrot.slane %v256_v33, 4  ;;  %v362_v44 = vrot.slane %v360_v34, 4  ;;  %v365_v45 = vrot.slane %v363_v35, 5  ;;  %v2968_v35 = vld [vmem:[%s2857_s27 + $0xc] sm:$0xf] }
  0x26   : > { %v371_v46 = vrot.slane %v369_v37, 5  ;;  %v252_v48 = vsel %vm2884_vm3, %v247_v40, %v251_v27  ;;  %v375_v49 = vrot.slane %v373_v41, 4  ;;  %v381_v50 = vrot.slane %v379_v42, 5 }
  0x27   : > { %4005 = vst [vmem:[#allocation3_spill] sm:$0xff] %v2938_v39  ;;  %2526 = vmatmul.msk.bf16.vlgmr.msra.gmra.mxu3 %vm673_vm4, %v2938_v39  ;;  %v456_v52 = vshrl.u32 %v2936_v38, 16  ;;  %v262_v53 = vsel %vm2884_vm3, %v257_v43, %v261_v32  ;;  %v625_v54 = vunpack.c.l.b16 %v252_v48  ;;  %v366_v55 = vor.u32 %v365_v45, %v362_v44  ;;  %v2975_v43 = vld [vmem:[%s2857_s27 + $0x10] sm:$0xf]  ;;  %v2978_v48 = vld [vmem:[%s2857_s27 + $0x14] sm:$0x1] }
  0x28   : > { %v459_v56 = vshll.u32 %v2936_v38, 16  ;;  %v626_v57 = vunpack.c.l.b16 %v262_v53  ;;  %v376_v58 = vor.u32 %v375_v49, %v371_v46  ;;  %v465_v60 = vshll.u32 %v2943_v47, 16  ;;  %v3155_v39 = vld [vmem:[%s2857_s27 + $0x2c] sm:$0x1] }
  0x29   : > { %v458_v59 = vrot.slane %v456_v52, 4  ;;  %v367_v63 = vrot.slane %v366_v55, 4  ;;  %v469_v3 = vshrl.u32 %v2943_v47, 16  ;;  %v475_v4 = vshll.u32 %v2950_v51, 16 }
  0x2a   : > { %v461_v0 = vrot.slane %v459_v56, 5  ;;  %v657_v6 = vpack.c.b16 %v626_v57, %v625_v54  ;;  %v377_v7 = vrot.slane %v376_v58, 4  ;;  %v467_v8 = vrot.slane %v465_v60, 5  ;;  %v2988_v58 = vld [vmem:[%s2857_s27 + $0x48] sm:$0xf] }
  0x2b   : > { %v372_v13 = vsel %vm2884_vm3, %v367_v63, %v371_v46  ;;  %v471_v15 = vrot.slane %v469_v3, 4  ;;  %v477_v16 = vrot.slane %v475_v4, 5  ;;  %v552_v22 = vshrl.u32 %v220_v5, 16  ;;  %v2993_v3 = vld [vmem:[%s2857_s27 + $0x4c] sm:$0xf] }
  0x2c   : > { %v462_v14 = vor.u32 %v461_v0, %v458_v59  ;;  %2514 = vmatmul.msk.bf16.vlgmr.msra.gmra.mxu0 %vm673_vm4, %v657_v6  ;;  %v382_v20 = vsel %vm2884_vm3, %v377_v7, %v381_v50  ;;  %v635_v21 = vunpack.c.l.b16 %v372_v13  ;;  %v555_v25 = vshll.u32 %v220_v5, 16 }
  0x2d   : > { %v636_v26 = vunpack.c.l.b16 %v382_v20  ;;  %v472_v28 = vor.u32 %v471_v15, %v467_v8  ;;  %v561_v30 = vshll.u32 %v221_v9, 16  ;;  %v554_v31 = vrot.slane %v552_v22, 4  ;;  %v3000_v15 = vld [vmem:[%s2857_s27 + $0x50] sm:$0x1] }
  0x2e   : > { %v463_v27 = vrot.slane %v462_v14, 4  ;;  %v557_v32 = vrot.slane %v555_v25, 5  ;;  %v565_v33 = vshrl.u32 %v221_v9, 16  ;;  %v571_v34 = vshll.u32 %v222_v17, 16 }
  0x2f   : > { %v2970_v37 = vpack.c.b16 %v636_v26, %v635_v21  ;;  %v473_v41 = vrot.slane %v472_v28, 4  ;;  %v563_v42 = vrot.slane %v561_v30, 5  ;;  %v264_v52 = vshrl.u32 %v2968_v35, 16  ;;  %v3011_v28 = vld [vmem:[%s2857_s27 + $0x78] sm:$0xf] }
  0x30   : > { %v468_v40 = vsel %vm2884_vm3, %v463_v27, %v467_v8  ;;  %v558_v45 = vor.u32 %v557_v32, %v554_v31  ;;  %v567_v46 = vrot.slane %v565_v33, 4  ;;  %v573_v50 = vrot.slane %v571_v34, 5  ;;  %v3015_v34 = vld [vmem:[%s2857_s27 + $0x7c] sm:$0xf] }
  0x31   : > { %v643_v44 = vunpack.c.l.b16 %v468_v40  ;;  %2519 = vmatmul.msk.bf16.gmra.mxu1 %vm673_vm4, %v2970_v37  ;;  %v478_v49 = vsel %vm2884_vm3, %v473_v41, %v477_v16  ;;  %v267_v53 = vshll.u32 %v2968_v35, 16  ;;  %v273_v57 = vshll.u32 %v2975_v43, 16 }
  0x32   : > { %v644_v54 = vunpack.c.l.b16 %v478_v49  ;;  %v559_v55 = vrot.slane %v558_v45, 4  ;;  %v568_v56 = vor.u32 %v567_v46, %v563_v42  ;;  %v266_v59 = vrot.slane %v264_v52, 4 }
  0x33   : > { %v269_v60 = vrot.slane %v267_v53, 5  ;;  %v277_v63 = vshrl.u32 %v2975_v43, 16  ;;  %v283_v0 = vshll.u32 %v2978_v48, 16  ;;  %v275_v7 = vrot.slane %v273_v57, 5 }
  0x34   : > { %v2995_v4 = vpack.c.b16 %v644_v54, %v643_v44  ;;  %v564_v5 = vsel %vm2884_vm3, %v559_v55, %v563_v42  ;;  %v569_v6 = vrot.slane %v568_v56, 4  ;;  %v384_v17 = vshrl.u32 %v2988_v58, 16 }
  0x35   : > { %v651_v8 = vunpack.c.l.b16 %v564_v5  ;;  %v270_v9 = vor.u32 %v269_v60, %v266_v59  ;;  %v279_v13 = vrot.slane %v277_v63, 4  ;;  %v285_v14 = vrot.slane %v283_v0, 5 }
  0x36   : > { %2523 = vmatmul.msk.bf16.gmra.mxu2 %vm673_vm4, %v2995_v4  ;;  %v574_v16 = vsel %vm2884_vm3, %v569_v6, %v573_v50  ;;  %v387_v20 = vshll.u32 %v2988_v58, 16  ;;  %v393_v21 = vshll.u32 %v2993_v3, 16  ;;  %v397_v27 = vshrl.u32 %v2993_v3, 16  ;;  %v3022_v50 = vld [vmem:[%s2857_s27 + $0x80] sm:$0x1] }
  0x37   : > { %v652_v22 = vunpack.c.l.b16 %v574_v16  ;;  %v271_v25 = vrot.slane %v270_v9, 4  ;;  %v280_v26 = vor.u32 %v279_v13, %v275_v7  ;;  %v386_v30 = vrot.slane %v384_v17, 4  ;;  %v3041_v16 = vld [vmem:[%s2857_s27 + $0xac] sm:$0xf]  ;;  %v3044_v17 = vld [vmem:[%s2857_s27 + $0xb0] sm:$0x1] }
  0x38   : > { %v389_v31 = vrot.slane %v387_v20, 5  ;;  %v395_v32 = vrot.slane %v393_v21, 5  ;;  %v403_v33 = vshll.u32 %v3000_v15, 16  ;;  %v399_v44 = vrot.slane %v397_v27, 4  ;;  %4008 = vst [vmem:[#allocation6_spill] sm:$0xff] %v3041_v16 }
  0x39   : > { %v3017_v40 = vpack.c.b16 %v652_v22, %v651_v8  ;;  %v276_v41 = vsel %vm2884_vm3, %v271_v25, %v275_v7  ;;  %v281_v42 = vrot.slane %v280_v26, 4  ;;  %v480_v52 = vshrl.u32 %v3011_v28, 16  ;;  %v3034_v8 = vld [vmem:[%s2857_s27 + $0xa8] sm:$0xf]  ;;  %4009 = vst [vmem:[#allocation7_spill] sm:$0xff] %v3044_v17 }
  0x3a   : > { %v627_v45 = vunpack.c.l.b16 %v276_v41  ;;  %v390_v46 = vor.u32 %v389_v31, %v386_v30  ;;  %v405_v49 = vrot.slane %v403_v33, 5  ;;  %v400_v54 = vor.u32 %v399_v44, %v395_v32  ;;  %4007 = vst [vmem:[#allocation5_spill] sm:$0xff] %v3034_v8 }
  0x3b   : > { %4006 = vst [vmem:[#allocation4_spill] sm:$0xff] %v3017_v40  ;;  %2527 = vmatmul.msk.bf16.gmra.mxu3 %vm673_vm4, %v3017_v40  ;;  %v286_v53 = vsel %vm2884_vm3, %v281_v42, %v285_v14  ;;  %v483_v55 = vshll.u32 %v3011_v28, 16  ;;  %v489_v56 = vshll.u32 %v3015_v34, 16  ;;  %v482_v60 = vrot.slane %v480_v52, 4  ;;  %v3058_v52 = vld [vmem:[%s2857_s27 + $0x18] sm:$0xf] }
  0x3c   : > { %v628_v57 = vunpack.c.l.b16 %v286_v53  ;;  %v391_v59 = vrot.slane %v390_v46, 4  ;;  %v493_v63 = vshrl.u32 %v3015_v34, 16  ;;  %v401_v0 = vrot.slane %v400_v54, 4  ;;  %v3144_v40 = vld [vmem:[%s2857_s27 + $0x24] sm:$0xf] }
  0x3d   : > { %v485_v5 = vrot.slane %v483_v55, 5  ;;  %v491_v6 = vrot.slane %v489_v56, 5  ;;  %v499_v7 = vshll.u32 %v3022_v50, 16  ;;  %v576_v30 = vshrl.u32 %v3034_v8, 16  ;;  %v3063_v56 = vld [vmem:[%s2857_s27 + $0x1c] sm:$0xf] }
  0x3e   : > { %v3036_v9 = vpack.c.b16 %v628_v57, %v627_v45  ;;  %v396_v13 = vsel %vm2884_vm3, %v391_v59, %v395_v32  ;;  %v495_v14 = vrot.slane %v493_v63, 4  ;;  %v406_v20 = vsel %vm2884_vm3, %v401_v0, %v405_v49  ;;  %v3066_v57 = vld [vmem:[%s2857_s27 + $0x20] sm:$0x1] }
  0x3f   : > { %v637_v21 = vunpack.c.l.b16 %v396_v13  ;;  %v486_v22 = vor.u32 %v485_v5, %v482_v60  ;;  %v501_v25 = vrot.slane %v499_v7, 5  ;;  %v638_v26 = vunpack.c.l.b16 %v406_v20 }
  0x40   : > { %2515 = vmatmul.msk.bf16.gmra.mxu0 %vm673_vm4, %v3036_v9  ;;  %v496_v27 = vor.u32 %v495_v14, %v491_v6  ;;  %v579_v31 = vshll.u32 %v3034_v8, 16  ;;  %v585_v33 = vshll.u32 %v3041_v16, 16  ;;  %v589_v41 = vshrl.u32 %v3041_v16, 16 }
  0x41   : > { %v487_v32 = vrot.slane %v486_v22, 4  ;;  %v595_v42 = vshll.u32 %v3044_v17, 16  ;;  %v3055_v44 = vpack.c.b16 %v638_v26, %v637_v21  ;;  %v578_v46 = vrot.slane %v576_v30, 4  ;;  %v3078_v26 = vld [vmem:[%s2857_s27 + $0x54] sm:$0xf] }
  0x42   : > { %v497_v45 = vrot.slane %v496_v27, 4  ;;  %v581_v49 = vrot.slane %v579_v31, 5  ;;  %v587_v54 = vrot.slane %v585_v33, 5  ;;  %v591_v55 = vrot.slane %v589_v41, 4  ;;  %v3122_v17 = vld [vmem:[%s2857_s27 + $0xb4] sm:$0xf] }
  0x43   : > { %4010 = vst [vmem:[#allocation8_spill] sm:$0xff] %v3055_v44  ;;  %v492_v53 = vsel %vm2884_vm3, %v487_v32, %v491_v6  ;;  %2520 = vmatmul.msk.bf16.gmra.mxu1 %vm673_vm4, %v3055_v44  ;;  %v597_v0 = vrot.slane %v595_v42, 5  ;;  %v288_v6 = vshrl.u32 %v3058_v52, 16  ;;  %v291_v13 = vshll.u32 %v3058_v52, 16  ;;  %v3083_v32 = vld [vmem:[%s2857_s27 + $0x58] sm:$0xf] }
  0x44   : > { %v502_v59 = vsel %vm2884_vm3, %v497_v45, %v501_v25  ;;  %v645_v60 = vunpack.c.l.b16 %v492_v53  ;;  %v582_v63 = vor.u32 %v581_v49, %v578_v46  ;;  %v592_v7 = vor.u32 %v591_v55, %v587_v54  ;;  %v3088_v46 = vld [vmem:[%s2857_s27 + $0x5c] sm:$0x1]  ;;  %4013 = vst [vmem:[#allocation11_spill] sm:$0xff] %v3122_v17 }
  0x45   : > { %v646_v5 = vunpack.c.l.b16 %v502_v59  ;;  %v297_v20 = vshll.u32 %v3063_v56, 16  ;;  %v301_v21 = vshrl.u32 %v3063_v56, 16  ;;  %v307_v22 = vshll.u32 %v3066_v57, 16 }
  0x46   : > { %v583_v14 = vrot.slane %v582_v63, 4  ;;  %v593_v27 = vrot.slane %v592_v7, 4  ;;  %v290_v30 = vrot.slane %v288_v6, 4  ;;  %v293_v31 = vrot.slane %v291_v13, 5  ;;  %v3098_v7 = vld [vmem:[%s2857_s27 + $0x84] sm:$0xf] }
  0x47   : > { %v3080_v25 = vpack.c.b16 %v646_v5, %v645_v60  ;;  %v299_v41 = vrot.slane %v297_v20, 5  ;;  %v303_v42 = vrot.slane %v301_v21, 4  ;;  %v309_v45 = vrot.slane %v307_v22, 5  ;;  %4011 = vst [vmem:[#allocation9_spill] sm:$0xff] %v3098_v7 }
  0x48   : > { %v588_v33 = vsel %vm2884_vm3, %v583_v14, %v587_v54  ;;  %v598_v49 = vsel %vm2884_vm3, %v593_v27, %v597_v0  ;;  %v294_v55 = vor.u32 %v293_v31, %v290_v30  ;;  %v408_v59 = vshrl.u32 %v3078_v26, 16  ;;  %v3105_v30 = vld [vmem:[%s2857_s27 + $0x88] sm:$0xf] }
  0x49   : > { %2524 = vmatmul.msk.bf16.gmra.mxu2 %vm673_vm4, %v3080_v25  ;;  %v653_v53 = vunpack.c.l.b16 %v588_v33  ;;  %v654_v60 = vunpack.c.l.b16 %v598_v49  ;;  %v304_v63 = vor.u32 %v303_v42, %v299_v41  ;;  %v411_v54 = vshll.u32 %v3078_v26, 16  ;;  %v3110_v49 = vld [vmem:[%s2857_s27 + $0x8c] sm:$0x1] }
  0x4a   : > { %v417_v5 = vshll.u32 %v3083_v32, 16  ;;  %v295_v6 = vrot.slane %v294_v55, 4  ;;  %v410_v13 = vrot.slane %v408_v59, 4  ;;  %v421_v14 = vshrl.u32 %v3083_v32, 16 }
  0x4b   : > { %v427_v0 = vshll.u32 %v3088_v46, 16  ;;  %v3102_v20 = vpack.c.b16 %v654_v60, %v653_v53  ;;  %v305_v21 = vrot.slane %v304_v63, 4  ;;  %v413_v22 = vrot.slane %v411_v54, 5 }
  0x4c   : > { %v419_v27 = vrot.slane %v417_v5, 5  ;;  %v300_v31 = vsel %vm2884_vm3, %v295_v6, %v299_v41  ;;  %v423_v33 = vrot.slane %v421_v14, 4  ;;  %v504_v55 = vshrl.u32 %v3098_v7, 16 }
  0x4d   : > { %4012 = vst [vmem:[#allocation10_spill] sm:$0xff] %v3102_v20  ;;  %v429_v42 = vrot.slane %v427_v0, 5  ;;  %2528 = vmatmul.msk.bf16.gmra.mxu3 %vm673_vm4, %v3102_v20  ;;  %v310_v53 = vsel %vm2884_vm3, %v305_v21, %v309_v45  ;;  %v629_v59 = vunpack.c.l.b16 %v300_v31  ;;  %v414_v60 = vor.u32 %v413_v22, %v410_v13  ;;  %v3127_v22 = vld [vmem:[%s2857_s27 + $0xb8] sm:$0xf] }
  0x4e   : > { %v507_v63 = vshll.u32 %v3098_v7, 16  ;;  %v630_v54 = vunpack.c.l.b16 %v310_v53  ;;  %v424_v41 = vor.u32 %v423_v33, %v419_v27  ;;  %v506_v5 = vrot.slane %v504_v55, 4  ;;  %4014 = vst [vmem:[#allocation12_spill] sm:$0xff] %v3127_v22 }
  0x4f   : > { %v513_v6 = vshll.u32 %v3105_v30, 16  ;;  %v415_v14 = vrot.slane %v414_v60, 4  ;;  %v517_v8 = vshrl.u32 %v3105_v30, 16  ;;  %v523_v20 = vshll.u32 %v3110_v49, 16  ;;  %v3132_v60 = vld [vmem:[%s2857_s27 + $0xbc] sm:$0x1] }
  0x50   : > { %v509_v0 = vrot.slane %v507_v63, 5  ;;  %v3124_v45 = vpack.c.b16 %v630_v54, %v629_v59  ;;  %v425_v21 = vrot.slane %v424_v41, 4  ;;  %4015 = vst [vmem:[#allocation13_spill] sm:$0xff] %v3132_v60  ;;  %v600_v54 = vshrl.u32 %v3122_v17, 16 }
  0x51   : > { %v515_v13 = vrot.slane %v513_v6, 5  ;;  %v420_v31 = vsel %vm2884_vm3, %v415_v14, %v419_v27  ;;  %v519_v55 = vrot.slane %v517_v8, 4  ;;  %v525_v53 = vrot.slane %v523_v20, 5 }
  0x52   : > { %v510_v33 = vor.u32 %v509_v0, %v506_v5  ;;  %2516 = vmatmul.msk.bf16.gmra.mxu0 %vm673_vm4, %v3124_v45  ;;  %v430_v59 = vsel %vm2884_vm3, %v425_v21, %v429_v42  ;;  %v639_v63 = vunpack.c.l.b16 %v420_v31  ;;  %v603_v41 = vshll.u32 %v3122_v17, 16 }
  0x53   : > { %v640_v6 = vunpack.c.l.b16 %v430_v59  ;;  %v520_v5 = vor.u32 %v519_v55, %v515_v13  ;;  %v609_v8 = vshll.u32 %v3127_v22, 16  ;;  %v602_v20 = vrot.slane %v600_v54, 4 }
  0x54   : > { %v511_v27 = vrot.slane %v510_v33, 4  ;;  %v605_v14 = vrot.slane %v603_v41, 5  ;;  %v613_v0 = vshrl.u32 %v3127_v22, 16  ;;  %v619_v16 = vshll.u32 %v3132_v60, 16  ;;  %v3151_v33 = vld [vmem:[%s2857_s27 + $0x28] sm:$0xf] }
  0x55   : > { %v3146_v42 = vpack.c.b16 %v640_v6, %v639_v63  ;;  %v521_v31 = vrot.slane %v520_v5, 4  ;;  %v611_v59 = vrot.slane %v609_v8, 5  ;;  %v1059_v55 = vrot.slane %v2904_v2, 5 }
  0x56   : > { %v516_v21 = vsel %vm2884_vm3, %v511_v27, %v515_v13  ;;  %v606_v54 = vor.u32 %v605_v14, %v602_v20  ;;  %v615_v41 = vrot.slane %v613_v0, 4  ;;  %v621_v6 = vrot.slane %v619_v16, 5 }
  0x57   : > { %4016 = vst [vmem:[#allocation14_spill] sm:$0xff] %v3146_v42  ;;  %v647_v17 = vunpack.c.l.b16 %v516_v21  ;;  %2521 = vmatmul.msk.bf16.gmra.mxu1 %vm673_vm4, %v3146_v42  ;;  %v526_v63 = vsel %vm2884_vm3, %v521_v31, %v525_v53  ;;  %v312_v13 = vshrl.u32 %v3144_v40, 16  ;;  %v315_v27 = vshll.u32 %v3144_v40, 16 }
  0x58   : > { %v648_v5 = vunpack.c.l.b16 %v526_v63  ;;  %v607_v8 = vrot.slane %v606_v54, 4  ;;  %v616_v60 = vor.u32 %v615_v41, %v611_v59  ;;  %v321_v2 = vshll.u32 %v3151_v33, 16  ;;  %v2699_v54 = vld [vmem:[%s3959_s1 + $0x18] sm:$0xf]  ;;  %v2720_v41 = vld [vmem:[%s3959_s1 + $0x1c] sm:$0xf] }
  0x59   : > { %v314_v20 = vrot.slane %v312_v13, 4  ;;  %v317_v14 = vrot.slane %v315_v27, 5  ;;  %v325_v0 = vshrl.u32 %v3151_v33, 16  ;;  %v331_v21 = vshll.u32 %v3155_v39, 16 }
  0x5a   : > { %v3166_v22 = vpack.c.b16 %v648_v5, %v647_v17  ;;  %v612_v16 = vsel %vm2884_vm3, %v607_v8, %v611_v59  ;;  %v617_v53 = vrot.slane %v616_v60, 4  ;;  %v323_v31 = vrot.slane %v321_v2, 5  ;;  %v2682_v17 = vld [vmem:[%s3959_s1 + $0x14] sm:$0xf]  ;;  %v2738_v60 = vld [vmem:[%s3959_s1 + $0x20] sm:$0xf] }
  0x5b   : > { %v655_v63 = vunpack.c.l.b16 %v612_v16  ;;  %v318_v13 = vor.u32 %v317_v14, %v314_v20  ;;  %v327_v27 = vrot.slane %v325_v0, 4  ;;  %v333_v7 = vrot.slane %v331_v21, 5 }
  0x5c   : > { %4017 = vst [vmem:[#allocation15_spill] sm:$0xff] %v3166_v22  ;;  %2525 = vmatmul.msk.bf16.gmra.mxu2 %vm673_vm4, %v3166_v22  ;;  %v622_v59 = vsel %vm2884_vm3, %v617_v53, %v621_v6  ;;  %v2610_v5 = vrot.slane %v2894_v61, 9  ;;  %v1056_v0 = vrot.slane %v2901_v1, 5  ;;  %v1829_v21 = vsel %vm722_vm0, %v2699_v54, 0 }
  0x5d   : > { %v656_v8 = vunpack.c.l.b16 %v622_v59  ;;  %v319_v2 = vrot.slane %v318_v13, 4  ;;  %v328_v20 = vor.u32 %v327_v27, %v323_v31  ;;  %v1985_v16 = vsel %vm722_vm0, %v2720_v41, 0  ;;  %1838 = vmatpush.bf16.msra.mxu2 %v1829_v21  ;;  %v2758_v21 = vld [vmem:[%s2857_s27 + $0xc] sm:$0xff] }
  0x5e   : > { %v1695_v22 = vsel %vm722_vm0, %v2682_v17, 0  ;;  %v2125_v6 = vsel %vm722_vm0, %v2738_v60, 0  ;;  %v1057_v27 = vsel %vm3187_vm7, %v2610_v5, %v1056_v0  ;;  %1994 = vmatpush.bf16.msra.mxu3 %v1985_v16  ;;  %v1058_v54 = vrot.slane %v1056_v0, 4 }
  0x5f   : > { %v3196_v53 = vpack.c.b16 %v656_v8, %v655_v63  ;;  %v324_v61 = vsel %vm2884_vm3, %v319_v2, %v323_v31  ;;  %v329_v13 = vrot.slane %v328_v20, 4  ;;  %1704 = vmatpush.bf16.msra.mxu1 %v1695_v22  ;;  %2134 = vmatpush.bf16.msra.mxu0 %v2125_v6  ;;  %v2611_v41 = vrot.slane %v2968_v35, 9  ;;  %v2757_v22 = vld [vmem:[%s2857_s27] sm:$0xff]  ;;  %v3233_v6 = vld [vmem:[%s2857_s27 + $0x18] sm:$0xff] }
  0x60   : > { %v631_v1 = vunpack.c.l.b16 %v324_v61  ;;  %v1168_v31 = vunpack.c.l.b16 %v1057_v27  ;;  %v1063_v17 = vrot.slane %v2975_v43, 5  ;;  %v1066_v60 = vrot.slane %v2978_v48, 5 }
  0x61   : > { %2529 = vmatmul.msk.bf16.gmra.mxu3 %vm673_vm4, %v3196_v53  ;;  %v334_v63 = vsel %vm2884_vm3, %v329_v13, %v333_v7  ;;  %v1060_v5 = vsel %vm3187_vm7, %v1058_v54, %v1059_v55  ;;  %v1070_v16 = vrot.slane %v3063_v56, 5  ;;  %v2612_v61 = vrot.slane %v3058_v52, 9 }
  0x62   : > { %v632_v59 = vunpack.c.l.b16 %v334_v63  ;;  %v1169_v8 = vunpack.c.l.b16 %v1060_v5  ;;  %v1064_v35 = vsel %vm3187_vm7, %v2611_v41, %v1063_v17  ;;  %v1065_v2 = vrot.slane %v1063_v17, 4  ;;  %v3253_v41 = vld [vmem:[%s2857_s27 + $0x24] sm:$0xff] }
  0x63   : > { %v1170_v7 = vunpack.c.l.b16 %v1064_v35  ;;  %v1072_v13 = vrot.slane %v1070_v16, 4  ;;  %v1073_v27 = vrot.slane %v3066_v57, 5  ;;  %v1077_v57 = vrot.slane %v3151_v33, 5 }
  0x64   : > { %v3214_v20 = vpack.c.b16 %v632_v59, %v631_v1  ;;  %v1200_v0 = vpack.c.b16 %v1169_v8, %v1168_v31  ;;  %v1067_v43 = vsel %vm3187_vm7, %v1065_v2, %v1066_v60  ;;  %v2613_v63 = vrot.slane %v3144_v40, 9  ;;  %v3275_v8 = vld [vmem:[%s2857_s27 + $0x30] sm:$0xff] }
  0x65   : > { %v1171_v48 = vunpack.c.l.b16 %v1067_v43  ;;  %v1074_v56 = vsel %vm3187_vm7, %v1072_v13, %v1073_v27  ;;  %v1079_v31 = vrot.slane %v1077_v57, 4  ;;  %v1080_v17 = vrot.slane %v3155_v39, 5  ;;  %v3303_v27 = vld [vmem:[%s2857_s27 + $0x3c] sm:$0xff] }
  0x66   : > { %2517 = vmatmul.msk.bf16.gmra.mxu0 %vm673_vm4, %v3214_v20  ;;  %v1173_v54 = vunpack.c.l.b16 %v1074_v56  ;;  %v1078_v60 = vsel %vm3187_vm7, %v2613_v63, %v1077_v57  ;;  %v1084_v39 = vrot.slane %v2863_v11, 5  ;;  %v2614_v35 = vrot.slane %v2860_v10, 9 }
  0x67   : > { %2594 = vmatmul.msk.bf16.vlgmr.msrb.gmra.mxu1 %vm673_vm4, %v2757_v22  ;;  %v3221_v55 = vpack.c.b16 %v1171_v48, %v1170_v7  ;;  %v1081_v33 = vsel %vm3187_vm7, %v1079_v31, %v1080_v17  ;;  %v1174_v59 = vunpack.c.l.b16 %v1078_v60  ;;  %v1087_v7 = vrot.slane %v2866_v12, 5 }
  0x68   : > { %v1175_v5 = vunpack.c.l.b16 %v1081_v33  ;;  %v1086_v2 = vrot.slane %v1084_v39, 4  ;;  %v1091_v13 = vrot.slane %v2923_v24, 5  ;;  %v2615_v56 = vrot.slane %v2920_v23, 9 }
  0x6a   : > { %v3267_v40 = vpack.c.b16 %v1175_v5, %v1174_v59  ;;  %v1088_v11 = vsel %vm3187_vm7, %v1086_v2, %v1087_v7  ;;  %v1092_v24 = vsel %vm3187_vm7, %v2615_v56, %v1091_v13  ;;  %v1098_v5 = vrot.slane %v2993_v3, 5 }
  0x6b   : > { %v1178_v23 = vunpack.c.l.b16 %v1092_v24  ;;  %v2616_v7 = vrot.slane %v2988_v58, 9  ;;  %v1105_v24 = vrot.slane %v3083_v32, 5 }
  0x6c   : > { %2627 = vmatmul.msk.bf16.vlgmr.msrb.gmra.mxu2 %vm673_vm4, %v1200_v0  ;;  %v1085_v0 = vsel %vm3187_vm7, %v2614_v35, %v1084_v39  ;;  %v3337_v35 = vld [vmem:[%s2857_s27 + $0x48] sm:$0xff] }
  0x6d   : > { %v1176_v48 = vunpack.c.l.b16 %v1085_v0  ;;  %4022 = vst [vmem:[#allocation18_spill] sm:$0xff] %v3337_v35  ;;  %v1100_v0 = vrot.slane %v1098_v5, 4 }
  0x71   : > { %2648 = vmatmul.msk.bf16.vlgmr.msrb.gmra.mxu3 %vm673_vm4, %v2758_v21 }
  0x76   : > { %2665 = vmatmul.msk.bf16.vlgmr.msrb.gmra.mxu0 %vm673_vm4, %v3036_v9  ;;  %v1071_v9 = vsel %vm3187_vm7, %v2612_v61, %v1070_v16 }
  0x77   : > { %2595 = vmatmul.msk.bf16.gmra.mxu1 %vm673_vm4, %v2758_v21  ;;  %v1172_v1 = vunpack.c.l.b16 %v1071_v9  ;;  %v1177_v21 = vunpack.c.l.b16 %v1088_v11  ;;  %v1101_v11 = vrot.slane %v3000_v15, 5 }
  0x79   : > { %v3247_v52 = vpack.c.b16 %v1173_v54, %v1172_v1  ;;  %v3295_v12 = vpack.c.b16 %v1177_v21, %v1176_v48  ;;  %v1093_v1 = vrot.slane %v1091_v13, 4  ;;  %v1094_v54 = vrot.slane %v2928_v29, 5 }
  0x7a   : > { %v1099_v21 = vsel %vm3187_vm7, %v2616_v7, %v1098_v5  ;;  %v1102_v13 = vsel %vm3187_vm7, %v1100_v0, %v1101_v11  ;;  %v2617_v5 = vrot.slane %v3078_v26, 9  ;;  %v1107_v7 = vrot.slane %v1105_v24, 4 }
  0x7b   : > { %v1095_v63 = vsel %vm3187_vm7, %v1093_v1, %v1094_v54  ;;  %v1180_v56 = vunpack.c.l.b16 %v1099_v21  ;;  %v1181_v1 = vunpack.c.l.b16 %v1102_v13  ;;  %v1108_v0 = vrot.slane %v3088_v46, 5 }
  0x7c   : > { %2628 = vmatmul.msk.bf16.gmra.mxu2 %vm673_vm4, %v3221_v55  ;;  %v1179_v60 = vunpack.c.l.b16 %v1095_v63  ;;  %v1106_v32 = vsel %vm3187_vm7, %v2617_v5, %v1105_v24  ;;  %v1112_v5 = vrot.slane %v2875_v19, 5 }
  0x7d   : > { %v3361_v54 = vpack.c.b16 %v1181_v1, %v1180_v56  ;;  %v1109_v13 = vsel %vm3187_vm7, %v1107_v7, %v1108_v0  ;;  %v1182_v56 = vunpack.c.l.b16 %v1106_v32  ;;  %v2787_v32 = vld [vmem:[%s2857_s27 + $0x68] sm:$0x1] }
  0x7e   : > { %v3327_v33 = vpack.c.b16 %v1179_v60, %v1178_v23  ;;  %v3371_v60 = vld [vmem:[%s2857_s27 + $0x54] sm:$0xff]  ;;  %v1183_v46 = vunpack.c.l.b16 %v1109_v13  ;;  %v1115_v13 = vrot.slane %v2787_v32, 5 }
  0x7f   : > { %4025 = vst [vmem:[#allocation21_spill] sm:$0xff] %v3361_v54 }
  0x80   : > { %4026 = vst [vmem:[#allocation22_spill] sm:$0xff] %v3371_v60 }
  0x81   : > { %2649 = vmatmul.msk.bf16.gmra.mxu3 %vm673_vm4, %v3233_v6 }
  0x86   : > { %2666 = vmatmul.msk.bf16.gmra.mxu0 %vm673_vm4, %v3124_v45 }
  0x87   : > { %2596 = vmatmul.msk.bf16.gmra.mxu1 %vm673_vm4, %v3233_v6 }
  0x8c   : > { %2629 = vmatmul.msk.bf16.gmra.mxu2 %vm673_vm4, %v3247_v52 }
  0x91   : > { %2650 = vmatmul.msk.bf16.gmra.mxu3 %vm673_vm4, %v3253_v41 }
  0x96   : > { %2667 = vmatmul.msk.bf16.gmra.mxu0 %vm673_vm4, %v3214_v20 }
  0x97   : > { %2597 = vmatmul.msk.bf16.gmra.mxu1 %vm673_vm4, %v3253_v41 }
  0x9c   : > { %v3270_v22 = vpop.f32.mrf.mxu1  ;;  %2630 = vmatmul.msk.bf16.gmra.mxu2 %vm673_vm4, %v3267_v40 }
  0xa1   : > { %2651 = vmatmul.msk.bf16.gmra.mxu3 %vm673_vm4, %v3275_v8 }
  0xa4   : > { %v3285_v43 = vpop.f32.mrf.mxu1 }
  0xa6   : > { %v3287_v16 = vpop.f32.mrf.mxu2  ;;  %2668 = vmatmul.msk.bf16.gmra.mxu0 %vm673_vm4, %v2896_v62 }
  0xa7   : > { %2598 = vmatmul.msk.bf16.gmra.mxu1 %vm673_vm4, %v3275_v8 }
  0xa9   : > { %v3293_v10 = vpop.f32.mrf.mxu0 }
  0xaa   : > { %v3297_v61 = vpop.f32.mrf.mxu3 }
  0xab   : > { %4020 = vst [vmem:[#allocation16_spill] sm:$0xff] %v3297_v61 }
  0xac   : > { %2631 = vmatmul.msk.bf16.gmra.mxu2 %vm673_vm4, %v3295_v12 }
  0xae   : > { %v3305_v9 = vpop.f32.mrf.mxu1  ;;  %v3309_v57 = vpop.f32.mrf.mxu2 }
  0xb1   : > { %2652 = vmatmul.msk.bf16.gmra.mxu3 %vm673_vm4, %v3303_v27  ;;  %v3317_v31 = vpop.f32.mrf.mxu0 }
  0xb2   : > { %v3319_v17 = vpop.f32.mrf.mxu3 }
  0xb3   : > { %4021 = vst [vmem:[#allocation17_spill] sm:$0xff] %v3319_v17 }
  0xb6   : > { %2669 = vmatmul.msk.bf16.gmra.mxu0 %vm673_vm4, %v2970_v37  ;;  %v3323_v29 = vpop.f32.mrf.mxu1 }
  0xb7   : > { %2599 = vmatmul.msk.bf16.gmra.mxu1 %vm673_vm4, %v3303_v27 }
  0xb9   : > { %v3329_v59 = vpop.f32.mrf.mxu2 }
  0xbc   : > { %2632 = vmatmul.msk.bf16.gmra.mxu2 %vm673_vm4, %v3327_v33 }
  0xbd   : > { %v3332_v39 = vpop.f32.mrf.mxu0 }
  0xbe   : > { %v3339_v2 = vpop.f32.mrf.mxu3 }
  0xbf   : > { %4023 = vst [vmem:[#allocation19_spill] sm:$0xff] %v3339_v2 }
  0xc0   : > { %v3343_v48 = vpop.f32.mrf.mxu1 }
  0xc1   : > { %2653 = vmatmul.msk.bf16.gmra.mxu3 %vm673_vm4, %v3337_v35  ;;  %v3347_v3 = vpop.f32.mrf.mxu2 }
  0xc5   : > { %v3353_v58 = vpop.f32.mrf.mxu0 }
  0xc6   : > { %2670 = vmatmul.msk.bf16.gmra.mxu0 %vm673_vm4, %v3055_v44  ;;  %v3357_v15 = vpop.f32.mrf.mxu3 }
  0xc7   : > { %4024 = vst [vmem:[#allocation20_spill] sm:$0xff] %v3357_v15  ;;  %2600 = vmatmul.msk.bf16.gmra.mxu1 %vm673_vm4, %v3337_v35  ;;  %v3406_v15 = vld [vmem:[%s2857_s27 + $0x60] sm:$0xff] }
  0xc8   : > { %v3364_v63 = vpop.f32.mrf.mxu1  ;;  %4030 = vst [vmem:[#allocation26_spill] sm:$0xff] %v3406_v15 }
  0xcc   : > { %v3366_v23 = vpop.f32.mrf.mxu2  ;;  %2633 = vmatmul.msk.bf16.gmra.mxu2 %vm673_vm4, %v3361_v54 }
  0xcf   : > { %v3375_v11 = vpop.f32.mrf.mxu0 }
  0xd0   : > { %v3377_v21 = vpop.f32.mrf.mxu3 }
  0xd1   : > { %4027 = vst [vmem:[#allocation23_spill] sm:$0xff] %v3377_v21  ;;  %2654 = vmatmul.msk.bf16.gmra.mxu3 %vm673_vm4, %v3371_v60  ;;  %v3393_v21 = vpack.c.b16 %v1183_v46, %v1182_v56 }
  0xd3   : > { %4028 = vst [vmem:[#allocation24_spill] sm:$0xff] %v3393_v21 }
  0xd4   : > { %v3385_v26 = vpop.f32.mrf.mxu1  ;;  %v3387_v1 = vpop.f32.mrf.mxu2 }
  0xd6   : > { %2671 = vmatmul.msk.bf16.gmra.mxu0 %vm673_vm4, %v3146_v42  ;;  %v2788_v42 = vld [vmem:[%s2857_s27 + $0x60] sm:$0xf] }
  0xd7   : > { %2601 = vmatmul.msk.bf16.gmra.mxu1 %vm673_vm4, %v3371_v60  ;;  %v3395_v24 = vpop.f32.mrf.mxu0  ;;  %v2618_v2 = vrot.slane %v2788_v42, 9  ;;  %v1114_v60 = vrot.slane %v1112_v5, 4 }
  0xd8   : > { %v3398_v7 = vpop.f32.mrf.mxu3 }
  0xd9   : > { %4029 = vst [vmem:[#allocation25_spill] sm:$0xff] %v3398_v7  ;;  %v1113_v19 = vsel %vm3187_vm7, %v2618_v2, %v1112_v5  ;;  %v1116_v46 = vsel %vm3187_vm7, %v1114_v60, %v1115_v13  ;;  %v1119_v60 = vrot.slane %v2943_v47, 5 }
  0xda   : > { %v1184_v17 = vunpack.c.l.b16 %v1113_v19  ;;  %v1185_v42 = vunpack.c.l.b16 %v1116_v46  ;;  %v3439_v19 = vld [vmem:[%s2857_s27 + $0x6c] sm:$0xff] }
  0xdc   : > { %2634 = vmatmul.msk.bf16.gmra.mxu2 %vm673_vm4, %v3393_v21  ;;  %v3402_v0 = vpop.f32.mrf.mxu1  ;;  %v3428_v2 = vpack.c.b16 %v1185_v42, %v1184_v17  ;;  %v1121_v17 = vrot.slane %v1119_v60, 4 }
  0xde   : > { %4032 = vst [vmem:[#allocation28_spill] sm:$0xff] %v3428_v2 }
  0xdf   : > { %v3409_v56 = vpop.f32.mrf.mxu2 }
  0xe1   : > { %2655 = vmatmul.msk.bf16.gmra.mxu3 %vm673_vm4, %v3406_v15 }
  0xe3   : > { %v3417_v7 = vpop.f32.mrf.mxu0 }
  0xe4   : > { %v3419_v32 = vpop.f32.mrf.mxu3  ;;  %v955_v21 = vpop.f32.mrf.mxu1 }
  0xe5   : > { %4031 = vst [vmem:[#allocation27_spill] sm:$0xff] %v3419_v32  ;;  %v956_v54 = vadd.f32 %v955_v21, %v3293_v10  ;;  %v1122_v21 = vrot.slane %v2950_v51, 5  ;;  %v2619_v32 = vrot.slane %v2936_v38, 9 }
  0xe6   : > { %2672 = vmatmul.msk.bf16.gmra.mxu0 %vm673_vm4, %v2915_v18 }
  0xe7   : > { %v3424_v44 = vpop.f32.mrf.mxu2  ;;  %2602 = vmatmul.msk.bf16.gmra.mxu1 %vm673_vm4, %v3406_v15  ;;  %v1120_v47 = vsel %vm3187_vm7, %v2619_v32, %v1119_v60 }
  0xe8   : > { %v1186_v61 = vunpack.c.l.b16 %v1120_v47 }
  0xeb   : > { %v3431_v5 = vpop.f32.mrf.mxu0 }
  0xec   : > { %v3433_v13 = vpop.f32.mrf.mxu3  ;;  %2635 = vmatmul.msk.bf16.gmra.mxu2 %vm673_vm4, %v3428_v2  ;;  %v957_v10 = vpop.f32.mrf.mxu1 }
  0xed   : > { %4033 = vst [vmem:[#allocation29_spill] sm:$0xff] %v3433_v13  ;;  %v958_v46 = vadd.f32 %v957_v10, %v3317_v31  ;;  %v1123_v13 = vsel %vm3187_vm7, %v1121_v17, %v1122_v21  ;;  %v1126_v21 = vrot.slane %v3015_v34, 5 }
  0xee   : > { %v1187_v35 = vunpack.c.l.b16 %v1123_v13  ;;  %v1129_v13 = vrot.slane %v3022_v50, 5 }
  0xef   : > { %v1276_v42 = vpop.f32.mrf.mxu2 }
  0xf0   : > { %v1356_v18 = vadd.f32 %v1276_v42, %v956_v54  ;;  %v3456_v10 = vpack.c.b16 %v1187_v35, %v1186_v61  ;;  %v3463_v42 = vld [vmem:[%s2857_s27 + $0x78] sm:$0xff] }
  0xf1   : > { %2656 = vmatmul.msk.bf16.gmra.mxu3 %vm673_vm4, %v3439_v19 }
  0xf3   : > { %v1566_v2 = vpop.f32.mrf.mxu0 }
  0xf4   : > { %v1410_v51 = vpop.f32.mrf.mxu3  ;;  %v960_v15 = vpop.f32.mrf.mxu1 }
  0xf5   : > { %v1490_v31 = vadd.f32 %v1410_v51, %v1356_v18  ;;  %v961_v38 = vadd.f32 %v960_v15, %v3332_v39 }
  0xf6   : > { %2673 = vmatmul.msk.bf16.gmra.mxu0 %vm673_vm4, %v2995_v4 }
  0xf7   : > { %v1278_v54 = vpop.f32.mrf.mxu2  ;;  %2603 = vmatmul.msk.bf16.gmra.mxu1 %vm673_vm4, %v3439_v19  ;;  %v3454_v32 = vadd.f32 %v1566_v2, %v1490_v31  ;;  %v2620_v2 = vrot.slane %v3011_v28, 9 }
  0xf8   : > { %v1357_v60 = vadd.f32 %v1278_v54, %v958_v46  ;;  %v1128_v46 = vrot.slane %v1126_v21, 4 }
  0xf9   : > { %v1127_v50 = vsel %vm3187_vm7, %v2620_v2, %v1126_v21 }
  0xfa   : > { %v1130_v51 = vsel %vm3187_vm7, %v1128_v46, %v1129_v13  ;;  %v1136_v46 = vrot.slane %v3110_v49, 5 }
  0xfb   : > { %v1568_v17 = vpop.f32.mrf.mxu0 }
  0xfc   : > { %v1412_v18 = vpop.f32.mrf.mxu3  ;;  %2636 = vmatmul.msk.bf16.gmra.mxu2 %vm673_vm4, %v3456_v10  ;;  %v962_v39 = vpop.f32.mrf.mxu1 }
  0xfd   : > { %v1491_v15 = vadd.f32 %v1412_v18, %v1357_v60  ;;  %v963_v47 = vadd.f32 %v962_v39, %v3353_v58  ;;  %v1188_v58 = vunpack.c.l.b16 %v1127_v50  ;;  %v1189_v18 = vunpack.c.l.b16 %v1130_v51  ;;  %v3489_v50 = vld [vmem:[%s2857_s27 + $0x84] sm:$0xff] }
  0xff   : > { %v1281_v61 = vpop.f32.mrf.mxu2  ;;  %v3467_v35 = vadd.f32 %v1568_v17, %v1491_v15  ;;  %v3482_v13 = vpack.c.b16 %v1189_v18, %v1188_v58  ;;  %v1133_v15 = vrot.slane %v3105_v30, 5 }
 0x100   : > { %v1358_v34 = vadd.f32 %v1281_v61, %v961_v38 }
 0x101   : > { %2657 = vmatmul.msk.bf16.gmra.mxu3 %vm673_vm4, %v3463_v42 }
 0x103   : > { %v1571_v31 = vpop.f32.mrf.mxu0 }
 0x104   : > { %v1415_v54 = vpop.f32.mrf.mxu3  ;;  %v965_v60 = vpop.f32.mrf.mxu1 }
 0x105   : > { %v1492_v28 = vadd.f32 %v1415_v54, %v1358_v34  ;;  %v966_v17 = vadd.f32 %v965_v60, %v3375_v11 }
 0x106   : > { %2674 = vmatmul.msk.bf16.gmra.mxu0 %vm673_vm4, %v3080_v25 }
 0x107   : > { %v1283_v38 = vpop.f32.mrf.mxu2  ;;  %2604 = vmatmul.msk.bf16.gmra.mxu1 %vm673_vm4, %v3463_v42  ;;  %v3480_v21 = vadd.f32 %v1571_v31, %v1492_v28  ;;  %v4034_v31 = vld [vmem:[#allocation9_spill] sm:$0xff] }
 0x108   : > { %v1359_v39 = vadd.f32 %v1283_v38, %v963_v47  ;;  %v2621_v54 = vrot.slane %v4034_v31, 9  ;;  %v1135_v47 = vrot.slane %v1133_v15, 4 }
 0x10a   : > { %v1134_v49 = vsel %vm3187_vm7, %v2621_v54, %v1133_v15  ;;  %v1137_v18 = vsel %vm3187_vm7, %v1135_v47, %v1136_v46  ;;  %v2789_v54 = vld [vmem:[%s2857_s27 + $0x94] sm:$0xf] }
 0x10b   : > { %v1573_v2 = vpop.f32.mrf.mxu0  ;;  %v1140_v47 = vrot.slane %v2789_v54, 5 }
 0x10c   : > { %v1417_v61 = vpop.f32.mrf.mxu3  ;;  %2637 = vmatmul.msk.bf16.gmra.mxu2 %vm673_vm4, %v3482_v13  ;;  %v967_v11 = vpop.f32.mrf.mxu1 }
 0x10d   : > { %v1493_v34 = vadd.f32 %v1417_v61, %v1359_v39  ;;  %v968_v51 = vadd.f32 %v967_v11, %v3395_v24  ;;  %v1190_v39 = vunpack.c.l.b16 %v1134_v49  ;;  %v1191_v61 = vunpack.c.l.b16 %v1137_v18 }
 0x10f   : > { %v1286_v60 = vpop.f32.mrf.mxu2  ;;  %v3493_v58 = vadd.f32 %v1573_v2, %v1493_v34  ;;  %v3508_v31 = vpack.c.b16 %v1191_v61, %v1190_v39 }
 0x110   : > { %v1360_v30 = vadd.f32 %v1286_v60, %v966_v17  ;;  %v4036_v17 = vld [vmem:[#allocation15_spill] sm:$0xff] }
 0x111   : > { %4035 = vst [vmem:[#allocation9_spill] sm:$0xff] %v3493_v58  ;;  %2658 = vmatmul.msk.bf16.gmra.mxu3 %vm673_vm4, %v3489_v50 }
 0x112   : > { %4038 = vst [vmem:[#allocation31_spill] sm:$0xff] %v3508_v31 }
 0x113   : > { %v1576_v28 = vpop.f32.mrf.mxu0 }
 0x114   : > { %v1420_v24 = vpop.f32.mrf.mxu3  ;;  %v970_v38 = vpop.f32.mrf.mxu1 }
 0x115   : > { %v1494_v11 = vadd.f32 %v1420_v24, %v1360_v30  ;;  %v971_v2 = vadd.f32 %v970_v38, %v3417_v7  ;;  %v2790_v30 = vld [vmem:[%s2857_s27 + $0x98] sm:$0x1]  ;;  %v3515_v38 = vld [vmem:[%s2857_s27 + $0x90] sm:$0xff] }
 0x116   : > { %2675 = vmatmul.msk.bf16.gmra.mxu0 %vm673_vm4, %v4036_v17  ;;  %v1143_v49 = vrot.slane %v2790_v30, 5  ;;  %4039 = vst [vmem:[#allocation32_spill] sm:$0xff] %v3515_v38 }
 0x117   : > { %v1288_v34 = vpop.f32.mrf.mxu2  ;;  %2605 = vmatmul.msk.bf16.gmra.mxu1 %vm673_vm4, %v3489_v50  ;;  %v3506_v15 = vadd.f32 %v1576_v28, %v1494_v11  ;;  %v2791_v28 = vld [vmem:[%s2857_s27 + $0x90] sm:$0xf] }
 0x118   : > { %v1361_v46 = vadd.f32 %v1288_v34, %v968_v51  ;;  %v2622_v11 = vrot.slane %v2791_v28, 9  ;;  %v1142_v51 = vrot.slane %v1140_v47, 4 }
 0x119   : > { %4037 = vst [vmem:[#allocation30_spill] sm:$0xff] %v3506_v15  ;;  %v2794_v15 = vld [vmem:[%s2857_s27 + $0x9c] sm:$0xf] }
 0x11a   : > { %v1141_v54 = vsel %vm3187_vm7, %v2622_v11, %v1140_v47  ;;  %v2792_v11 = vld [vmem:[%s2857_s27 + $0xa0] sm:$0xf] }
 0x11b   : > { %v1578_v60 = vpop.f32.mrf.mxu0 }
 0x11c   : > { %v1422_v7 = vpop.f32.mrf.mxu3  ;;  %2638 = vmatmul.msk.bf16.gmra.mxu2 %vm673_vm4, %v3508_v31  ;;  %v972_v18 = vpop.f32.mrf.mxu1 }
 0x11d   : > { %v1495_v24 = vadd.f32 %v1422_v7, %v1361_v46  ;;  %v973_v17 = vadd.f32 %v972_v18, %v3431_v5  ;;  %v1144_v46 = vsel %vm3187_vm7, %v1142_v51, %v1143_v49  ;;  %v1192_v18 = vunpack.c.l.b16 %v1141_v54 }
 0x11e   : > { %v1193_v28 = vunpack.c.l.b16 %v1144_v46  ;;  %v1147_v51 = vrot.slane %v2792_v11, 5  ;;  %v2793_v46 = vld [vmem:[%s2857_s27 + $0xa4] sm:$0x1] }
 0x11f   : > { %v1291_v39 = vpop.f32.mrf.mxu2  ;;  %v3519_v61 = vadd.f32 %v1578_v60, %v1495_v24  ;;  %v4041_v60 = vld [vmem:[#allocation3_spill] sm:$0xff] }
 0x120   : > { %v1362_v34 = vadd.f32 %v1291_v39, %v971_v2  ;;  %v3533_v49 = vpack.c.b16 %v1193_v28, %v1192_v18 }
 0x121   : > { %4040 = vst [vmem:[#allocation33_spill] sm:$0xff] %v3519_v61  ;;  %2659 = vmatmul.msk.bf16.gmra.mxu3 %vm673_vm4, %v3515_v38  ;;  %v3540_v61 = vld [vmem:[%s2857_s27 + $0x9c] sm:$0xff] }
 0x122   : > { %4043 = vst [vmem:[#allocation35_spill] sm:$0xff] %v3533_v49 }
 0x123   : > { %v1581_v30 = vpop.f32.mrf.mxu0  ;;  %4044 = vst [vmem:[#allocation36_spill] sm:$0xff] %v3540_v61 }
 0x124   : > { %v1425_v7 = vpop.f32.mrf.mxu3  ;;  %v975_v5 = vpop.f32.mrf.mxu1 }
 0x125   : > { %v1496_v31 = vadd.f32 %v1425_v7, %v1362_v34  ;;  %v1150_v7 = vrot.slane %v2793_v46, 5 }
 0x126   : > { %2676 = vmatmul.msk.bf16.gmra.mxu0 %vm673_vm4, %v4041_v60 }
 0x127   : > { %v1293_v2 = vpop.f32.mrf.mxu2  ;;  %2606 = vmatmul.msk.bf16.gmra.mxu1 %vm673_vm4, %v3515_v38  ;;  %v3531_v47 = vadd.f32 %v1581_v30, %v1496_v31  ;;  %v2623_v38 = vrot.slane %v2794_v15, 9  ;;  %v1149_v31 = vrot.slane %v1147_v51, 4 }
 0x128   : > { %v1363_v24 = vadd.f32 %v1293_v2, %v973_v17  ;;  %v976_v17 = vadd.f32 %v975_v5, %v3270_v22  ;;  %v4046_v5 = vld [vmem:[#allocation4_spill] sm:$0xff] }
 0x129   : > { %4042 = vst [vmem:[#allocation34_spill] sm:$0xff] %v3531_v47  ;;  %v1148_v2 = vsel %vm3187_vm7, %v2623_v38, %v1147_v51 }
 0x12a   : > { %v1194_v15 = vunpack.c.l.b16 %v1148_v2 }
 0x12b   : > { %v1583_v39 = vpop.f32.mrf.mxu0 }
 0x12c   : > { %v1427_v54 = vpop.f32.mrf.mxu3  ;;  %2639 = vmatmul.msk.bf16.gmra.mxu2 %vm673_vm4, %v3533_v49  ;;  %v977_v34 = vpop.f32.mrf.mxu1 }
 0x12d   : > { %v1497_v60 = vadd.f32 %v1427_v54, %v1363_v24  ;;  %v1151_v24 = vsel %vm3187_vm7, %v1149_v31, %v1150_v7  ;;  %v4049_v31 = vld [vmem:[#allocation6_spill] sm:$0xff] }
 0x12e   : > { %v1195_v49 = vunpack.c.l.b16 %v1151_v24  ;;  %v4050_v24 = vld [vmem:[#allocation7_spill] sm:$0xff] }
 0x12f   : > { %v1296_v30 = vpop.f32.mrf.mxu2  ;;  %v3544_v18 = vadd.f32 %v1583_v39, %v1497_v60  ;;  %v978_v60 = vadd.f32 %v977_v34, %v3285_v43  ;;  %v3566_v34 = vld [vmem:[%s2857_s27 + $0xa8] sm:$0xff] }
 0x130   : > { %v1364_v28 = vadd.f32 %v1296_v30, %v976_v17  ;;  %v3559_v7 = vpack.c.b16 %v1195_v49, %v1194_v15  ;;  %v1154_v17 = vrot.slane %v4049_v31, 5  ;;  %4051 = vst [vmem:[#allocation6_spill] sm:$0xff] %v3566_v34 }
 0x131   : > { %4045 = vst [vmem:[#allocation37_spill] sm:$0xff] %v3544_v18  ;;  %2660 = vmatmul.msk.bf16.gmra.mxu3 %vm673_vm4, %v3540_v61 }
 0x132   : > { %4048 = vst [vmem:[#allocation39_spill] sm:$0xff] %v3559_v7 }
 0x133   : > { %v1586_v11 = vpop.f32.mrf.mxu0 }
 0x134   : > { %v1430_v54 = vpop.f32.mrf.mxu3  ;;  %v980_v46 = vpop.f32.mrf.mxu1 }
 0x135   : > { %v1498_v22 = vadd.f32 %v1430_v54, %v1364_v28  ;;  %v1157_v54 = vrot.slane %v4050_v24, 5 }
 0x136   : > { %2677 = vmatmul.msk.bf16.gmra.mxu0 %vm673_vm4, %v4046_v5  ;;  %v4052_v5 = vld [vmem:[#allocation5_spill] sm:$0xff] }
 0x137   : > { %v1298_v39 = vpop.f32.mrf.mxu2  ;;  %2607 = vmatmul.msk.bf16.gmra.mxu1 %vm673_vm4, %v3540_v61  ;;  %v3557_v38 = vadd.f32 %v1586_v11, %v1498_v22  ;;  %v2624_v18 = vrot.slane %v4052_v5, 9  ;;  %v1156_v11 = vrot.slane %v1154_v17, 4  ;;  %v981_v22 = vadd.f32 %v980_v46, %v3305_v9 }
 0x138   : > { %v1365_v51 = vadd.f32 %v1298_v39, %v978_v60 }
 0x139   : > { %4047 = vst [vmem:[#allocation38_spill] sm:$0xff] %v3557_v38  ;;  %v1155_v39 = vsel %vm3187_vm7, %v2624_v18, %v1154_v17  ;;  %v3584_v18 = vld [vmem:[%s2857_s27 + $0xc0] sm:$0xf] }
 0x13a   : > { %v1196_v24 = vunpack.c.l.b16 %v1155_v39  ;;  %4055 = vst [vmem:[#allocation5_spill] sm:$0xff] %v3584_v18  ;;  %v1523_v39 = vshrl.u32 %v3584_v18, 16 }
 0x13b   : > { %v1588_v30 = vpop.f32.mrf.mxu0 }
 0x13c   : > { %v1432_v2 = vpop.f32.mrf.mxu3  ;;  %2640 = vmatmul.msk.bf16.gmra.mxu2 %vm673_vm4, %v3559_v7  ;;  %v982_v28 = vpop.f32.mrf.mxu1  ;;  %v4054_v7 = vld [vmem:[#allocation10_spill] sm:$0xff] }
 0x13d   : > { %v1499_v43 = vadd.f32 %v1432_v2, %v1365_v51  ;;  %v1158_v51 = vsel %vm3187_vm7, %v1156_v11, %v1157_v54 }
 0x13e   : > { %v1197_v9 = vunpack.c.l.b16 %v1158_v51 }
 0x13f   : > { %v1301_v49 = vpop.f32.mrf.mxu2  ;;  %v3570_v15 = vadd.f32 %v1588_v30, %v1499_v43  ;;  %v983_v30 = vadd.f32 %v982_v28, %v3323_v29  ;;  %v1526_v29 = vshll.u32 %v3584_v18, 16 }
 0x140   : > { %v1366_v60 = vadd.f32 %v1301_v49, %v981_v22  ;;  %v3588_v11 = vpack.c.b16 %v1197_v9, %v1196_v24  ;;  %v3591_v22 = vld [vmem:[%s2857_s27 + $0xc4] sm:$0xf]  ;;  %v4059_v49 = vld [vmem:[#allocation12_spill] sm:$0xff]  ;;  %v4060_v24 = vld [vmem:[#allocation13_spill] sm:$0xff] }
 0x141   : > { %4053 = vst [vmem:[#allocation7_spill] sm:$0xff] %v3570_v15  ;;  %2661 = vmatmul.msk.bf16.gmra.mxu3 %vm673_vm4, %v3566_v34  ;;  %v1532_v28 = vshll.u32 %v3591_v22, 16  ;;  %v1164_v9 = vrot.slane %v4060_v24, 5  ;;  %v1525_v15 = vrot.slane %v1523_v39, 4  ;;  %v1528_v38 = vrot.slane %v1526_v29, 5 }
 0x142   : > { %4057 = vst [vmem:[#allocation41_spill] sm:$0xff] %v3588_v11 }
 0x143   : > { %v1591_v31 = vpop.f32.mrf.mxu0  ;;  %4058 = vst [vmem:[#allocation42_spill] sm:$0xff] %v3591_v22 }
 0x144   : > { %v1435_v5 = vpop.f32.mrf.mxu3  ;;  %v985_v2 = vpop.f32.mrf.mxu1 }
 0x145   : > { %v1500_v46 = vadd.f32 %v1435_v5, %v1366_v60  ;;  %v1161_v60 = vrot.slane %v4059_v49, 5  ;;  %v1536_v5 = vshrl.u32 %v3591_v22, 16  ;;  %v986_v18 = vadd.f32 %v985_v2, %v3343_v48 }
 0x146   : > { %2678 = vmatmul.msk.bf16.gmra.mxu0 %vm673_vm4, %v4054_v7  ;;  %v1534_v22 = vrot.slane %v1532_v28, 5  ;;  %v1529_v2 = vor.u32 %v1528_v38, %v1525_v15 }
 0x147   : > { %v1303_v43 = vpop.f32.mrf.mxu2  ;;  %2608 = vmatmul.msk.bf16.gmra.mxu1 %vm673_vm4, %v3566_v34  ;;  %v3586_v17 = vadd.f32 %v1591_v31, %v1500_v46  ;;  %v1538_v61 = vrot.slane %v1536_v5, 4 }
 0x148   : > { %v1367_v54 = vadd.f32 %v1303_v43, %v983_v30  ;;  %v3602_v30 = vld [vmem:[%s2857_s27 + $0xb4] sm:$0xff]  ;;  %v4061_v43 = vld [vmem:[#allocation11_spill] sm:$0xff] }
 0x149   : > { %4056 = vst [vmem:[#allocation40_spill] sm:$0xff] %v3586_v17  ;;  %v2625_v49 = vrot.slane %v4061_v43, 9  ;;  %v1163_v17 = vrot.slane %v1161_v60, 4  ;;  %v1539_v39 = vor.u32 %v1538_v61, %v1534_v22 }
 0x14b   : > { %v1593_v51 = vpop.f32.mrf.mxu0  ;;  %v1540_v38 = vrot.slane %v1539_v39, 4 }
 0x14c   : > { %v1437_v7 = vpop.f32.mrf.mxu3  ;;  %2641 = vmatmul.msk.bf16.gmra.mxu2 %vm673_vm4, %v3588_v11  ;;  %v987_v31 = vpop.f32.mrf.mxu1  ;;  %v3609_v11 = vld [vmem:[%s2857_s27 + $0xc8] sm:$0x1] }
 0x14d   : > { %v1501_v46 = vadd.f32 %v1437_v7, %v1367_v54  ;;  %v1162_v7 = vsel %vm3187_vm7, %v2625_v49, %v1161_v60  ;;  %v1165_v54 = vsel %vm3187_vm7, %v1163_v17, %v1164_v9  ;;  %v1542_v29 = vshll.u32 %v3609_v11, 16 }
 0x14e   : > { %v1198_v5 = vunpack.c.l.b16 %v1162_v7  ;;  %v988_v24 = vadd.f32 %v987_v31, %v3364_v63  ;;  %v1530_v17 = vrot.slane %v1529_v2, 4 }
 0x14f   : > { %v1306_v34 = vpop.f32.mrf.mxu2  ;;  %v3606_v47 = vadd.f32 %v1593_v51, %v1501_v46  ;;  %v1544_v61 = vrot.slane %v1542_v29, 5 }
 0x150   : > { %v1368_v58 = vadd.f32 %v1306_v34, %v986_v18  ;;  %v1199_v34 = vunpack.c.l.b16 %v1165_v54  ;;  %v3634_v54 = vld [vmem:[%s2857_s27 + $0xc0] sm:$0xff] }
 0x151   : > { %2662 = vmatmul.msk.bf16.gmra.mxu3 %vm673_vm4, %v3602_v30  ;;  %v1545_v63 = vsel %vm2884_vm3, %v1540_v38, %v1544_v61 }
 0x152   : > { %v3625_v46 = vpack.c.b16 %v1199_v34, %v1198_v5  ;;  %v1549_v39 = vunpack.c.l.b16 %v1545_v63 }
 0x153   : > { %v1596_v48 = vpop.f32.mrf.mxu0 }
 0x154   : > { %v1440_v28 = vpop.f32.mrf.mxu3  ;;  %v990_v51 = vpop.f32.mrf.mxu1 }
 0x155   : > { %v1502_v18 = vadd.f32 %v1440_v28, %v1368_v58  ;;  %v1535_v58 = vsel %vm2884_vm3, %v1530_v17, %v1534_v22 }
 0x156   : > { %2679 = vmatmul.msk.bf16.gmra.mxu0 %vm673_vm4, %v3196_v53  ;;  %v1548_v2 = vunpack.c.l.b16 %v1535_v58 }
 0x157   : > { %v1308_v60 = vpop.f32.mrf.mxu2  ;;  %2609 = vmatmul.msk.bf16.gmra.mxu1 %vm673_vm4, %v3602_v30  ;;  %v3623_v15 = vadd.f32 %v1596_v48, %v1502_v18  ;;  %v991_v48 = vadd.f32 %v990_v51, %v3385_v26 }
 0x158   : > { %v1369_v9 = vadd.f32 %v1308_v60, %v988_v24  ;;  %v3641_v22 = vpack.c.b16 %v1549_v39, %v1548_v2 }
 0x15b   : > { %v1598_v43 = vpop.f32.mrf.mxu0 }
 0x15c   : > { %v1442_v31 = vpop.f32.mrf.mxu3  ;;  %2642 = vmatmul.msk.bf16.gmra.mxu2 %vm673_vm4, %v3625_v46  ;;  %v992_v49 = vpop.f32.mrf.mxu1 }
 0x15d   : > { %v1503_v7 = vadd.f32 %v1442_v31, %v1369_v9  ;;  %v993_v26 = vadd.f32 %v992_v49, %v3402_v0 }
 0x15f   : > { %v1311_v29 = vpop.f32.mrf.mxu2  ;;  %v3637_v28 = vadd.f32 %v1598_v43, %v1503_v7 }
 0x160   : > { %v1370_v5 = vadd.f32 %v1311_v29, %v991_v48 }
 0x161   : > { %2663 = vmatmul.msk.bf16.gmra.mxu3 %vm673_vm4, %v3634_v54 }
 0x163   : > { %v1601_v34 = vpop.f32.mrf.mxu0 }
 0x164   : > { %v1445_v18 = vpop.f32.mrf.mxu3  ;;  %v995_v24 = vpop.f32.mrf.mxu1 }
 0x165   : > { %v1504_v60 = vadd.f32 %v1445_v18, %v1370_v5  ;;  %v996_v63 = vadd.f32 %v995_v24, %v3287_v16 }
 0x166   : > { %2680 = vmatmul.msk.bf16.gmra.mxu0 %vm673_vm4, %v3641_v22 }
 0x167   : > { %v1313_v51 = vpop.f32.mrf.mxu2  ;;  %2683 = vmatmul.msk.bf16.vlgmr.msra.gmra.mxu1 %vm673_vm4, %v3221_v55  ;;  %v3648_v17 = vadd.f32 %v1601_v34, %v1504_v60 }
 0x168   : > { %v1371_v38 = vadd.f32 %v1313_v51, %v993_v26 }
 0x16b   : > { %v1603_v61 = vpop.f32.mrf.mxu0 }
 0x16c   : > { %v1447_v9 = vpop.f32.mrf.mxu3  ;;  %2704 = vmatmul.msk.bf16.vlgmr.msra.gmra.mxu2 %vm673_vm4, %v3233_v6  ;;  %v997_v43 = vpop.f32.mrf.mxu1 }
 0x16d   : > { %v1505_v58 = vadd.f32 %v1447_v9, %v1371_v38  ;;  %v998_v6 = vadd.f32 %v997_v43, %v3309_v57 }
 0x16f   : > { %v1316_v31 = vpop.f32.mrf.mxu2  ;;  %v3653_v7 = vadd.f32 %v1603_v61, %v1505_v58 }
 0x170   : > { %v1372_v0 = vadd.f32 %v1316_v31, %v996_v63 }
 0x171   : > { %2721 = vmatmul.msk.bf16.vlgmr.msra.gmra.mxu3 %vm673_vm4, %v3124_v45 }
 0x173   : > { %v1606_v55 = vpop.f32.mrf.mxu0 }
 0x174   : > { %v1450_v49 = vpop.f32.mrf.mxu3  ;;  %v1000_v48 = vpop.f32.mrf.mxu1 }
 0x175   : > { %v1506_v2 = vadd.f32 %v1450_v49, %v1372_v0  ;;  %v1001_v24 = vadd.f32 %v1000_v48, %v3329_v59 }
 0x176   : > { %2739 = vmatmul.msk.bf16.vlgmr.msra.gmra.mxu0 %vm673_vm4, %v3247_v52 }
 0x177   : > { %v1318_v39 = vpop.f32.mrf.mxu2  ;;  %2684 = vmatmul.msk.bf16.gmra.mxu1 %vm673_vm4, %v3247_v52  ;;  %v3662_v16 = vadd.f32 %v1606_v55, %v1506_v2 }
 0x178   : > { %v1373_v29 = vadd.f32 %v1318_v39, %v998_v6 }
 0x17b   : > { %v1608_v5 = vpop.f32.mrf.mxu0 }
 0x17c   : > { %v1452_v34 = vpop.f32.mrf.mxu3  ;;  %2705 = vmatmul.msk.bf16.gmra.mxu2 %vm673_vm4, %v3253_v41  ;;  %v1002_v45 = vpop.f32.mrf.mxu1 }
 0x17d   : > { %v1507_v18 = vadd.f32 %v1452_v34, %v1373_v29  ;;  %v1003_v41 = vadd.f32 %v1002_v45, %v3347_v3 }
 0x17f   : > { %v1321_v60 = vpop.f32.mrf.mxu2  ;;  %v3667_v26 = vadd.f32 %v1608_v5, %v1507_v18 }
 0x180   : > { %v1374_v57 = vadd.f32 %v1321_v60, %v1001_v24 }
 0x181   : > { %2722 = vmatmul.msk.bf16.gmra.mxu3 %vm673_vm4, %v3214_v20 }
 0x183   : > { %v1611_v52 = vpop.f32.mrf.mxu0 }
 0x184   : > { %v1455_v51 = vpop.f32.mrf.mxu3  ;;  %v1005_v38 = vpop.f32.mrf.mxu1 }
 0x185   : > { %v1508_v61 = vadd.f32 %v1455_v51, %v1374_v57  ;;  %v1006_v0 = vadd.f32 %v1005_v38, %v3366_v23 }
 0x186   : > { %2740 = vmatmul.msk.bf16.gmra.mxu0 %vm673_vm4, %v3267_v40 }
 0x187   : > { %v1323_v9 = vpop.f32.mrf.mxu2  ;;  %2685 = vmatmul.msk.bf16.gmra.mxu1 %vm673_vm4, %v3267_v40  ;;  %v3676_v59 = vadd.f32 %v1611_v52, %v1508_v61 }
 0x188   : > { %v1375_v43 = vadd.f32 %v1323_v9, %v1003_v41 }
 0x18b   : > { %v1613_v58 = vpop.f32.mrf.mxu0 }
 0x18c   : > { %v1457_v63 = vpop.f32.mrf.mxu3  ;;  %2706 = vmatmul.msk.bf16.gmra.mxu2 %vm673_vm4, %v3275_v8  ;;  %v1007_v20 = vpop.f32.mrf.mxu1 }
 0x18d   : > { %v1509_v31 = vadd.f32 %v1457_v63, %v1375_v43  ;;  %v1008_v8 = vadd.f32 %v1007_v20, %v3387_v1  ;;  %v4062_v43 = vld [vmem:[#allocation18_spill] sm:$0xff]  ;;  %v4063_v63 = vld [vmem:[#allocation16_spill] sm:$0xff] }
 0x18f   : > { %v1326_v55 = vpop.f32.mrf.mxu2  ;;  %v3681_v49 = vadd.f32 %v1613_v58, %v1509_v31 }
 0x190   : > { %v1376_v3 = vadd.f32 %v1326_v55, %v1006_v0  ;;  %v4064_v55 = vld [vmem:[#allocation8_spill] sm:$0xff] }
 0x191   : > { %2723 = vmatmul.msk.bf16.gmra.mxu3 %vm673_vm4, %v2896_v62 }
 0x193   : > { %v1616_v40 = vpop.f32.mrf.mxu0 }
 0x194   : > { %v1460_v48 = vpop.f32.mrf.mxu3  ;;  %v1010_v2 = vpop.f32.mrf.mxu1 }
 0x195   : > { %v1510_v6 = vadd.f32 %v1460_v48, %v1376_v3  ;;  %v1011_v18 = vadd.f32 %v1010_v2, %v3409_v56  ;;  %v4065_v2 = vld [vmem:[#allocation21_spill] sm:$0xff] }
 0x196   : > { %2741 = vmatmul.msk.bf16.gmra.mxu0 %vm673_vm4, %v3295_v12 }
 0x197   : > { %v1328_v39 = vpop.f32.mrf.mxu2  ;;  %2686 = vmatmul.msk.bf16.gmra.mxu1 %vm673_vm4, %v3295_v12  ;;  %v3690_v23 = vadd.f32 %v1616_v40, %v1510_v6  ;;  %v4066_v6 = vld [vmem:[#allocation17_spill] sm:$0xff] }
 0x198   : > { %v1377_v29 = vadd.f32 %v1328_v39, %v1008_v8 }
 0x19b   : > { %v1618_v5 = vpop.f32.mrf.mxu0 }
 0x19c   : > { %v1462_v34 = vpop.f32.mrf.mxu3  ;;  %2707 = vmatmul.msk.bf16.gmra.mxu2 %vm673_vm4, %v3303_v27  ;;  %v1012_v62 = vpop.f32.mrf.mxu1 }
 0x19d   : > { %v1511_v45 = vadd.f32 %v1462_v34, %v1377_v29  ;;  %v1013_v27 = vadd.f32 %v1012_v62, %v3424_v44 }
 0x19f   : > { %v1331_v24 = vpop.f32.mrf.mxu2  ;;  %v3695_v60 = vadd.f32 %v1618_v5, %v1511_v45  ;;  %v4067_v45 = vld [vmem:[#allocation22_spill] sm:$0xff] }
 0x1a0   : > { %v1378_v1 = vadd.f32 %v1331_v24, %v1011_v18 }
 0x1a1   : > { %2724 = vmatmul.msk.bf16.gmra.mxu3 %vm673_vm4, %v2970_v37 }
 0x1a3   : > { %v1621_v12 = vpop.f32.mrf.mxu0 }
 0x1a4   : > { %v1465_v57 = vpop.f32.mrf.mxu3  ;;  %v1015_v52 = vpop.f32.mrf.mxu1 }
 0x1a5   : > { %v1512_v51 = vadd.f32 %v1465_v57, %v1378_v1  ;;  %v1016_v20 = vadd.f32 %v1015_v52, %v4063_v63  ;;  %v4068_v1 = vld [vmem:[#allocation19_spill] sm:$0xff] }
 0x1a6   : > { %2742 = vmatmul.msk.bf16.gmra.mxu0 %vm673_vm4, %v3327_v33 }
 0x1a7   : > { %v1333_v38 = vpop.f32.mrf.mxu2  ;;  %2687 = vmatmul.msk.bf16.gmra.mxu1 %vm673_vm4, %v3327_v33  ;;  %v3704_v56 = vadd.f32 %v1621_v12, %v1512_v51 }
 0x1a8   : > { %v1379_v61 = vadd.f32 %v1333_v38, %v1013_v27  ;;  %v4069_v27 = vld [vmem:[#allocation14_spill] sm:$0xff] }
 0x1ab   : > { %v1623_v41 = vpop.f32.mrf.mxu0 }
 0x1ac   : > { %v1467_v9 = vpop.f32.mrf.mxu3  ;;  %2708 = vmatmul.msk.bf16.gmra.mxu2 %vm673_vm4, %v4062_v43  ;;  %v1017_v37 = vpop.f32.mrf.mxu1  ;;  %v4070_v43 = vld [vmem:[#allocation24_spill] sm:$0xff] }
 0x1ad   : > { %v1513_v58 = vadd.f32 %v1467_v9, %v1379_v61  ;;  %v1018_v8 = vadd.f32 %v1017_v37, %v4066_v6  ;;  %v4071_v37 = vld [vmem:[#allocation20_spill] sm:$0xff] }
 0x1af   : > { %v1336_v31 = vpop.f32.mrf.mxu2  ;;  %v3709_v0 = vadd.f32 %v1623_v41, %v1513_v58 }
 0x1b0   : > { %v1380_v44 = vadd.f32 %v1336_v31, %v1016_v20 }
 0x1b1   : > { %2725 = vmatmul.msk.bf16.gmra.mxu3 %vm673_vm4, %v4064_v55 }
 0x1b3   : > { %v1626_v33 = vpop.f32.mrf.mxu0 }
 0x1b4   : > { %v1470_v3 = vpop.f32.mrf.mxu3  ;;  %v1020_v40 = vpop.f32.mrf.mxu1 }
 0x1b5   : > { %v1514_v48 = vadd.f32 %v1470_v3, %v1380_v44  ;;  %v1021_v12 = vadd.f32 %v1020_v40, %v4068_v1  ;;  %v4076_v1 = vld [vmem:[#allocation25_spill] sm:$0xff] }
 0x1b6   : > { %2743 = vmatmul.msk.bf16.gmra.mxu0 %vm673_vm4, %v4065_v2 }
 0x1b7   : > { %v1338_v39 = vpop.f32.mrf.mxu2  ;;  %2688 = vmatmul.msk.bf16.gmra.mxu1 %vm673_vm4, %v4065_v2  ;;  %v3718_v29 = vadd.f32 %v1626_v33, %v1514_v48  ;;  %v4072_v33 = vld [vmem:[#allocation26_spill] sm:$0xff]  ;;  %v4073_v48 = vld [vmem:[#allocation23_spill] sm:$0xff] }
 0x1b8   : > { %v1381_v5 = vadd.f32 %v1338_v39, %v1018_v8 }
 0x1bb   : > { %v1628_v34 = vpop.f32.mrf.mxu0 }
 0x1bc   : > { %v1472_v62 = vpop.f32.mrf.mxu3  ;;  %2709 = vmatmul.msk.bf16.gmra.mxu2 %vm673_vm4, %v4067_v45  ;;  %v1022_v18 = vpop.f32.mrf.mxu1 }
 0x1bd   : > { %v1515_v24 = vadd.f32 %v1472_v62, %v1381_v5  ;;  %v1023_v58 = vadd.f32 %v1022_v18, %v4071_v37  ;;  %v4074_v5 = vld [vmem:[#allocation2_spill] sm:$0xff] }
 0x1bf   : > { %v1341_v57 = vpop.f32.mrf.mxu2  ;;  %v3723_v52 = vadd.f32 %v1628_v34, %v1515_v24  ;;  %v4075_v24 = vld [vmem:[#allocation28_spill] sm:$0xff] }
 0x1c0   : > { %v1382_v51 = vadd.f32 %v1341_v57, %v1021_v12 }
 0x1c1   : > { %2726 = vmatmul.msk.bf16.gmra.mxu3 %vm673_vm4, %v4069_v27 }
 0x1c3   : > { %v1631_v38 = vpop.f32.mrf.mxu0 }
 0x1c4   : > { %v1475_v61 = vpop.f32.mrf.mxu3  ;;  %v1025_v41 = vpop.f32.mrf.mxu1 }
 0x1c5   : > { %v1516_v9 = vadd.f32 %v1475_v61, %v1382_v51  ;;  %v1026_v2 = vadd.f32 %v1025_v41, %v4073_v48 }
 0x1c6   : > { %2744 = vmatmul.msk.bf16.gmra.mxu0 %vm673_vm4, %v4070_v43 }
 0x1c7   : > { %v1343_v63 = vpop.f32.mrf.mxu2  ;;  %2689 = vmatmul.msk.bf16.gmra.mxu1 %vm673_vm4, %v4070_v43  ;;  %v3732_v20 = vadd.f32 %v1631_v38, %v1516_v9  ;;  %v4077_v43 = vld [vmem:[#allocation27_spill] sm:$0xff] }
 0x1c8   : > { %v1383_v31 = vadd.f32 %v1343_v63, %v1023_v58 }
 0x1cb   : > { %v1633_v44 = vpop.f32.mrf.mxu0 }
 0x1cc   : > { %v1477_v55 = vpop.f32.mrf.mxu3  ;;  %2710 = vmatmul.msk.bf16.gmra.mxu2 %vm673_vm4, %v4072_v33  ;;  %v1027_v3 = vpop.f32.mrf.mxu1 }
 0x1cd   : > { %v1517_v40 = vadd.f32 %v1477_v55, %v1383_v31  ;;  %v1028_v12 = vadd.f32 %v1027_v3, %v4076_v1 }
 0x1cf   : > { %v1346_v6 = vpop.f32.mrf.mxu2  ;;  %v3737_v8 = vadd.f32 %v1633_v44, %v1517_v40 }
 0x1d0   : > { %v1384_v39 = vadd.f32 %v1346_v6, %v1026_v2 }
 0x1d1   : > { %2727 = vmatmul.msk.bf16.gmra.mxu3 %vm673_vm4, %v4074_v5 }
 0x1d3   : > { %v1636_v34 = vpop.f32.mrf.mxu0 }
 0x1d4   : > { %v1480_v62 = vpop.f32.mrf.mxu3  ;;  %v1030_v45 = vpop.f32.mrf.mxu1 }
 0x1d5   : > { %v1518_v18 = vadd.f32 %v1480_v62, %v1384_v39  ;;  %v1031_v37 = vadd.f32 %v1030_v45, %v4077_v43  ;;  %v4079_v43 = vld [vmem:[#allocation9_spill] sm:$0xff] }
 0x1d6   : > { %2745 = vmatmul.msk.bf16.gmra.mxu0 %vm673_vm4, %v4075_v24 }
 0x1d7   : > { %v1348_v57 = vpop.f32.mrf.mxu2  ;;  %2690 = vmatmul.msk.bf16.gmra.mxu1 %vm673_vm4, %v4075_v24  ;;  %v3746_v51 = vadd.f32 %v1636_v34, %v1518_v18 }
 0x1d8   : > { %v1385_v27 = vadd.f32 %v1348_v57, %v1028_v12 }
 0x1db   : > { %v1638_v38 = vpop.f32.mrf.mxu0 }
 0x1dc   : > { %v1482_v61 = vpop.f32.mrf.mxu3  ;;  %2711 = vmatmul.msk.bf16.gmra.mxu2 %vm673_vm4, %v3439_v19  ;;  %v1032_v41 = vpop.f32.mrf.mxu1  ;;  %v4078_v19 = vld [vmem:[#allocation29_spill] sm:$0xff] }
 0x1dd   : > { %v1519_v9 = vadd.f32 %v1482_v61, %v1385_v27  ;;  %v1033_v48 = vadd.f32 %v1032_v41, %v4078_v19 }
 0x1df   : > { %v1351_v58 = vpop.f32.mrf.mxu2  ;;  %v3751_v63 = vadd.f32 %v1638_v38, %v1519_v9 }
 0x1e0   : > { %v1386_v31 = vadd.f32 %v1351_v58, %v1031_v37 }
 0x1e1   : > { %2728 = vmatmul.msk.bf16.gmra.mxu3 %vm673_vm4, %v2995_v4 }
 0x1e3   : > { %v1641_v44 = vpop.f32.mrf.mxu0 }
 0x1e4   : > { %v1485_v55 = vpop.f32.mrf.mxu3  ;;  %v1706_v33 = vpop.f32.mrf.mxu1 }
 0x1e5   : > { %v1520_v3 = vadd.f32 %v1485_v55, %v1386_v31  ;;  %v1786_v40 = vadd.f32 %v1706_v33, %v3454_v32 }
 0x1e6   : > { %2746 = vmatmul.msk.bf16.gmra.mxu0 %vm673_vm4, %v3456_v10 }
 0x1e7   : > { %v1353_v2 = vpop.f32.mrf.mxu2  ;;  %2691 = vmatmul.msk.bf16.gmra.mxu1 %vm673_vm4, %v3456_v10  ;;  %v3761_v6 = vadd.f32 %v1641_v44, %v1520_v3  ;;  %v4080_v3 = vld [vmem:[#allocation15_spill] sm:$0xff] }
 0x1e8   : > { %v1387_v39 = vadd.f32 %v1353_v2, %v1033_v48 }
 0x1eb   : > { %v1643_v5 = vpop.f32.mrf.mxu0 }
 0x1ec   : > { %v1487_v4 = vpop.f32.mrf.mxu3  ;;  %2712 = vmatmul.msk.bf16.gmra.mxu2 %vm673_vm4, %v3463_v42  ;;  %v1708_v34 = vpop.f32.mrf.mxu1 }
 0x1ed   : > { %v1521_v62 = vadd.f32 %v1487_v4, %v1387_v39  ;;  %v1787_v32 = vadd.f32 %v1708_v34, %v3467_v35  ;;  %v4081_v34 = vld [vmem:[#allocation30_spill] sm:$0xff] }
 0x1ef   : > { %v1840_v45 = vpop.f32.mrf.mxu2  ;;  %v3766_v18 = vadd.f32 %v1643_v5, %v1521_v62 }
 0x1f0   : > { %v1920_v24 = vadd.f32 %v1840_v45, %v1786_v40 }
 0x1f1   : > { %2729 = vmatmul.msk.bf16.gmra.mxu3 %vm673_vm4, %v3080_v25 }
 0x1f3   : > { %v2136_v10 = vpop.f32.mrf.mxu0 }
 0x1f4   : > { %v1996_v1 = vpop.f32.mrf.mxu3  ;;  %v1711_v12 = vpop.f32.mrf.mxu1 }
 0x1f5   : > { %v2076_v57 = vadd.f32 %v1996_v1, %v1920_v24  ;;  %v1788_v27 = vadd.f32 %v1711_v12, %v3480_v21 }
 0x1f6   : > { %2747 = vmatmul.msk.bf16.gmra.mxu0 %vm673_vm4, %v3482_v13 }
 0x1f7   : > { %v2216_v42 = vadd.f32 %v2136_v10, %v2076_v57  ;;  %v1842_v38 = vpop.f32.mrf.mxu2  ;;  %2692 = vmatmul.msk.bf16.gmra.mxu1 %vm673_vm4, %v3482_v13 }
 0x1f8   : > { %v1921_v35 = vadd.f32 %v1842_v38, %v1787_v32  ;;  %v4082_v32 = vld [vmem:[#allocation31_spill] sm:$0xff] }
 0x1f9   : > { %v2318_v21 = vmul.f32 %v2216_v42, %v2216_v42  ;;  %v2249_v55 = vsel %vm2248_vm8, %v2216_v42, 0.0 }
 0x1fb   : > { %v2138_v61 = vpop.f32.mrf.mxu0 }
 0x1fc   : > { %v1998_v41 = vpop.f32.mrf.mxu3  ;;  %2713 = vmatmul.msk.bf16.gmra.mxu2 %vm673_vm4, %v3489_v50  ;;  %v1713_v25 = vpop.f32.mrf.mxu1  ;;  %v2350_v50 = vsel %vm2248_vm8, %v2318_v21, 0.0 }
 0x1fd   : > { %v2077_v9 = vadd.f32 %v1998_v41, %v1921_v35  ;;  %v1789_v37 = vadd.f32 %v1713_v25, %v4079_v43 }
 0x1ff   : > { %v2217_v58 = vadd.f32 %v2138_v61, %v2077_v9  ;;  %v1845_v31 = vpop.f32.mrf.mxu2  ;;  %v4083_v61 = vld [vmem:[#allocation32_spill] sm:$0xff]  ;;  %v4084_v9 = vld [vmem:[#allocation33_spill] sm:$0xff] }
 0x200   : > { %v1922_v44 = vadd.f32 %v1845_v31, %v1788_v27 }
 0x201   : > { %v2250_v33 = vsel %vm2248_vm8, %v2217_v58, 0.0  ;;  %v2319_v13 = vmul.f32 %v2217_v58, %v2217_v58  ;;  %2730 = vmatmul.msk.bf16.gmra.mxu3 %vm673_vm4, %v4080_v3 }
 0x202   : > { %v2251_v40 = vadd.f32 %v2250_v33, %v2249_v55  ;;  %v4085_v55 = vld [vmem:[#allocation3_spill] sm:$0xff] }
 0x203   : > { %v2351_v19 = vsel %vm2248_vm8, %v2319_v13, 0.0  ;;  %v2141_v48 = vpop.f32.mrf.mxu0 }
 0x204   : > { %v2352_v2 = vadd.f32 %v2351_v19, %v2350_v50  ;;  %v2001_v39 = vpop.f32.mrf.mxu3  ;;  %v1716_v5 = vpop.f32.mrf.mxu1 }
 0x205   : > { %v2078_v4 = vadd.f32 %v2001_v39, %v1922_v44  ;;  %v1790_v62 = vadd.f32 %v1716_v5, %v4081_v34  ;;  %v4087_v5 = vld [vmem:[#allocation35_spill] sm:$0xff] }
 0x206   : > { %2748 = vmatmul.msk.bf16.gmra.mxu0 %vm673_vm4, %v4082_v32 }
 0x207   : > { %v2218_v45 = vadd.f32 %v2141_v48, %v2078_v4  ;;  %v1847_v24 = vpop.f32.mrf.mxu2  ;;  %2693 = vmatmul.msk.bf16.gmra.mxu1 %vm673_vm4, %v4082_v32 }
 0x208   : > { %v1923_v10 = vadd.f32 %v1847_v24, %v1789_v37 }
 0x209   : > { %v2252_v1 = vsel %vm2248_vm8, %v2218_v45, 0.0  ;;  %v2320_v12 = vmul.f32 %v2218_v45, %v2218_v45 }
 0x20a   : > { %v2253_v57 = vadd.f32 %v2252_v1, %v2251_v40 }
 0x20b   : > { %v2353_v27 = vsel %vm2248_vm8, %v2320_v12, 0.0  ;;  %v2143_v42 = vpop.f32.mrf.mxu0 }
 0x20c   : > { %v2354_v38 = vadd.f32 %v2353_v27, %v2352_v2  ;;  %v2003_v35 = vpop.f32.mrf.mxu3  ;;  %2714 = vmatmul.msk.bf16.gmra.mxu2 %vm673_vm4, %v4083_v61  ;;  %v1718_v41 = vpop.f32.mrf.mxu1  ;;  %v4086_v2 = vld [vmem:[#allocation34_spill] sm:$0xff]  ;;  %v4088_v27 = vld [vmem:[#allocation36_spill] sm:$0xff] }
 0x20d   : > { %v2079_v25 = vadd.f32 %v2003_v35, %v1923_v10  ;;  %v1791_v43 = vadd.f32 %v1718_v41, %v4084_v9  ;;  %v4089_v35 = vld [vmem:[#allocation37_spill] sm:$0xff] }
 0x20f   : > { %v2219_v21 = vadd.f32 %v2143_v42, %v2079_v25  ;;  %v1850_v58 = vpop.f32.mrf.mxu2 }
 0x210   : > { %v1924_v31 = vadd.f32 %v1850_v58, %v1790_v62  ;;  %v4090_v58 = vld [vmem:[#allocation4_spill] sm:$0xff] }
 0x211   : > { %v2254_v37 = vsel %vm2248_vm8, %v2219_v21, 0.0  ;;  %v2321_v44 = vmul.f32 %v2219_v21, %v2219_v21  ;;  %2731 = vmatmul.msk.bf16.gmra.mxu3 %vm673_vm4, %v4085_v55 }
 0x212   : > { %v2255_v33 = vadd.f32 %v2254_v37, %v2253_v57 }
 0x213   : > { %v2355_v13 = vsel %vm2248_vm8, %v2321_v44, 0.0  ;;  %v2146_v3 = vpop.f32.mrf.mxu0 }
 0x214   : > { %v2356_v40 = vadd.f32 %v2355_v13, %v2354_v38  ;;  %v2006_v50 = vpop.f32.mrf.mxu3  ;;  %v1721_v19 = vpop.f32.mrf.mxu1 }
 0x215   : > { %v2080_v48 = vadd.f32 %v2006_v50, %v1924_v31  ;;  %v1792_v39 = vadd.f32 %v1721_v19, %v4086_v2  ;;  %v4092_v19 = vld [vmem:[#allocation39_spill] sm:$0xff] }
 0x216   : > { %2749 = vmatmul.msk.bf16.gmra.mxu0 %vm673_vm4, %v4087_v5 }
 0x217   : > { %v2220_v4 = vadd.f32 %v2146_v3, %v2080_v48  ;;  %v1852_v34 = vpop.f32.mrf.mxu2  ;;  %2694 = vmatmul.msk.bf16.gmra.mxu1 %vm673_vm4, %v4087_v5 }
 0x218   : > { %v1925_v62 = vadd.f32 %v1852_v34, %v1791_v43 }
 0x219   : > { %v2256_v32 = vsel %vm2248_vm8, %v2220_v4, 0.0  ;;  %v2322_v45 = vmul.f32 %v2220_v4, %v2220_v4 }
 0x21a   : > { %v2257_v24 = vadd.f32 %v2256_v32, %v2255_v33 }
 0x21b   : > { %v2357_v10 = vsel %vm2248_vm8, %v2322_v45, 0.0  ;;  %v2148_v1 = vpop.f32.mrf.mxu0 }
 0x21c   : > { %v2358_v12 = vadd.f32 %v2357_v10, %v2356_v40  ;;  %v2008_v57 = vpop.f32.mrf.mxu3  ;;  %2715 = vmatmul.msk.bf16.gmra.mxu2 %vm673_vm4, %v4088_v27  ;;  %v1723_v42 = vpop.f32.mrf.mxu1  ;;  %v4091_v40 = vld [vmem:[#allocation38_spill] sm:$0xff] }
 0x21d   : > { %v2081_v38 = vadd.f32 %v2008_v57, %v1925_v62  ;;  %v1793_v61 = vadd.f32 %v1723_v42, %v4089_v35  ;;  %v4093_v10 = vld [vmem:[#allocation6_spill] sm:$0xff]  ;;  %v4094_v57 = vld [vmem:[#allocation7_spill] sm:$0xff] }
 0x21f   : > { %v2221_v41 = vadd.f32 %v2148_v1, %v2081_v38  ;;  %v1855_v25 = vpop.f32.mrf.mxu2 }
 0x220   : > { %v1926_v9 = vadd.f32 %v1855_v25, %v1792_v39  ;;  %v4095_v25 = vld [vmem:[#allocation10_spill] sm:$0xff] }
 0x221   : > { %v2258_v43 = vsel %vm2248_vm8, %v2221_v41, 0.0  ;;  %v2323_v21 = vmul.f32 %v2221_v41, %v2221_v41  ;;  %2732 = vmatmul.msk.bf16.gmra.mxu3 %vm673_vm4, %v4090_v58 }
 0x222   : > { %v2259_v31 = vadd.f32 %v2258_v43, %v2257_v24 }
 0x223   : > { %v2359_v37 = vsel %vm2248_vm8, %v2323_v21, 0.0  ;;  %v2151_v44 = vpop.f32.mrf.mxu0 }
 0x224   : > { %v2360_v55 = vadd.f32 %v2359_v37, %v2358_v12  ;;  %v2011_v33 = vpop.f32.mrf.mxu3  ;;  %v1726_v13 = vpop.f32.mrf.mxu1 }
 0x225   : > { %v2082_v3 = vadd.f32 %v2011_v33, %v1926_v9  ;;  %v1794_v50 = vadd.f32 %v1726_v13, %v4091_v40  ;;  %v4097_v13 = vld [vmem:[#allocation41_spill] sm:$0xff] }
 0x226   : > { %2750 = vmatmul.msk.bf16.gmra.mxu0 %vm673_vm4, %v4092_v19 }
 0x227   : > { %v2222_v48 = vadd.f32 %v2151_v44, %v2082_v3  ;;  %v1857_v2 = vpop.f32.mrf.mxu2  ;;  %2695 = vmatmul.msk.bf16.gmra.mxu1 %vm673_vm4, %v4092_v19 }
 0x228   : > { %v1927_v39 = vadd.f32 %v1857_v2, %v1793_v61 }
 0x229   : > { %v2260_v5 = vsel %vm2248_vm8, %v2222_v48, 0.0  ;;  %v2324_v4 = vmul.f32 %v2222_v48, %v2222_v48 }
 0x22a   : > { %v2261_v34 = vadd.f32 %v2260_v5, %v2259_v31 }
 0x22b   : > { %v2361_v62 = vsel %vm2248_vm8, %v2324_v4, 0.0  ;;  %v2153_v32 = vpop.f32.mrf.mxu0 }
 0x22c   : > { %v2362_v45 = vadd.f32 %v2361_v62, %v2360_v55  ;;  %v2013_v24 = vpop.f32.mrf.mxu3  ;;  %2716 = vmatmul.msk.bf16.gmra.mxu2 %vm673_vm4, %v4093_v10  ;;  %v1728_v1 = vpop.f32.mrf.mxu1  ;;  %v4096_v55 = vld [vmem:[#allocation40_spill] sm:$0xff] }
 0x22d   : > { %v2083_v12 = vadd.f32 %v2013_v24, %v1927_v39  ;;  %v1795_v27 = vadd.f32 %v1728_v1, %v4094_v57 }
 0x22f   : > { %v2223_v42 = vadd.f32 %v2153_v32, %v2083_v12  ;;  %v1860_v38 = vpop.f32.mrf.mxu2  ;;  %v4098_v12 = vld [vmem:[#allocation42_spill] sm:$0xff] }
 0x230   : > { %v1928_v35 = vadd.f32 %v1860_v38, %v1794_v50  ;;  %v1681_v57 = vrot.slane %v4098_v12, 5 }
 0x231   : > { %v2262_v61 = vsel %vm2248_vm8, %v2223_v42, 0.0  ;;  %v2325_v41 = vmul.f32 %v2223_v42, %v2223_v42  ;;  %2733 = vmatmul.msk.bf16.gmra.mxu3 %vm673_vm4, %v4095_v25 }
 0x232   : > { %v2263_v9 = vadd.f32 %v2262_v61, %v2261_v34 }
 0x233   : > { %v2363_v43 = vsel %vm2248_vm8, %v2325_v41, 0.0  ;;  %v2156_v21 = vpop.f32.mrf.mxu0  ;;  %v3845_v41 = vld [vmem:[%s2857_s27 + $0xd0] sm:$0xf] }
 0x234   : > { %v2364_v58 = vadd.f32 %v2363_v43, %v2362_v45  ;;  %v2016_v31 = vpop.f32.mrf.mxu3  ;;  %v1731_v37 = vpop.f32.mrf.mxu1  ;;  %v4099_v43 = vld [vmem:[#allocation5_spill] sm:$0xff] }
 0x235   : > { %v2084_v44 = vadd.f32 %v2016_v31, %v1928_v35  ;;  %v1796_v33 = vadd.f32 %v1731_v37, %v4096_v55  ;;  %v3841_v35 = vld [vmem:[%s2857_s27 + $0xcc] sm:$0xf] }
 0x236   : > { %2751 = vmatmul.msk.bf16.gmra.mxu0 %vm673_vm4, %v4097_v13  ;;  %v1956_v55 = vshll.u32 %v3841_v35, 16 }
 0x237   : > { %v2224_v3 = vadd.f32 %v2156_v21, %v2084_v44  ;;  %v1862_v40 = vpop.f32.mrf.mxu2  ;;  %2696 = vmatmul.msk.bf16.gmra.mxu1 %vm673_vm4, %v4097_v13  ;;  %v2681_v21 = vrot.slane %v4099_v43, 9  ;;  %v1684_v44 = vrot.slane %v3609_v11, 5  ;;  %v1966_v13 = vshrl.u32 %v3845_v41, 16 }
 0x238   : > { %v1929_v50 = vadd.f32 %v1862_v40, %v1795_v27 }
 0x239   : > { %v2264_v19 = vsel %vm2248_vm8, %v2224_v3, 0.0  ;;  %v2326_v48 = vmul.f32 %v2224_v3, %v2224_v3  ;;  %v1682_v11 = vsel %vm3187_vm7, %v2681_v21, %v1681_v57 }
 0x23a   : > { %v2265_v2 = vadd.f32 %v2264_v19, %v2263_v9  ;;  %v1688_v12 = vunpack.c.l.b16 %v1682_v11 }
 0x23b   : > { %v2365_v39 = vsel %vm2248_vm8, %v2326_v48, 0.0  ;;  %v2158_v5 = vpop.f32.mrf.mxu0 }
 0x23c   : > { %v2366_v4 = vadd.f32 %v2365_v39, %v2364_v58  ;;  %v2018_v34 = vpop.f32.mrf.mxu3  ;;  %2717 = vmatmul.msk.bf16.gmra.mxu2 %vm673_vm4, %v3602_v30  ;;  %v1733_v62 = vpop.f32.mrf.mxu1  ;;  %v1683_v58 = vrot.slane %v1681_v57, 4 }
 0x23d   : > { %v2085_v32 = vadd.f32 %v2018_v34, %v1929_v50  ;;  %v1797_v45 = vadd.f32 %v1733_v62, %v3606_v47  ;;  %v1968_v34 = vrot.slane %v1966_v13, 4 }
 0x23e   : > { %v1685_v48 = vsel %vm3187_vm7, %v1683_v58, %v1684_v44 }
 0x23f   : > { %v2225_v24 = vadd.f32 %v2158_v5, %v2085_v32  ;;  %v1865_v10 = vpop.f32.mrf.mxu2  ;;  %v1958_v5 = vrot.slane %v1956_v55, 5  ;;  %v1689_v57 = vunpack.c.l.b16 %v1685_v48  ;;  %v2111_v55 = vrot.slane %v3845_v41, 5 }
 0x240   : > { %v1930_v1 = vadd.f32 %v1865_v10, %v1796_v33  ;;  %v1962_v33 = vshll.u32 %v3845_v41, 16  ;;  %v2737_v41 = vrot.slane %v3841_v35, 9 }
 0x241   : > { %v2266_v27 = vsel %vm2248_vm8, %v2225_v24, 0.0  ;;  %v2327_v42 = vmul.f32 %v2225_v24, %v2225_v24  ;;  %2734 = vmatmul.msk.bf16.gmra.mxu3 %vm673_vm4, %v3196_v53  ;;  %v1953_v53 = vshrl.u32 %v3841_v35, 16  ;;  %v234_v24 = vld [vmem:[%s2857_s27 + $0xd4] sm:$0x1] }
 0x242   : > { %v2267_v38 = vadd.f32 %v2266_v27, %v2265_v2  ;;  %v2114_v48 = vrot.slane %v234_v24, 5 }
 0x243   : > { %v2367_v30 = vsel %vm2248_vm8, %v2327_v42, 0.0  ;;  %v2161_v61 = vpop.f32.mrf.mxu0  ;;  %v1955_v2 = vrot.slane %v1953_v53, 4 }
 0x244   : > { %v2368_v47 = vadd.f32 %v2367_v30, %v2366_v4  ;;  %v2021_v25 = vpop.f32.mrf.mxu3  ;;  %v1736_v9 = vpop.f32.mrf.mxu1  ;;  %v1964_v4 = vrot.slane %v1962_v33, 5  ;;  %v1972_v30 = vshll.u32 %v234_v24, 16 }
 0x245   : > { %v2086_v31 = vadd.f32 %v2021_v25, %v1930_v1  ;;  %v1798_v37 = vadd.f32 %v1736_v9, %v3623_v15  ;;  %v1959_v42 = vor.u32 %v1958_v5, %v1955_v2 }
 0x246   : > { %2752 = vmatmul.msk.bf16.gmra.mxu0 %vm673_vm4, %v3625_v46  ;;  %v1974_v44 = vrot.slane %v1972_v30, 5 }
 0x247   : > { %v2226_v3 = vadd.f32 %v2161_v61, %v2086_v31  ;;  %v1867_v40 = vpop.f32.mrf.mxu2  ;;  %2697 = vmatmul.msk.bf16.gmra.mxu1 %vm673_vm4, %v3625_v46  ;;  %v1960_v58 = vrot.slane %v1959_v42, 4 }
 0x248   : > { %v1931_v15 = vadd.f32 %v1867_v40, %v1797_v45 }
 0x249   : > { %v2268_v50 = vsel %vm2248_vm8, %v2226_v3, 0.0  ;;  %v2328_v19 = vmul.f32 %v2226_v3, %v2226_v3 }
 0x24a   : > { %v2269_v39 = vadd.f32 %v2268_v50, %v2267_v38  ;;  %v1969_v38 = vor.u32 %v1968_v34, %v1964_v4 }
 0x24b   : > { %v2369_v62 = vsel %vm2248_vm8, %v2328_v19, 0.0  ;;  %v2163_v32 = vpop.f32.mrf.mxu0  ;;  %v2113_v19 = vrot.slane %v2111_v55, 4 }
 0x24c   : > { %v2370_v46 = vadd.f32 %v2369_v62, %v2368_v47  ;;  %v2023_v45 = vpop.f32.mrf.mxu3  ;;  %2718 = vmatmul.msk.bf16.gmra.mxu2 %vm673_vm4, %v3634_v54  ;;  %v1738_v10 = vpop.f32.mrf.mxu1  ;;  %v1690_v47 = vpack.c.b16 %v1689_v57, %v1688_v12  ;;  %v1970_v31 = vrot.slane %v1969_v38, 4 }
 0x24d   : > { %v2087_v1 = vadd.f32 %v2023_v45, %v1931_v15  ;;  %v1799_v27 = vadd.f32 %v1738_v10, %v3637_v28  ;;  %v2115_v45 = vsel %vm3187_vm7, %v2113_v19, %v2114_v48 }
 0x24e   : > { %v1975_v15 = vsel %vm2884_vm3, %v1970_v31, %v1974_v44  ;;  %v2119_v42 = vunpack.c.l.b16 %v2115_v45 }
 0x24f   : > { %v2227_v61 = vadd.f32 %v2163_v32, %v2087_v1  ;;  %v1870_v25 = vpop.f32.mrf.mxu2  ;;  %v1979_v62 = vunpack.c.l.b16 %v1975_v15 }
 0x250   : > { %v1932_v9 = vadd.f32 %v1870_v25, %v1798_v37 }
 0x251   : > { %v2270_v43 = vsel %vm2248_vm8, %v2227_v61, 0.0  ;;  %v2329_v21 = vmul.f32 %v2227_v61, %v2227_v61  ;;  %2735 = vmatmul.msk.bf16.gmra.mxu3 %vm673_vm4, %v3641_v22  ;;  %v1965_v22 = vsel %vm2884_vm3, %v1960_v58, %v1964_v4 }
 0x252   : > { %v2271_v54 = vadd.f32 %v2270_v43, %v2269_v39  ;;  %v2774_v39 = vld [vmem:[%s2857_s27 + $0xcc] sm:$0xff]  ;;  %v1978_v34 = vunpack.c.l.b16 %v1965_v22 }
 0x253   : > { %v2371_v53 = vsel %vm2248_vm8, %v2329_v21, 0.0  ;;  %v2166_v28 = vpop.f32.mrf.mxu0 }
 0x254   : > { %v2372_v33 = vadd.f32 %v2371_v53, %v2370_v46  ;;  %v2026_v13 = vpop.f32.mrf.mxu3  ;;  %v1741_v37 = vpop.f32.mrf.mxu1  ;;  %v2112_v46 = vsel %vm3187_vm7, %v2737_v41, %v2111_v55  ;;  %v1980_v12 = vpack.c.b16 %v1979_v62, %v1978_v34 }
 0x255   : > { %v2088_v3 = vadd.f32 %v2026_v13, %v1932_v9  ;;  %v1800_v40 = vadd.f32 %v1741_v37, %v3648_v17 }
 0x256   : > { %2753 = vmatmul.msk.bf16.gmra.mxu0 %vm673_vm4, %v1690_v47 }
 0x257   : > { %v2228_v11 = vadd.f32 %v2166_v28, %v2088_v3  ;;  %v1872_v50 = vpop.f32.mrf.mxu2  ;;  %2698 = vmatmul.msk.bf16.gmra.mxu1 %vm673_vm4, %v1690_v47 }
 0x258   : > { %v1933_v2 = vadd.f32 %v1872_v50, %v1799_v27  ;;  %v2118_v27 = vunpack.c.l.b16 %v2112_v46 }
 0x259   : > { %v2272_v17 = vsel %vm2248_vm8, %v2228_v11, 0.0  ;;  %v2330_v5 = vmul.f32 %v2228_v11, %v2228_v11 }
 0x25a   : > { %v2273_v32 = vadd.f32 %v2272_v17, %v2271_v54  ;;  %v2120_v43 = vpack.c.b16 %v2119_v42, %v2118_v27 }
 0x25b   : > { %v2373_v4 = vsel %vm2248_vm8, %v2330_v5, 0.0  ;;  %v2168_v36 = vpop.f32.mrf.mxu0 }
 0x25c   : > { %v2374_v35 = vadd.f32 %v2373_v4, %v2372_v33  ;;  %v2028_v10 = vpop.f32.mrf.mxu3  ;;  %2719 = vmatmul.msk.bf16.gmra.mxu2 %vm673_vm4, %v2774_v39  ;;  %v1743_v24 = vpop.f32.mrf.mxu1 }
 0x25d   : > { %v2089_v1 = vadd.f32 %v2028_v10, %v1933_v2  ;;  %v1801_v57 = vadd.f32 %v1743_v24, %v3653_v7 }
 0x25f   : > { %v2229_v38 = vadd.f32 %v2168_v36, %v2089_v1  ;;  %v1875_v30 = vpop.f32.mrf.mxu2 }
 0x260   : > { %v1934_v61 = vadd.f32 %v1875_v30, %v1800_v40 }
 0x261   : > { %v2274_v25 = vsel %vm2248_vm8, %v2229_v38, 0.0  ;;  %v2331_v9 = vmul.f32 %v2229_v38, %v2229_v38  ;;  %2736 = vmatmul.msk.bf16.gmra.mxu3 %vm673_vm4, %v1980_v12 }
 0x262   : > { %v2275_v14 = vadd.f32 %v2274_v25, %v2273_v32 }
 0x263   : > { %v2375_v21 = vsel %vm2248_vm8, %v2331_v9, 0.0  ;;  %v2171_v47 = vpop.f32.mrf.mxu0 }
 0x264   : > { %v2376_v54 = vadd.f32 %v2375_v21, %v2374_v35  ;;  %v2031_v58 = vpop.f32.mrf.mxu3  ;;  %v1746_v31 = vpop.f32.mrf.mxu1 }
 0x265   : > { %v2090_v44 = vadd.f32 %v2031_v58, %v1934_v61  ;;  %v1802_v7 = vadd.f32 %v1746_v31, %v3662_v16 }
 0x266   : > { %2754 = vmatmul.msk.bf16.gmra.mxu0 %vm673_vm4, %v2120_v43 }
 0x267   : > { %v2230_v53 = vadd.f32 %v2171_v47, %v2090_v44  ;;  %v1877_v28 = vpop.f32.mrf.mxu2 }
 0x268   : > { %v1935_v55 = vadd.f32 %v1877_v28, %v1801_v57 }
 0x269   : > { %v2276_v33 = vsel %vm2248_vm8, %v2230_v53, 0.0  ;;  %v2332_v13 = vmul.f32 %v2230_v53, %v2230_v53 }
 0x26a   : > { %v2277_v37 = vadd.f32 %v2276_v33, %v2275_v14 }
 0x26b   : > { %v2377_v3 = vsel %vm2248_vm8, %v2332_v13, 0.0  ;;  %v2173_v40 = vpop.f32.mrf.mxu0 }
 0x26c   : > { %v2378_v22 = vadd.f32 %v2377_v3, %v2376_v54  ;;  %v2033_v15 = vpop.f32.mrf.mxu3  ;;  %v1748_v11 = vpop.f32.mrf.mxu1 }
 0x26d   : > { %v2091_v50 = vadd.f32 %v2033_v15, %v1935_v55  ;;  %v1803_v41 = vadd.f32 %v1748_v11, %v3667_v26 }
 0x26f   : > { %v2231_v19 = vadd.f32 %v2173_v40, %v2091_v50  ;;  %v1880_v16 = vpop.f32.mrf.mxu2 }
 0x270   : > { %v1936_v48 = vadd.f32 %v1880_v16, %v1802_v7 }
 0x271   : > { %v2278_v2 = vsel %vm2248_vm8, %v2231_v19, 0.0  ;;  %v2333_v39 = vmul.f32 %v2231_v19, %v2231_v19 }
 0x272   : > { %v2279_v17 = vadd.f32 %v2278_v2, %v2277_v37 }
 0x273   : > { %v2379_v5 = vsel %vm2248_vm8, %v2333_v39, 0.0  ;;  %v2176_v34 = vpop.f32.mrf.mxu0 }
 0x274   : > { %v2380_v62 = vadd.f32 %v2379_v5, %v2378_v22  ;;  %v2036_v32 = vpop.f32.mrf.mxu3  ;;  %v1751_v4 = vpop.f32.mrf.mxu1 }
 0x275   : > { %v2092_v36 = vadd.f32 %v2036_v32, %v1936_v48  ;;  %v1804_v46 = vadd.f32 %v1751_v4, %v3676_v59 }
 0x277   : > { %v2232_v45 = vadd.f32 %v2176_v34, %v2092_v36  ;;  %v1882_v35 = vpop.f32.mrf.mxu2 }
 0x278   : > { %v1937_v10 = vadd.f32 %v1882_v35, %v1803_v41 }
 0x279   : > { %v2280_v26 = vsel %vm2248_vm8, %v2232_v45, 0.0  ;;  %v2334_v24 = vmul.f32 %v2232_v45, %v2232_v45 }
 0x27a   : > { %v2281_v1 = vadd.f32 %v2280_v26, %v2279_v17 }
 0x27b   : > { %v2381_v12 = vsel %vm2248_vm8, %v2334_v24, 0.0  ;;  %v2178_v57 = vpop.f32.mrf.mxu0 }
 0x27c   : > { %v2382_v27 = vadd.f32 %v2381_v12, %v2380_v62  ;;  %v2038_v42 = vpop.f32.mrf.mxu3  ;;  %v1753_v38 = vpop.f32.mrf.mxu1 }
 0x27d   : > { %v2093_v30 = vadd.f32 %v2038_v42, %v1937_v10  ;;  %v1805_v61 = vadd.f32 %v1753_v38, %v3681_v49 }
 0x27f   : > { %v2233_v25 = vadd.f32 %v2178_v57, %v2093_v30  ;;  %v1885_v9 = vpop.f32.mrf.mxu2 }
 0x280   : > { %v1938_v14 = vadd.f32 %v1885_v9, %v1804_v46 }
 0x281   : > { %v2282_v59 = vsel %vm2248_vm8, %v2233_v25, 0.0  ;;  %v2335_v43 = vmul.f32 %v2233_v25, %v2233_v25 }
 0x282   : > { %v2283_v21 = vadd.f32 %v2282_v59, %v2281_v1 }
 0x283   : > { %v2383_v47 = vsel %vm2248_vm8, %v2335_v43, 0.0  ;;  %v2181_v54 = vpop.f32.mrf.mxu0 }
 0x284   : > { %v2384_v58 = vadd.f32 %v2383_v47, %v2382_v27  ;;  %v2041_v31 = vpop.f32.mrf.mxu3  ;;  %v1756_v44 = vpop.f32.mrf.mxu1 }
 0x285   : > { %v2094_v7 = vadd.f32 %v2041_v31, %v1938_v14  ;;  %v1806_v53 = vadd.f32 %v1756_v44, %v3690_v23 }
 0x287   : > { %v2234_v28 = vadd.f32 %v2181_v54, %v2094_v7  ;;  %v1887_v55 = vpop.f32.mrf.mxu2 }
 0x288   : > { %v1939_v33 = vadd.f32 %v1887_v55, %v1805_v61 }
 0x289   : > { %v2284_v49 = vsel %vm2248_vm8, %v2234_v28, 0.0  ;;  %v2336_v13 = vmul.f32 %v2234_v28, %v2234_v28 }
 0x28a   : > { %v2285_v37 = vadd.f32 %v2284_v49, %v2283_v21 }
 0x28b   : > { %v2385_v3 = vsel %vm2248_vm8, %v2336_v13, 0.0  ;;  %v2183_v40 = vpop.f32.mrf.mxu0 }
 0x28c   : > { %v2386_v22 = vadd.f32 %v2385_v3, %v2384_v58  ;;  %v2043_v15 = vpop.f32.mrf.mxu3  ;;  %v1758_v11 = vpop.f32.mrf.mxu1 }
 0x28d   : > { %v2095_v50 = vadd.f32 %v2043_v15, %v1939_v33  ;;  %v1807_v36 = vadd.f32 %v1758_v11, %v3695_v60 }
 0x28f   : > { %v2235_v41 = vadd.f32 %v2183_v40, %v2095_v50  ;;  %v1890_v19 = vpop.f32.mrf.mxu2 }
 0x290   : > { %v1940_v16 = vadd.f32 %v1890_v19, %v1806_v53 }
 0x291   : > { %v2286_v48 = vsel %vm2248_vm8, %v2235_v41, 0.0  ;;  %v2337_v23 = vmul.f32 %v2235_v41, %v2235_v41 }
 0x292   : > { %v2287_v2 = vadd.f32 %v2286_v48, %v2285_v37 }
 0x293   : > { %v2387_v39 = vsel %vm2248_vm8, %v2337_v23, 0.0  ;;  %v2186_v17 = vpop.f32.mrf.mxu0 }
 0x294   : > { %v2388_v5 = vadd.f32 %v2387_v39, %v2386_v22  ;;  %v2046_v34 = vpop.f32.mrf.mxu3  ;;  %v1761_v62 = vpop.f32.mrf.mxu1 }
 0x295   : > { %v2096_v32 = vadd.f32 %v2046_v34, %v1940_v16  ;;  %v1808_v30 = vadd.f32 %v1761_v62, %v3704_v56 }
 0x297   : > { %v2236_v4 = vadd.f32 %v2186_v17, %v2096_v32  ;;  %v1892_v46 = vpop.f32.mrf.mxu2 }
 0x298   : > { %v1941_v10 = vadd.f32 %v1892_v46, %v1807_v36 }
 0x299   : > { %v2288_v45 = vsel %vm2248_vm8, %v2236_v4, 0.0  ;;  %v2338_v35 = vmul.f32 %v2236_v4, %v2236_v4 }
 0x29a   : > { %v2289_v26 = vadd.f32 %v2288_v45, %v2287_v2 }
 0x29b   : > { %v2389_v24 = vsel %vm2248_vm8, %v2338_v35, 0.0  ;;  %v2188_v1 = vpop.f32.mrf.mxu0 }
 0x29c   : > { %v2390_v12 = vadd.f32 %v2389_v24, %v2388_v5  ;;  %v2048_v57 = vpop.f32.mrf.mxu3  ;;  %v1763_v27 = vpop.f32.mrf.mxu1 }
 0x29d   : > { %v2097_v42 = vadd.f32 %v2048_v57, %v1941_v10  ;;  %v1809_v44 = vadd.f32 %v1763_v27, %v3709_v0 }
 0x29f   : > { %v2237_v38 = vadd.f32 %v2188_v1, %v2097_v42  ;;  %v1895_v61 = vpop.f32.mrf.mxu2 }
 0x2a0   : > { %v1942_v9 = vadd.f32 %v1895_v61, %v1808_v30 }
 0x2a1   : > { %v2290_v25 = vsel %vm2248_vm8, %v2237_v38, 0.0  ;;  %v2339_v60 = vmul.f32 %v2237_v38, %v2237_v38 }
 0x2a2   : > { %v2291_v14 = vadd.f32 %v2290_v25, %v2289_v26 }
 0x2a3   : > { %v2391_v59 = vsel %vm2248_vm8, %v2339_v60, 0.0  ;;  %v2191_v43 = vpop.f32.mrf.mxu0 }
 0x2a4   : > { %v2392_v21 = vadd.f32 %v2391_v59, %v2390_v12  ;;  %v2051_v47 = vpop.f32.mrf.mxu3  ;;  %v1766_v54 = vpop.f32.mrf.mxu1 }
 0x2a5   : > { %v2098_v58 = vadd.f32 %v2051_v47, %v1942_v9  ;;  %v1810_v15 = vadd.f32 %v1766_v54, %v3718_v29 }
 0x2a7   : > { %v2238_v31 = vadd.f32 %v2191_v43, %v2098_v58  ;;  %v1897_v7 = vpop.f32.mrf.mxu2 }
 0x2a8   : > { %v1943_v28 = vadd.f32 %v1897_v7, %v1809_v44 }
 0x2a9   : > { %v2292_v53 = vsel %vm2248_vm8, %v2238_v31, 0.0  ;;  %v2340_v56 = vmul.f32 %v2238_v31, %v2238_v31 }
 0x2aa   : > { %v2293_v55 = vadd.f32 %v2292_v53, %v2291_v14 }
 0x2ab   : > { %v2393_v33 = vsel %vm2248_vm8, %v2340_v56, 0.0  ;;  %v2193_v49 = vpop.f32.mrf.mxu0 }
 0x2ac   : > { %v2394_v13 = vadd.f32 %v2393_v33, %v2392_v21  ;;  %v2053_v37 = vpop.f32.mrf.mxu3  ;;  %v1768_v3 = vpop.f32.mrf.mxu1 }
 0x2ad   : > { %v2099_v40 = vadd.f32 %v2053_v37, %v1943_v28  ;;  %v1811_v34 = vadd.f32 %v1768_v3, %v3723_v52 }
 0x2af   : > { %v2239_v22 = vadd.f32 %v2193_v49, %v2099_v40  ;;  %v1900_v11 = vpop.f32.mrf.mxu2 }
 0x2b0   : > { %v1944_v41 = vadd.f32 %v1900_v11, %v1810_v15 }
 0x2b1   : > { %v2294_v50 = vsel %vm2248_vm8, %v2239_v22, 0.0  ;;  %v2341_v0 = vmul.f32 %v2239_v22, %v2239_v22 }
 0x2b2   : > { %v2295_v19 = vadd.f32 %v2294_v50, %v2293_v55 }
 0x2b3   : > { %v2395_v16 = vsel %vm2248_vm8, %v2341_v0, 0.0  ;;  %v2196_v48 = vpop.f32.mrf.mxu0 }
 0x2b4   : > { %v2396_v23 = vadd.f32 %v2395_v16, %v2394_v13  ;;  %v2056_v2 = vpop.f32.mrf.mxu3  ;;  %v1771_v39 = vpop.f32.mrf.mxu1 }
 0x2b5   : > { %v2100_v17 = vadd.f32 %v2056_v2, %v1944_v41  ;;  %v1812_v12 = vadd.f32 %v1771_v39, %v3732_v20 }
 0x2b7   : > { %v2240_v5 = vadd.f32 %v2196_v48, %v2100_v17  ;;  %v1902_v62 = vpop.f32.mrf.mxu2 }
 0x2b8   : > { %v1945_v4 = vadd.f32 %v1902_v62, %v1811_v34 }
 0x2b9   : > { %v2296_v32 = vsel %vm2248_vm8, %v2240_v5, 0.0  ;;  %v2342_v29 = vmul.f32 %v2240_v5, %v2240_v5 }
 0x2ba   : > { %v2297_v36 = vadd.f32 %v2296_v32, %v2295_v19 }
 0x2bb   : > { %v2397_v46 = vsel %vm2248_vm8, %v2342_v29, 0.0  ;;  %v2198_v45 = vpop.f32.mrf.mxu0 }
 0x2bc   : > { %v2398_v35 = vadd.f32 %v2397_v46, %v2396_v23  ;;  %v2058_v10 = vpop.f32.mrf.mxu3  ;;  %v1773_v26 = vpop.f32.mrf.mxu1 }
 0x2bd   : > { %v2101_v24 = vadd.f32 %v2058_v10, %v1945_v4  ;;  %v1813_v43 = vadd.f32 %v1773_v26, %v3737_v8 }
 0x2bf   : > { %v2241_v1 = vadd.f32 %v2198_v45, %v2101_v24  ;;  %v1905_v57 = vpop.f32.mrf.mxu2 }
 0x2c0   : > { %v1946_v42 = vadd.f32 %v1905_v57, %v1812_v12 }
 0x2c1   : > { %v2298_v27 = vsel %vm2248_vm8, %v2241_v1, 0.0  ;;  %v2343_v52 = vmul.f32 %v2241_v1, %v2241_v1 }
 0x2c2   : > { %v2299_v38 = vadd.f32 %v2298_v27, %v2297_v36 }
 0x2c3   : > { %v2399_v30 = vsel %vm2248_vm8, %v2343_v52, 0.0  ;;  %v2201_v61 = vpop.f32.mrf.mxu0 }
 0x2c4   : > { %v2400_v25 = vadd.f32 %v2399_v30, %v2398_v35  ;;  %v2061_v60 = vpop.f32.mrf.mxu3  ;;  %v1776_v14 = vpop.f32.mrf.mxu1 }
 0x2c5   : > { %v2102_v9 = vadd.f32 %v2061_v60, %v1946_v42  ;;  %v1814_v55 = vadd.f32 %v1776_v14, %v3746_v51 }
 0x2c7   : > { %v2242_v59 = vadd.f32 %v2201_v61, %v2102_v9  ;;  %v1907_v21 = vpop.f32.mrf.mxu2 }
 0x2c8   : > { %v1947_v54 = vadd.f32 %v1907_v21, %v1813_v43 }
 0x2c9   : > { %v2300_v47 = vsel %vm2248_vm8, %v2242_v59, 0.0  ;;  %v2344_v20 = vmul.f32 %v2242_v59, %v2242_v59 }
 0x2ca   : > { %v2301_v58 = vadd.f32 %v2300_v47, %v2299_v38 }
 0x2cb   : > { %v2401_v31 = vsel %vm2248_vm8, %v2344_v20, 0.0  ;;  %v2203_v44 = vpop.f32.mrf.mxu0 }
 0x2cc   : > { %v2402_v7 = vadd.f32 %v2401_v31, %v2400_v25  ;;  %v2063_v53 = vpop.f32.mrf.mxu3  ;;  %v1778_v49 = vpop.f32.mrf.mxu1 }
 0x2cd   : > { %v2103_v56 = vadd.f32 %v2063_v53, %v1947_v54  ;;  %v1815_v41 = vadd.f32 %v1778_v49, %v3751_v63 }
 0x2cf   : > { %v2243_v28 = vadd.f32 %v2203_v44, %v2103_v56  ;;  %v1910_v33 = vpop.f32.mrf.mxu2 }
 0x2d0   : > { %v1948_v37 = vadd.f32 %v1910_v33, %v1814_v55 }
 0x2d1   : > { %v2302_v13 = vsel %vm2248_vm8, %v2243_v28, 0.0  ;;  %v2345_v8 = vmul.f32 %v2243_v28, %v2243_v28 }
 0x2d2   : > { %v2303_v3 = vadd.f32 %v2302_v13, %v2301_v58 }
 0x2d3   : > { %v2403_v40 = vsel %vm2248_vm8, %v2345_v8, 0.0  ;;  %v2206_v22 = vpop.f32.mrf.mxu0 }
 0x2d4   : > { %v2404_v15 = vadd.f32 %v2403_v40, %v2402_v7  ;;  %v2066_v11 = vpop.f32.mrf.mxu3  ;;  %v1781_v23 = vpop.f32.mrf.mxu1 }
 0x2d5   : > { %v2104_v50 = vadd.f32 %v2066_v11, %v1948_v37  ;;  %v1816_v29 = vadd.f32 %v1781_v23, %v3761_v6 }
 0x2d7   : > { %v2244_v0 = vadd.f32 %v2206_v22, %v2104_v50  ;;  %v1912_v19 = vpop.f32.mrf.mxu2 }
 0x2d8   : > { %v1949_v48 = vadd.f32 %v1912_v19, %v1815_v41 }
 0x2d9   : > { %v2304_v16 = vsel %vm2248_vm8, %v2244_v0, 0.0  ;;  %v2346_v51 = vmul.f32 %v2244_v0, %v2244_v0 }
 0x2da   : > { %v2305_v2 = vadd.f32 %v2304_v16, %v2303_v3 }
 0x2db   : > { %v2405_v39 = vsel %vm2248_vm8, %v2346_v51, 0.0  ;;  %v2208_v17 = vpop.f32.mrf.mxu0 }
 0x2dc   : > { %v2406_v5 = vadd.f32 %v2405_v39, %v2404_v15  ;;  %v2068_v34 = vpop.f32.mrf.mxu3  ;;  %v1783_v10 = vpop.f32.mrf.mxu1 }
 0x2dd   : > { %v2105_v62 = vadd.f32 %v2068_v34, %v1949_v48  ;;  %v1817_v27 = vadd.f32 %v1783_v10, %v3766_v18 }
 0x2df   : > { %v2245_v32 = vadd.f32 %v2208_v17, %v2105_v62  ;;  %v1915_v4 = vpop.f32.mrf.mxu2 }
 0x2e0   : > { %v1950_v46 = vadd.f32 %v1915_v4, %v1816_v29 }
 0x2e1   : > { %v2306_v36 = vsel %vm2248_vm8, %v2245_v32, 0.0  ;;  %v2347_v63 = vmul.f32 %v2245_v32, %v2245_v32 }
 0x2e2   : > { %v2307_v45 = vadd.f32 %v2306_v36, %v2305_v2 }
 0x2e3   : > { %v2407_v35 = vsel %vm2248_vm8, %v2347_v63, 0.0  ;;  %v2211_v24 = vpop.f32.mrf.mxu0 }
 0x2e4   : > { %v2408_v26 = vadd.f32 %v2407_v35, %v2406_v5  ;;  %v2071_v1 = vpop.f32.mrf.mxu3 }
 0x2e5   : > { %v2106_v12 = vadd.f32 %v2071_v1, %v1950_v46 }
 0x2e7   : > { %v2246_v57 = vadd.f32 %v2211_v24, %v2106_v12  ;;  %v1917_v52 = vpop.f32.mrf.mxu2 }
 0x2e8   : > { %v1951_v38 = vadd.f32 %v1917_v52, %v1817_v27 }
 0x2e9   : > { %v2308_v42 = vsel %vm2248_vm8, %v2246_v57, 0.0  ;;  %v2348_v6 = vmul.f32 %v2246_v57, %v2246_v57 }
 0x2ea   : > { %v2309_v30 = vadd.f32 %v2308_v42, %v2307_v45 }
 0x2eb   : > { %v2409_v61 = vsel %vm2248_vm8, %v2348_v6, 0.0  ;;  %v2213_v14 = vpop.f32.mrf.mxu0 }
 0x2ec   : > { %v2410_v25 = vadd.f32 %v2409_v61, %v2408_v26  ;;  %v2073_v60 = vpop.f32.mrf.mxu3 }
 0x2ed   : > { %v2107_v9 = vadd.f32 %v2073_v60, %v1951_v38 }
 0x2ef   : > { %v2247_v59 = vadd.f32 %v2213_v14, %v2107_v9 }
 0x2f1   : > { %v2310_v43 = vsel %vm2248_vm8, %v2247_v59, 0.0  ;;  %v2349_v21 = vmul.f32 %v2247_v59, %v2247_v59 }
 0x2f2   : > { %v2311_v47 = vadd.f32 %v2310_v43, %v2309_v30 }
 0x2f3   : > { %v2411_v18 = vsel %vm2248_vm8, %v2349_v21, 0.0 }
 0x2f4   : > { %v2312_v20 = vrot.slane %v2311_v47, 4  ;;  %v2412_v54 = vadd.f32 %v2411_v18, %v2410_v25 }
 0x2f6   : > { %v2313_v58 = vadd.f32 %v2312_v20, %v2311_v47  ;;  %v2413_v31 = vrot.slane %v2412_v54, 4 }
 0x2f8   : > { %v2314_v44 = vrot.slane %v2313_v58, 2  ;;  %v2414_v7 = vadd.f32 %v2413_v31, %v2412_v54 }
 0x2fa   : > { %v2315_v53 = vadd.f32 %v2314_v44, %v2313_v58  ;;  %v2415_v56 = vrot.slane %v2414_v7, 2 }
 0x2fc   : > { %v2316_v28 = vrot.slane %v2315_v53, 1  ;;  %v2416_v55 = vadd.f32 %v2415_v56, %v2414_v7 }
 0x2fe   : > { %v2317_v33 = vadd.f32 %v2316_v28, %v2315_v53  ;;  %v2417_v49 = vrot.slane %v2416_v55, 1 }
 0x300   : > { %v2418_v13 = vadd.f32 %v2417_v49, %v2416_v55  ;;  %2419 = vst.msk [vmem:[%s175_s14] sm:$0xff] %vm2248_vm8, %v2317_v33 }
 0x302   : > { %2420 = vst.msk [vmem:[%s179_s17] sm:$0xff] %vm2248_vm8, %v2418_v13 }
 0x303 PF: > { %s14_s12 = sadd.s32 1, %s2801_s12  }
 0x304   : > { %p11_p4 = scmp.ge.s32.totalorder %s14_s12, 4  }
 0x306   :  { %13 = sbr.rel (!%p11_p4) target bundleno = 1 (0x1), region = 78 }

// kernel: conv_layer_forward.7
= control target key start
LH: loop header
LB: loop body
LE: loop exit
PB: predicated region body
PF: predicated region fallthrough
CT: control target
= control target key end

     0   :  { %s2784_s15 = smov 0   ;;  %s3990_s0 = inlined_call_operand.vmem [shape: bf16[2,18,18,8], index: 0, kind: input, shape index: {}]   ;;  %s3991_s1 = inlined_call_operand.vmem [shape: bf16[9,8,128], index: 1, kind: input, shape index: {}]   ;;  %s3992_s2 = inlined_call_operand.vmem [shape: f32[1,16], index: 2, kind: input, shape index: {}]   ;;  %s3993_s3 = inlined_call_operand.vmem [shape: f32[1,16], index: 3, kind: input, shape index: {}]   ;;  %s3994_s4 = inlined_call_operand.vmem [shape: f32[2,16,16,16], index: 4, kind: output, shape index: {}]  }
   0x1 LB: > { %s2458_s16 = sadd.s32 4294967295, %s2757_s15   ;;  %p2462_p0 = scmp.ge.s32.totalorder %s2757_s15, 1  ;;  %s2757_s15 = sphi %s2784_s15, %s14_s15  }
   0x2   : > { %p162_p1 = scmp.lt.s32.totalorder %s2757_s15, 3 }
   0x4   : > { %p163_p2 = pnand %p2462_p0, %p162_p1 }
   0x6   : > { %166 = sbr.rel (%p163_p2) target bundleno = 760 (0x2f8), region = 36 }
   0xb   : > { %v2466_v0 = vld [vmem:[%s3991_s1 + $0x4] sm:$0xf]  ;;  %vm740_vm0 = vcmask 1043456   ;;  %p188_p3 = scmp.lt.s32.totalorder %s2458_s16, 1  ;;  %v2579_v2 = vld [vmem:[%s3991_s1 + $0x8] sm:$0xf] }
   0xc   : > { %v742_v1 = vsel %vm740_vm0, %v2466_v0, 0  ;;  %v1283_v3 = vsel %vm740_vm0, %v2579_v2, 0  ;;  %v2596_v4 = vld [vmem:[%s3991_s1 + $0xc] sm:$0xf]  ;;  %v253_v5 = vld [vmem:[%s3991_s1] sm:$0xf] }
   0xd   : > { %2729 = vmatpush.bf16.msra.mxu1 %v742_v1  ;;  %2730 = vmatpush.bf16.msra.mxu2 %v742_v1  ;;  %s4134_s16 = smov (!%p188_p3, %s2458_s16), 1  ;;  %v2617_v6 = vld [vmem:[%s3991_s1 + $0x10] sm:$0xf]  ;;  %v1417_v7 = vsel %vm740_vm0, %v2596_v4, 0  ;;  %v962_v8 = vsel %vm740_vm0, %v253_v5, 0  ;;  %vm691_vm4 = vcmask 64512  }
   0xe   : > { %2731 = vmatpush.bf16.msra.mxu3 %v742_v1  ;;  %751 = vmatpush.bf16.msra.mxu0 %v742_v1  ;;  %s2732_s27 = smul.u32 216, %s4134_s16  ;;  %v1573_v9 = vsel %vm740_vm0, %v2617_v6, 0  ;;  %vm254_vm1 = vsmask.f32 3328  ;;  %vm255_vm2 = vsmask.f32 7440 }
   0xf   : > { %vm2845_vm3 = vmor %vm254_vm1, %vm255_vm2  ;;  %vm1069_vm5 = vcmask 1042432   ;;  %vm1070_vm6 = vcmask 1046532   ;;  %s2710_s19 = sshll.u32 %s4134_s16, 8  ;;  %vm2370_vm8 = vcmask 130048  }
  0x10   : > { %s2818_s30 = scalar_lea.vmem %s3990_s0, %s2732_s27  ;;  %vm3148_vm7 = vmor %vm1069_vm5, %vm1070_vm6  ;;  %s3751_s22 = scalar_lea.vmem %s3994_s4, %s2710_s19 }
  0x11   : > { %1292 = vmatpush.bf16.msrb.mxu2 %v1283_v3  ;;  %971 = vmatpush.bf16.msrb.mxu1 %v962_v8  ;;  %v2821_v10 = vld [vmem:[%s2818_s30 + $0x30] sm:$0xf]  ;;  %v2824_v11 = vld [vmem:[%s2818_s30 + $0x34] sm:$0xf]  ;;  %v2827_v12 = vld [vmem:[%s2818_s30 + $0x38] sm:$0x1] }
  0x12   : > { %1426 = vmatpush.bf16.msrb.mxu3 %v1417_v7  ;;  %1582 = vmatpush.bf16.msrb.mxu0 %v1573_v9  ;;  %v354_v13 = vshrl.u32 %v2821_v10, 16  ;;  %v357_v14 = vshll.u32 %v2821_v10, 16  ;;  %v363_v15 = vshll.u32 %v2824_v11, 16  ;;  %v367_v16 = vshrl.u32 %v2824_v11, 16  ;;  %v223_v17 = vld [vmem:[%s2818_s30 + $0x60] sm:$0xf] }
  0x13   : > { %v373_v18 = vshll.u32 %v2827_v12, 16  ;;  %v2836_v19 = vld [vmem:[%s2818_s30 + $0x64] sm:$0xf]  ;;  %v225_v20 = vld [vmem:[%s2818_s30 + $0x68] sm:$0x1]  ;;  %v450_v21 = vshrl.u32 %v223_v17, 16 }
  0x14   : > { %v356_v22 = vrot.slane %v354_v13, 4  ;;  %v359_v23 = vrot.slane %v357_v14, 5  ;;  %v365_v24 = vrot.slane %v363_v15, 5  ;;  %v369_v25 = vrot.slane %v367_v16, 4  ;;  %v235_v26 = vld [vmem:[%s2818_s30 + $0x90] sm:$0xf] }
  0x15   : > { %v375_v27 = vrot.slane %v373_v18, 5  ;;  %v452_v28 = vrot.slane %v450_v21, 4  ;;  %v453_v29 = vshll.u32 %v223_v17, 16  ;;  %v459_v30 = vshll.u32 %v2836_v19, 16  ;;  %v236_v35 = vld [vmem:[%s2818_s30 + $0x94] sm:$0xf] }
  0x16   : > { %v360_v31 = vor.u32 %v359_v23, %v356_v22  ;;  %v370_v32 = vor.u32 %v369_v25, %v365_v24  ;;  %v463_v33 = vshrl.u32 %v2836_v19, 16  ;;  %v469_v34 = vshll.u32 %v225_v20, 16  ;;  %v237_v45 = vld [vmem:[%s2818_s30 + $0x98] sm:$0x1]  ;;  %v2855_v61 = vld [vmem:[%s2818_s30] sm:$0xf] }
  0x17   : > { %v455_v37 = vrot.slane %v453_v29, 5  ;;  %v461_v38 = vrot.slane %v459_v30, 5  ;;  %v546_v39 = vshrl.u32 %v235_v26, 16  ;;  %v549_v47 = vshll.u32 %v235_v26, 16  ;;  %v2862_v1 = vld [vmem:[%s2818_s30 + $0x4] sm:$0xf] }
  0x18   : > { %v361_v40 = vrot.slane %v360_v31, 4  ;;  %v371_v41 = vrot.slane %v370_v32, 4  ;;  %v465_v42 = vrot.slane %v463_v33, 4  ;;  %v471_v43 = vrot.slane %v469_v34, 5  ;;  %v2865_v2 = vld [vmem:[%s2818_s30 + $0x8] sm:$0x1] }
  0x19   : > { %v456_v44 = vor.u32 %v455_v37, %v452_v28  ;;  %v548_v46 = vrot.slane %v546_v39, 4  ;;  %v555_v48 = vshll.u32 %v236_v35, 16  ;;  %v559_v52 = vshrl.u32 %v236_v35, 16  ;;  %v2881_v23 = vld [vmem:[%s2818_s30 + $0x3c] sm:$0xf] }
  0x1a   : > { %v366_v49 = vsel %vm2845_vm3, %v361_v40, %v365_v24  ;;  %v376_v50 = vsel %vm2845_vm3, %v371_v41, %v375_v27  ;;  %v466_v51 = vor.u32 %v465_v42, %v461_v38  ;;  %v551_v56 = vrot.slane %v549_v47, 5  ;;  %v2884_v24 = vld [vmem:[%s2818_s30 + $0x40] sm:$0xf]  ;;  %v2889_v29 = vld [vmem:[%s2818_s30 + $0x44] sm:$0x1] }
  0x1b   : > { %v651_v53 = vunpack.c.l.b16 %v366_v49  ;;  %v652_v54 = vunpack.c.l.b16 %v376_v50  ;;  %v457_v55 = vrot.slane %v456_v44, 4  ;;  %v557_v58 = vrot.slane %v555_v48, 5  ;;  %v2904_v47 = vld [vmem:[%s2818_s30 + $0x70] sm:$0xf] }
  0x1c   : > { %v467_v57 = vrot.slane %v466_v51, 4  ;;  %v561_v59 = vrot.slane %v559_v52, 4  ;;  %v565_v60 = vshll.u32 %v237_v45, 16  ;;  %v552_v0 = vor.u32 %v551_v56, %v548_v46  ;;  %v2911_v51 = vld [vmem:[%s2818_s30 + $0x74] sm:$0x1] }
  0x1d   : > { %v2857_v62 = vpack.c.b16 %v652_v54, %v651_v53  ;;  %v462_v63 = vsel %vm2845_vm3, %v457_v55, %v461_v38  ;;  %v258_v9 = vshrl.u32 %v2855_v61, 16  ;;  %v261_v13 = vshll.u32 %v2855_v61, 16  ;;  %v2897_v38 = vld [vmem:[%s2818_s30 + $0x6c] sm:$0xf] }
  0x1e   : > { %v472_v3 = vsel %vm2845_vm3, %v467_v57, %v471_v43  ;;  %v659_v4 = vunpack.c.l.b16 %v462_v63  ;;  %v562_v5 = vor.u32 %v561_v59, %v557_v58  ;;  %v567_v6 = vrot.slane %v565_v60, 5 }
  0x1f   : > { %2471 = vmatmul.msk.bf16.vlgmr.msra.gmra.mxu1 %vm691_vm4, %v2857_v62  ;;  %v660_v7 = vunpack.c.l.b16 %v472_v3  ;;  %v553_v8 = vrot.slane %v552_v0, 4  ;;  %v267_v15 = vshll.u32 %v2862_v1, 16  ;;  %v271_v16 = vshrl.u32 %v2862_v1, 16 }
  0x20   : > { %v563_v14 = vrot.slane %v562_v5, 4  ;;  %v277_v17 = vshll.u32 %v2865_v2, 16  ;;  %v260_v21 = vrot.slane %v258_v9, 4  ;;  %v263_v22 = vrot.slane %v261_v13, 5  ;;  %v238_v5 = vld [vmem:[%s2818_s30 + $0x9c] sm:$0xf] }
  0x21   : > { %v2876_v18 = vpack.c.b16 %v660_v7, %v659_v4  ;;  %v558_v20 = vsel %vm2845_vm3, %v553_v8, %v557_v58  ;;  %v269_v27 = vrot.slane %v267_v15, 5  ;;  %v273_v28 = vrot.slane %v271_v16, 4  ;;  %v239_v9 = vld [vmem:[%s2818_s30 + $0xa0] sm:$0xf] }
  0x22   : > { %v568_v25 = vsel %vm2845_vm3, %v563_v14, %v567_v6  ;;  %v667_v26 = vunpack.c.l.b16 %v558_v20  ;;  %v264_v31 = vor.u32 %v263_v22, %v260_v21  ;;  %v279_v32 = vrot.slane %v277_v17, 5  ;;  %v240_v17 = vld [vmem:[%s2818_s30 + $0xa4] sm:$0x1] }
  0x23   : > { %4037 = vst [vmem:[#allocation2_spill] sm:$0xff] %v2876_v18  ;;  %2475 = vmatmul.msk.bf16.vlgmr.msra.gmra.mxu2 %vm691_vm4, %v2876_v18  ;;  %v668_v30 = vunpack.c.l.b16 %v568_v25  ;;  %v274_v33 = vor.u32 %v273_v28, %v269_v27  ;;  %v378_v34 = vshrl.u32 %v2881_v23, 16  ;;  %v381_v35 = vshll.u32 %v2881_v23, 16 }
  0x24   : > { %v387_v37 = vshll.u32 %v2884_v24, 16  ;;  %v265_v40 = vrot.slane %v264_v31, 4  ;;  %v391_v41 = vshrl.u32 %v2884_v24, 16  ;;  %v397_v42 = vshll.u32 %v2889_v29, 16 }
  0x25   : > { %v2899_v39 = vpack.c.b16 %v668_v30, %v667_v26  ;;  %v275_v43 = vrot.slane %v274_v33, 4  ;;  %v380_v44 = vrot.slane %v378_v34, 4  ;;  %v383_v45 = vrot.slane %v381_v35, 5  ;;  %v2929_v35 = vld [vmem:[%s2818_s30 + $0xc] sm:$0xf] }
  0x26   : > { %v389_v46 = vrot.slane %v387_v37, 5  ;;  %v270_v48 = vsel %vm2845_vm3, %v265_v40, %v269_v27  ;;  %v393_v49 = vrot.slane %v391_v41, 4  ;;  %v399_v50 = vrot.slane %v397_v42, 5 }
  0x27   : > { %4038 = vst [vmem:[#allocation3_spill] sm:$0xff] %v2899_v39  ;;  %2479 = vmatmul.msk.bf16.vlgmr.msra.gmra.mxu3 %vm691_vm4, %v2899_v39  ;;  %v474_v52 = vshrl.u32 %v2897_v38, 16  ;;  %v280_v53 = vsel %vm2845_vm3, %v275_v43, %v279_v32  ;;  %v643_v54 = vunpack.c.l.b16 %v270_v48  ;;  %v384_v55 = vor.u32 %v383_v45, %v380_v44  ;;  %v2936_v43 = vld [vmem:[%s2818_s30 + $0x10] sm:$0xf]  ;;  %v2939_v48 = vld [vmem:[%s2818_s30 + $0x14] sm:$0x1] }
  0x28   : > { %v477_v56 = vshll.u32 %v2897_v38, 16  ;;  %v644_v57 = vunpack.c.l.b16 %v280_v53  ;;  %v394_v58 = vor.u32 %v393_v49, %v389_v46  ;;  %v483_v60 = vshll.u32 %v2904_v47, 16  ;;  %v3116_v39 = vld [vmem:[%s2818_s30 + $0x2c] sm:$0x1] }
  0x29   : > { %v476_v59 = vrot.slane %v474_v52, 4  ;;  %v385_v63 = vrot.slane %v384_v55, 4  ;;  %v487_v3 = vshrl.u32 %v2904_v47, 16  ;;  %v493_v4 = vshll.u32 %v2911_v51, 16 }
  0x2a   : > { %v479_v0 = vrot.slane %v477_v56, 5  ;;  %v675_v6 = vpack.c.b16 %v644_v57, %v643_v54  ;;  %v395_v7 = vrot.slane %v394_v58, 4  ;;  %v485_v8 = vrot.slane %v483_v60, 5  ;;  %v2949_v58 = vld [vmem:[%s2818_s30 + $0x48] sm:$0xf] }
  0x2b   : > { %v390_v13 = vsel %vm2845_vm3, %v385_v63, %v389_v46  ;;  %v489_v15 = vrot.slane %v487_v3, 4  ;;  %v495_v16 = vrot.slane %v493_v4, 5  ;;  %v570_v22 = vshrl.u32 %v238_v5, 16  ;;  %v2954_v3 = vld [vmem:[%s2818_s30 + $0x4c] sm:$0xf] }
  0x2c   : > { %v480_v14 = vor.u32 %v479_v0, %v476_v59  ;;  %2467 = vmatmul.msk.bf16.vlgmr.msra.gmra.mxu0 %vm691_vm4, %v675_v6  ;;  %v400_v20 = vsel %vm2845_vm3, %v395_v7, %v399_v50  ;;  %v653_v21 = vunpack.c.l.b16 %v390_v13  ;;  %v573_v25 = vshll.u32 %v238_v5, 16 }
  0x2d   : > { %v654_v26 = vunpack.c.l.b16 %v400_v20  ;;  %v490_v28 = vor.u32 %v489_v15, %v485_v8  ;;  %v579_v30 = vshll.u32 %v239_v9, 16  ;;  %v572_v31 = vrot.slane %v570_v22, 4  ;;  %v2961_v15 = vld [vmem:[%s2818_s30 + $0x50] sm:$0x1] }
  0x2e   : > { %v481_v27 = vrot.slane %v480_v14, 4  ;;  %v575_v32 = vrot.slane %v573_v25, 5  ;;  %v583_v33 = vshrl.u32 %v239_v9, 16  ;;  %v589_v34 = vshll.u32 %v240_v17, 16 }
  0x2f   : > { %v2931_v37 = vpack.c.b16 %v654_v26, %v653_v21  ;;  %v491_v41 = vrot.slane %v490_v28, 4  ;;  %v581_v42 = vrot.slane %v579_v30, 5  ;;  %v282_v52 = vshrl.u32 %v2929_v35, 16  ;;  %v2972_v28 = vld [vmem:[%s2818_s30 + $0x78] sm:$0xf] }
  0x30   : > { %v486_v40 = vsel %vm2845_vm3, %v481_v27, %v485_v8  ;;  %v576_v45 = vor.u32 %v575_v32, %v572_v31  ;;  %v585_v46 = vrot.slane %v583_v33, 4  ;;  %v591_v50 = vrot.slane %v589_v34, 5  ;;  %v2976_v34 = vld [vmem:[%s2818_s30 + $0x7c] sm:$0xf] }
  0x31   : > { %v661_v44 = vunpack.c.l.b16 %v486_v40  ;;  %2472 = vmatmul.msk.bf16.gmra.mxu1 %vm691_vm4, %v2931_v37  ;;  %v496_v49 = vsel %vm2845_vm3, %v491_v41, %v495_v16  ;;  %v285_v53 = vshll.u32 %v2929_v35, 16  ;;  %v291_v57 = vshll.u32 %v2936_v43, 16 }
  0x32   : > { %v662_v54 = vunpack.c.l.b16 %v496_v49  ;;  %v577_v55 = vrot.slane %v576_v45, 4  ;;  %v586_v56 = vor.u32 %v585_v46, %v581_v42  ;;  %v284_v59 = vrot.slane %v282_v52, 4 }
  0x33   : > { %v287_v60 = vrot.slane %v285_v53, 5  ;;  %v295_v63 = vshrl.u32 %v2936_v43, 16  ;;  %v301_v0 = vshll.u32 %v2939_v48, 16  ;;  %v293_v7 = vrot.slane %v291_v57, 5 }
  0x34   : > { %v2956_v4 = vpack.c.b16 %v662_v54, %v661_v44  ;;  %v582_v5 = vsel %vm2845_vm3, %v577_v55, %v581_v42  ;;  %v587_v6 = vrot.slane %v586_v56, 4  ;;  %v402_v17 = vshrl.u32 %v2949_v58, 16 }
  0x35   : > { %v669_v8 = vunpack.c.l.b16 %v582_v5  ;;  %v288_v9 = vor.u32 %v287_v60, %v284_v59  ;;  %v297_v13 = vrot.slane %v295_v63, 4  ;;  %v303_v14 = vrot.slane %v301_v0, 5 }
  0x36   : > { %2476 = vmatmul.msk.bf16.gmra.mxu2 %vm691_vm4, %v2956_v4  ;;  %v592_v16 = vsel %vm2845_vm3, %v587_v6, %v591_v50  ;;  %v405_v20 = vshll.u32 %v2949_v58, 16  ;;  %v411_v21 = vshll.u32 %v2954_v3, 16  ;;  %v415_v27 = vshrl.u32 %v2954_v3, 16  ;;  %v2983_v50 = vld [vmem:[%s2818_s30 + $0x80] sm:$0x1] }
  0x37   : > { %v670_v22 = vunpack.c.l.b16 %v592_v16  ;;  %v289_v25 = vrot.slane %v288_v9, 4  ;;  %v298_v26 = vor.u32 %v297_v13, %v293_v7  ;;  %v404_v30 = vrot.slane %v402_v17, 4  ;;  %v3002_v16 = vld [vmem:[%s2818_s30 + $0xac] sm:$0xf]  ;;  %v3005_v17 = vld [vmem:[%s2818_s30 + $0xb0] sm:$0x1] }
  0x38   : > { %v407_v31 = vrot.slane %v405_v20, 5  ;;  %v413_v32 = vrot.slane %v411_v21, 5  ;;  %v421_v33 = vshll.u32 %v2961_v15, 16  ;;  %v417_v44 = vrot.slane %v415_v27, 4  ;;  %4041 = vst [vmem:[#allocation6_spill] sm:$0xff] %v3002_v16 }
  0x39   : > { %v2978_v40 = vpack.c.b16 %v670_v22, %v669_v8  ;;  %v294_v41 = vsel %vm2845_vm3, %v289_v25, %v293_v7  ;;  %v299_v42 = vrot.slane %v298_v26, 4  ;;  %v498_v52 = vshrl.u32 %v2972_v28, 16  ;;  %v2995_v8 = vld [vmem:[%s2818_s30 + $0xa8] sm:$0xf]  ;;  %4042 = vst [vmem:[#allocation7_spill] sm:$0xff] %v3005_v17 }
  0x3a   : > { %v645_v45 = vunpack.c.l.b16 %v294_v41  ;;  %v408_v46 = vor.u32 %v407_v31, %v404_v30  ;;  %v423_v49 = vrot.slane %v421_v33, 5  ;;  %v418_v54 = vor.u32 %v417_v44, %v413_v32  ;;  %4040 = vst [vmem:[#allocation5_spill] sm:$0xff] %v2995_v8 }
  0x3b   : > { %4039 = vst [vmem:[#allocation4_spill] sm:$0xff] %v2978_v40  ;;  %2480 = vmatmul.msk.bf16.gmra.mxu3 %vm691_vm4, %v2978_v40  ;;  %v304_v53 = vsel %vm2845_vm3, %v299_v42, %v303_v14  ;;  %v501_v55 = vshll.u32 %v2972_v28, 16  ;;  %v507_v56 = vshll.u32 %v2976_v34, 16  ;;  %v500_v60 = vrot.slane %v498_v52, 4  ;;  %v3019_v52 = vld [vmem:[%s2818_s30 + $0x18] sm:$0xf] }
  0x3c   : > { %v646_v57 = vunpack.c.l.b16 %v304_v53  ;;  %v409_v59 = vrot.slane %v408_v46, 4  ;;  %v511_v63 = vshrl.u32 %v2976_v34, 16  ;;  %v419_v0 = vrot.slane %v418_v54, 4  ;;  %v3105_v40 = vld [vmem:[%s2818_s30 + $0x24] sm:$0xf] }
  0x3d   : > { %v503_v5 = vrot.slane %v501_v55, 5  ;;  %v509_v6 = vrot.slane %v507_v56, 5  ;;  %v517_v7 = vshll.u32 %v2983_v50, 16  ;;  %v594_v30 = vshrl.u32 %v2995_v8, 16  ;;  %v3024_v56 = vld [vmem:[%s2818_s30 + $0x1c] sm:$0xf] }
  0x3e   : > { %v2997_v9 = vpack.c.b16 %v646_v57, %v645_v45  ;;  %v414_v13 = vsel %vm2845_vm3, %v409_v59, %v413_v32  ;;  %v513_v14 = vrot.slane %v511_v63, 4  ;;  %v424_v20 = vsel %vm2845_vm3, %v419_v0, %v423_v49  ;;  %v3027_v57 = vld [vmem:[%s2818_s30 + $0x20] sm:$0x1] }
  0x3f   : > { %v655_v21 = vunpack.c.l.b16 %v414_v13  ;;  %v504_v22 = vor.u32 %v503_v5, %v500_v60  ;;  %v519_v25 = vrot.slane %v517_v7, 5  ;;  %v656_v26 = vunpack.c.l.b16 %v424_v20 }
  0x40   : > { %2468 = vmatmul.msk.bf16.gmra.mxu0 %vm691_vm4, %v2997_v9  ;;  %v514_v27 = vor.u32 %v513_v14, %v509_v6  ;;  %v597_v31 = vshll.u32 %v2995_v8, 16  ;;  %v603_v33 = vshll.u32 %v3002_v16, 16  ;;  %v607_v41 = vshrl.u32 %v3002_v16, 16 }
  0x41   : > { %v505_v32 = vrot.slane %v504_v22, 4  ;;  %v613_v42 = vshll.u32 %v3005_v17, 16  ;;  %v3016_v44 = vpack.c.b16 %v656_v26, %v655_v21  ;;  %v596_v46 = vrot.slane %v594_v30, 4  ;;  %v3039_v26 = vld [vmem:[%s2818_s30 + $0x54] sm:$0xf] }
  0x42   : > { %v515_v45 = vrot.slane %v514_v27, 4  ;;  %v599_v49 = vrot.slane %v597_v31, 5  ;;  %v605_v54 = vrot.slane %v603_v33, 5  ;;  %v609_v55 = vrot.slane %v607_v41, 4  ;;  %v3083_v17 = vld [vmem:[%s2818_s30 + $0xb4] sm:$0xf] }
  0x43   : > { %4043 = vst [vmem:[#allocation8_spill] sm:$0xff] %v3016_v44  ;;  %v510_v53 = vsel %vm2845_vm3, %v505_v32, %v509_v6  ;;  %2473 = vmatmul.msk.bf16.gmra.mxu1 %vm691_vm4, %v3016_v44  ;;  %v615_v0 = vrot.slane %v613_v42, 5  ;;  %v306_v6 = vshrl.u32 %v3019_v52, 16  ;;  %v309_v13 = vshll.u32 %v3019_v52, 16  ;;  %v3044_v32 = vld [vmem:[%s2818_s30 + $0x58] sm:$0xf] }
  0x44   : > { %v520_v59 = vsel %vm2845_vm3, %v515_v45, %v519_v25  ;;  %v663_v60 = vunpack.c.l.b16 %v510_v53  ;;  %v600_v63 = vor.u32 %v599_v49, %v596_v46  ;;  %v610_v7 = vor.u32 %v609_v55, %v605_v54  ;;  %v3049_v46 = vld [vmem:[%s2818_s30 + $0x5c] sm:$0x1]  ;;  %4046 = vst [vmem:[#allocation11_spill] sm:$0xff] %v3083_v17 }
  0x45   : > { %v664_v5 = vunpack.c.l.b16 %v520_v59  ;;  %v315_v20 = vshll.u32 %v3024_v56, 16  ;;  %v319_v21 = vshrl.u32 %v3024_v56, 16  ;;  %v325_v22 = vshll.u32 %v3027_v57, 16 }
  0x46   : > { %v601_v14 = vrot.slane %v600_v63, 4  ;;  %v611_v27 = vrot.slane %v610_v7, 4  ;;  %v308_v30 = vrot.slane %v306_v6, 4  ;;  %v311_v31 = vrot.slane %v309_v13, 5  ;;  %v3059_v7 = vld [vmem:[%s2818_s30 + $0x84] sm:$0xf] }
  0x47   : > { %v3041_v25 = vpack.c.b16 %v664_v5, %v663_v60  ;;  %v317_v41 = vrot.slane %v315_v20, 5  ;;  %v321_v42 = vrot.slane %v319_v21, 4  ;;  %v327_v45 = vrot.slane %v325_v22, 5  ;;  %4044 = vst [vmem:[#allocation9_spill] sm:$0xff] %v3059_v7 }
  0x48   : > { %v606_v33 = vsel %vm2845_vm3, %v601_v14, %v605_v54  ;;  %v616_v49 = vsel %vm2845_vm3, %v611_v27, %v615_v0  ;;  %v312_v55 = vor.u32 %v311_v31, %v308_v30  ;;  %v426_v59 = vshrl.u32 %v3039_v26, 16  ;;  %v3066_v30 = vld [vmem:[%s2818_s30 + $0x88] sm:$0xf] }
  0x49   : > { %2477 = vmatmul.msk.bf16.gmra.mxu2 %vm691_vm4, %v3041_v25  ;;  %v671_v53 = vunpack.c.l.b16 %v606_v33  ;;  %v672_v60 = vunpack.c.l.b16 %v616_v49  ;;  %v322_v63 = vor.u32 %v321_v42, %v317_v41  ;;  %v429_v54 = vshll.u32 %v3039_v26, 16  ;;  %v3071_v49 = vld [vmem:[%s2818_s30 + $0x8c] sm:$0x1] }
  0x4a   : > { %v435_v5 = vshll.u32 %v3044_v32, 16  ;;  %v313_v6 = vrot.slane %v312_v55, 4  ;;  %v428_v13 = vrot.slane %v426_v59, 4  ;;  %v439_v14 = vshrl.u32 %v3044_v32, 16 }
  0x4b   : > { %v445_v0 = vshll.u32 %v3049_v46, 16  ;;  %v3063_v20 = vpack.c.b16 %v672_v60, %v671_v53  ;;  %v323_v21 = vrot.slane %v322_v63, 4  ;;  %v431_v22 = vrot.slane %v429_v54, 5 }
  0x4c   : > { %v437_v27 = vrot.slane %v435_v5, 5  ;;  %v318_v31 = vsel %vm2845_vm3, %v313_v6, %v317_v41  ;;  %v441_v33 = vrot.slane %v439_v14, 4  ;;  %v522_v55 = vshrl.u32 %v3059_v7, 16 }
  0x4d   : > { %4045 = vst [vmem:[#allocation10_spill] sm:$0xff] %v3063_v20  ;;  %v447_v42 = vrot.slane %v445_v0, 5  ;;  %2481 = vmatmul.msk.bf16.gmra.mxu3 %vm691_vm4, %v3063_v20  ;;  %v328_v53 = vsel %vm2845_vm3, %v323_v21, %v327_v45  ;;  %v647_v59 = vunpack.c.l.b16 %v318_v31  ;;  %v432_v60 = vor.u32 %v431_v22, %v428_v13  ;;  %v3088_v22 = vld [vmem:[%s2818_s30 + $0xb8] sm:$0xf] }
  0x4e   : > { %v525_v63 = vshll.u32 %v3059_v7, 16  ;;  %v648_v54 = vunpack.c.l.b16 %v328_v53  ;;  %v442_v41 = vor.u32 %v441_v33, %v437_v27  ;;  %v524_v5 = vrot.slane %v522_v55, 4  ;;  %4047 = vst [vmem:[#allocation12_spill] sm:$0xff] %v3088_v22 }
  0x4f   : > { %v531_v6 = vshll.u32 %v3066_v30, 16  ;;  %v433_v14 = vrot.slane %v432_v60, 4  ;;  %v535_v8 = vshrl.u32 %v3066_v30, 16  ;;  %v541_v20 = vshll.u32 %v3071_v49, 16  ;;  %v3093_v60 = vld [vmem:[%s2818_s30 + $0xbc] sm:$0x1] }
  0x50   : > { %v527_v0 = vrot.slane %v525_v63, 5  ;;  %v3085_v45 = vpack.c.b16 %v648_v54, %v647_v59  ;;  %v443_v21 = vrot.slane %v442_v41, 4  ;;  %4048 = vst [vmem:[#allocation13_spill] sm:$0xff] %v3093_v60  ;;  %v618_v54 = vshrl.u32 %v3083_v17, 16 }
  0x51   : > { %v533_v13 = vrot.slane %v531_v6, 5  ;;  %v438_v31 = vsel %vm2845_vm3, %v433_v14, %v437_v27  ;;  %v537_v55 = vrot.slane %v535_v8, 4  ;;  %v543_v53 = vrot.slane %v541_v20, 5 }
  0x52   : > { %v528_v33 = vor.u32 %v527_v0, %v524_v5  ;;  %2469 = vmatmul.msk.bf16.gmra.mxu0 %vm691_vm4, %v3085_v45  ;;  %v448_v59 = vsel %vm2845_vm3, %v443_v21, %v447_v42  ;;  %v657_v63 = vunpack.c.l.b16 %v438_v31  ;;  %v621_v41 = vshll.u32 %v3083_v17, 16 }
  0x53   : > { %v658_v6 = vunpack.c.l.b16 %v448_v59  ;;  %v538_v5 = vor.u32 %v537_v55, %v533_v13  ;;  %v627_v8 = vshll.u32 %v3088_v22, 16  ;;  %v620_v20 = vrot.slane %v618_v54, 4 }
  0x54   : > { %v529_v27 = vrot.slane %v528_v33, 4  ;;  %v623_v14 = vrot.slane %v621_v41, 5  ;;  %v631_v0 = vshrl.u32 %v3088_v22, 16  ;;  %v637_v16 = vshll.u32 %v3093_v60, 16  ;;  %v3112_v33 = vld [vmem:[%s2818_s30 + $0x28] sm:$0xf] }
  0x55   : > { %v3107_v42 = vpack.c.b16 %v658_v6, %v657_v63  ;;  %v539_v31 = vrot.slane %v538_v5, 4  ;;  %v629_v59 = vrot.slane %v627_v8, 5  ;;  %v1077_v55 = vrot.slane %v2865_v2, 5 }
  0x56   : > { %v534_v21 = vsel %vm2845_vm3, %v529_v27, %v533_v13  ;;  %v624_v54 = vor.u32 %v623_v14, %v620_v20  ;;  %v633_v41 = vrot.slane %v631_v0, 4  ;;  %v639_v6 = vrot.slane %v637_v16, 5 }
  0x57   : > { %4049 = vst [vmem:[#allocation14_spill] sm:$0xff] %v3107_v42  ;;  %v665_v17 = vunpack.c.l.b16 %v534_v21  ;;  %2474 = vmatmul.msk.bf16.gmra.mxu1 %vm691_vm4, %v3107_v42  ;;  %v544_v63 = vsel %vm2845_vm3, %v539_v31, %v543_v53  ;;  %v330_v13 = vshrl.u32 %v3105_v40, 16  ;;  %v333_v27 = vshll.u32 %v3105_v40, 16 }
  0x58   : > { %v666_v5 = vunpack.c.l.b16 %v544_v63  ;;  %v625_v8 = vrot.slane %v624_v54, 4  ;;  %v634_v60 = vor.u32 %v633_v41, %v629_v59  ;;  %v339_v2 = vshll.u32 %v3112_v33, 16  ;;  %v2652_v54 = vld [vmem:[%s3991_s1 + $0x18] sm:$0xf]  ;;  %v2673_v41 = vld [vmem:[%s3991_s1 + $0x1c] sm:$0xf] }
  0x59   : > { %v332_v20 = vrot.slane %v330_v13, 4  ;;  %v335_v14 = vrot.slane %v333_v27, 5  ;;  %v343_v0 = vshrl.u32 %v3112_v33, 16  ;;  %v349_v21 = vshll.u32 %v3116_v39, 16 }
  0x5a   : > { %v3127_v22 = vpack.c.b16 %v666_v5, %v665_v17  ;;  %v630_v16 = vsel %vm2845_vm3, %v625_v8, %v629_v59  ;;  %v635_v53 = vrot.slane %v634_v60, 4  ;;  %v341_v31 = vrot.slane %v339_v2, 5  ;;  %v2635_v17 = vld [vmem:[%s3991_s1 + $0x14] sm:$0xf]  ;;  %v2691_v60 = vld [vmem:[%s3991_s1 + $0x20] sm:$0xf] }
  0x5b   : > { %v673_v63 = vunpack.c.l.b16 %v630_v16  ;;  %v336_v13 = vor.u32 %v335_v14, %v332_v20  ;;  %v345_v27 = vrot.slane %v343_v0, 4  ;;  %v351_v7 = vrot.slane %v349_v21, 5 }
  0x5c   : > { %4050 = vst [vmem:[#allocation15_spill] sm:$0xff] %v3127_v22  ;;  %2478 = vmatmul.msk.bf16.gmra.mxu2 %vm691_vm4, %v3127_v22  ;;  %v640_v59 = vsel %vm2845_vm3, %v635_v53, %v639_v6  ;;  %v2563_v5 = vrot.slane %v2855_v61, 9  ;;  %v1074_v0 = vrot.slane %v2862_v1, 5  ;;  %v1847_v21 = vsel %vm740_vm0, %v2652_v54, 0 }
  0x5d   : > { %v674_v8 = vunpack.c.l.b16 %v640_v59  ;;  %v337_v2 = vrot.slane %v336_v13, 4  ;;  %v346_v20 = vor.u32 %v345_v27, %v341_v31  ;;  %v2003_v16 = vsel %vm740_vm0, %v2673_v41, 0  ;;  %1856 = vmatpush.bf16.msra.mxu2 %v1847_v21  ;;  %v2712_v21 = vld [vmem:[%s2818_s30 + $0xc] sm:$0xff] }
  0x5e   : > { %v1713_v22 = vsel %vm740_vm0, %v2635_v17, 0  ;;  %v2143_v6 = vsel %vm740_vm0, %v2691_v60, 0  ;;  %v1075_v27 = vsel %vm3148_vm7, %v2563_v5, %v1074_v0  ;;  %2012 = vmatpush.bf16.msra.mxu3 %v2003_v16  ;;  %v1076_v54 = vrot.slane %v1074_v0, 4 }
  0x5f   : > { %v3157_v53 = vpack.c.b16 %v674_v8, %v673_v63  ;;  %v342_v61 = vsel %vm2845_vm3, %v337_v2, %v341_v31  ;;  %v347_v13 = vrot.slane %v346_v20, 4  ;;  %1722 = vmatpush.bf16.msra.mxu1 %v1713_v22  ;;  %2152 = vmatpush.bf16.msra.mxu0 %v2143_v6  ;;  %v2564_v41 = vrot.slane %v2929_v35, 9  ;;  %v2711_v22 = vld [vmem:[%s2818_s30] sm:$0xff]  ;;  %v3194_v6 = vld [vmem:[%s2818_s30 + $0x18] sm:$0xff] }
  0x60   : > { %v649_v1 = vunpack.c.l.b16 %v342_v61  ;;  %v1186_v31 = vunpack.c.l.b16 %v1075_v27  ;;  %v1081_v17 = vrot.slane %v2936_v43, 5  ;;  %v1084_v60 = vrot.slane %v2939_v48, 5 }
  0x61   : > { %2482 = vmatmul.msk.bf16.gmra.mxu3 %vm691_vm4, %v3157_v53  ;;  %v352_v63 = vsel %vm2845_vm3, %v347_v13, %v351_v7  ;;  %v1078_v5 = vsel %vm3148_vm7, %v1076_v54, %v1077_v55  ;;  %v1088_v16 = vrot.slane %v3024_v56, 5  ;;  %v2565_v61 = vrot.slane %v3019_v52, 9 }
  0x62   : > { %v650_v59 = vunpack.c.l.b16 %v352_v63  ;;  %v1187_v8 = vunpack.c.l.b16 %v1078_v5  ;;  %v1082_v35 = vsel %vm3148_vm7, %v2564_v41, %v1081_v17  ;;  %v1083_v2 = vrot.slane %v1081_v17, 4  ;;  %v3214_v41 = vld [vmem:[%s2818_s30 + $0x24] sm:$0xff] }
  0x63   : > { %v1188_v7 = vunpack.c.l.b16 %v1082_v35  ;;  %v1090_v13 = vrot.slane %v1088_v16, 4  ;;  %v1091_v27 = vrot.slane %v3027_v57, 5  ;;  %v1095_v57 = vrot.slane %v3112_v33, 5 }
  0x64   : > { %v3175_v20 = vpack.c.b16 %v650_v59, %v649_v1  ;;  %v1218_v0 = vpack.c.b16 %v1187_v8, %v1186_v31  ;;  %v1085_v43 = vsel %vm3148_vm7, %v1083_v2, %v1084_v60  ;;  %v2566_v63 = vrot.slane %v3105_v40, 9  ;;  %v3236_v8 = vld [vmem:[%s2818_s30 + $0x30] sm:$0xff] }
  0x65   : > { %v1189_v48 = vunpack.c.l.b16 %v1085_v43  ;;  %v1092_v56 = vsel %vm3148_vm7, %v1090_v13, %v1091_v27  ;;  %v1097_v31 = vrot.slane %v1095_v57, 4  ;;  %v1098_v17 = vrot.slane %v3116_v39, 5  ;;  %v3264_v27 = vld [vmem:[%s2818_s30 + $0x3c] sm:$0xff] }
  0x66   : > { %2470 = vmatmul.msk.bf16.gmra.mxu0 %vm691_vm4, %v3175_v20  ;;  %v1191_v54 = vunpack.c.l.b16 %v1092_v56  ;;  %v1096_v60 = vsel %vm3148_vm7, %v2566_v63, %v1095_v57  ;;  %v1102_v39 = vrot.slane %v2824_v11, 5  ;;  %v2567_v35 = vrot.slane %v2821_v10, 9 }
  0x67   : > { %2547 = vmatmul.msk.bf16.vlgmr.msrb.gmra.mxu1 %vm691_vm4, %v2711_v22  ;;  %v3182_v55 = vpack.c.b16 %v1189_v48, %v1188_v7  ;;  %v1099_v33 = vsel %vm3148_vm7, %v1097_v31, %v1098_v17  ;;  %v1192_v59 = vunpack.c.l.b16 %v1096_v60  ;;  %v1105_v7 = vrot.slane %v2827_v12, 5 }
  0x68   : > { %v1193_v5 = vunpack.c.l.b16 %v1099_v33  ;;  %v1104_v2 = vrot.slane %v1102_v39, 4  ;;  %v1109_v13 = vrot.slane %v2884_v24, 5  ;;  %v2568_v56 = vrot.slane %v2881_v23, 9 }
  0x6a   : > { %v3228_v40 = vpack.c.b16 %v1193_v5, %v1192_v59  ;;  %v1106_v11 = vsel %vm3148_vm7, %v1104_v2, %v1105_v7  ;;  %v1110_v24 = vsel %vm3148_vm7, %v2568_v56, %v1109_v13  ;;  %v1116_v5 = vrot.slane %v2954_v3, 5 }
  0x6b   : > { %v1196_v23 = vunpack.c.l.b16 %v1110_v24  ;;  %v2569_v7 = vrot.slane %v2949_v58, 9  ;;  %v1123_v24 = vrot.slane %v3044_v32, 5 }
  0x6c   : > { %2580 = vmatmul.msk.bf16.vlgmr.msrb.gmra.mxu2 %vm691_vm4, %v1218_v0  ;;  %v1103_v0 = vsel %vm3148_vm7, %v2567_v35, %v1102_v39  ;;  %v3298_v35 = vld [vmem:[%s2818_s30 + $0x48] sm:$0xff] }
  0x6d   : > { %v1194_v48 = vunpack.c.l.b16 %v1103_v0  ;;  %4055 = vst [vmem:[#allocation18_spill] sm:$0xff] %v3298_v35  ;;  %v1118_v0 = vrot.slane %v1116_v5, 4 }
  0x71   : > { %2601 = vmatmul.msk.bf16.vlgmr.msrb.gmra.mxu3 %vm691_vm4, %v2712_v21 }
  0x76   : > { %2618 = vmatmul.msk.bf16.vlgmr.msrb.gmra.mxu0 %vm691_vm4, %v2997_v9  ;;  %v1089_v9 = vsel %vm3148_vm7, %v2565_v61, %v1088_v16 }
  0x77   : > { %2548 = vmatmul.msk.bf16.gmra.mxu1 %vm691_vm4, %v2712_v21  ;;  %v1190_v1 = vunpack.c.l.b16 %v1089_v9  ;;  %v1195_v21 = vunpack.c.l.b16 %v1106_v11  ;;  %v1119_v11 = vrot.slane %v2961_v15, 5 }
  0x79   : > { %v3208_v52 = vpack.c.b16 %v1191_v54, %v1190_v1  ;;  %v3256_v12 = vpack.c.b16 %v1195_v21, %v1194_v48  ;;  %v1111_v1 = vrot.slane %v1109_v13, 4  ;;  %v1112_v54 = vrot.slane %v2889_v29, 5 }
  0x7a   : > { %v1117_v21 = vsel %vm3148_vm7, %v2569_v7, %v1116_v5  ;;  %v1120_v13 = vsel %vm3148_vm7, %v1118_v0, %v1119_v11  ;;  %v2570_v5 = vrot.slane %v3039_v26, 9  ;;  %v1125_v7 = vrot.slane %v1123_v24, 4 }
  0x7b   : > { %v1113_v63 = vsel %vm3148_vm7, %v1111_v1, %v1112_v54  ;;  %v1198_v56 = vunpack.c.l.b16 %v1117_v21  ;;  %v1199_v1 = vunpack.c.l.b16 %v1120_v13  ;;  %v1126_v0 = vrot.slane %v3049_v46, 5 }
  0x7c   : > { %2581 = vmatmul.msk.bf16.gmra.mxu2 %vm691_vm4, %v3182_v55  ;;  %v1197_v60 = vunpack.c.l.b16 %v1113_v63  ;;  %v1124_v32 = vsel %vm3148_vm7, %v2570_v5, %v1123_v24  ;;  %v1130_v5 = vrot.slane %v2836_v19, 5 }
  0x7d   : > { %v3322_v54 = vpack.c.b16 %v1199_v1, %v1198_v56  ;;  %v1127_v13 = vsel %vm3148_vm7, %v1125_v7, %v1126_v0  ;;  %v1200_v56 = vunpack.c.l.b16 %v1124_v32  ;;  %v2743_v32 = vld [vmem:[%s2818_s30 + $0x68] sm:$0x1] }
  0x7e   : > { %v3288_v33 = vpack.c.b16 %v1197_v60, %v1196_v23  ;;  %v3332_v60 = vld [vmem:[%s2818_s30 + $0x54] sm:$0xff]  ;;  %v1201_v46 = vunpack.c.l.b16 %v1127_v13  ;;  %v1133_v13 = vrot.slane %v2743_v32, 5 }
  0x7f   : > { %4058 = vst [vmem:[#allocation21_spill] sm:$0xff] %v3322_v54 }
  0x80   : > { %4059 = vst [vmem:[#allocation22_spill] sm:$0xff] %v3332_v60 }
  0x81   : > { %2602 = vmatmul.msk.bf16.gmra.mxu3 %vm691_vm4, %v3194_v6 }
  0x86   : > { %2619 = vmatmul.msk.bf16.gmra.mxu0 %vm691_vm4, %v3085_v45 }
  0x87   : > { %2549 = vmatmul.msk.bf16.gmra.mxu1 %vm691_vm4, %v3194_v6 }
  0x8c   : > { %2582 = vmatmul.msk.bf16.gmra.mxu2 %vm691_vm4, %v3208_v52 }
  0x91   : > { %2603 = vmatmul.msk.bf16.gmra.mxu3 %vm691_vm4, %v3214_v41 }
  0x96   : > { %2620 = vmatmul.msk.bf16.gmra.mxu0 %vm691_vm4, %v3175_v20 }
  0x97   : > { %2550 = vmatmul.msk.bf16.gmra.mxu1 %vm691_vm4, %v3214_v41 }
  0x9c   : > { %v3231_v22 = vpop.f32.mrf.mxu1  ;;  %2583 = vmatmul.msk.bf16.gmra.mxu2 %vm691_vm4, %v3228_v40 }
  0xa1   : > { %2604 = vmatmul.msk.bf16.gmra.mxu3 %vm691_vm4, %v3236_v8 }
  0xa4   : > { %v3246_v43 = vpop.f32.mrf.mxu1 }
  0xa6   : > { %v3248_v16 = vpop.f32.mrf.mxu2  ;;  %2621 = vmatmul.msk.bf16.gmra.mxu0 %vm691_vm4, %v2857_v62 }
  0xa7   : > { %2551 = vmatmul.msk.bf16.gmra.mxu1 %vm691_vm4, %v3236_v8 }
  0xa9   : > { %v3254_v10 = vpop.f32.mrf.mxu0 }
  0xaa   : > { %v3258_v61 = vpop.f32.mrf.mxu3 }
  0xab   : > { %4053 = vst [vmem:[#allocation16_spill] sm:$0xff] %v3258_v61 }
  0xac   : > { %2584 = vmatmul.msk.bf16.gmra.mxu2 %vm691_vm4, %v3256_v12 }
  0xae   : > { %v3266_v9 = vpop.f32.mrf.mxu1  ;;  %v3270_v57 = vpop.f32.mrf.mxu2 }
  0xb1   : > { %2605 = vmatmul.msk.bf16.gmra.mxu3 %vm691_vm4, %v3264_v27  ;;  %v3278_v31 = vpop.f32.mrf.mxu0 }
  0xb2   : > { %v3280_v17 = vpop.f32.mrf.mxu3 }
  0xb3   : > { %4054 = vst [vmem:[#allocation17_spill] sm:$0xff] %v3280_v17 }
  0xb6   : > { %2622 = vmatmul.msk.bf16.gmra.mxu0 %vm691_vm4, %v2931_v37  ;;  %v3284_v29 = vpop.f32.mrf.mxu1 }
  0xb7   : > { %2552 = vmatmul.msk.bf16.gmra.mxu1 %vm691_vm4, %v3264_v27 }
  0xb9   : > { %v3290_v59 = vpop.f32.mrf.mxu2 }
  0xbc   : > { %2585 = vmatmul.msk.bf16.gmra.mxu2 %vm691_vm4, %v3288_v33 }
  0xbd   : > { %v3293_v39 = vpop.f32.mrf.mxu0 }
  0xbe   : > { %v3300_v2 = vpop.f32.mrf.mxu3 }
  0xbf   : > { %4056 = vst [vmem:[#allocation19_spill] sm:$0xff] %v3300_v2 }
  0xc0   : > { %v3304_v48 = vpop.f32.mrf.mxu1 }
  0xc1   : > { %2606 = vmatmul.msk.bf16.gmra.mxu3 %vm691_vm4, %v3298_v35  ;;  %v3308_v3 = vpop.f32.mrf.mxu2 }
  0xc5   : > { %v3314_v58 = vpop.f32.mrf.mxu0 }
  0xc6   : > { %2623 = vmatmul.msk.bf16.gmra.mxu0 %vm691_vm4, %v3016_v44  ;;  %v3318_v15 = vpop.f32.mrf.mxu3 }
  0xc7   : > { %4057 = vst [vmem:[#allocation20_spill] sm:$0xff] %v3318_v15  ;;  %2553 = vmatmul.msk.bf16.gmra.mxu1 %vm691_vm4, %v3298_v35  ;;  %v3367_v15 = vld [vmem:[%s2818_s30 + $0x60] sm:$0xff] }
  0xc8   : > { %v3325_v63 = vpop.f32.mrf.mxu1  ;;  %4063 = vst [vmem:[#allocation26_spill] sm:$0xff] %v3367_v15 }
  0xcc   : > { %v3327_v23 = vpop.f32.mrf.mxu2  ;;  %2586 = vmatmul.msk.bf16.gmra.mxu2 %vm691_vm4, %v3322_v54 }
  0xcf   : > { %v3336_v11 = vpop.f32.mrf.mxu0 }
  0xd0   : > { %v3338_v21 = vpop.f32.mrf.mxu3 }
  0xd1   : > { %4060 = vst [vmem:[#allocation23_spill] sm:$0xff] %v3338_v21  ;;  %2607 = vmatmul.msk.bf16.gmra.mxu3 %vm691_vm4, %v3332_v60  ;;  %v3354_v21 = vpack.c.b16 %v1201_v46, %v1200_v56 }
  0xd3   : > { %4061 = vst [vmem:[#allocation24_spill] sm:$0xff] %v3354_v21 }
  0xd4   : > { %v3346_v26 = vpop.f32.mrf.mxu1  ;;  %v3348_v1 = vpop.f32.mrf.mxu2 }
  0xd6   : > { %2624 = vmatmul.msk.bf16.gmra.mxu0 %vm691_vm4, %v3107_v42  ;;  %v2744_v42 = vld [vmem:[%s2818_s30 + $0x60] sm:$0xf] }
  0xd7   : > { %2554 = vmatmul.msk.bf16.gmra.mxu1 %vm691_vm4, %v3332_v60  ;;  %v3356_v24 = vpop.f32.mrf.mxu0  ;;  %v2571_v2 = vrot.slane %v2744_v42, 9  ;;  %v1132_v60 = vrot.slane %v1130_v5, 4 }
  0xd8   : > { %v3359_v7 = vpop.f32.mrf.mxu3 }
  0xd9   : > { %4062 = vst [vmem:[#allocation25_spill] sm:$0xff] %v3359_v7  ;;  %v1131_v19 = vsel %vm3148_vm7, %v2571_v2, %v1130_v5  ;;  %v1134_v46 = vsel %vm3148_vm7, %v1132_v60, %v1133_v13  ;;  %v1137_v60 = vrot.slane %v2904_v47, 5 }
  0xda   : > { %v1202_v17 = vunpack.c.l.b16 %v1131_v19  ;;  %v1203_v42 = vunpack.c.l.b16 %v1134_v46  ;;  %v3400_v19 = vld [vmem:[%s2818_s30 + $0x6c] sm:$0xff] }
  0xdc   : > { %2587 = vmatmul.msk.bf16.gmra.mxu2 %vm691_vm4, %v3354_v21  ;;  %v3363_v0 = vpop.f32.mrf.mxu1  ;;  %v3389_v2 = vpack.c.b16 %v1203_v42, %v1202_v17  ;;  %v1139_v17 = vrot.slane %v1137_v60, 4 }
  0xde   : > { %4065 = vst [vmem:[#allocation28_spill] sm:$0xff] %v3389_v2 }
  0xdf   : > { %v3370_v56 = vpop.f32.mrf.mxu2 }
  0xe1   : > { %2608 = vmatmul.msk.bf16.gmra.mxu3 %vm691_vm4, %v3367_v15 }
  0xe3   : > { %v3378_v7 = vpop.f32.mrf.mxu0 }
  0xe4   : > { %v3380_v32 = vpop.f32.mrf.mxu3  ;;  %v973_v21 = vpop.f32.mrf.mxu1 }
  0xe5   : > { %4064 = vst [vmem:[#allocation27_spill] sm:$0xff] %v3380_v32  ;;  %v974_v54 = vadd.f32 %v973_v21, %v3254_v10  ;;  %v1140_v21 = vrot.slane %v2911_v51, 5  ;;  %v2572_v32 = vrot.slane %v2897_v38, 9 }
  0xe6   : > { %2625 = vmatmul.msk.bf16.gmra.mxu0 %vm691_vm4, %v2876_v18 }
  0xe7   : > { %v3385_v44 = vpop.f32.mrf.mxu2  ;;  %2555 = vmatmul.msk.bf16.gmra.mxu1 %vm691_vm4, %v3367_v15  ;;  %v1138_v47 = vsel %vm3148_vm7, %v2572_v32, %v1137_v60 }
  0xe8   : > { %v1204_v61 = vunpack.c.l.b16 %v1138_v47 }
  0xeb   : > { %v3392_v5 = vpop.f32.mrf.mxu0 }
  0xec   : > { %v3394_v13 = vpop.f32.mrf.mxu3  ;;  %2588 = vmatmul.msk.bf16.gmra.mxu2 %vm691_vm4, %v3389_v2  ;;  %v975_v10 = vpop.f32.mrf.mxu1 }
  0xed   : > { %4066 = vst [vmem:[#allocation29_spill] sm:$0xff] %v3394_v13  ;;  %v976_v46 = vadd.f32 %v975_v10, %v3278_v31  ;;  %v1141_v13 = vsel %vm3148_vm7, %v1139_v17, %v1140_v21  ;;  %v1144_v21 = vrot.slane %v2976_v34, 5 }
  0xee   : > { %v1205_v35 = vunpack.c.l.b16 %v1141_v13  ;;  %v1147_v13 = vrot.slane %v2983_v50, 5 }
  0xef   : > { %v1294_v42 = vpop.f32.mrf.mxu2 }
  0xf0   : > { %v1374_v18 = vadd.f32 %v1294_v42, %v974_v54  ;;  %v3417_v10 = vpack.c.b16 %v1205_v35, %v1204_v61  ;;  %v3424_v42 = vld [vmem:[%s2818_s30 + $0x78] sm:$0xff] }
  0xf1   : > { %2609 = vmatmul.msk.bf16.gmra.mxu3 %vm691_vm4, %v3400_v19 }
  0xf3   : > { %v1584_v2 = vpop.f32.mrf.mxu0 }
  0xf4   : > { %v1428_v51 = vpop.f32.mrf.mxu3  ;;  %v978_v15 = vpop.f32.mrf.mxu1 }
  0xf5   : > { %v1508_v31 = vadd.f32 %v1428_v51, %v1374_v18  ;;  %v979_v38 = vadd.f32 %v978_v15, %v3293_v39 }
  0xf6   : > { %2626 = vmatmul.msk.bf16.gmra.mxu0 %vm691_vm4, %v2956_v4 }
  0xf7   : > { %v1296_v54 = vpop.f32.mrf.mxu2  ;;  %2556 = vmatmul.msk.bf16.gmra.mxu1 %vm691_vm4, %v3400_v19  ;;  %v3415_v32 = vadd.f32 %v1584_v2, %v1508_v31  ;;  %v2573_v2 = vrot.slane %v2972_v28, 9 }
  0xf8   : > { %v1375_v60 = vadd.f32 %v1296_v54, %v976_v46  ;;  %v1146_v46 = vrot.slane %v1144_v21, 4 }
  0xf9   : > { %v1145_v50 = vsel %vm3148_vm7, %v2573_v2, %v1144_v21 }
  0xfa   : > { %v1148_v51 = vsel %vm3148_vm7, %v1146_v46, %v1147_v13  ;;  %v1154_v46 = vrot.slane %v3071_v49, 5 }
  0xfb   : > { %v1586_v17 = vpop.f32.mrf.mxu0 }
  0xfc   : > { %v1430_v18 = vpop.f32.mrf.mxu3  ;;  %2589 = vmatmul.msk.bf16.gmra.mxu2 %vm691_vm4, %v3417_v10  ;;  %v980_v39 = vpop.f32.mrf.mxu1 }
  0xfd   : > { %v1509_v15 = vadd.f32 %v1430_v18, %v1375_v60  ;;  %v981_v47 = vadd.f32 %v980_v39, %v3314_v58  ;;  %v1206_v58 = vunpack.c.l.b16 %v1145_v50  ;;  %v1207_v18 = vunpack.c.l.b16 %v1148_v51  ;;  %v3450_v50 = vld [vmem:[%s2818_s30 + $0x84] sm:$0xff] }
  0xff   : > { %v1299_v61 = vpop.f32.mrf.mxu2  ;;  %v3428_v35 = vadd.f32 %v1586_v17, %v1509_v15  ;;  %v3443_v13 = vpack.c.b16 %v1207_v18, %v1206_v58  ;;  %v1151_v15 = vrot.slane %v3066_v30, 5 }
 0x100   : > { %v1376_v34 = vadd.f32 %v1299_v61, %v979_v38 }
 0x101   : > { %2610 = vmatmul.msk.bf16.gmra.mxu3 %vm691_vm4, %v3424_v42 }
 0x103   : > { %v1589_v31 = vpop.f32.mrf.mxu0 }
 0x104   : > { %v1433_v54 = vpop.f32.mrf.mxu3  ;;  %v983_v60 = vpop.f32.mrf.mxu1 }
 0x105   : > { %v1510_v28 = vadd.f32 %v1433_v54, %v1376_v34  ;;  %v984_v17 = vadd.f32 %v983_v60, %v3336_v11 }
 0x106   : > { %2627 = vmatmul.msk.bf16.gmra.mxu0 %vm691_vm4, %v3041_v25 }
 0x107   : > { %v1301_v38 = vpop.f32.mrf.mxu2  ;;  %2557 = vmatmul.msk.bf16.gmra.mxu1 %vm691_vm4, %v3424_v42  ;;  %v3441_v21 = vadd.f32 %v1589_v31, %v1510_v28  ;;  %v4067_v31 = vld [vmem:[#allocation9_spill] sm:$0xff] }
 0x108   : > { %v1377_v39 = vadd.f32 %v1301_v38, %v981_v47  ;;  %v2574_v54 = vrot.slane %v4067_v31, 9  ;;  %v1153_v47 = vrot.slane %v1151_v15, 4 }
 0x10a   : > { %v1152_v49 = vsel %vm3148_vm7, %v2574_v54, %v1151_v15  ;;  %v1155_v18 = vsel %vm3148_vm7, %v1153_v47, %v1154_v46  ;;  %v2745_v54 = vld [vmem:[%s2818_s30 + $0x94] sm:$0xf] }
 0x10b   : > { %v1591_v2 = vpop.f32.mrf.mxu0  ;;  %v1158_v47 = vrot.slane %v2745_v54, 5 }
 0x10c   : > { %v1435_v61 = vpop.f32.mrf.mxu3  ;;  %2590 = vmatmul.msk.bf16.gmra.mxu2 %vm691_vm4, %v3443_v13  ;;  %v985_v11 = vpop.f32.mrf.mxu1 }
 0x10d   : > { %v1511_v34 = vadd.f32 %v1435_v61, %v1377_v39  ;;  %v986_v51 = vadd.f32 %v985_v11, %v3356_v24  ;;  %v1208_v39 = vunpack.c.l.b16 %v1152_v49  ;;  %v1209_v61 = vunpack.c.l.b16 %v1155_v18 }
 0x10f   : > { %v1304_v60 = vpop.f32.mrf.mxu2  ;;  %v3454_v58 = vadd.f32 %v1591_v2, %v1511_v34  ;;  %v3469_v31 = vpack.c.b16 %v1209_v61, %v1208_v39 }
 0x110   : > { %v1378_v30 = vadd.f32 %v1304_v60, %v984_v17  ;;  %v4069_v17 = vld [vmem:[#allocation15_spill] sm:$0xff] }
 0x111   : > { %4068 = vst [vmem:[#allocation9_spill] sm:$0xff] %v3454_v58  ;;  %2611 = vmatmul.msk.bf16.gmra.mxu3 %vm691_vm4, %v3450_v50 }
 0x112   : > { %4071 = vst [vmem:[#allocation31_spill] sm:$0xff] %v3469_v31 }
 0x113   : > { %v1594_v28 = vpop.f32.mrf.mxu0 }
 0x114   : > { %v1438_v24 = vpop.f32.mrf.mxu3  ;;  %v988_v38 = vpop.f32.mrf.mxu1 }
 0x115   : > { %v1512_v11 = vadd.f32 %v1438_v24, %v1378_v30  ;;  %v989_v2 = vadd.f32 %v988_v38, %v3378_v7  ;;  %v2746_v30 = vld [vmem:[%s2818_s30 + $0x98] sm:$0x1]  ;;  %v3476_v38 = vld [vmem:[%s2818_s30 + $0x90] sm:$0xff] }
 0x116   : > { %2628 = vmatmul.msk.bf16.gmra.mxu0 %vm691_vm4, %v4069_v17  ;;  %v1161_v49 = vrot.slane %v2746_v30, 5  ;;  %4072 = vst [vmem:[#allocation32_spill] sm:$0xff] %v3476_v38 }
 0x117   : > { %v1306_v34 = vpop.f32.mrf.mxu2  ;;  %2558 = vmatmul.msk.bf16.gmra.mxu1 %vm691_vm4, %v3450_v50  ;;  %v3467_v15 = vadd.f32 %v1594_v28, %v1512_v11  ;;  %v2747_v28 = vld [vmem:[%s2818_s30 + $0x90] sm:$0xf] }
 0x118   : > { %v1379_v46 = vadd.f32 %v1306_v34, %v986_v51  ;;  %v2575_v11 = vrot.slane %v2747_v28, 9  ;;  %v1160_v51 = vrot.slane %v1158_v47, 4 }
 0x119   : > { %4070 = vst [vmem:[#allocation30_spill] sm:$0xff] %v3467_v15 }
 0x11a   : > { %v1159_v54 = vsel %vm3148_vm7, %v2575_v11, %v1158_v47  ;;  %v2748_v11 = vld [vmem:[%s2818_s30 + $0xa0] sm:$0xf] }
 0x11b   : > { %v1596_v60 = vpop.f32.mrf.mxu0 }
 0x11c   : > { %v1440_v7 = vpop.f32.mrf.mxu3  ;;  %2591 = vmatmul.msk.bf16.gmra.mxu2 %vm691_vm4, %v3469_v31  ;;  %v990_v18 = vpop.f32.mrf.mxu1  ;;  %v2750_v31 = vld [vmem:[%s2818_s30 + $0x9c] sm:$0xf] }
 0x11d   : > { %v1513_v24 = vadd.f32 %v1440_v7, %v1379_v46  ;;  %v991_v58 = vadd.f32 %v990_v18, %v3392_v5  ;;  %v1162_v46 = vsel %vm3148_vm7, %v1160_v51, %v1161_v49  ;;  %v1210_v18 = vunpack.c.l.b16 %v1159_v54 }
 0x11e   : > { %v1211_v28 = vunpack.c.l.b16 %v1162_v46  ;;  %v1165_v51 = vrot.slane %v2748_v11, 5  ;;  %v2749_v46 = vld [vmem:[%s2818_s30 + $0xa4] sm:$0x1] }
 0x11f   : > { %v1309_v39 = vpop.f32.mrf.mxu2  ;;  %v3480_v61 = vadd.f32 %v1596_v60, %v1513_v24  ;;  %v4074_v60 = vld [vmem:[#allocation3_spill] sm:$0xff] }
 0x120   : > { %v1380_v34 = vadd.f32 %v1309_v39, %v989_v2  ;;  %v3494_v49 = vpack.c.b16 %v1211_v28, %v1210_v18 }
 0x121   : > { %4073 = vst [vmem:[#allocation33_spill] sm:$0xff] %v3480_v61  ;;  %2612 = vmatmul.msk.bf16.gmra.mxu3 %vm691_vm4, %v3476_v38 }
 0x122   : > { %4076 = vst [vmem:[#allocation35_spill] sm:$0xff] %v3494_v49 }
 0x123   : > { %v1599_v30 = vpop.f32.mrf.mxu0 }
 0x124   : > { %v1443_v7 = vpop.f32.mrf.mxu3  ;;  %v993_v5 = vpop.f32.mrf.mxu1 }
 0x125   : > { %v1514_v15 = vadd.f32 %v1443_v7, %v1380_v34  ;;  %v1168_v7 = vrot.slane %v2749_v46, 5 }
 0x126   : > { %2629 = vmatmul.msk.bf16.gmra.mxu0 %vm691_vm4, %v4074_v60  ;;  %v3501_v60 = vld [vmem:[%s2818_s30 + $0x9c] sm:$0xff] }
 0x127   : > { %v1311_v2 = vpop.f32.mrf.mxu2  ;;  %2559 = vmatmul.msk.bf16.gmra.mxu1 %vm691_vm4, %v3476_v38  ;;  %v3492_v47 = vadd.f32 %v1599_v30, %v1514_v15  ;;  %4077 = vst [vmem:[#allocation36_spill] sm:$0xff] %v3501_v60  ;;  %v2576_v38 = vrot.slane %v2750_v31, 9  ;;  %v1167_v15 = vrot.slane %v1165_v51, 4 }
 0x128   : > { %v1381_v24 = vadd.f32 %v1311_v2, %v991_v58  ;;  %v994_v58 = vadd.f32 %v993_v5, %v3231_v22  ;;  %v4079_v5 = vld [vmem:[#allocation4_spill] sm:$0xff] }
 0x129   : > { %4075 = vst [vmem:[#allocation34_spill] sm:$0xff] %v3492_v47  ;;  %v1166_v2 = vsel %vm3148_vm7, %v2576_v38, %v1165_v51 }
 0x12a   : > { %v1212_v31 = vunpack.c.l.b16 %v1166_v2 }
 0x12b   : > { %v1601_v39 = vpop.f32.mrf.mxu0 }
 0x12c   : > { %v1445_v54 = vpop.f32.mrf.mxu3  ;;  %2592 = vmatmul.msk.bf16.gmra.mxu2 %vm691_vm4, %v3494_v49  ;;  %v995_v34 = vpop.f32.mrf.mxu1 }
 0x12d   : > { %v1515_v61 = vadd.f32 %v1445_v54, %v1381_v24  ;;  %v1169_v24 = vsel %vm3148_vm7, %v1167_v15, %v1168_v7  ;;  %v4082_v15 = vld [vmem:[#allocation6_spill] sm:$0xff] }
 0x12e   : > { %v1213_v47 = vunpack.c.l.b16 %v1169_v24  ;;  %v4083_v24 = vld [vmem:[#allocation7_spill] sm:$0xff] }
 0x12f   : > { %v1314_v30 = vpop.f32.mrf.mxu2  ;;  %v3505_v18 = vadd.f32 %v1601_v39, %v1515_v61  ;;  %v996_v61 = vadd.f32 %v995_v34, %v3246_v43  ;;  %v3527_v34 = vld [vmem:[%s2818_s30 + $0xa8] sm:$0xff] }
 0x130   : > { %v1382_v28 = vadd.f32 %v1314_v30, %v994_v58  ;;  %v3520_v7 = vpack.c.b16 %v1213_v47, %v1212_v31  ;;  %v1172_v58 = vrot.slane %v4082_v15, 5  ;;  %4084 = vst [vmem:[#allocation6_spill] sm:$0xff] %v3527_v34 }
 0x131   : > { %4078 = vst [vmem:[#allocation37_spill] sm:$0xff] %v3505_v18  ;;  %2613 = vmatmul.msk.bf16.gmra.mxu3 %vm691_vm4, %v3501_v60  ;;  %v4085_v18 = vld [vmem:[#allocation5_spill] sm:$0xff] }
 0x132   : > { %4081 = vst [vmem:[#allocation39_spill] sm:$0xff] %v3520_v7 }
 0x133   : > { %v1604_v11 = vpop.f32.mrf.mxu0 }
 0x134   : > { %v1448_v54 = vpop.f32.mrf.mxu3  ;;  %v998_v46 = vpop.f32.mrf.mxu1 }
 0x135   : > { %v1516_v22 = vadd.f32 %v1448_v54, %v1382_v28  ;;  %v1175_v54 = vrot.slane %v4083_v24, 5 }
 0x136   : > { %2630 = vmatmul.msk.bf16.gmra.mxu0 %vm691_vm4, %v4079_v5  ;;  %v2577_v5 = vrot.slane %v4085_v18, 9 }
 0x137   : > { %v1316_v39 = vpop.f32.mrf.mxu2  ;;  %2560 = vmatmul.msk.bf16.gmra.mxu1 %vm691_vm4, %v3501_v60  ;;  %v3518_v38 = vadd.f32 %v1604_v11, %v1516_v22  ;;  %v1174_v11 = vrot.slane %v1172_v58, 4  ;;  %v999_v22 = vadd.f32 %v998_v46, %v3266_v9 }
 0x138   : > { %v1383_v51 = vadd.f32 %v1316_v39, %v996_v61  ;;  %v1173_v39 = vsel %vm3148_vm7, %v2577_v5, %v1172_v58  ;;  %v3545_v5 = vld [vmem:[%s2818_s30 + $0xc0] sm:$0xf] }
 0x139   : > { %4080 = vst [vmem:[#allocation38_spill] sm:$0xff] %v3518_v38  ;;  %v1214_v24 = vunpack.c.l.b16 %v1173_v39  ;;  %v4087_v38 = vld [vmem:[#allocation10_spill] sm:$0xff]  ;;  %v1541_v39 = vshrl.u32 %v3545_v5, 16 }
 0x13a   : > { %4088 = vst [vmem:[#allocation5_spill] sm:$0xff] %v3545_v5 }
 0x13b   : > { %v1606_v30 = vpop.f32.mrf.mxu0 }
 0x13c   : > { %v1450_v2 = vpop.f32.mrf.mxu3  ;;  %2593 = vmatmul.msk.bf16.gmra.mxu2 %vm691_vm4, %v3520_v7  ;;  %v1000_v28 = vpop.f32.mrf.mxu1 }
 0x13d   : > { %v1517_v43 = vadd.f32 %v1450_v2, %v1383_v51  ;;  %v1176_v51 = vsel %vm3148_vm7, %v1174_v11, %v1175_v54 }
 0x13e   : > { %v1215_v9 = vunpack.c.l.b16 %v1176_v51 }
 0x13f   : > { %v1319_v47 = vpop.f32.mrf.mxu2  ;;  %v3531_v31 = vadd.f32 %v1606_v30, %v1517_v43  ;;  %v1001_v30 = vadd.f32 %v1000_v28, %v3284_v29  ;;  %v1544_v29 = vshll.u32 %v3545_v5, 16 }
 0x140   : > { %v1384_v61 = vadd.f32 %v1319_v47, %v999_v22  ;;  %v3549_v11 = vpack.c.b16 %v1215_v9, %v1214_v24  ;;  %v3552_v22 = vld [vmem:[%s2818_s30 + $0xc4] sm:$0xf]  ;;  %v4092_v47 = vld [vmem:[#allocation12_spill] sm:$0xff]  ;;  %v4093_v24 = vld [vmem:[#allocation13_spill] sm:$0xff] }
 0x141   : > { %4086 = vst [vmem:[#allocation7_spill] sm:$0xff] %v3531_v31  ;;  %2614 = vmatmul.msk.bf16.gmra.mxu3 %vm691_vm4, %v3527_v34  ;;  %v1550_v28 = vshll.u32 %v3552_v22, 16  ;;  %v1182_v9 = vrot.slane %v4093_v24, 5  ;;  %v1546_v7 = vrot.slane %v1544_v29, 5 }
 0x142   : > { %4090 = vst [vmem:[#allocation41_spill] sm:$0xff] %v3549_v11 }
 0x143   : > { %v1609_v15 = vpop.f32.mrf.mxu0  ;;  %4091 = vst [vmem:[#allocation42_spill] sm:$0xff] %v3552_v22 }
 0x144   : > { %v1453_v18 = vpop.f32.mrf.mxu3  ;;  %v1003_v2 = vpop.f32.mrf.mxu1 }
 0x145   : > { %v1518_v46 = vadd.f32 %v1453_v18, %v1384_v61  ;;  %v1179_v61 = vrot.slane %v4092_v47, 5  ;;  %v1554_v18 = vshrl.u32 %v3552_v22, 16  ;;  %v1004_v5 = vadd.f32 %v1003_v2, %v3304_v48 }
 0x146   : > { %2631 = vmatmul.msk.bf16.gmra.mxu0 %vm691_vm4, %v4087_v38  ;;  %v1543_v38 = vrot.slane %v1541_v39, 4  ;;  %v1552_v22 = vrot.slane %v1550_v28, 5 }
 0x147   : > { %v1321_v43 = vpop.f32.mrf.mxu2  ;;  %2561 = vmatmul.msk.bf16.gmra.mxu1 %vm691_vm4, %v3527_v34  ;;  %v3547_v58 = vadd.f32 %v1609_v15, %v1518_v46  ;;  %v1556_v60 = vrot.slane %v1554_v18, 4 }
 0x148   : > { %v1385_v54 = vadd.f32 %v1321_v43, %v1001_v30  ;;  %v3563_v30 = vld [vmem:[%s2818_s30 + $0xb4] sm:$0xff]  ;;  %v4094_v43 = vld [vmem:[#allocation11_spill] sm:$0xff]  ;;  %v1547_v2 = vor.u32 %v1546_v7, %v1543_v38 }
 0x149   : > { %4089 = vst [vmem:[#allocation40_spill] sm:$0xff] %v3547_v58  ;;  %v2578_v47 = vrot.slane %v4094_v43, 9  ;;  %v1181_v58 = vrot.slane %v1179_v61, 4  ;;  %v1557_v39 = vor.u32 %v1556_v60, %v1552_v22 }
 0x14b   : > { %v1611_v51 = vpop.f32.mrf.mxu0  ;;  %v1558_v38 = vrot.slane %v1557_v39, 4 }
 0x14c   : > { %v1455_v31 = vpop.f32.mrf.mxu3  ;;  %2594 = vmatmul.msk.bf16.gmra.mxu2 %vm691_vm4, %v3549_v11  ;;  %v1005_v15 = vpop.f32.mrf.mxu1  ;;  %v3570_v11 = vld [vmem:[%s2818_s30 + $0xc8] sm:$0x1] }
 0x14d   : > { %v1519_v46 = vadd.f32 %v1455_v31, %v1385_v54  ;;  %v1180_v31 = vsel %vm3148_vm7, %v2578_v47, %v1179_v61  ;;  %v1183_v54 = vsel %vm3148_vm7, %v1181_v58, %v1182_v9  ;;  %v1560_v29 = vshll.u32 %v3570_v11, 16 }
 0x14e   : > { %v1216_v18 = vunpack.c.l.b16 %v1180_v31  ;;  %v1006_v24 = vadd.f32 %v1005_v15, %v3325_v63  ;;  %v1548_v58 = vrot.slane %v1547_v2, 4 }
 0x14f   : > { %v1324_v34 = vpop.f32.mrf.mxu2  ;;  %v3567_v49 = vadd.f32 %v1611_v51, %v1519_v46  ;;  %v1562_v60 = vrot.slane %v1560_v29, 5 }
 0x150   : > { %v1386_v17 = vadd.f32 %v1324_v34, %v1004_v5  ;;  %v1217_v34 = vunpack.c.l.b16 %v1183_v54  ;;  %v3595_v54 = vld [vmem:[%s2818_s30 + $0xc0] sm:$0xff] }
 0x151   : > { %2615 = vmatmul.msk.bf16.gmra.mxu3 %vm691_vm4, %v3563_v30  ;;  %v1563_v63 = vsel %vm2845_vm3, %v1558_v38, %v1562_v60 }
 0x152   : > { %v3586_v46 = vpack.c.b16 %v1217_v34, %v1216_v18  ;;  %v1567_v39 = vunpack.c.l.b16 %v1563_v63 }
 0x153   : > { %v1614_v48 = vpop.f32.mrf.mxu0 }
 0x154   : > { %v1458_v28 = vpop.f32.mrf.mxu3  ;;  %v1008_v51 = vpop.f32.mrf.mxu1 }
 0x155   : > { %v1520_v5 = vadd.f32 %v1458_v28, %v1386_v17  ;;  %v1553_v17 = vsel %vm2845_vm3, %v1548_v58, %v1552_v22 }
 0x156   : > { %2632 = vmatmul.msk.bf16.gmra.mxu0 %vm691_vm4, %v3157_v53  ;;  %v1566_v2 = vunpack.c.l.b16 %v1553_v17 }
 0x157   : > { %v1326_v61 = vpop.f32.mrf.mxu2  ;;  %2562 = vmatmul.msk.bf16.gmra.mxu1 %vm691_vm4, %v3563_v30  ;;  %v3584_v7 = vadd.f32 %v1614_v48, %v1520_v5  ;;  %v1009_v48 = vadd.f32 %v1008_v51, %v3346_v26 }
 0x158   : > { %v1387_v9 = vadd.f32 %v1326_v61, %v1006_v24  ;;  %v3602_v22 = vpack.c.b16 %v1567_v39, %v1566_v2 }
 0x15b   : > { %v1616_v43 = vpop.f32.mrf.mxu0 }
 0x15c   : > { %v1460_v15 = vpop.f32.mrf.mxu3  ;;  %2595 = vmatmul.msk.bf16.gmra.mxu2 %vm691_vm4, %v3586_v46  ;;  %v1010_v47 = vpop.f32.mrf.mxu1 }
 0x15d   : > { %v1521_v31 = vadd.f32 %v1460_v15, %v1387_v9  ;;  %v1011_v26 = vadd.f32 %v1010_v47, %v3363_v0 }
 0x15f   : > { %v1329_v29 = vpop.f32.mrf.mxu2  ;;  %v3598_v28 = vadd.f32 %v1616_v43, %v1521_v31 }
 0x160   : > { %v1388_v18 = vadd.f32 %v1329_v29, %v1009_v48 }
 0x161   : > { %2616 = vmatmul.msk.bf16.gmra.mxu3 %vm691_vm4, %v3595_v54 }
 0x163   : > { %v1619_v34 = vpop.f32.mrf.mxu0 }
 0x164   : > { %v1463_v5 = vpop.f32.mrf.mxu3  ;;  %v1013_v24 = vpop.f32.mrf.mxu1 }
 0x165   : > { %v1522_v61 = vadd.f32 %v1463_v5, %v1388_v18  ;;  %v1014_v63 = vadd.f32 %v1013_v24, %v3248_v16 }
 0x166   : > { %2633 = vmatmul.msk.bf16.gmra.mxu0 %vm691_vm4, %v3602_v22 }
 0x167   : > { %v1331_v51 = vpop.f32.mrf.mxu2  ;;  %2636 = vmatmul.msk.bf16.vlgmr.msra.gmra.mxu1 %vm691_vm4, %v3182_v55  ;;  %v3609_v58 = vadd.f32 %v1619_v34, %v1522_v61 }
 0x168   : > { %v1389_v38 = vadd.f32 %v1331_v51, %v1011_v26 }
 0x16b   : > { %v1621_v60 = vpop.f32.mrf.mxu0 }
 0x16c   : > { %v1465_v9 = vpop.f32.mrf.mxu3  ;;  %2657 = vmatmul.msk.bf16.vlgmr.msra.gmra.mxu2 %vm691_vm4, %v3194_v6  ;;  %v1015_v43 = vpop.f32.mrf.mxu1 }
 0x16d   : > { %v1523_v17 = vadd.f32 %v1465_v9, %v1389_v38  ;;  %v1016_v6 = vadd.f32 %v1015_v43, %v3270_v57 }
 0x16f   : > { %v1334_v15 = vpop.f32.mrf.mxu2  ;;  %v3614_v31 = vadd.f32 %v1621_v60, %v1523_v17 }
 0x170   : > { %v1390_v0 = vadd.f32 %v1334_v15, %v1014_v63 }
 0x171   : > { %2674 = vmatmul.msk.bf16.vlgmr.msra.gmra.mxu3 %vm691_vm4, %v3085_v45 }
 0x173   : > { %v1624_v55 = vpop.f32.mrf.mxu0 }
 0x174   : > { %v1468_v47 = vpop.f32.mrf.mxu3  ;;  %v1018_v48 = vpop.f32.mrf.mxu1 }
 0x175   : > { %v1524_v2 = vadd.f32 %v1468_v47, %v1390_v0  ;;  %v1019_v24 = vadd.f32 %v1018_v48, %v3290_v59 }
 0x176   : > { %2692 = vmatmul.msk.bf16.vlgmr.msra.gmra.mxu0 %vm691_vm4, %v3208_v52 }
 0x177   : > { %v1336_v39 = vpop.f32.mrf.mxu2  ;;  %2637 = vmatmul.msk.bf16.gmra.mxu1 %vm691_vm4, %v3208_v52  ;;  %v3623_v16 = vadd.f32 %v1624_v55, %v1524_v2 }
 0x178   : > { %v1391_v29 = vadd.f32 %v1336_v39, %v1016_v6 }
 0x17b   : > { %v1626_v18 = vpop.f32.mrf.mxu0 }
 0x17c   : > { %v1470_v34 = vpop.f32.mrf.mxu3  ;;  %2658 = vmatmul.msk.bf16.gmra.mxu2 %vm691_vm4, %v3214_v41  ;;  %v1020_v45 = vpop.f32.mrf.mxu1 }
 0x17d   : > { %v1525_v5 = vadd.f32 %v1470_v34, %v1391_v29  ;;  %v1021_v41 = vadd.f32 %v1020_v45, %v3308_v3 }
 0x17f   : > { %v1339_v61 = vpop.f32.mrf.mxu2  ;;  %v3628_v26 = vadd.f32 %v1626_v18, %v1525_v5 }
 0x180   : > { %v1392_v57 = vadd.f32 %v1339_v61, %v1019_v24 }
 0x181   : > { %2675 = vmatmul.msk.bf16.gmra.mxu3 %vm691_vm4, %v3175_v20 }
 0x183   : > { %v1629_v52 = vpop.f32.mrf.mxu0 }
 0x184   : > { %v1473_v51 = vpop.f32.mrf.mxu3  ;;  %v1023_v38 = vpop.f32.mrf.mxu1 }
 0x185   : > { %v1526_v60 = vadd.f32 %v1473_v51, %v1392_v57  ;;  %v1024_v0 = vadd.f32 %v1023_v38, %v3327_v23 }
 0x186   : > { %2693 = vmatmul.msk.bf16.gmra.mxu0 %vm691_vm4, %v3228_v40 }
 0x187   : > { %v1341_v9 = vpop.f32.mrf.mxu2  ;;  %2638 = vmatmul.msk.bf16.gmra.mxu1 %vm691_vm4, %v3228_v40  ;;  %v3637_v59 = vadd.f32 %v1629_v52, %v1526_v60 }
 0x188   : > { %v1393_v43 = vadd.f32 %v1341_v9, %v1021_v41 }
 0x18b   : > { %v1631_v17 = vpop.f32.mrf.mxu0 }
 0x18c   : > { %v1475_v63 = vpop.f32.mrf.mxu3  ;;  %2659 = vmatmul.msk.bf16.gmra.mxu2 %vm691_vm4, %v3236_v8  ;;  %v1025_v20 = vpop.f32.mrf.mxu1 }
 0x18d   : > { %v1527_v15 = vadd.f32 %v1475_v63, %v1393_v43  ;;  %v1026_v8 = vadd.f32 %v1025_v20, %v3348_v1  ;;  %v4095_v43 = vld [vmem:[#allocation18_spill] sm:$0xff]  ;;  %v4096_v63 = vld [vmem:[#allocation16_spill] sm:$0xff] }
 0x18f   : > { %v1344_v55 = vpop.f32.mrf.mxu2  ;;  %v3642_v47 = vadd.f32 %v1631_v17, %v1527_v15 }
 0x190   : > { %v1394_v3 = vadd.f32 %v1344_v55, %v1024_v0  ;;  %v4097_v55 = vld [vmem:[#allocation8_spill] sm:$0xff] }
 0x191   : > { %2676 = vmatmul.msk.bf16.gmra.mxu3 %vm691_vm4, %v2857_v62 }
 0x193   : > { %v1634_v40 = vpop.f32.mrf.mxu0 }
 0x194   : > { %v1478_v48 = vpop.f32.mrf.mxu3  ;;  %v1028_v2 = vpop.f32.mrf.mxu1 }
 0x195   : > { %v1528_v6 = vadd.f32 %v1478_v48, %v1394_v3  ;;  %v1029_v5 = vadd.f32 %v1028_v2, %v3370_v56  ;;  %v4098_v2 = vld [vmem:[#allocation21_spill] sm:$0xff] }
 0x196   : > { %2694 = vmatmul.msk.bf16.gmra.mxu0 %vm691_vm4, %v3256_v12 }
 0x197   : > { %v1346_v39 = vpop.f32.mrf.mxu2  ;;  %2639 = vmatmul.msk.bf16.gmra.mxu1 %vm691_vm4, %v3256_v12  ;;  %v3651_v23 = vadd.f32 %v1634_v40, %v1528_v6  ;;  %v4099_v6 = vld [vmem:[#allocation17_spill] sm:$0xff] }
 0x198   : > { %v1395_v29 = vadd.f32 %v1346_v39, %v1026_v8 }
 0x19b   : > { %v1636_v18 = vpop.f32.mrf.mxu0 }
 0x19c   : > { %v1480_v34 = vpop.f32.mrf.mxu3  ;;  %2660 = vmatmul.msk.bf16.gmra.mxu2 %vm691_vm4, %v3264_v27  ;;  %v1030_v62 = vpop.f32.mrf.mxu1 }
 0x19d   : > { %v1529_v45 = vadd.f32 %v1480_v34, %v1395_v29  ;;  %v1031_v27 = vadd.f32 %v1030_v62, %v3385_v44 }
 0x19f   : > { %v1349_v24 = vpop.f32.mrf.mxu2  ;;  %v3656_v61 = vadd.f32 %v1636_v18, %v1529_v45  ;;  %v4100_v45 = vld [vmem:[#allocation22_spill] sm:$0xff] }
 0x1a0   : > { %v1396_v1 = vadd.f32 %v1349_v24, %v1029_v5 }
 0x1a1   : > { %2677 = vmatmul.msk.bf16.gmra.mxu3 %vm691_vm4, %v2931_v37 }
 0x1a3   : > { %v1639_v12 = vpop.f32.mrf.mxu0 }
 0x1a4   : > { %v1483_v57 = vpop.f32.mrf.mxu3  ;;  %v1033_v52 = vpop.f32.mrf.mxu1 }
 0x1a5   : > { %v1530_v51 = vadd.f32 %v1483_v57, %v1396_v1  ;;  %v1034_v20 = vadd.f32 %v1033_v52, %v4096_v63  ;;  %v4101_v1 = vld [vmem:[#allocation19_spill] sm:$0xff] }
 0x1a6   : > { %2695 = vmatmul.msk.bf16.gmra.mxu0 %vm691_vm4, %v3288_v33 }
 0x1a7   : > { %v1351_v38 = vpop.f32.mrf.mxu2  ;;  %2640 = vmatmul.msk.bf16.gmra.mxu1 %vm691_vm4, %v3288_v33  ;;  %v3665_v56 = vadd.f32 %v1639_v12, %v1530_v51 }
 0x1a8   : > { %v1397_v60 = vadd.f32 %v1351_v38, %v1031_v27  ;;  %v4102_v27 = vld [vmem:[#allocation14_spill] sm:$0xff] }
 0x1ab   : > { %v1641_v41 = vpop.f32.mrf.mxu0 }
 0x1ac   : > { %v1485_v9 = vpop.f32.mrf.mxu3  ;;  %2661 = vmatmul.msk.bf16.gmra.mxu2 %vm691_vm4, %v4095_v43  ;;  %v1035_v37 = vpop.f32.mrf.mxu1  ;;  %v4103_v43 = vld [vmem:[#allocation24_spill] sm:$0xff] }
 0x1ad   : > { %v1531_v17 = vadd.f32 %v1485_v9, %v1397_v60  ;;  %v1036_v8 = vadd.f32 %v1035_v37, %v4099_v6  ;;  %v4104_v37 = vld [vmem:[#allocation20_spill] sm:$0xff] }
 0x1af   : > { %v1354_v15 = vpop.f32.mrf.mxu2  ;;  %v3670_v0 = vadd.f32 %v1641_v41, %v1531_v17 }
 0x1b0   : > { %v1398_v44 = vadd.f32 %v1354_v15, %v1034_v20 }
 0x1b1   : > { %2678 = vmatmul.msk.bf16.gmra.mxu3 %vm691_vm4, %v4097_v55 }
 0x1b3   : > { %v1644_v33 = vpop.f32.mrf.mxu0 }
 0x1b4   : > { %v1488_v3 = vpop.f32.mrf.mxu3  ;;  %v1038_v40 = vpop.f32.mrf.mxu1 }
 0x1b5   : > { %v1532_v48 = vadd.f32 %v1488_v3, %v1398_v44  ;;  %v1039_v12 = vadd.f32 %v1038_v40, %v4101_v1  ;;  %v4109_v1 = vld [vmem:[#allocation25_spill] sm:$0xff] }
 0x1b6   : > { %2696 = vmatmul.msk.bf16.gmra.mxu0 %vm691_vm4, %v4098_v2 }
 0x1b7   : > { %v1356_v39 = vpop.f32.mrf.mxu2  ;;  %2641 = vmatmul.msk.bf16.gmra.mxu1 %vm691_vm4, %v4098_v2  ;;  %v3679_v29 = vadd.f32 %v1644_v33, %v1532_v48  ;;  %v4105_v33 = vld [vmem:[#allocation26_spill] sm:$0xff]  ;;  %v4106_v48 = vld [vmem:[#allocation23_spill] sm:$0xff] }
 0x1b8   : > { %v1399_v18 = vadd.f32 %v1356_v39, %v1036_v8 }
 0x1bb   : > { %v1646_v34 = vpop.f32.mrf.mxu0 }
 0x1bc   : > { %v1490_v62 = vpop.f32.mrf.mxu3  ;;  %2662 = vmatmul.msk.bf16.gmra.mxu2 %vm691_vm4, %v4100_v45  ;;  %v1040_v5 = vpop.f32.mrf.mxu1 }
 0x1bd   : > { %v1533_v24 = vadd.f32 %v1490_v62, %v1399_v18  ;;  %v1041_v17 = vadd.f32 %v1040_v5, %v4104_v37  ;;  %v4107_v18 = vld [vmem:[#allocation2_spill] sm:$0xff] }
 0x1bf   : > { %v1359_v57 = vpop.f32.mrf.mxu2  ;;  %v3684_v52 = vadd.f32 %v1646_v34, %v1533_v24  ;;  %v4108_v24 = vld [vmem:[#allocation28_spill] sm:$0xff] }
 0x1c0   : > { %v1400_v51 = vadd.f32 %v1359_v57, %v1039_v12 }
 0x1c1   : > { %2679 = vmatmul.msk.bf16.gmra.mxu3 %vm691_vm4, %v4102_v27 }
 0x1c3   : > { %v1649_v38 = vpop.f32.mrf.mxu0 }
 0x1c4   : > { %v1493_v60 = vpop.f32.mrf.mxu3  ;;  %v1043_v41 = vpop.f32.mrf.mxu1 }
 0x1c5   : > { %v1534_v9 = vadd.f32 %v1493_v60, %v1400_v51  ;;  %v1044_v2 = vadd.f32 %v1043_v41, %v4106_v48 }
 0x1c6   : > { %2697 = vmatmul.msk.bf16.gmra.mxu0 %vm691_vm4, %v4103_v43 }
 0x1c7   : > { %v1361_v63 = vpop.f32.mrf.mxu2  ;;  %2642 = vmatmul.msk.bf16.gmra.mxu1 %vm691_vm4, %v4103_v43  ;;  %v3693_v20 = vadd.f32 %v1649_v38, %v1534_v9  ;;  %v4110_v43 = vld [vmem:[#allocation27_spill] sm:$0xff] }
 0x1c8   : > { %v1401_v15 = vadd.f32 %v1361_v63, %v1041_v17 }
 0x1cb   : > { %v1651_v44 = vpop.f32.mrf.mxu0 }
 0x1cc   : > { %v1495_v55 = vpop.f32.mrf.mxu3  ;;  %2663 = vmatmul.msk.bf16.gmra.mxu2 %vm691_vm4, %v4105_v33  ;;  %v1045_v3 = vpop.f32.mrf.mxu1 }
 0x1cd   : > { %v1535_v40 = vadd.f32 %v1495_v55, %v1401_v15  ;;  %v1046_v12 = vadd.f32 %v1045_v3, %v4109_v1 }
 0x1cf   : > { %v1364_v6 = vpop.f32.mrf.mxu2  ;;  %v3698_v8 = vadd.f32 %v1651_v44, %v1535_v40  ;;  %v4111_v40 = vld [vmem:[#allocation29_spill] sm:$0xff] }
 0x1d0   : > { %v1402_v39 = vadd.f32 %v1364_v6, %v1044_v2 }
 0x1d1   : > { %2680 = vmatmul.msk.bf16.gmra.mxu3 %vm691_vm4, %v4107_v18 }
 0x1d3   : > { %v1654_v34 = vpop.f32.mrf.mxu0 }
 0x1d4   : > { %v1498_v62 = vpop.f32.mrf.mxu3  ;;  %v1048_v45 = vpop.f32.mrf.mxu1 }
 0x1d5   : > { %v1536_v5 = vadd.f32 %v1498_v62, %v1402_v39  ;;  %v1049_v37 = vadd.f32 %v1048_v45, %v4110_v43 }
 0x1d6   : > { %2698 = vmatmul.msk.bf16.gmra.mxu0 %vm691_vm4, %v4108_v24 }
 0x1d7   : > { %v1366_v57 = vpop.f32.mrf.mxu2  ;;  %2643 = vmatmul.msk.bf16.gmra.mxu1 %vm691_vm4, %v4108_v24  ;;  %v3707_v51 = vadd.f32 %v1654_v34, %v1536_v5 }
 0x1d8   : > { %v1403_v27 = vadd.f32 %v1366_v57, %v1046_v12 }
 0x1db   : > { %v1656_v38 = vpop.f32.mrf.mxu0 }
 0x1dc   : > { %v1500_v60 = vpop.f32.mrf.mxu3  ;;  %2664 = vmatmul.msk.bf16.gmra.mxu2 %vm691_vm4, %v3400_v19  ;;  %v1050_v41 = vpop.f32.mrf.mxu1 }
 0x1dd   : > { %v1537_v9 = vadd.f32 %v1500_v60, %v1403_v27  ;;  %v1051_v19 = vadd.f32 %v1050_v41, %v4111_v40  ;;  %v3740_v27 = vld [vmem:[%s3993_s3] ss:$0 sm:$0xff] }
 0x1df   : > { %v1369_v17 = vpop.f32.mrf.mxu2  ;;  %v3712_v63 = vadd.f32 %v1656_v38, %v1537_v9 }
 0x1e0   : > { %v1404_v15 = vadd.f32 %v1369_v17, %v1049_v37 }
 0x1e1   : > { %2681 = vmatmul.msk.bf16.gmra.mxu3 %vm691_vm4, %v2956_v4 }
 0x1e3   : > { %v1659_v44 = vpop.f32.mrf.mxu0 }
 0x1e4   : > { %v1503_v55 = vpop.f32.mrf.mxu3  ;;  %v1724_v33 = vpop.f32.mrf.mxu1 }
 0x1e5   : > { %v1538_v3 = vadd.f32 %v1503_v55, %v1404_v15  ;;  %v1804_v62 = vadd.f32 %v1724_v33, %v3415_v32 }
 0x1e6   : > { %2699 = vmatmul.msk.bf16.gmra.mxu0 %vm691_vm4, %v3417_v10 }
 0x1e7   : > { %v1371_v48 = vpop.f32.mrf.mxu2  ;;  %2644 = vmatmul.msk.bf16.gmra.mxu1 %vm691_vm4, %v3417_v10  ;;  %v3721_v2 = vadd.f32 %v1659_v44, %v1538_v3  ;;  %v4112_v3 = vld [vmem:[#allocation15_spill] sm:$0xff] }
 0x1e8   : > { %v1405_v6 = vadd.f32 %v1371_v48, %v1051_v19 }
 0x1eb   : > { %v1661_v39 = vpop.f32.mrf.mxu0 }
 0x1ec   : > { %v1505_v18 = vpop.f32.mrf.mxu3  ;;  %2665 = vmatmul.msk.bf16.gmra.mxu2 %vm691_vm4, %v3424_v42  ;;  %v1726_v4 = vpop.f32.mrf.mxu1  ;;  %v3733_v42 = vld [vmem:[%s3992_s2] ss:$0 sm:$0xff] }
 0x1ed   : > { %v1539_v34 = vadd.f32 %v1505_v18, %v1405_v6 }
 0x1ef   : > { %v1858_v45 = vpop.f32.mrf.mxu2  ;;  %v3726_v5 = vadd.f32 %v1661_v39, %v1539_v34  ;;  %v4114_v34 = vld [vmem:[#allocation9_spill] sm:$0xff] }
 0x1f0   : > { %v1938_v10 = vadd.f32 %v1858_v45, %v1804_v62 }
 0x1f1   : > { %2682 = vmatmul.msk.bf16.gmra.mxu3 %vm691_vm4, %v3041_v25  ;;  %v1805_v25 = vadd.f32 %v1726_v4, %v3428_v35  ;;  %v4113_v4 = vld [vmem:[#allocation31_spill] sm:$0xff] }
 0x1f3   : > { %v2154_v24 = vpop.f32.mrf.mxu0 }
 0x1f4   : > { %v2014_v1 = vpop.f32.mrf.mxu3  ;;  %v1729_v12 = vpop.f32.mrf.mxu1 }
 0x1f5   : > { %v2094_v57 = vadd.f32 %v2014_v1, %v1938_v10  ;;  %v1806_v44 = vadd.f32 %v1729_v12, %v3441_v21 }
 0x1f6   : > { %2700 = vmatmul.msk.bf16.gmra.mxu0 %vm691_vm4, %v3443_v13 }
 0x1f7   : > { %v2234_v32 = vadd.f32 %v2154_v24, %v2094_v57  ;;  %v1860_v38 = vpop.f32.mrf.mxu2  ;;  %2645 = vmatmul.msk.bf16.gmra.mxu1 %vm691_vm4, %v3443_v13 }
 0x1f8   : > { %v1939_v41 = vadd.f32 %v1860_v38, %v1805_v25 }
 0x1f9   : > { %v2270_v60 = vmul.f32 %v3733_v42, %v2234_v32  ;;  %v4115_v32 = vld [vmem:[#allocation32_spill] sm:$0xff] }
 0x1fb   : > { %v2306_v9 = vadd.f32 %v3740_v27, %v2270_v60  ;;  %v2156_v43 = vpop.f32.mrf.mxu0 }
 0x1fc   : > { %v2016_v37 = vpop.f32.mrf.mxu3  ;;  %2666 = vmatmul.msk.bf16.gmra.mxu2 %vm691_vm4, %v3450_v50  ;;  %v1731_v35 = vpop.f32.mrf.mxu1 }
 0x1fd   : > { %v2338_v13 = vmax.f32 %v2306_v9, 0.0  ;;  %v2095_v17 = vadd.f32 %v2016_v37, %v1939_v41  ;;  %v1807_v62 = vadd.f32 %v1731_v35, %v4114_v34  ;;  %v4116_v9 = vld [vmem:[#allocation30_spill] sm:$0xff] }
 0x1ff   : > { %2371 = vst.msk [vmem:[%s3751_s22] sm:$0xff] %vm2370_vm8, %v2338_v13  ;;  %v2235_v15 = vadd.f32 %v2156_v43, %v2095_v17  ;;  %v1863_v55 = vpop.f32.mrf.mxu2  ;;  %v4117_v13 = vld [vmem:[#allocation3_spill] sm:$0xff] }
 0x200   : > { %v1940_v40 = vadd.f32 %v1863_v55, %v1806_v44 }
 0x201   : > { %v2271_v33 = vmul.f32 %v3733_v42, %v2235_v15  ;;  %2683 = vmatmul.msk.bf16.gmra.mxu3 %vm691_vm4, %v4112_v3 }
 0x203   : > { %v2307_v19 = vadd.f32 %v3740_v27, %v2271_v33  ;;  %v2159_v48 = vpop.f32.mrf.mxu0 }
 0x204   : > { %v2019_v50 = vpop.f32.mrf.mxu3  ;;  %v1734_v6 = vpop.f32.mrf.mxu1 }
 0x205   : > { %v2339_v39 = vmax.f32 %v2307_v19, 0.0  ;;  %v2096_v18 = vadd.f32 %v2019_v50, %v1940_v40  ;;  %v1808_v43 = vadd.f32 %v1734_v6, %v4116_v9  ;;  %v4118_v19 = vld [vmem:[#allocation35_spill] sm:$0xff]  ;;  %v4119_v50 = vld [vmem:[#allocation33_spill] sm:$0xff] }
 0x206   : > { %2701 = vmatmul.msk.bf16.gmra.mxu0 %vm691_vm4, %v4113_v4 }
 0x207   : > { %2372 = vst.msk [vmem:[%s3751_s22 + $0x8] sm:$0xff] %vm2370_vm8, %v2339_v39  ;;  %v2236_v21 = vadd.f32 %v2159_v48, %v2096_v18  ;;  %v1865_v45 = vpop.f32.mrf.mxu2  ;;  %2646 = vmatmul.msk.bf16.gmra.mxu1 %vm691_vm4, %v4113_v4 }
 0x208   : > { %v1941_v24 = vadd.f32 %v1865_v45, %v1807_v62  ;;  %v4120_v45 = vld [vmem:[#allocation36_spill] sm:$0xff] }
 0x209   : > { %v2272_v10 = vmul.f32 %v3733_v42, %v2236_v21 }
 0x20b   : > { %v2308_v1 = vadd.f32 %v3740_v27, %v2272_v10  ;;  %v2161_v12 = vpop.f32.mrf.mxu0 }
 0x20c   : > { %v2021_v57 = vpop.f32.mrf.mxu3  ;;  %2667 = vmatmul.msk.bf16.gmra.mxu2 %vm691_vm4, %v4115_v32  ;;  %v1736_v25 = vpop.f32.mrf.mxu1 }
 0x20d   : > { %v2340_v38 = vmax.f32 %v2308_v1, 0.0  ;;  %v2097_v60 = vadd.f32 %v2021_v57, %v1941_v24  ;;  %v1809_v6 = vadd.f32 %v1736_v25, %v4119_v50  ;;  %v4121_v57 = vld [vmem:[#allocation34_spill] sm:$0xff] }
 0x20f   : > { %2373 = vst.msk [vmem:[%s3751_s22 + $0x10] sm:$0xff] %vm2370_vm8, %v2340_v38  ;;  %v2237_v41 = vadd.f32 %v2161_v12, %v2097_v60  ;;  %v1868_v37 = vpop.f32.mrf.mxu2  ;;  %v4122_v60 = vld [vmem:[#allocation4_spill] sm:$0xff] }
 0x210   : > { %v1942_v17 = vadd.f32 %v1868_v37, %v1808_v43 }
 0x211   : > { %v2273_v35 = vmul.f32 %v3733_v42, %v2237_v41  ;;  %2684 = vmatmul.msk.bf16.gmra.mxu3 %vm691_vm4, %v4117_v13 }
 0x213   : > { %v2309_v15 = vadd.f32 %v3740_v27, %v2273_v35  ;;  %v2164_v44 = vpop.f32.mrf.mxu0 }
 0x214   : > { %v2024_v55 = vpop.f32.mrf.mxu3  ;;  %v1739_v33 = vpop.f32.mrf.mxu1 }
 0x215   : > { %v2341_v3 = vmax.f32 %v2309_v15, 0.0  ;;  %v2098_v40 = vadd.f32 %v2024_v55, %v1942_v17  ;;  %v1810_v32 = vadd.f32 %v1739_v33, %v4121_v57  ;;  %v4123_v15 = vld [vmem:[#allocation39_spill] sm:$0xff]  ;;  %v4124_v55 = vld [vmem:[#allocation37_spill] sm:$0xff] }
 0x216   : > { %2702 = vmatmul.msk.bf16.gmra.mxu0 %vm691_vm4, %v4118_v19 }
 0x217   : > { %2374 = vst.msk [vmem:[%s3751_s22 + $0x18] sm:$0xff] %vm2370_vm8, %v2341_v3  ;;  %v2238_v48 = vadd.f32 %v2164_v44, %v2098_v40  ;;  %v1870_v39 = vpop.f32.mrf.mxu2  ;;  %2647 = vmatmul.msk.bf16.gmra.mxu1 %vm691_vm4, %v4118_v19 }
 0x218   : > { %v1943_v4 = vadd.f32 %v1870_v39, %v1809_v6  ;;  %v4125_v39 = vld [vmem:[#allocation6_spill] sm:$0xff] }
 0x219   : > { %v2274_v18 = vmul.f32 %v3733_v42, %v2238_v48 }
 0x21b   : > { %v2310_v21 = vadd.f32 %v3740_v27, %v2274_v18  ;;  %v2166_v34 = vpop.f32.mrf.mxu0 }
 0x21c   : > { %v2026_v62 = vpop.f32.mrf.mxu3  ;;  %2668 = vmatmul.msk.bf16.gmra.mxu2 %vm691_vm4, %v4120_v45  ;;  %v1741_v10 = vpop.f32.mrf.mxu1 }
 0x21d   : > { %v2342_v24 = vmax.f32 %v2310_v21, 0.0  ;;  %v2099_v1 = vadd.f32 %v2026_v62, %v1943_v4  ;;  %v1811_v33 = vadd.f32 %v1741_v10, %v4124_v55  ;;  %v4126_v62 = vld [vmem:[#allocation38_spill] sm:$0xff] }
 0x21f   : > { %2375 = vst.msk [vmem:[%s3751_s22 + $0x20] sm:$0xff] %vm2370_vm8, %v2342_v24  ;;  %v2239_v12 = vadd.f32 %v2166_v34, %v2099_v1  ;;  %v1873_v25 = vpop.f32.mrf.mxu2  ;;  %v4127_v1 = vld [vmem:[#allocation10_spill] sm:$0xff] }
 0x220   : > { %v1944_v41 = vadd.f32 %v1873_v25, %v1810_v32 }
 0x221   : > { %v2275_v38 = vmul.f32 %v3733_v42, %v2239_v12  ;;  %2685 = vmatmul.msk.bf16.gmra.mxu3 %vm691_vm4, %v4122_v60 }
 0x223   : > { %v2311_v9 = vadd.f32 %v3740_v27, %v2275_v38  ;;  %v2169_v43 = vpop.f32.mrf.mxu0 }
 0x224   : > { %v2029_v37 = vpop.f32.mrf.mxu3  ;;  %v1744_v35 = vpop.f32.mrf.mxu1 }
 0x225   : > { %v2343_v13 = vmax.f32 %v2311_v9, 0.0  ;;  %v2100_v17 = vadd.f32 %v2029_v37, %v1944_v41  ;;  %v1812_v45 = vadd.f32 %v1744_v35, %v4126_v62  ;;  %v4128_v9 = vld [vmem:[#allocation41_spill] sm:$0xff]  ;;  %v4129_v37 = vld [vmem:[#allocation7_spill] sm:$0xff] }
 0x226   : > { %2703 = vmatmul.msk.bf16.gmra.mxu0 %vm691_vm4, %v4123_v15 }
 0x227   : > { %2376 = vst.msk [vmem:[%s3751_s22 + $0x28] sm:$0xff] %vm2370_vm8, %v2343_v13  ;;  %v2240_v44 = vadd.f32 %v2169_v43, %v2100_v17  ;;  %v1875_v3 = vpop.f32.mrf.mxu2  ;;  %2648 = vmatmul.msk.bf16.gmra.mxu1 %vm691_vm4, %v4123_v15 }
 0x228   : > { %v1945_v19 = vadd.f32 %v1875_v3, %v1811_v33 }
 0x229   : > { %v2276_v40 = vmul.f32 %v3733_v42, %v2240_v44 }
 0x22b   : > { %v2312_v48 = vadd.f32 %v3740_v27, %v2276_v40  ;;  %v2171_v50 = vpop.f32.mrf.mxu0 }
 0x22c   : > { %v2031_v6 = vpop.f32.mrf.mxu3  ;;  %2669 = vmatmul.msk.bf16.gmra.mxu2 %vm691_vm4, %v4125_v39  ;;  %v1746_v18 = vpop.f32.mrf.mxu1 }
 0x22d   : > { %v2344_v4 = vmax.f32 %v2312_v48, 0.0  ;;  %v2101_v21 = vadd.f32 %v2031_v6, %v1945_v19  ;;  %v1813_v35 = vadd.f32 %v1746_v18, %v4129_v37 }
 0x22f   : > { %2377 = vst.msk [vmem:[%s3751_s22 + $0x30] sm:$0xff] %vm2370_vm8, %v2344_v4  ;;  %v2241_v34 = vadd.f32 %v2171_v50, %v2101_v21  ;;  %v1878_v10 = vpop.f32.mrf.mxu2  ;;  %v4130_v50 = vld [vmem:[#allocation40_spill] sm:$0xff] }
 0x230   : > { %v1946_v12 = vadd.f32 %v1878_v10, %v1812_v45  ;;  %v3836_v45 = vld [vmem:[%s2818_s30 + $0xcc] sm:$0xf]  ;;  %v3839_v10 = vld [vmem:[%s2818_s30 + $0xd0] sm:$0xf] }
 0x231   : > { %v2277_v24 = vmul.f32 %v3733_v42, %v2241_v34  ;;  %2686 = vmatmul.msk.bf16.gmra.mxu3 %vm691_vm4, %v4127_v1 }
 0x233   : > { %v2313_v57 = vadd.f32 %v3740_v27, %v2277_v24  ;;  %v2174_v32 = vpop.f32.mrf.mxu0 }
 0x234   : > { %v2034_v25 = vpop.f32.mrf.mxu3  ;;  %v1749_v38 = vpop.f32.mrf.mxu1 }
 0x235   : > { %v2345_v60 = vmax.f32 %v2313_v57, 0.0  ;;  %v2102_v41 = vadd.f32 %v2034_v25, %v1946_v12  ;;  %v1814_v6 = vadd.f32 %v1749_v38, %v4130_v50  ;;  %v1974_v38 = vshll.u32 %v3836_v45, 16 }
 0x236   : > { %2704 = vmatmul.msk.bf16.gmra.mxu0 %vm691_vm4, %v4128_v9 }
 0x237   : > { %2378 = vst.msk [vmem:[%s3751_s22 + $0x38] sm:$0xff] %vm2370_vm8, %v2345_v60  ;;  %v2242_v43 = vadd.f32 %v2174_v32, %v2102_v41  ;;  %v1880_v13 = vpop.f32.mrf.mxu2  ;;  %2649 = vmatmul.msk.bf16.gmra.mxu1 %vm691_vm4, %v4128_v9  ;;  %v4132_v32 = vld [vmem:[#allocation5_spill] sm:$0xff]  ;;  %v1980_v60 = vshll.u32 %v3839_v10, 16  ;;  %v1984_v41 = vshrl.u32 %v3839_v10, 16 }
 0x238   : > { %v1947_v15 = vadd.f32 %v1880_v13, %v1813_v35  ;;  %v2634_v25 = vrot.slane %v4132_v32, 9  ;;  %v1702_v13 = vrot.slane %v3570_v11, 5 }
 0x239   : > { %v2278_v17 = vmul.f32 %v3733_v42, %v2242_v43 }
 0x23b   : > { %v2314_v44 = vadd.f32 %v3740_v27, %v2278_v17  ;;  %v2176_v55 = vpop.f32.mrf.mxu0 }
 0x23c   : > { %v2036_v33 = vpop.f32.mrf.mxu3  ;;  %2670 = vmatmul.msk.bf16.gmra.mxu2 %vm691_vm4, %v3563_v30  ;;  %v1751_v3 = vpop.f32.mrf.mxu1  ;;  %v4131_v30 = vld [vmem:[#allocation42_spill] sm:$0xff] }
 0x23d   : > { %v2346_v40 = vmax.f32 %v2314_v44, 0.0  ;;  %v2103_v19 = vadd.f32 %v2036_v33, %v1947_v15  ;;  %v1699_v62 = vrot.slane %v4131_v30, 5  ;;  %v1815_v43 = vadd.f32 %v1751_v3, %v3567_v49 }
 0x23e   : > { %v1976_v33 = vrot.slane %v1974_v38, 5 }
 0x23f   : > { %2379 = vst.msk [vmem:[%s3751_s22 + $0x40] sm:$0xff] %vm2370_vm8, %v2346_v40  ;;  %v2243_v48 = vadd.f32 %v2176_v55, %v2103_v19  ;;  %v1883_v39 = vpop.f32.mrf.mxu2  ;;  %v1701_v35 = vrot.slane %v1699_v62, 4  ;;  %v1700_v44 = vsel %vm3148_vm7, %v2634_v25, %v1699_v62  ;;  %v1982_v40 = vrot.slane %v1980_v60, 5 }
 0x240   : > { %v1948_v4 = vadd.f32 %v1883_v39, %v1814_v6  ;;  %v1986_v19 = vrot.slane %v1984_v41, 4 }
 0x241   : > { %v2279_v18 = vmul.f32 %v3733_v42, %v2243_v48  ;;  %2687 = vmatmul.msk.bf16.gmra.mxu3 %vm691_vm4, %v3157_v53  ;;  %v1971_v53 = vshrl.u32 %v3836_v45, 16  ;;  %v252_v48 = vld [vmem:[%s2818_s30 + $0xd4] sm:$0x1] }
 0x242   : > { %v1990_v30 = vshll.u32 %v252_v48, 16 }
 0x243   : > { %v2315_v21 = vadd.f32 %v3740_v27, %v2279_v18  ;;  %v2179_v34 = vpop.f32.mrf.mxu0  ;;  %v1973_v55 = vrot.slane %v1971_v53, 4  ;;  %v1706_v18 = vunpack.c.l.b16 %v1700_v44 }
 0x244   : > { %v2039_v24 = vpop.f32.mrf.mxu3  ;;  %v1754_v1 = vpop.f32.mrf.mxu1  ;;  %v1992_v38 = vrot.slane %v1990_v30, 5 }
 0x245   : > { %v2347_v12 = vmax.f32 %v2315_v21, 0.0  ;;  %v2104_v57 = vadd.f32 %v2039_v24, %v1948_v4  ;;  %v1977_v21 = vor.u32 %v1976_v33, %v1973_v55  ;;  %v1816_v24 = vadd.f32 %v1754_v1, %v3584_v7  ;;  %v2728_v33 = vld [vmem:[%s2818_s30 + $0xcc] sm:$0xff] }
 0x246   : > { %2705 = vmatmul.msk.bf16.gmra.mxu0 %vm691_vm4, %v3586_v46  ;;  %v2132_v55 = vrot.slane %v252_v48, 5 }
 0x247   : > { %2380 = vst.msk [vmem:[%s3751_s22 + $0x48] sm:$0xff] %vm2370_vm8, %v2347_v12  ;;  %v2244_v9 = vadd.f32 %v2179_v34, %v2104_v57  ;;  %v1885_v37 = vpop.f32.mrf.mxu2  ;;  %2650 = vmatmul.msk.bf16.gmra.mxu1 %vm691_vm4, %v3586_v46  ;;  %v1703_v46 = vsel %vm3148_vm7, %v1701_v35, %v1702_v13  ;;  %v1987_v34 = vor.u32 %v1986_v19, %v1982_v40  ;;  %v1978_v25 = vrot.slane %v1977_v21, 4 }
 0x248   : > { %v1949_v15 = vadd.f32 %v1885_v37, %v1815_v43  ;;  %v1707_v4 = vunpack.c.l.b16 %v1703_v46  ;;  %v2690_v13 = vrot.slane %v3836_v45, 9 }
 0x249   : > { %v2280_v17 = vmul.f32 %v3733_v42, %v2244_v9  ;;  %v1988_v53 = vrot.slane %v1987_v34, 4  ;;  %v2129_v9 = vrot.slane %v3839_v10, 5 }
 0x24a   : > { %v1708_v32 = vpack.c.b16 %v1707_v4, %v1706_v18 }
 0x24b   : > { %v2316_v49 = vadd.f32 %v3740_v27, %v2280_v17  ;;  %v2181_v3 = vpop.f32.mrf.mxu0  ;;  %v1993_v35 = vsel %vm2845_vm3, %v1988_v53, %v1992_v38  ;;  %v2131_v44 = vrot.slane %v2129_v9, 4  ;;  %v2130_v46 = vsel %vm3148_vm7, %v2690_v13, %v2129_v9 }
 0x24c   : > { %v2041_v50 = vpop.f32.mrf.mxu3  ;;  %2671 = vmatmul.msk.bf16.gmra.mxu2 %vm691_vm4, %v3595_v54  ;;  %v1756_v11 = vpop.f32.mrf.mxu1  ;;  %v1997_v36 = vunpack.c.l.b16 %v1993_v35  ;;  %v2136_v18 = vunpack.c.l.b16 %v2130_v46 }
 0x24d   : > { %v2348_v6 = vmax.f32 %v2316_v49, 0.0  ;;  %v2105_v39 = vadd.f32 %v2041_v50, %v1949_v15  ;;  %v1817_v10 = vadd.f32 %v1756_v11, %v3598_v28  ;;  %v2133_v28 = vsel %vm3148_vm7, %v2131_v44, %v2132_v55 }
 0x24e   : > { %v2137_v4 = vunpack.c.l.b16 %v2133_v28 }
 0x24f   : > { %2381 = vst.msk [vmem:[%s3751_s22 + $0x50] sm:$0xff] %vm2370_vm8, %v2348_v6  ;;  %v2245_v62 = vadd.f32 %v2181_v3, %v2105_v39  ;;  %v1888_v12 = vpop.f32.mrf.mxu2 }
 0x250   : > { %v1950_v54 = vadd.f32 %v1888_v12, %v1816_v24  ;;  %v2138_v24 = vpack.c.b16 %v2137_v4, %v2136_v18 }
 0x251   : > { %v2281_v57 = vmul.f32 %v3733_v42, %v2245_v62  ;;  %2688 = vmatmul.msk.bf16.gmra.mxu3 %vm691_vm4, %v3602_v22  ;;  %v1983_v22 = vsel %vm2845_vm3, %v1978_v25, %v1982_v40 }
 0x252   : > { %v1996_v49 = vunpack.c.l.b16 %v1983_v22 }
 0x253   : > { %v2317_v60 = vadd.f32 %v3740_v27, %v2281_v57  ;;  %v2184_v41 = vpop.f32.mrf.mxu0 }
 0x254   : > { %v2044_v43 = vpop.f32.mrf.mxu3  ;;  %v1759_v7 = vpop.f32.mrf.mxu1  ;;  %v1998_v39 = vpack.c.b16 %v1997_v36, %v1996_v49 }
 0x255   : > { %v2349_v1 = vmax.f32 %v2317_v60, 0.0  ;;  %v2106_v37 = vadd.f32 %v2044_v43, %v1950_v54  ;;  %v1818_v34 = vadd.f32 %v1759_v7, %v3609_v58 }
 0x256   : > { %2706 = vmatmul.msk.bf16.gmra.mxu0 %vm691_vm4, %v1708_v32 }
 0x257   : > { %2382 = vst.msk [vmem:[%s3751_s22 + $0x58] sm:$0xff] %vm2370_vm8, %v2349_v1  ;;  %v2246_v17 = vadd.f32 %v2184_v41, %v2106_v37  ;;  %v1890_v15 = vpop.f32.mrf.mxu2  ;;  %2651 = vmatmul.msk.bf16.gmra.mxu1 %vm691_vm4, %v1708_v32 }
 0x258   : > { %v1951_v40 = vadd.f32 %v1890_v15, %v1817_v10 }
 0x259   : > { %v2282_v19 = vmul.f32 %v3733_v42, %v2246_v17 }
 0x25b   : > { %v2318_v3 = vadd.f32 %v3740_v27, %v2282_v19  ;;  %v2186_v45 = vpop.f32.mrf.mxu0 }
 0x25c   : > { %v2046_v50 = vpop.f32.mrf.mxu3  ;;  %2672 = vmatmul.msk.bf16.gmra.mxu2 %vm691_vm4, %v2728_v33  ;;  %v1761_v48 = vpop.f32.mrf.mxu1 }
 0x25d   : > { %v2350_v11 = vmax.f32 %v2318_v3, 0.0  ;;  %v2107_v6 = vadd.f32 %v2046_v50, %v1951_v40  ;;  %v1819_v38 = vadd.f32 %v1761_v48, %v3614_v31 }
 0x25f   : > { %2383 = vst.msk [vmem:[%s3751_s22 + $0x60] sm:$0xff] %vm2370_vm8, %v2350_v11  ;;  %v2247_v21 = vadd.f32 %v2186_v45, %v2107_v6  ;;  %v1893_v30 = vpop.f32.mrf.mxu2 }
 0x260   : > { %v1952_v14 = vadd.f32 %v1893_v30, %v1818_v34 }
 0x261   : > { %v2283_v62 = vmul.f32 %v3733_v42, %v2247_v21  ;;  %2689 = vmatmul.msk.bf16.gmra.mxu3 %vm691_vm4, %v1998_v39 }
 0x263   : > { %v2319_v12 = vadd.f32 %v3740_v27, %v2283_v62  ;;  %v2189_v57 = vpop.f32.mrf.mxu0 }
 0x264   : > { %v2049_v54 = vpop.f32.mrf.mxu3  ;;  %v1764_v32 = vpop.f32.mrf.mxu1 }
 0x265   : > { %v2351_v25 = vmax.f32 %v2319_v12, 0.0  ;;  %v2108_v53 = vadd.f32 %v2049_v54, %v1952_v14  ;;  %v1820_v17 = vadd.f32 %v1764_v32, %v3623_v16 }
 0x266   : > { %2707 = vmatmul.msk.bf16.gmra.mxu0 %vm691_vm4, %v2138_v24 }
 0x267   : > { %2384 = vst.msk [vmem:[%s3751_s22 + $0x68] sm:$0xff] %vm2370_vm8, %v2351_v25  ;;  %v2248_v58 = vadd.f32 %v2189_v57, %v2108_v53  ;;  %v1895_v60 = vpop.f32.mrf.mxu2 }
 0x268   : > { %v1953_v9 = vadd.f32 %v1895_v60, %v1819_v38 }
 0x269   : > { %v2284_v41 = vmul.f32 %v3733_v42, %v2248_v58 }
 0x26b   : > { %v2320_v43 = vadd.f32 %v3740_v27, %v2284_v41  ;;  %v2191_v7 = vpop.f32.mrf.mxu0 }
 0x26c   : > { %v2051_v1 = vpop.f32.mrf.mxu3  ;;  %v1766_v37 = vpop.f32.mrf.mxu1 }
 0x26d   : > { %v2352_v22 = vmax.f32 %v2320_v43, 0.0  ;;  %v2109_v35 = vadd.f32 %v2051_v1, %v1953_v9  ;;  %v1821_v3 = vadd.f32 %v1766_v37, %v3628_v26 }
 0x26f   : > { %2385 = vst.msk [vmem:[%s3751_s22 + $0x70] sm:$0xff] %vm2370_vm8, %v2352_v22  ;;  %v2249_v13 = vadd.f32 %v2191_v7, %v2109_v35  ;;  %v1898_v10 = vpop.f32.mrf.mxu2 }
 0x270   : > { %v1954_v15 = vadd.f32 %v1898_v10, %v1820_v17 }
 0x271   : > { %v2285_v31 = vmul.f32 %v3733_v42, %v2249_v13 }
 0x273   : > { %v2321_v44 = vadd.f32 %v3740_v27, %v2285_v31  ;;  %v2194_v55 = vpop.f32.mrf.mxu0 }
 0x274   : > { %v2054_v33 = vpop.f32.mrf.mxu3  ;;  %v1769_v19 = vpop.f32.mrf.mxu1 }
 0x275   : > { %v2353_v40 = vmax.f32 %v2321_v44, 0.0  ;;  %v2110_v49 = vadd.f32 %v2054_v33, %v1954_v15  ;;  %v1822_v4 = vadd.f32 %v1769_v19, %v3637_v59 }
 0x277   : > { %2386 = vst.msk [vmem:[%s3751_s22 + $0x78] sm:$0xff] %vm2370_vm8, %v2353_v40  ;;  %v2250_v36 = vadd.f32 %v2194_v55, %v2110_v49  ;;  %v1900_v45 = vpop.f32.mrf.mxu2 }
 0x278   : > { %v1955_v46 = vadd.f32 %v1900_v45, %v1821_v3 }
 0x279   : > { %v2286_v16 = vmul.f32 %v3733_v42, %v2250_v36 }
 0x27b   : > { %v2322_v28 = vadd.f32 %v3740_v27, %v2286_v16  ;;  %v2196_v50 = vpop.f32.mrf.mxu0 }
 0x27c   : > { %v2056_v48 = vpop.f32.mrf.mxu3  ;;  %v1771_v11 = vpop.f32.mrf.mxu1 }
 0x27d   : > { %v2354_v6 = vmax.f32 %v2322_v28, 0.0  ;;  %v2111_v39 = vadd.f32 %v2056_v48, %v1955_v46  ;;  %v1823_v32 = vadd.f32 %v1771_v11, %v3642_v47 }
 0x27f   : > { %2387 = vst.msk [vmem:[%s3751_s22 + $0x80] sm:$0xff] %vm2370_vm8, %v2354_v6  ;;  %v2251_v18 = vadd.f32 %v2196_v50, %v2111_v39  ;;  %v1903_v21 = vpop.f32.mrf.mxu2 }
 0x280   : > { %v1956_v34 = vadd.f32 %v1903_v21, %v1822_v4 }
 0x281   : > { %v2287_v26 = vmul.f32 %v3733_v42, %v2251_v18 }
 0x283   : > { %v2323_v30 = vadd.f32 %v3740_v27, %v2287_v26  ;;  %v2199_v62 = vpop.f32.mrf.mxu0 }
 0x284   : > { %v2059_v14 = vpop.f32.mrf.mxu3  ;;  %v1774_v24 = vpop.f32.mrf.mxu1 }
 0x285   : > { %v2355_v12 = vmax.f32 %v2323_v30, 0.0  ;;  %v2112_v57 = vadd.f32 %v2059_v14, %v1956_v34  ;;  %v1824_v1 = vadd.f32 %v1774_v24, %v3651_v23 }
 0x287   : > { %2388 = vst.msk [vmem:[%s3751_s22 + $0x88] sm:$0xff] %vm2370_vm8, %v2355_v12  ;;  %v2252_v54 = vadd.f32 %v2199_v62, %v2112_v57  ;;  %v1905_v25 = vpop.f32.mrf.mxu2 }
 0x288   : > { %v1957_v53 = vadd.f32 %v1905_v25, %v1823_v32 }
 0x289   : > { %v2288_v59 = vmul.f32 %v3733_v42, %v2252_v54 }
 0x28b   : > { %v2324_v58 = vadd.f32 %v3740_v27, %v2288_v59  ;;  %v2201_v38 = vpop.f32.mrf.mxu0 }
 0x28c   : > { %v2061_v60 = vpop.f32.mrf.mxu3  ;;  %v1776_v41 = vpop.f32.mrf.mxu1 }
 0x28d   : > { %v2356_v9 = vmax.f32 %v2324_v58, 0.0  ;;  %v2113_v43 = vadd.f32 %v2061_v60, %v1957_v53  ;;  %v1825_v55 = vadd.f32 %v1776_v41, %v3656_v61 }
 0x28f   : > { %2389 = vst.msk [vmem:[%s3751_s22 + $0x90] sm:$0xff] %vm2370_vm8, %v2356_v9  ;;  %v2253_v7 = vadd.f32 %v2201_v38, %v2113_v43  ;;  %v1908_v37 = vpop.f32.mrf.mxu2 }
 0x290   : > { %v1958_v22 = vadd.f32 %v1908_v37, %v1824_v1 }
 0x291   : > { %v2289_v47 = vmul.f32 %v3733_v42, %v2253_v7 }
 0x293   : > { %v2325_v35 = vadd.f32 %v3740_v27, %v2289_v47  ;;  %v2204_v13 = vpop.f32.mrf.mxu0 }
 0x294   : > { %v2064_v17 = vpop.f32.mrf.mxu3  ;;  %v1779_v10 = vpop.f32.mrf.mxu1 }
 0x295   : > { %v2357_v31 = vmax.f32 %v2325_v35, 0.0  ;;  %v2114_v15 = vadd.f32 %v2064_v17, %v1958_v22  ;;  %v1826_v28 = vadd.f32 %v1779_v10, %v3665_v56 }
 0x297   : > { %2390 = vst.msk [vmem:[%s3751_s22 + $0x98] sm:$0xff] %vm2370_vm8, %v2357_v31  ;;  %v2254_v44 = vadd.f32 %v2204_v13, %v2114_v15  ;;  %v1910_v33 = vpop.f32.mrf.mxu2 }
 0x298   : > { %v1959_v19 = vadd.f32 %v1910_v33, %v1825_v55 }
 0x299   : > { %v2290_v23 = vmul.f32 %v3733_v42, %v2254_v44 }
 0x29b   : > { %v2326_v40 = vadd.f32 %v3740_v27, %v2290_v23  ;;  %v2206_v49 = vpop.f32.mrf.mxu0 }
 0x29c   : > { %v2066_v36 = vpop.f32.mrf.mxu3  ;;  %v1781_v3 = vpop.f32.mrf.mxu1 }
 0x29d   : > { %v2358_v45 = vmax.f32 %v2326_v40, 0.0  ;;  %v2115_v16 = vadd.f32 %v2066_v36, %v1959_v19  ;;  %v1827_v34 = vadd.f32 %v1781_v3, %v3670_v0 }
 0x29f   : > { %2391 = vst.msk [vmem:[%s3751_s22 + $0xa0] sm:$0xff] %vm2370_vm8, %v2358_v45  ;;  %v2255_v46 = vadd.f32 %v2206_v49, %v2115_v16  ;;  %v1913_v50 = vpop.f32.mrf.mxu2 }
 0x2a0   : > { %v1960_v48 = vadd.f32 %v1913_v50, %v1826_v28 }
 0x2a1   : > { %v2291_v61 = vmul.f32 %v3733_v42, %v2255_v46 }
 0x2a3   : > { %v2327_v11 = vadd.f32 %v3740_v27, %v2291_v61  ;;  %v2209_v6 = vpop.f32.mrf.mxu0 }
 0x2a4   : > { %v2069_v39 = vpop.f32.mrf.mxu3  ;;  %v1784_v18 = vpop.f32.mrf.mxu1 }
 0x2a5   : > { %v2359_v4 = vmax.f32 %v2327_v11, 0.0  ;;  %v2116_v21 = vadd.f32 %v2069_v39, %v1960_v48  ;;  %v1828_v59 = vadd.f32 %v1784_v18, %v3679_v29 }
 0x2a7   : > { %2392 = vst.msk [vmem:[%s3751_s22 + $0xa8] sm:$0xff] %vm2370_vm8, %v2359_v4  ;;  %v2256_v26 = vadd.f32 %v2209_v6, %v2116_v21  ;;  %v1915_v30 = vpop.f32.mrf.mxu2 }
 0x2a8   : > { %v1961_v62 = vadd.f32 %v1915_v30, %v1827_v34 }
 0x2a9   : > { %v2292_v56 = vmul.f32 %v3733_v42, %v2256_v26 }
 0x2ab   : > { %v2328_v14 = vadd.f32 %v3740_v27, %v2292_v56  ;;  %v2211_v24 = vpop.f32.mrf.mxu0 }
 0x2ac   : > { %v2071_v12 = vpop.f32.mrf.mxu3  ;;  %v1786_v57 = vpop.f32.mrf.mxu1 }
 0x2ad   : > { %v2360_v54 = vmax.f32 %v2328_v14, 0.0  ;;  %v2117_v32 = vadd.f32 %v2071_v12, %v1961_v62  ;;  %v1829_v37 = vadd.f32 %v1786_v57, %v3684_v52 }
 0x2af   : > { %2393 = vst.msk [vmem:[%s3751_s22 + $0xb0] sm:$0xff] %vm2370_vm8, %v2360_v54  ;;  %v2257_v25 = vadd.f32 %v2211_v24, %v2117_v32  ;;  %v1918_v53 = vpop.f32.mrf.mxu2 }
 0x2b0   : > { %v1962_v58 = vadd.f32 %v1918_v53, %v1828_v59 }
 0x2b1   : > { %v2293_v0 = vmul.f32 %v3733_v42, %v2257_v25 }
 0x2b3   : > { %v2329_v38 = vadd.f32 %v3740_v27, %v2293_v0  ;;  %v2214_v60 = vpop.f32.mrf.mxu0 }
 0x2b4   : > { %v2074_v41 = vpop.f32.mrf.mxu3  ;;  %v1789_v9 = vpop.f32.mrf.mxu1 }
 0x2b5   : > { %v2361_v43 = vmax.f32 %v2329_v38, 0.0  ;;  %v2118_v7 = vadd.f32 %v2074_v41, %v1962_v58  ;;  %v1830_v55 = vadd.f32 %v1789_v9, %v3693_v20 }
 0x2b7   : > { %2394 = vst.msk [vmem:[%s3751_s22 + $0xb8] sm:$0xff] %vm2370_vm8, %v2361_v43  ;;  %v2258_v1 = vadd.f32 %v2214_v60, %v2118_v7  ;;  %v1920_v47 = vpop.f32.mrf.mxu2 }
 0x2b8   : > { %v1963_v22 = vadd.f32 %v1920_v47, %v1829_v37 }
 0x2b9   : > { %v2294_v29 = vmul.f32 %v3733_v42, %v2258_v1 }
 0x2bb   : > { %v2330_v35 = vadd.f32 %v3740_v27, %v2294_v29  ;;  %v2216_v13 = vpop.f32.mrf.mxu0 }
 0x2bc   : > { %v2076_v17 = vpop.f32.mrf.mxu3  ;;  %v1791_v10 = vpop.f32.mrf.mxu1 }
 0x2bd   : > { %v2362_v31 = vmax.f32 %v2330_v35, 0.0  ;;  %v2119_v15 = vadd.f32 %v2076_v17, %v1963_v22  ;;  %v1831_v46 = vadd.f32 %v1791_v10, %v3698_v8 }
 0x2bf   : > { %2395 = vst.msk [vmem:[%s3751_s22 + $0xc0] sm:$0xff] %vm2370_vm8, %v2362_v31  ;;  %v2259_v44 = vadd.f32 %v2216_v13, %v2119_v15  ;;  %v1923_v33 = vpop.f32.mrf.mxu2 }
 0x2c0   : > { %v1964_v23 = vadd.f32 %v1923_v33, %v1830_v55 }
 0x2c1   : > { %v2295_v52 = vmul.f32 %v3733_v42, %v2259_v44 }
 0x2c3   : > { %v2331_v19 = vadd.f32 %v3740_v27, %v2295_v52  ;;  %v2219_v40 = vpop.f32.mrf.mxu0 }
 0x2c4   : > { %v2079_v49 = vpop.f32.mrf.mxu3  ;;  %v1794_v45 = vpop.f32.mrf.mxu1 }
 0x2c5   : > { %v2363_v36 = vmax.f32 %v2331_v19, 0.0  ;;  %v2120_v3 = vadd.f32 %v2079_v49, %v1964_v23  ;;  %v1832_v4 = vadd.f32 %v1794_v45, %v3707_v51 }
 0x2c7   : > { %2396 = vst.msk [vmem:[%s3751_s22 + $0xc8] sm:$0xff] %vm2370_vm8, %v2363_v36  ;;  %v2260_v16 = vadd.f32 %v2219_v40, %v2120_v3  ;;  %v1925_v28 = vpop.f32.mrf.mxu2 }
 0x2c8   : > { %v1965_v50 = vadd.f32 %v1925_v28, %v1831_v46 }
 0x2c9   : > { %v2296_v20 = vmul.f32 %v3733_v42, %v2260_v16 }
 0x2cb   : > { %v2332_v61 = vadd.f32 %v3740_v27, %v2296_v20  ;;  %v2221_v48 = vpop.f32.mrf.mxu0 }
 0x2cc   : > { %v2081_v11 = vpop.f32.mrf.mxu3  ;;  %v1796_v26 = vpop.f32.mrf.mxu1 }
 0x2cd   : > { %v2364_v6 = vmax.f32 %v2332_v61, 0.0  ;;  %v2121_v39 = vadd.f32 %v2081_v11, %v1965_v50  ;;  %v1833_v57 = vadd.f32 %v1796_v26, %v3712_v63 }
 0x2cf   : > { %2397 = vst.msk [vmem:[%s3751_s22 + $0xd0] sm:$0xff] %vm2370_vm8, %v2364_v6  ;;  %v2261_v18 = vadd.f32 %v2221_v48, %v2121_v39  ;;  %v1928_v21 = vpop.f32.mrf.mxu2 }
 0x2d0   : > { %v1966_v34 = vadd.f32 %v1928_v21, %v1832_v4 }
 0x2d1   : > { %v2297_v8 = vmul.f32 %v3733_v42, %v2261_v18 }
 0x2d3   : > { %v2333_v30 = vadd.f32 %v3740_v27, %v2297_v8  ;;  %v2224_v56 = vpop.f32.mrf.mxu0 }
 0x2d4   : > { %v2084_v62 = vpop.f32.mrf.mxu3  ;;  %v1799_v25 = vpop.f32.mrf.mxu1 }
 0x2d5   : > { %v2365_v14 = vmax.f32 %v2333_v30, 0.0  ;;  %v2122_v24 = vadd.f32 %v2084_v62, %v1966_v34  ;;  %v1834_v41 = vadd.f32 %v1799_v25, %v3721_v2 }
 0x2d7   : > { %2398 = vst.msk [vmem:[%s3751_s22 + $0xd8] sm:$0xff] %vm2370_vm8, %v2365_v14  ;;  %v2262_v12 = vadd.f32 %v2224_v56, %v2122_v24  ;;  %v1930_v54 = vpop.f32.mrf.mxu2 }
 0x2d8   : > { %v1967_v32 = vadd.f32 %v1930_v54, %v1833_v57 }
 0x2d9   : > { %v2298_v51 = vmul.f32 %v3733_v42, %v2262_v12 }
 0x2db   : > { %v2334_v59 = vadd.f32 %v3740_v27, %v2298_v51  ;;  %v2226_v53 = vpop.f32.mrf.mxu0 }
 0x2dc   : > { %v2086_v0 = vpop.f32.mrf.mxu3  ;;  %v1801_v1 = vpop.f32.mrf.mxu1 }
 0x2dd   : > { %v2366_v58 = vmax.f32 %v2334_v59, 0.0  ;;  %v2123_v38 = vadd.f32 %v2086_v0, %v1967_v32  ;;  %v1835_v13 = vadd.f32 %v1801_v1, %v3726_v5 }
 0x2df   : > { %2399 = vst.msk [vmem:[%s3751_s22 + $0xe0] sm:$0xff] %vm2370_vm8, %v2366_v58  ;;  %v2263_v60 = vadd.f32 %v2226_v53, %v2123_v38  ;;  %v1933_v9 = vpop.f32.mrf.mxu2 }
 0x2e0   : > { %v1968_v43 = vadd.f32 %v1933_v9, %v1834_v41 }
 0x2e1   : > { %v2299_v63 = vmul.f32 %v3733_v42, %v2263_v60 }
 0x2e3   : > { %v2335_v7 = vadd.f32 %v3740_v27, %v2299_v63  ;;  %v2229_v37 = vpop.f32.mrf.mxu0 }
 0x2e4   : > { %v2089_v47 = vpop.f32.mrf.mxu3 }
 0x2e5   : > { %v2367_v29 = vmax.f32 %v2335_v7, 0.0  ;;  %v2124_v22 = vadd.f32 %v2089_v47, %v1968_v43 }
 0x2e7   : > { %2400 = vst.msk [vmem:[%s3751_s22 + $0xe8] sm:$0xff] %vm2370_vm8, %v2367_v29  ;;  %v2264_v35 = vadd.f32 %v2229_v37, %v2124_v22  ;;  %v1935_v17 = vpop.f32.mrf.mxu2 }
 0x2e8   : > { %v1969_v10 = vadd.f32 %v1935_v17, %v1835_v13 }
 0x2e9   : > { %v2300_v2 = vmul.f32 %v3733_v42, %v2264_v35 }
 0x2eb   : > { %v2336_v31 = vadd.f32 %v3740_v27, %v2300_v2  ;;  %v2231_v33 = vpop.f32.mrf.mxu0 }
 0x2ec   : > { %v2091_v15 = vpop.f32.mrf.mxu3 }
 0x2ed   : > { %v2368_v44 = vmax.f32 %v2336_v31, 0.0  ;;  %v2125_v55 = vadd.f32 %v2091_v15, %v1969_v10 }
 0x2ef   : > { %2401 = vst.msk [vmem:[%s3751_s22 + $0xf0] sm:$0xff] %vm2370_vm8, %v2368_v44  ;;  %v2265_v52 = vadd.f32 %v2231_v33, %v2125_v55 }
 0x2f1   : > { %v2301_v23 = vmul.f32 %v3733_v42, %v2265_v52 }
 0x2f3   : > { %v2337_v19 = vadd.f32 %v3740_v27, %v2301_v23 }
 0x2f5   : > { %v2369_v40 = vmax.f32 %v2337_v19, 0.0 }
 0x2f7   : > { %2402 = vst.msk [vmem:[%s3751_s22 + $0xf8] sm:$0xff] %vm2370_vm8, %v2369_v40 }
 0x2f8 PF: > { %s14_s15 = sadd.s32 1, %s2757_s15  }
 0x2f9   : > { %p11_p4 = scmp.ge.s32.totalorder %s14_s15, 4  }
 0x2fb   :  { %13 = sbr.rel (!%p11_p4) target bundleno = 1 (0x1), region = 74 }

</bundles_post_ra>
